<compile_context>
chip_gen: v5e
topology: v5e:2x2
jax: 0.10.0
libtpu: 0.0.40
codegen_flags: <defaults>
</compile_context>

<pallas_src>
import functools
import math

import jax
import jax.numpy as jnp
from jax.experimental import pallas as pl
from jax.experimental.pallas import tpu as pltpu


# --------------------------------------------------------------------------- #
# Fused per-stream Pallas kernel (one grid step = one of the int/pop streams)
# --------------------------------------------------------------------------- #
def _dice_stream_kernel(
        # per-stream activations (leading stream axis squeezed away by BlockSpec)
        his_ref, u_lt_ref, u_st_ref, item_ref, cat_ref,
        # LongTermInterestModule (eval BN folded into W2/b2)
        lt_Wl_ref, lt_W1_ref, lt_b1_ref, lt_W2_ref, lt_b2_ref,
        # fused GRU input-gate weights: [short-term | fusion] along the output axis
        gru_wih_ref, gru_bih_ref,
        # ShortTermInterestModule GRU hidden + attention (eval BN folded into W2/b2)
        st_whh_ref, st_bhh_ref,
        st_Ws_ref, st_W1_ref, st_b1_ref, st_W2_ref, st_b2_ref,
        # InterestFusionModule GRU hidden
        if_whh_ref, if_bhh_ref,
        # InterestFusionModule head (eval BN folded into Wa2/ba2 and Wp1/bp1)
        Wa1_ref, ba1_ref, Wa2_ref, ba2_ref, Wp1_ref, bp1_ref, Wp2_ref, bp2_ref,
        # outputs
        zl_ref, zs_ref, con_ref, y_ref,
        *, gamma):
    f32 = jnp.float32
    B, S, Dc = his_ref.shape
    H = st_whh_ref.shape[0]

    his = his_ref[...].astype(f32)                         # (B, S, Dc)
    his_flat = his.reshape(B * S, Dc)
    u_lt = u_lt_ref[...]
    u_st = u_st_ref[...]

    # ---- bulk input matmuls hoisted off any serial path (single MXU pushes) ----
    gi_all = (jnp.dot(his_flat, gru_wih_ref[...], preferred_element_type=f32)
              + gru_bih_ref[...]).reshape(B, S, 6 * H)     # [st gates | if gates]
    h_lt = jnp.dot(his_flat, lt_Wl_ref[...],
                   preferred_element_type=f32).reshape(B, S, Dc)

    def softmax_rows(x):                                   # softmax over the last (lane) axis
        m = jnp.max(x, axis=-1, keepdims=True)
        e = jnp.exp(x - m)
        return e * pl.reciprocal(jnp.sum(e, axis=-1, keepdims=True), approx=True)

    def att_logits(h3, u2, W1, b1, W2, b2):
        """4-way attention feature MLP -> (B, S) logits, one K=4*Dc contraction."""
        u3 = u2[:, None, :]
        feat = jnp.concatenate(
            [h3, jnp.broadcast_to(u3, (B, S, Dc)), h3 - u3, h3 * u3], axis=-1)
        x1 = jnp.maximum(
            jnp.dot(feat.reshape(B * S, 4 * Dc), W1,
                    preferred_element_type=f32) + b1, 0.0)
        return jnp.sum(x1.reshape(B, S, Dc) * W2, axis=-1) + b2

    # ---- long-term attention ----
    a_lt = softmax_rows(att_logits(h_lt, u_lt, lt_W1_ref[...], lt_b1_ref[...],
                                   lt_W2_ref[...], lt_b2_ref[...]))

    # ---- short-term GRU + fusion GRU: S is static -> fully unrolled; the two
    #      independent recurrences are interleaved so their h@Whh pushes pipeline ----
    whh_st = st_whh_ref[...]
    bhh_st = st_bhh_ref[...]
    whh_if = if_whh_ref[...]
    bhh_if = if_bhh_ref[...]

    def gru_step(h, gi, whh, bhh):
        gh = jnp.dot(h, whh, preferred_element_type=f32) + bhh
        r = jax.nn.sigmoid(gi[:, 0:H] + gh[:, 0:H])
        z = jax.nn.sigmoid(gi[:, H:2 * H] + gh[:, H:2 * H])
        n = jnp.tanh(gi[:, 2 * H:3 * H] + r * gh[:, 2 * H:3 * H])
        return (1.0 - z) * n + z * h

    h_st = jnp.zeros((B, H), f32)
    h_if = jnp.zeros((B, H), f32)
    o_st_steps = []
    for t in range(S):
        h_st = gru_step(h_st, gi_all[:, t, 0:3 * H], whh_st, bhh_st)
        h_if = gru_step(h_if, gi_all[:, t, 3 * H:6 * H], whh_if, bhh_if)
        o_st_steps.append(h_st)

    # ---- short-term attention: bulk B*S-row matmuls, completely off the recurrence ----
    o_st = jnp.concatenate([h[:, None, :] for h in o_st_steps], axis=1)  # (B, S, H)
    hp = jnp.dot(o_st.reshape(B * S, H), st_Ws_ref[...],
                 preferred_element_type=f32).reshape(B, S, Dc)
    a_st = softmax_rows(att_logits(hp, u_st, st_W1_ref[...], st_b1_ref[...],
                                   st_W2_ref[...], st_b2_ref[...]))

    # ---- attention readout + interest proxies (tiny VPU work, unrolled) ----
    disc = [float(gamma) ** (S - 1 - s) for s in range(S)]
    dsum = float(sum(disc))
    z_l = jnp.zeros((B, Dc), f32)
    z_s = jnp.zeros((B, Dc), f32)
    p_l = jnp.zeros((B, Dc), f32)
    p_s = jnp.zeros((B, Dc), f32)
    for s in range(S):
        hs = his[:, s, :]
        z_l = z_l + a_lt[:, s:s + 1] * hs
        z_s = z_s + a_st[:, s:s + 1] * hs
        p_l = p_l + (1.0 / S) * hs
        p_s = p_s + (disc[s] / dsum) * hs

    # ---- contrastive (softplus BPR) loss, per sample ----
    def bpr(a, pos, neg):
        return jax.nn.softplus(jnp.sum(a * neg, axis=1, keepdims=True)
                               - jnp.sum(a * pos, axis=1, keepdims=True))

    con = (bpr(z_l, p_l, p_s) + bpr(p_l, z_l, z_s)
           + bpr(z_s, p_s, p_l) + bpr(p_s, z_s, z_l))                             # (B, 1)

    # ---- fusion head on [pos; neg] stacked rows (2B), reusing h_if / z_l / z_s ----
    z_l2 = jnp.concatenate([z_l, z_l], axis=0)
    z_s2 = jnp.concatenate([z_s, z_s], axis=0)
    h_l2 = jnp.concatenate([h_if, h_if], axis=0)
    alpha_in = jnp.concatenate([h_l2, z_l2, z_s2], axis=-1)                       # (2B, H+2Dc)
    a1 = jnp.maximum(jnp.dot(alpha_in, Wa1_ref[...], preferred_element_type=f32)
                     + ba1_ref[...], 0.0)
    alpha = jax.nn.sigmoid(jnp.sum(a1 * Wa2_ref[...], axis=-1, keepdims=True) + ba2_ref[...])
    z_t = alpha * z_l2 + (1.0 - alpha) * z_s2
    pred_in = jnp.concatenate([z_t, item_ref[...], cat_ref[...]], axis=-1)        # (2B, Dc+2De)
    p1 = jnp.dot(pred_in, Wp1_ref[...], preferred_element_type=f32) + bp1_ref[...]
    y = jax.nn.sigmoid(jnp.dot(p1, Wp2_ref[...], preferred_element_type=f32) + bp2_ref[...])

    zl_ref[...] = z_l.astype(zl_ref.dtype)
    zs_ref[...] = z_s.astype(zs_ref.dtype)
    con_ref[...] = con.astype(con_ref.dtype)
    y_ref[...] = y.astype(y_ref.dtype)


# --------------------------------------------------------------------------- #
# BlockSpec plumbing
# --------------------------------------------------------------------------- #
def _stream_spec(block_shape):
    """Per-stream tensor (2, ...): leading stream axis indexed by the grid and squeezed."""
    nd = len(block_shape)
    return pl.BlockSpec((pl.Squeezed(),) + tuple(block_shape),
                        lambda s, _nd=nd: (s,) + (0,) * _nd)


def _weight_spec(shape):
    """Whole-array weight block, identical for both grid steps (stays resident, no re-DMA)."""
    nd = len(shape)
    return pl.BlockSpec(tuple(shape), lambda s, _nd=nd: (0,) * _nd)


# --------------------------------------------------------------------------- #
# Parameter construction (deterministic, synthetic)
# --------------------------------------------------------------------------- #
def init_params(key, cfg, num_users, num_items, num_cats):
    De = cfg.embedding_dim
    Dc = 2 * De
    H = cfg.hidden_dim
    O = cfg.output_dim
    f32 = jnp.float32
    kit = iter(jax.random.split(key, 64))

    def u(shape, scale=0.1):
        return jax.random.uniform(next(kit), shape, f32, -scale, scale)

    eps = 1e-5
    bns = lambda d: jnp.full((1, d), 1.0 / (1.0 + eps) ** 0.5, f32)   # BN eval scale
    bnb = lambda d: jnp.zeros((1, d), f32)                             # BN eval shift

    stdv = 1.0 / math.sqrt(De)
    p = {}
    p['users_int'] = u((num_users, De), stdv)
    p['users_pop'] = u((num_users, De), stdv)
    p['items_int'] = u((num_items, De), stdv).at[0].set(0.0)   # padding_idx=0
    p['items_pop'] = u((num_items, De), stdv).at[0].set(0.0)
    p['cats_int'] = u((num_cats, De), stdv).at[0].set(0.0)
    p['cats_pop'] = u((num_cats, De), stdv).at[0].set(0.0)

    # LongTermInterestModule
    p['lt_Wl'] = u((Dc, Dc))
    p['lt_W1'] = u((4 * Dc, Dc)); p['lt_b1'] = jnp.zeros((1, Dc), f32)
    p['lt_bn_s'] = bns(Dc); p['lt_bn_b'] = bnb(Dc)
    p['lt_W2'] = u((1, Dc)); p['lt_b2'] = jnp.zeros((1, 1), f32)
    p['lt_Wu'] = u((De, Dc)); p['lt_bu'] = jnp.zeros((1, Dc), f32)
    p['lt_ubn_s'] = bns(Dc); p['lt_ubn_b'] = bnb(Dc)

    # ShortTermInterestModule
    p['st_gru_wih'] = u((Dc, 3 * H)); p['st_gru_whh'] = u((H, 3 * H))
    p['st_gru_bih'] = jnp.zeros((1, 3 * H), f32); p['st_gru_bhh'] = jnp.zeros((1, 3 * H), f32)
    p['st_Ws'] = u((H, Dc))
    p['st_W1'] = u((4 * Dc, Dc)); p['st_b1'] = jnp.zeros((1, Dc), f32)
    p['st_bn_s'] = bns(Dc); p['st_bn_b'] = bnb(Dc)
    p['st_W2'] = u((1, Dc)); p['st_b2'] = jnp.zeros((1, 1), f32)
    p['st_Wu'] = u((De, Dc)); p['st_bu'] = jnp.zeros((1, Dc), f32)
    p['st_ubn_s'] = bns(Dc); p['st_ubn_b'] = bnb(Dc)

    # InterestFusionModule
    p['if_gru_wih'] = u((Dc, 3 * H)); p['if_gru_whh'] = u((H, 3 * H))
    p['if_gru_bih'] = jnp.zeros((1, 3 * H), f32); p['if_gru_bhh'] = jnp.zeros((1, 3 * H), f32)
    p['if_Wa1'] = u((H + 2 * Dc, H)); p['if_ba1'] = jnp.zeros((1, H), f32)
    p['if_bna_s'] = bns(H); p['if_bna_b'] = bnb(H)
    p['if_Wa2'] = u((1, H)); p['if_ba2'] = jnp.zeros((1, 1), f32)
    p['if_Wp1'] = u((2 * Dc, O)); p['if_bp1'] = jnp.zeros((1, O), f32)
    p['if_bnp_s'] = bns(O); p['if_bnp_b'] = bnb(O)
    p['if_Wp2'] = u((O, O)); p['if_bp2'] = jnp.zeros((1, O), f32)
    return p


# --------------------------------------------------------------------------- #
# DICE forward (JAX glue + single fused Pallas kernel)
# --------------------------------------------------------------------------- #
def dice_forward(params, batch, cfg):
    p = params
    De = cfg.embedding_dim
    Dc = 2 * De
    H = cfg.hidden_dim
    O = cfg.output_dim
    f32 = jnp.float32

    user_ids = batch['user']
    user_int = p['users_int'][user_ids]
    user_pop = p['users_pop'][user_ids]
    pos_item_int = p['items_int'][batch['pos_item']]
    pos_item_pop = p['items_pop'][batch['pos_item']]
    neg_item_int = p['items_int'][batch['neg_item']]
    neg_item_pop = p['items_pop'][batch['neg_item']]
    pos_cat_int = p['cats_int'][batch['pos_cat']]
    pos_cat_pop = p['cats_pop'][batch['pos_cat']]
    neg_cat_int = p['cats_int'][batch['neg_cat']]
    neg_cat_pop = p['cats_pop'][batch['neg_cat']]
    mask = batch['mask']

    his_int = jnp.concatenate([p['items_int'][batch['item_his']],
                               p['cats_int'][batch['cat_his']]], axis=-1)
    his_pop = jnp.concatenate([p['items_pop'][batch['item_his']],
                               p['cats_pop'][batch['cat_his']]], axis=-1)
    B, S, _ = his_int.shape

    # ---- stack the independent int/pop streams along a leading axis (grid axis) ----
    his2 = jnp.stack([his_int, his_pop], axis=0).astype(f32)                   # (2, B, S, Dc)
    user2 = jnp.stack([user_int, user_pop], axis=0).astype(f32)                # (2, B, De)
    item_pn = jnp.stack(
        [jnp.concatenate([pos_item_int, neg_item_int], axis=0),
         jnp.concatenate([pos_item_pop, neg_item_pop], axis=0)], axis=0).astype(f32)  # (2, 2B, De)
    cat_pn = jnp.stack(
        [jnp.concatenate([pos_cat_int, neg_cat_int], axis=0),
         jnp.concatenate([pos_cat_pop, neg_cat_pop], axis=0)], axis=0).astype(f32)

    # ---- wrapper-side parameter plumbing: user transform + eval-mode BN folding ----
    u_lt = (user2 @ p['lt_Wu'] + p['lt_bu']) * p['lt_ubn_s'] + p['lt_ubn_b']   # (2, B, Dc)
    u_st = (user2 @ p['st_Wu'] + p['st_bu']) * p['st_ubn_s'] + p['st_ubn_b']

    lt_W2e = p['lt_W2'] * p['lt_bn_s']
    lt_b2e = p['lt_b2'] + jnp.sum(p['lt_bn_b'] * p['lt_W2'], axis=-1, keepdims=True)
    st_W2e = p['st_W2'] * p['st_bn_s']
    st_b2e = p['st_b2'] + jnp.sum(p['st_bn_b'] * p['st_W2'], axis=-1, keepdims=True)
    if_Wa2e = p['if_Wa2'] * p['if_bna_s']
    if_ba2e = p['if_ba2'] + jnp.sum(p['if_bna_b'] * p['if_Wa2'], axis=-1, keepdims=True)
    if_Wp1e = p['if_Wp1'] * p['if_bnp_s']
    if_bp1e = p['if_bp1'] * p['if_bnp_s'] + p['if_bnp_b']

    # fuse the two GRU input-gate matmuls into one (Dc, 6H) contraction
    gru_wih = jnp.concatenate([p['st_gru_wih'], p['if_gru_wih']], axis=1)      # (Dc, 6H)
    gru_bih = jnp.concatenate([p['st_gru_bih'], p['if_gru_bih']], axis=1)      # (1, 6H)

    weights = [
        p['lt_Wl'], p['lt_W1'], p['lt_b1'], lt_W2e, lt_b2e,
        gru_wih, gru_bih,
        p['st_gru_whh'], p['st_gru_bhh'],
        p['st_Ws'], p['st_W1'], p['st_b1'], st_W2e, st_b2e,
        p['if_gru_whh'], p['if_gru_bhh'],
        p['if_Wa1'], p['if_ba1'], if_Wa2e, if_ba2e,
        if_Wp1e, if_bp1e, p['if_Wp2'], p['if_bp2'],
    ]

    kernel = functools.partial(_dice_stream_kernel, gamma=float(cfg.gamma))
    z_l, z_s, con, y = pl.pallas_call(
        kernel,
        grid=(2,),                                          # stream axis: 0 = int, 1 = pop
        in_specs=([_stream_spec((B, S, Dc)),
                   _stream_spec((B, Dc)), _stream_spec((B, Dc)),
                   _stream_spec((2 * B, De)), _stream_spec((2 * B, De))]
                  + [_weight_spec(w.shape) for w in weights]),
        out_specs=(_stream_spec((B, Dc)), _stream_spec((B, Dc)),
                   _stream_spec((B, 1)), _stream_spec((2 * B, O))),
        out_shape=(jax.ShapeDtypeStruct((2, B, Dc), f32),
                   jax.ShapeDtypeStruct((2, B, Dc), f32),
                   jax.ShapeDtypeStruct((2, B, 1), f32),
                   jax.ShapeDtypeStruct((2, 2 * B, O), f32)),
        compiler_params=pltpu.CompilerParams(
            dimension_semantics=("parallel",)),             # 2 TCs on v7x, serial elsewhere
    )(his2, u_lt, u_st, item_pn, cat_pn, *weights)

    # ---------------- scalar loss arithmetic (JAX glue) ----------------
    z_l_int, z_l_pop = z_l[0], z_l[1]
    z_s_int, z_s_pop = z_s[0], z_s[1]
    loss_con = con[0, :, 0] + con[1, :, 0]                               # (B,)

    def mse(a, b):
        return jnp.mean((a - b) ** 2)

    loss_disc_base = (cfg.discrepancy_weight * mse(z_l_int, z_s_int)
                      + cfg.discrepancy_weight * mse(z_l_pop, z_s_pop))
    reg_loss = cfg.reg_weight * sum(jnp.sqrt(jnp.sum(v ** 2)) for v in p.values())
    loss_base = loss_con + loss_disc_base + reg_loss

    pos_y_int, neg_y_int = y[0, :B], y[0, B:]
    pos_y_pop, neg_y_pop = y[1, :B], y[1, B:]
    pos_total = (pos_y_int + pos_y_pop) / 2.0
    neg_total = (neg_y_int + neg_y_pop) / 2.0

    def bpr_mean(pos, neg):
        return -jnp.mean(jnp.log(jax.nn.sigmoid(pos - neg)))

    def mask_bpr(pos, neg, m):
        return -jnp.mean(m.astype(f32) * jnp.log(jax.nn.sigmoid(pos - neg)))

    loss_int = mask_bpr(pos_y_int, neg_y_int, mask)
    loss_pop = mask_bpr(neg_y_pop, pos_y_pop, mask) + mask_bpr(pos_y_pop, neg_y_pop, ~mask)
    loss_click = bpr_mean(pos_total, neg_total)

    # NOTE: jnp.unique is data-dependent -> keep this path eager (not under jax.jit).
    item_all = jnp.unique(jnp.concatenate([batch['pos_item'], batch['neg_item']]))
    user_all = jnp.unique(user_ids)
    loss_discrepancy = (mse(p['items_int'][item_all], p['items_pop'][item_all])
                        + mse(p['users_int'][user_all], p['users_pop'][user_all]))  # L2 criterion

    loss = (loss_base + cfg.int_weight * loss_int + cfg.pop_weight * loss_pop
            + loss_click - cfg.discrepancy_weight * loss_discrepancy)
    return loss, pos_total, neg_total


# --------------------------------------------------------------------------- #
# Main
# --------------------------------------------------------------------------- #
if __name__ == "__main__":
    class Config:
        gamma = 0.9
        embedding_dim = 16          # -> combined_dim = 32
        hidden_dim = 16
        output_dim = 8
        dropout_rate = 0.1
        int_weight = 0.5
        pop_weight = 0.5
        reg_weight = 1e-4
        discrepancy_weight = 0.01
        discrepancy_type = 'L2'

    cfg = Config()
    NUM_USERS, NUM_ITEMS, NUM_CATS = 10, 20, 7
    B, S = 4, 8

    key = jax.random.PRNGKey(0)
    kp, kb = jax.random.split(key)
    params = init_params(kp, cfg, NUM_USERS, NUM_ITEMS, NUM_CATS)

    ks = jax.random.split(kb, 8)
    batch = {
        'user': jax.random.randint(ks[0], (B,), 0, NUM_USERS),
        'pos_item': jax.random.randint(ks[1], (B,), 1, NUM_ITEMS),
        'neg_item': jax.random.randint(ks[2], (B,), 1, NUM_ITEMS),
        'pos_cat': jax.random.randint(ks[3], (B,), 1, NUM_CATS),
        'neg_cat': jax.random.randint(ks[4], (B,), 1, NUM_CATS),
        'mask': jax.random.bernoulli(ks[5], 0.7, (B, 1)),
        'item_his': jax.random.randint(ks[6], (B, S), 0, NUM_ITEMS),
        'cat_his': jax.random.randint(ks[7], (B, S), 0, NUM_CATS),
    }

    loss, pos_y_pred, neg_y_pred = dice_forward(params, batch, cfg)
    jax.block_until_ready((loss, pos_y_pred, neg_y_pred))
    assert loss.shape == (B,)
    assert pos_y_pred.shape == (B, cfg.output_dim)
    assert neg_y_pred.shape == (B, cfg.output_dim)
    print("KERNEL_OK")
</pallas_src>

<mosaic_0001>
module attributes {stable_mosaic.version = 11 : i64} {
  func.func @_dice_stream_kernel(%arg0: i32, %arg1: memref<1x4x8x32xf32, #tpu.memory_space<vmem>>, %arg2: memref<1x4x32xf32, #tpu.memory_space<vmem>>, %arg3: memref<1x4x32xf32, #tpu.memory_space<vmem>>, %arg4: memref<1x8x16xf32, #tpu.memory_space<vmem>>, %arg5: memref<1x8x16xf32, #tpu.memory_space<vmem>>, %arg6: memref<32x32xf32, #tpu.memory_space<vmem>>, %arg7: memref<128x32xf32, #tpu.memory_space<vmem>>, %arg8: memref<1x32xf32, #tpu.memory_space<vmem>>, %arg9: memref<1x32xf32, #tpu.memory_space<vmem>>, %arg10: memref<1x1xf32, #tpu.memory_space<vmem>>, %arg11: memref<32x96xf32, #tpu.memory_space<vmem>>, %arg12: memref<1x96xf32, #tpu.memory_space<vmem>>, %arg13: memref<16x48xf32, #tpu.memory_space<vmem>>, %arg14: memref<1x48xf32, #tpu.memory_space<vmem>>, %arg15: memref<16x32xf32, #tpu.memory_space<vmem>>, %arg16: memref<128x32xf32, #tpu.memory_space<vmem>>, %arg17: memref<1x32xf32, #tpu.memory_space<vmem>>, %arg18: memref<1x32xf32, #tpu.memory_space<vmem>>, %arg19: memref<1x1xf32, #tpu.memory_space<vmem>>, %arg20: memref<16x48xf32, #tpu.memory_space<vmem>>, %arg21: memref<1x48xf32, #tpu.memory_space<vmem>>, %arg22: memref<80x16xf32, #tpu.memory_space<vmem>>, %arg23: memref<1x16xf32, #tpu.memory_space<vmem>>, %arg24: memref<1x16xf32, #tpu.memory_space<vmem>>, %arg25: memref<1x1xf32, #tpu.memory_space<vmem>>, %arg26: memref<64x8xf32, #tpu.memory_space<vmem>>, %arg27: memref<1x8xf32, #tpu.memory_space<vmem>>, %arg28: memref<8x8xf32, #tpu.memory_space<vmem>>, %arg29: memref<1x8xf32, #tpu.memory_space<vmem>>, %arg30: memref<1x4x32xf32, #tpu.memory_space<vmem>>, %arg31: memref<1x4x32xf32, #tpu.memory_space<vmem>>, %arg32: memref<1x4x1xf32, #tpu.memory_space<vmem>>, %arg33: memref<1x8x8xf32, #tpu.memory_space<vmem>>) attributes {dimension_semantics = [#tpu.dimension_semantics<parallel>], iteration_bounds = array<i64: 2>, scalar_prefetch = 0 : i64, scratch_operands = 0 : i64, tpu.core_type = #tpu.core_type<tc>, window_params = [{transform_indices = @transform_0, window_bounds = array<i64: 1, 4, 8, 32>}, {transform_indices = @transform_1, window_bounds = array<i64: 1, 4, 32>}, {transform_indices = @transform_2, window_bounds = array<i64: 1, 4, 32>}, {transform_indices = @transform_3, window_bounds = array<i64: 1, 8, 16>}, {transform_indices = @transform_4, window_bounds = array<i64: 1, 8, 16>}, {pipeline_mode = #tpu.pipeline_mode<synchronous>, transform_indices = @transform_5, window_bounds = array<i64: 32, 32>}, {pipeline_mode = #tpu.pipeline_mode<synchronous>, transform_indices = @transform_6, window_bounds = array<i64: 128, 32>}, {pipeline_mode = #tpu.pipeline_mode<synchronous>, transform_indices = @transform_7, window_bounds = array<i64: 1, 32>}, {pipeline_mode = #tpu.pipeline_mode<synchronous>, transform_indices = @transform_8, window_bounds = array<i64: 1, 32>}, {pipeline_mode = #tpu.pipeline_mode<synchronous>, transform_indices = @transform_9, window_bounds = array<i64: 1, 1>}, {pipeline_mode = #tpu.pipeline_mode<synchronous>, transform_indices = @transform_10, window_bounds = array<i64: 32, 96>}, {pipeline_mode = #tpu.pipeline_mode<synchronous>, transform_indices = @transform_11, window_bounds = array<i64: 1, 96>}, {pipeline_mode = #tpu.pipeline_mode<synchronous>, transform_indices = @transform_12, window_bounds = array<i64: 16, 48>}, {pipeline_mode = #tpu.pipeline_mode<synchronous>, transform_indices = @transform_13, window_bounds = array<i64: 1, 48>}, {pipeline_mode = #tpu.pipeline_mode<synchronous>, transform_indices = @transform_14, window_bounds = array<i64: 16, 32>}, {pipeline_mode = #tpu.pipeline_mode<synchronous>, transform_indices = @transform_15, window_bounds = array<i64: 128, 32>}, {pipeline_mode = #tpu.pipeline_mode<synchronous>, transform_indices = @transform_16, window_bounds = array<i64: 1, 32>}, {pipeline_mode = #tpu.pipeline_mode<synchronous>, transform_indices = @transform_17, window_bounds = array<i64: 1, 32>}, {pipeline_mode = #tpu.pipeline_mode<synchronous>, transform_indices = @transform_18, window_bounds = array<i64: 1, 1>}, {pipeline_mode = #tpu.pipeline_mode<synchronous>, transform_indices = @transform_19, window_bounds = array<i64: 16, 48>}, {pipeline_mode = #tpu.pipeline_mode<synchronous>, transform_indices = @transform_20, window_bounds = array<i64: 1, 48>}, {pipeline_mode = #tpu.pipeline_mode<synchronous>, transform_indices = @transform_21, window_bounds = array<i64: 80, 16>}, {pipeline_mode = #tpu.pipeline_mode<synchronous>, transform_indices = @transform_22, window_bounds = array<i64: 1, 16>}, {pipeline_mode = #tpu.pipeline_mode<synchronous>, transform_indices = @transform_23, window_bounds = array<i64: 1, 16>}, {pipeline_mode = #tpu.pipeline_mode<synchronous>, transform_indices = @transform_24, window_bounds = array<i64: 1, 1>}, {pipeline_mode = #tpu.pipeline_mode<synchronous>, transform_indices = @transform_25, window_bounds = array<i64: 64, 8>}, {pipeline_mode = #tpu.pipeline_mode<synchronous>, transform_indices = @transform_26, window_bounds = array<i64: 1, 8>}, {pipeline_mode = #tpu.pipeline_mode<synchronous>, transform_indices = @transform_27, window_bounds = array<i64: 8, 8>}, {pipeline_mode = #tpu.pipeline_mode<synchronous>, transform_indices = @transform_28, window_bounds = array<i64: 1, 8>}, {transform_indices = @transform_29, window_bounds = array<i64: 1, 4, 32>}, {transform_indices = @transform_30, window_bounds = array<i64: 1, 4, 32>}, {transform_indices = @transform_31, window_bounds = array<i64: 1, 4, 1>}, {transform_indices = @transform_32, window_bounds = array<i64: 1, 8, 8>}]} {
    %c0 = arith.constant 0 : index
    %c0_0 = arith.constant 0 : index
    %c0_1 = arith.constant 0 : index
    %c0_2 = arith.constant 0 : index
    %0 = vector.load %arg1[%c0, %c0_0, %c0_1, %c0_2] : memref<1x4x8x32xf32, #tpu.memory_space<vmem>>, vector<1x4x8x32xf32>
    %1 = vector.shape_cast %0 : vector<1x4x8x32xf32> to vector<4x8x32xf32>
    %2 = vector.shape_cast %1 : vector<4x8x32xf32> to vector<32x32xf32>
    %c0_3 = arith.constant 0 : index
    %c0_4 = arith.constant 0 : index
    %c0_5 = arith.constant 0 : index
    %3 = vector.load %arg2[%c0_3, %c0_4, %c0_5] : memref<1x4x32xf32, #tpu.memory_space<vmem>>, vector<1x4x32xf32>
    %4 = vector.shape_cast %3 : vector<1x4x32xf32> to vector<4x32xf32>
    %c0_6 = arith.constant 0 : index
    %c0_7 = arith.constant 0 : index
    %c0_8 = arith.constant 0 : index
    %5 = vector.load %arg3[%c0_6, %c0_7, %c0_8] : memref<1x4x32xf32, #tpu.memory_space<vmem>>, vector<1x4x32xf32>
    %6 = vector.shape_cast %5 : vector<1x4x32xf32> to vector<4x32xf32>
    %c0_9 = arith.constant 0 : index
    %c0_10 = arith.constant 0 : index
    %7 = vector.load %arg11[%c0_9, %c0_10] : memref<32x96xf32, #tpu.memory_space<vmem>>, vector<32x96xf32>
    %cst = arith.constant dense<0.000000e+00> : vector<32x96xf32>
    %8 = tpu.matmul %2, %7, %cst {dimension_numbers = #tpu.dot_dimension_numbers<[1], [0], [0], [1], [0, 0, 1, 1], [], []>} : vector<32x32xf32>, vector<32x96xf32>, vector<32x96xf32> -> vector<32x96xf32>
    %c0_11 = arith.constant 0 : index
    %c0_12 = arith.constant 0 : index
    %9 = vector.load %arg12[%c0_11, %c0_12] : memref<1x96xf32, #tpu.memory_space<vmem>>, vector<1x96xf32>
    %10 = vector.broadcast %9 : vector<1x96xf32> to vector<32x96xf32>
    %11 = arith.addf %8, %10 : vector<32x96xf32>
    %12 = vector.shape_cast %11 : vector<32x96xf32> to vector<4x8x96xf32>
    %c0_13 = arith.constant 0 : index
    %c0_14 = arith.constant 0 : index
    %13 = vector.load %arg6[%c0_13, %c0_14] : memref<32x32xf32, #tpu.memory_space<vmem>>, vector<32x32xf32>
    %cst_15 = arith.constant dense<0.000000e+00> : vector<32x32xf32>
    %14 = tpu.matmul %2, %13, %cst_15 {dimension_numbers = #tpu.dot_dimension_numbers<[1], [0], [0], [1], [0, 0, 1, 1], [], []>} : vector<32x32xf32>, vector<32x32xf32>, vector<32x32xf32> -> vector<32x32xf32>
    %15 = vector.shape_cast %14 : vector<32x32xf32> to vector<4x8x32xf32>
    %c0_16 = arith.constant 0 : index
    %c0_17 = arith.constant 0 : index
    %16 = vector.load %arg7[%c0_16, %c0_17] : memref<128x32xf32, #tpu.memory_space<vmem>>, vector<128x32xf32>
    %c0_18 = arith.constant 0 : index
    %c0_19 = arith.constant 0 : index
    %17 = vector.load %arg8[%c0_18, %c0_19] : memref<1x32xf32, #tpu.memory_space<vmem>>, vector<1x32xf32>
    %c0_20 = arith.constant 0 : index
    %c0_21 = arith.constant 0 : index
    %18 = vector.load %arg9[%c0_20, %c0_21] : memref<1x32xf32, #tpu.memory_space<vmem>>, vector<1x32xf32>
    %c0_22 = arith.constant 0 : index
    %c0_23 = arith.constant 0 : index
    %19 = vector.load %arg10[%c0_22, %c0_23] : memref<1x1xf32, #tpu.memory_space<vmem>>, vector<1x1xf32>
    %20 = vector.shape_cast %4 : vector<4x32xf32> to vector<4x1x32xf32>
    %21 = vector.shape_cast %20 : vector<4x1x32xf32> to vector<4x1x32xf32>
    %22 = vector.broadcast %21 : vector<4x1x32xf32> to vector<4x8x32xf32>
    %23 = vector.broadcast %20 : vector<4x1x32xf32> to vector<4x8x32xf32>
    %24 = arith.subf %15, %23 : vector<4x8x32xf32>
    %25 = vector.broadcast %20 : vector<4x1x32xf32> to vector<4x8x32xf32>
    %26 = arith.mulf %15, %25 : vector<4x8x32xf32>
    %27 = tpu.concatenate %15, %22, %24, %26 in 2 : vector<4x8x32xf32>, vector<4x8x32xf32>, vector<4x8x32xf32>, vector<4x8x32xf32> -> vector<4x8x128xf32>
    %28 = vector.shape_cast %27 : vector<4x8x128xf32> to vector<32x128xf32>
    %cst_24 = arith.constant dense<0.000000e+00> : vector<32x32xf32>
    %29 = tpu.matmul %28, %16, %cst_24 {dimension_numbers = #tpu.dot_dimension_numbers<[1], [0], [0], [1], [0, 0, 1, 1], [], []>} : vector<32x128xf32>, vector<128x32xf32>, vector<32x32xf32> -> vector<32x32xf32>
    %30 = vector.broadcast %17 : vector<1x32xf32> to vector<32x32xf32>
    %31 = arith.addf %29, %30 : vector<32x32xf32>
    %cst_25 = arith.constant 0.000000e+00 : f32
    %32 = vector.broadcast %cst_25 : f32 to vector<32x32xf32>
    %33 = arith.maximumf %31, %32 : vector<32x32xf32>
    %34 = vector.shape_cast %33 : vector<32x32xf32> to vector<4x8x32xf32>
    %35 = vector.shape_cast %18 : vector<1x32xf32> to vector<1x1x32xf32>
    %36 = vector.broadcast %35 : vector<1x1x32xf32> to vector<4x8x32xf32>
    %37 = arith.mulf %34, %36 : vector<4x8x32xf32>
    %cst_26 = arith.constant dense<0.000000e+00> : vector<4x8xf32>
    %38 = vector.multi_reduction <add>, %37, %cst_26 [2] : vector<4x8x32xf32> to vector<4x8xf32>
    %39 = vector.broadcast %19 : vector<1x1xf32> to vector<4x8xf32>
    %40 = arith.addf %38, %39 : vector<4x8xf32>
    %cst_27 = arith.constant dense<0xFF800000> : vector<4xf32>
    %41 = vector.multi_reduction <maximumf>, %40, %cst_27 [1] : vector<4x8xf32> to vector<4xf32>
    %42 = vector.shape_cast %41 : vector<4xf32> to vector<4x1xf32>
    %43 = vector.broadcast %42 : vector<4x1xf32> to vector<4x8xf32>
    %44 = arith.subf %40, %43 : vector<4x8xf32>
    %45 = math.exp %44 : vector<4x8xf32>
    %cst_28 = arith.constant dense<0.000000e+00> : vector<4xf32>
    %46 = vector.multi_reduction <add>, %45, %cst_28 [1] : vector<4x8xf32> to vector<4xf32>
    %47 = vector.shape_cast %46 : vector<4xf32> to vector<4x1xf32>
    %48 = tpu.reciprocal %47 {approx = true} : vector<4x1xf32> -> vector<4x1xf32>
    %49 = vector.broadcast %48 : vector<4x1xf32> to vector<4x8xf32>
    %50 = arith.mulf %45, %49 : vector<4x8xf32>
    %c0_29 = arith.constant 0 : index
    %c0_30 = arith.constant 0 : index
    %51 = vector.load %arg13[%c0_29, %c0_30] : memref<16x48xf32, #tpu.memory_space<vmem>>, vector<16x48xf32>
    %c0_31 = arith.constant 0 : index
    %c0_32 = arith.constant 0 : index
    %52 = vector.load %arg14[%c0_31, %c0_32] : memref<1x48xf32, #tpu.memory_space<vmem>>, vector<1x48xf32>
    %c0_33 = arith.constant 0 : index
    %c0_34 = arith.constant 0 : index
    %53 = vector.load %arg20[%c0_33, %c0_34] : memref<16x48xf32, #tpu.memory_space<vmem>>, vector<16x48xf32>
    %c0_35 = arith.constant 0 : index
    %c0_36 = arith.constant 0 : index
    %54 = vector.load %arg21[%c0_35, %c0_36] : memref<1x48xf32, #tpu.memory_space<vmem>>, vector<1x48xf32>
    %cst_37 = arith.constant 0.000000e+00 : f32
    %55 = vector.broadcast %cst_37 : f32 to vector<4x16xf32>
    %cst_38 = arith.constant 0.000000e+00 : f32
    %56 = vector.broadcast %cst_38 : f32 to vector<4x16xf32>
    %57 = vector.extract_strided_slice %12 {offsets = [0, 0, 0], sizes = [4, 1, 48], strides = [1, 1, 1]} : vector<4x8x96xf32> to vector<4x1x48xf32>
    %58 = vector.shape_cast %57 : vector<4x1x48xf32> to vector<4x48xf32>
    %cst_39 = arith.constant dense<0.000000e+00> : vector<4x48xf32>
    %59 = tpu.matmul %55, %51, %cst_39 {dimension_numbers = #tpu.dot_dimension_numbers<[1], [0], [0], [1], [0, 0, 1, 1], [], []>} : vector<4x16xf32>, vector<16x48xf32>, vector<4x48xf32> -> vector<4x48xf32>
    %60 = vector.broadcast %52 : vector<1x48xf32> to vector<4x48xf32>
    %61 = arith.addf %59, %60 : vector<4x48xf32>
    %62 = vector.extract_strided_slice %58 {offsets = [0, 0], sizes = [4, 16], strides = [1, 1]} : vector<4x48xf32> to vector<4x16xf32>
    %63 = vector.extract_strided_slice %61 {offsets = [0, 0], sizes = [4, 16], strides = [1, 1]} : vector<4x48xf32> to vector<4x16xf32>
    %64 = arith.addf %62, %63 : vector<4x16xf32>
    %65 = arith.negf %64 : vector<4x16xf32>
    %66 = math.exp %65 : vector<4x16xf32>
    %cst_40 = arith.constant 1.000000e+00 : f32
    %67 = vector.broadcast %cst_40 : f32 to vector<4x16xf32>
    %68 = arith.addf %67, %66 : vector<4x16xf32>
    %69 = arith.divf %67, %68 : vector<4x16xf32>
    %70 = vector.extract_strided_slice %58 {offsets = [0, 16], sizes = [4, 16], strides = [1, 1]} : vector<4x48xf32> to vector<4x16xf32>
    %71 = vector.extract_strided_slice %61 {offsets = [0, 16], sizes = [4, 16], strides = [1, 1]} : vector<4x48xf32> to vector<4x16xf32>
    %72 = arith.addf %70, %71 : vector<4x16xf32>
    %73 = arith.negf %72 : vector<4x16xf32>
    %74 = math.exp %73 : vector<4x16xf32>
    %cst_41 = arith.constant 1.000000e+00 : f32
    %75 = vector.broadcast %cst_41 : f32 to vector<4x16xf32>
    %76 = arith.addf %75, %74 : vector<4x16xf32>
    %77 = arith.divf %75, %76 : vector<4x16xf32>
    %78 = vector.extract_strided_slice %58 {offsets = [0, 32], sizes = [4, 16], strides = [1, 1]} : vector<4x48xf32> to vector<4x16xf32>
    %79 = vector.extract_strided_slice %61 {offsets = [0, 32], sizes = [4, 16], strides = [1, 1]} : vector<4x48xf32> to vector<4x16xf32>
    %80 = arith.mulf %69, %79 : vector<4x16xf32>
    %81 = arith.addf %78, %80 : vector<4x16xf32>
    %82 = math.tanh %81 : vector<4x16xf32>
    %cst_42 = arith.constant 1.000000e+00 : f32
    %83 = vector.broadcast %cst_42 : f32 to vector<4x16xf32>
    %84 = arith.subf %83, %77 : vector<4x16xf32>
    %85 = arith.mulf %84, %82 : vector<4x16xf32>
    %86 = arith.mulf %77, %55 : vector<4x16xf32>
    %87 = arith.addf %85, %86 : vector<4x16xf32>
    %88 = vector.extract_strided_slice %12 {offsets = [0, 0, 48], sizes = [4, 1, 48], strides = [1, 1, 1]} : vector<4x8x96xf32> to vector<4x1x48xf32>
    %89 = vector.shape_cast %88 : vector<4x1x48xf32> to vector<4x48xf32>
    %cst_43 = arith.constant dense<0.000000e+00> : vector<4x48xf32>
    %90 = tpu.matmul %56, %53, %cst_43 {dimension_numbers = #tpu.dot_dimension_numbers<[1], [0], [0], [1], [0, 0, 1, 1], [], []>} : vector<4x16xf32>, vector<16x48xf32>, vector<4x48xf32> -> vector<4x48xf32>
    %91 = vector.broadcast %54 : vector<1x48xf32> to vector<4x48xf32>
    %92 = arith.addf %90, %91 : vector<4x48xf32>
    %93 = vector.extract_strided_slice %89 {offsets = [0, 0], sizes = [4, 16], strides = [1, 1]} : vector<4x48xf32> to vector<4x16xf32>
    %94 = vector.extract_strided_slice %92 {offsets = [0, 0], sizes = [4, 16], strides = [1, 1]} : vector<4x48xf32> to vector<4x16xf32>
    %95 = arith.addf %93, %94 : vector<4x16xf32>
    %96 = arith.negf %95 : vector<4x16xf32>
    %97 = math.exp %96 : vector<4x16xf32>
    %cst_44 = arith.constant 1.000000e+00 : f32
    %98 = vector.broadcast %cst_44 : f32 to vector<4x16xf32>
    %99 = arith.addf %98, %97 : vector<4x16xf32>
    %100 = arith.divf %98, %99 : vector<4x16xf32>
    %101 = vector.extract_strided_slice %89 {offsets = [0, 16], sizes = [4, 16], strides = [1, 1]} : vector<4x48xf32> to vector<4x16xf32>
    %102 = vector.extract_strided_slice %92 {offsets = [0, 16], sizes = [4, 16], strides = [1, 1]} : vector<4x48xf32> to vector<4x16xf32>
    %103 = arith.addf %101, %102 : vector<4x16xf32>
    %104 = arith.negf %103 : vector<4x16xf32>
    %105 = math.exp %104 : vector<4x16xf32>
    %cst_45 = arith.constant 1.000000e+00 : f32
    %106 = vector.broadcast %cst_45 : f32 to vector<4x16xf32>
    %107 = arith.addf %106, %105 : vector<4x16xf32>
    %108 = arith.divf %106, %107 : vector<4x16xf32>
    %109 = vector.extract_strided_slice %89 {offsets = [0, 32], sizes = [4, 16], strides = [1, 1]} : vector<4x48xf32> to vector<4x16xf32>
    %110 = vector.extract_strided_slice %92 {offsets = [0, 32], sizes = [4, 16], strides = [1, 1]} : vector<4x48xf32> to vector<4x16xf32>
    %111 = arith.mulf %100, %110 : vector<4x16xf32>
    %112 = arith.addf %109, %111 : vector<4x16xf32>
    %113 = math.tanh %112 : vector<4x16xf32>
    %cst_46 = arith.constant 1.000000e+00 : f32
    %114 = vector.broadcast %cst_46 : f32 to vector<4x16xf32>
    %115 = arith.subf %114, %108 : vector<4x16xf32>
    %116 = arith.mulf %115, %113 : vector<4x16xf32>
    %117 = arith.mulf %108, %56 : vector<4x16xf32>
    %118 = arith.addf %116, %117 : vector<4x16xf32>
    %119 = vector.extract_strided_slice %12 {offsets = [0, 1, 0], sizes = [4, 1, 48], strides = [1, 1, 1]} : vector<4x8x96xf32> to vector<4x1x48xf32>
    %120 = vector.shape_cast %119 : vector<4x1x48xf32> to vector<4x48xf32>
    %cst_47 = arith.constant dense<0.000000e+00> : vector<4x48xf32>
    %121 = tpu.matmul %87, %51, %cst_47 {dimension_numbers = #tpu.dot_dimension_numbers<[1], [0], [0], [1], [0, 0, 1, 1], [], []>} : vector<4x16xf32>, vector<16x48xf32>, vector<4x48xf32> -> vector<4x48xf32>
    %122 = vector.broadcast %52 : vector<1x48xf32> to vector<4x48xf32>
    %123 = arith.addf %121, %122 : vector<4x48xf32>
    %124 = vector.extract_strided_slice %120 {offsets = [0, 0], sizes = [4, 16], strides = [1, 1]} : vector<4x48xf32> to vector<4x16xf32>
    %125 = vector.extract_strided_slice %123 {offsets = [0, 0], sizes = [4, 16], strides = [1, 1]} : vector<4x48xf32> to vector<4x16xf32>
    %126 = arith.addf %124, %125 : vector<4x16xf32>
    %127 = arith.negf %126 : vector<4x16xf32>
    %128 = math.exp %127 : vector<4x16xf32>
    %cst_48 = arith.constant 1.000000e+00 : f32
    %129 = vector.broadcast %cst_48 : f32 to vector<4x16xf32>
    %130 = arith.addf %129, %128 : vector<4x16xf32>
    %131 = arith.divf %129, %130 : vector<4x16xf32>
    %132 = vector.extract_strided_slice %120 {offsets = [0, 16], sizes = [4, 16], strides = [1, 1]} : vector<4x48xf32> to vector<4x16xf32>
    %133 = vector.extract_strided_slice %123 {offsets = [0, 16], sizes = [4, 16], strides = [1, 1]} : vector<4x48xf32> to vector<4x16xf32>
    %134 = arith.addf %132, %133 : vector<4x16xf32>
    %135 = arith.negf %134 : vector<4x16xf32>
    %136 = math.exp %135 : vector<4x16xf32>
    %cst_49 = arith.constant 1.000000e+00 : f32
    %137 = vector.broadcast %cst_49 : f32 to vector<4x16xf32>
    %138 = arith.addf %137, %136 : vector<4x16xf32>
    %139 = arith.divf %137, %138 : vector<4x16xf32>
    %140 = vector.extract_strided_slice %120 {offsets = [0, 32], sizes = [4, 16], strides = [1, 1]} : vector<4x48xf32> to vector<4x16xf32>
    %141 = vector.extract_strided_slice %123 {offsets = [0, 32], sizes = [4, 16], strides = [1, 1]} : vector<4x48xf32> to vector<4x16xf32>
    %142 = arith.mulf %131, %141 : vector<4x16xf32>
    %143 = arith.addf %140, %142 : vector<4x16xf32>
    %144 = math.tanh %143 : vector<4x16xf32>
    %cst_50 = arith.constant 1.000000e+00 : f32
    %145 = vector.broadcast %cst_50 : f32 to vector<4x16xf32>
    %146 = arith.subf %145, %139 : vector<4x16xf32>
    %147 = arith.mulf %146, %144 : vector<4x16xf32>
    %148 = arith.mulf %139, %87 : vector<4x16xf32>
    %149 = arith.addf %147, %148 : vector<4x16xf32>
    %150 = vector.extract_strided_slice %12 {offsets = [0, 1, 48], sizes = [4, 1, 48], strides = [1, 1, 1]} : vector<4x8x96xf32> to vector<4x1x48xf32>
    %151 = vector.shape_cast %150 : vector<4x1x48xf32> to vector<4x48xf32>
    %cst_51 = arith.constant dense<0.000000e+00> : vector<4x48xf32>
    %152 = tpu.matmul %118, %53, %cst_51 {dimension_numbers = #tpu.dot_dimension_numbers<[1], [0], [0], [1], [0, 0, 1, 1], [], []>} : vector<4x16xf32>, vector<16x48xf32>, vector<4x48xf32> -> vector<4x48xf32>
    %153 = vector.broadcast %54 : vector<1x48xf32> to vector<4x48xf32>
    %154 = arith.addf %152, %153 : vector<4x48xf32>
    %155 = vector.extract_strided_slice %151 {offsets = [0, 0], sizes = [4, 16], strides = [1, 1]} : vector<4x48xf32> to vector<4x16xf32>
    %156 = vector.extract_strided_slice %154 {offsets = [0, 0], sizes = [4, 16], strides = [1, 1]} : vector<4x48xf32> to vector<4x16xf32>
    %157 = arith.addf %155, %156 : vector<4x16xf32>
    %158 = arith.negf %157 : vector<4x16xf32>
    %159 = math.exp %158 : vector<4x16xf32>
    %cst_52 = arith.constant 1.000000e+00 : f32
    %160 = vector.broadcast %cst_52 : f32 to vector<4x16xf32>
    %161 = arith.addf %160, %159 : vector<4x16xf32>
    %162 = arith.divf %160, %161 : vector<4x16xf32>
    %163 = vector.extract_strided_slice %151 {offsets = [0, 16], sizes = [4, 16], strides = [1, 1]} : vector<4x48xf32> to vector<4x16xf32>
    %164 = vector.extract_strided_slice %154 {offsets = [0, 16], sizes = [4, 16], strides = [1, 1]} : vector<4x48xf32> to vector<4x16xf32>
    %165 = arith.addf %163, %164 : vector<4x16xf32>
    %166 = arith.negf %165 : vector<4x16xf32>
    %167 = math.exp %166 : vector<4x16xf32>
    %cst_53 = arith.constant 1.000000e+00 : f32
    %168 = vector.broadcast %cst_53 : f32 to vector<4x16xf32>
    %169 = arith.addf %168, %167 : vector<4x16xf32>
    %170 = arith.divf %168, %169 : vector<4x16xf32>
    %171 = vector.extract_strided_slice %151 {offsets = [0, 32], sizes = [4, 16], strides = [1, 1]} : vector<4x48xf32> to vector<4x16xf32>
    %172 = vector.extract_strided_slice %154 {offsets = [0, 32], sizes = [4, 16], strides = [1, 1]} : vector<4x48xf32> to vector<4x16xf32>
    %173 = arith.mulf %162, %172 : vector<4x16xf32>
    %174 = arith.addf %171, %173 : vector<4x16xf32>
    %175 = math.tanh %174 : vector<4x16xf32>
    %cst_54 = arith.constant 1.000000e+00 : f32
    %176 = vector.broadcast %cst_54 : f32 to vector<4x16xf32>
    %177 = arith.subf %176, %170 : vector<4x16xf32>
    %178 = arith.mulf %177, %175 : vector<4x16xf32>
    %179 = arith.mulf %170, %118 : vector<4x16xf32>
    %180 = arith.addf %178, %179 : vector<4x16xf32>
    %181 = vector.extract_strided_slice %12 {offsets = [0, 2, 0], sizes = [4, 1, 48], strides = [1, 1, 1]} : vector<4x8x96xf32> to vector<4x1x48xf32>
    %182 = vector.shape_cast %181 : vector<4x1x48xf32> to vector<4x48xf32>
    %cst_55 = arith.constant dense<0.000000e+00> : vector<4x48xf32>
    %183 = tpu.matmul %149, %51, %cst_55 {dimension_numbers = #tpu.dot_dimension_numbers<[1], [0], [0], [1], [0, 0, 1, 1], [], []>} : vector<4x16xf32>, vector<16x48xf32>, vector<4x48xf32> -> vector<4x48xf32>
    %184 = vector.broadcast %52 : vector<1x48xf32> to vector<4x48xf32>
    %185 = arith.addf %183, %184 : vector<4x48xf32>
    %186 = vector.extract_strided_slice %182 {offsets = [0, 0], sizes = [4, 16], strides = [1, 1]} : vector<4x48xf32> to vector<4x16xf32>
    %187 = vector.extract_strided_slice %185 {offsets = [0, 0], sizes = [4, 16], strides = [1, 1]} : vector<4x48xf32> to vector<4x16xf32>
    %188 = arith.addf %186, %187 : vector<4x16xf32>
    %189 = arith.negf %188 : vector<4x16xf32>
    %190 = math.exp %189 : vector<4x16xf32>
    %cst_56 = arith.constant 1.000000e+00 : f32
    %191 = vector.broadcast %cst_56 : f32 to vector<4x16xf32>
    %192 = arith.addf %191, %190 : vector<4x16xf32>
    %193 = arith.divf %191, %192 : vector<4x16xf32>
    %194 = vector.extract_strided_slice %182 {offsets = [0, 16], sizes = [4, 16], strides = [1, 1]} : vector<4x48xf32> to vector<4x16xf32>
    %195 = vector.extract_strided_slice %185 {offsets = [0, 16], sizes = [4, 16], strides = [1, 1]} : vector<4x48xf32> to vector<4x16xf32>
    %196 = arith.addf %194, %195 : vector<4x16xf32>
    %197 = arith.negf %196 : vector<4x16xf32>
    %198 = math.exp %197 : vector<4x16xf32>
    %cst_57 = arith.constant 1.000000e+00 : f32
    %199 = vector.broadcast %cst_57 : f32 to vector<4x16xf32>
    %200 = arith.addf %199, %198 : vector<4x16xf32>
    %201 = arith.divf %199, %200 : vector<4x16xf32>
    %202 = vector.extract_strided_slice %182 {offsets = [0, 32], sizes = [4, 16], strides = [1, 1]} : vector<4x48xf32> to vector<4x16xf32>
    %203 = vector.extract_strided_slice %185 {offsets = [0, 32], sizes = [4, 16], strides = [1, 1]} : vector<4x48xf32> to vector<4x16xf32>
    %204 = arith.mulf %193, %203 : vector<4x16xf32>
    %205 = arith.addf %202, %204 : vector<4x16xf32>
    %206 = math.tanh %205 : vector<4x16xf32>
    %cst_58 = arith.constant 1.000000e+00 : f32
    %207 = vector.broadcast %cst_58 : f32 to vector<4x16xf32>
    %208 = arith.subf %207, %201 : vector<4x16xf32>
    %209 = arith.mulf %208, %206 : vector<4x16xf32>
    %210 = arith.mulf %201, %149 : vector<4x16xf32>
    %211 = arith.addf %209, %210 : vector<4x16xf32>
    %212 = vector.extract_strided_slice %12 {offsets = [0, 2, 48], sizes = [4, 1, 48], strides = [1, 1, 1]} : vector<4x8x96xf32> to vector<4x1x48xf32>
    %213 = vector.shape_cast %212 : vector<4x1x48xf32> to vector<4x48xf32>
    %cst_59 = arith.constant dense<0.000000e+00> : vector<4x48xf32>
    %214 = tpu.matmul %180, %53, %cst_59 {dimension_numbers = #tpu.dot_dimension_numbers<[1], [0], [0], [1], [0, 0, 1, 1], [], []>} : vector<4x16xf32>, vector<16x48xf32>, vector<4x48xf32> -> vector<4x48xf32>
    %215 = vector.broadcast %54 : vector<1x48xf32> to vector<4x48xf32>
    %216 = arith.addf %214, %215 : vector<4x48xf32>
    %217 = vector.extract_strided_slice %213 {offsets = [0, 0], sizes = [4, 16], strides = [1, 1]} : vector<4x48xf32> to vector<4x16xf32>
    %218 = vector.extract_strided_slice %216 {offsets = [0, 0], sizes = [4, 16], strides = [1, 1]} : vector<4x48xf32> to vector<4x16xf32>
    %219 = arith.addf %217, %218 : vector<4x16xf32>
    %220 = arith.negf %219 : vector<4x16xf32>
    %221 = math.exp %220 : vector<4x16xf32>
    %cst_60 = arith.constant 1.000000e+00 : f32
    %222 = vector.broadcast %cst_60 : f32 to vector<4x16xf32>
    %223 = arith.addf %222, %221 : vector<4x16xf32>
    %224 = arith.divf %222, %223 : vector<4x16xf32>
    %225 = vector.extract_strided_slice %213 {offsets = [0, 16], sizes = [4, 16], strides = [1, 1]} : vector<4x48xf32> to vector<4x16xf32>
    %226 = vector.extract_strided_slice %216 {offsets = [0, 16], sizes = [4, 16], strides = [1, 1]} : vector<4x48xf32> to vector<4x16xf32>
    %227 = arith.addf %225, %226 : vector<4x16xf32>
    %228 = arith.negf %227 : vector<4x16xf32>
    %229 = math.exp %228 : vector<4x16xf32>
    %cst_61 = arith.constant 1.000000e+00 : f32
    %230 = vector.broadcast %cst_61 : f32 to vector<4x16xf32>
    %231 = arith.addf %230, %229 : vector<4x16xf32>
    %232 = arith.divf %230, %231 : vector<4x16xf32>
    %233 = vector.extract_strided_slice %213 {offsets = [0, 32], sizes = [4, 16], strides = [1, 1]} : vector<4x48xf32> to vector<4x16xf32>
    %234 = vector.extract_strided_slice %216 {offsets = [0, 32], sizes = [4, 16], strides = [1, 1]} : vector<4x48xf32> to vector<4x16xf32>
    %235 = arith.mulf %224, %234 : vector<4x16xf32>
    %236 = arith.addf %233, %235 : vector<4x16xf32>
    %237 = math.tanh %236 : vector<4x16xf32>
    %cst_62 = arith.constant 1.000000e+00 : f32
    %238 = vector.broadcast %cst_62 : f32 to vector<4x16xf32>
    %239 = arith.subf %238, %232 : vector<4x16xf32>
    %240 = arith.mulf %239, %237 : vector<4x16xf32>
    %241 = arith.mulf %232, %180 : vector<4x16xf32>
    %242 = arith.addf %240, %241 : vector<4x16xf32>
    %243 = vector.extract_strided_slice %12 {offsets = [0, 3, 0], sizes = [4, 1, 48], strides = [1, 1, 1]} : vector<4x8x96xf32> to vector<4x1x48xf32>
    %244 = vector.shape_cast %243 : vector<4x1x48xf32> to vector<4x48xf32>
    %cst_63 = arith.constant dense<0.000000e+00> : vector<4x48xf32>
    %245 = tpu.matmul %211, %51, %cst_63 {dimension_numbers = #tpu.dot_dimension_numbers<[1], [0], [0], [1], [0, 0, 1, 1], [], []>} : vector<4x16xf32>, vector<16x48xf32>, vector<4x48xf32> -> vector<4x48xf32>
    %246 = vector.broadcast %52 : vector<1x48xf32> to vector<4x48xf32>
    %247 = arith.addf %245, %246 : vector<4x48xf32>
    %248 = vector.extract_strided_slice %244 {offsets = [0, 0], sizes = [4, 16], strides = [1, 1]} : vector<4x48xf32> to vector<4x16xf32>
    %249 = vector.extract_strided_slice %247 {offsets = [0, 0], sizes = [4, 16], strides = [1, 1]} : vector<4x48xf32> to vector<4x16xf32>
    %250 = arith.addf %248, %249 : vector<4x16xf32>
    %251 = arith.negf %250 : vector<4x16xf32>
    %252 = math.exp %251 : vector<4x16xf32>
    %cst_64 = arith.constant 1.000000e+00 : f32
    %253 = vector.broadcast %cst_64 : f32 to vector<4x16xf32>
    %254 = arith.addf %253, %252 : vector<4x16xf32>
    %255 = arith.divf %253, %254 : vector<4x16xf32>
    %256 = vector.extract_strided_slice %244 {offsets = [0, 16], sizes = [4, 16], strides = [1, 1]} : vector<4x48xf32> to vector<4x16xf32>
    %257 = vector.extract_strided_slice %247 {offsets = [0, 16], sizes = [4, 16], strides = [1, 1]} : vector<4x48xf32> to vector<4x16xf32>
    %258 = arith.addf %256, %257 : vector<4x16xf32>
    %259 = arith.negf %258 : vector<4x16xf32>
    %260 = math.exp %259 : vector<4x16xf32>
    %cst_65 = arith.constant 1.000000e+00 : f32
    %261 = vector.broadcast %cst_65 : f32 to vector<4x16xf32>
    %262 = arith.addf %261, %260 : vector<4x16xf32>
    %263 = arith.divf %261, %262 : vector<4x16xf32>
    %264 = vector.extract_strided_slice %244 {offsets = [0, 32], sizes = [4, 16], strides = [1, 1]} : vector<4x48xf32> to vector<4x16xf32>
    %265 = vector.extract_strided_slice %247 {offsets = [0, 32], sizes = [4, 16], strides = [1, 1]} : vector<4x48xf32> to vector<4x16xf32>
    %266 = arith.mulf %255, %265 : vector<4x16xf32>
    %267 = arith.addf %264, %266 : vector<4x16xf32>
    %268 = math.tanh %267 : vector<4x16xf32>
    %cst_66 = arith.constant 1.000000e+00 : f32
    %269 = vector.broadcast %cst_66 : f32 to vector<4x16xf32>
    %270 = arith.subf %269, %263 : vector<4x16xf32>
    %271 = arith.mulf %270, %268 : vector<4x16xf32>
    %272 = arith.mulf %263, %211 : vector<4x16xf32>
    %273 = arith.addf %271, %272 : vector<4x16xf32>
    %274 = vector.extract_strided_slice %12 {offsets = [0, 3, 48], sizes = [4, 1, 48], strides = [1, 1, 1]} : vector<4x8x96xf32> to vector<4x1x48xf32>
    %275 = vector.shape_cast %274 : vector<4x1x48xf32> to vector<4x48xf32>
    %cst_67 = arith.constant dense<0.000000e+00> : vector<4x48xf32>
    %276 = tpu.matmul %242, %53, %cst_67 {dimension_numbers = #tpu.dot_dimension_numbers<[1], [0], [0], [1], [0, 0, 1, 1], [], []>} : vector<4x16xf32>, vector<16x48xf32>, vector<4x48xf32> -> vector<4x48xf32>
    %277 = vector.broadcast %54 : vector<1x48xf32> to vector<4x48xf32>
    %278 = arith.addf %276, %277 : vector<4x48xf32>
    %279 = vector.extract_strided_slice %275 {offsets = [0, 0], sizes = [4, 16], strides = [1, 1]} : vector<4x48xf32> to vector<4x16xf32>
    %280 = vector.extract_strided_slice %278 {offsets = [0, 0], sizes = [4, 16], strides = [1, 1]} : vector<4x48xf32> to vector<4x16xf32>
    %281 = arith.addf %279, %280 : vector<4x16xf32>
    %282 = arith.negf %281 : vector<4x16xf32>
    %283 = math.exp %282 : vector<4x16xf32>
    %cst_68 = arith.constant 1.000000e+00 : f32
    %284 = vector.broadcast %cst_68 : f32 to vector<4x16xf32>
    %285 = arith.addf %284, %283 : vector<4x16xf32>
    %286 = arith.divf %284, %285 : vector<4x16xf32>
    %287 = vector.extract_strided_slice %275 {offsets = [0, 16], sizes = [4, 16], strides = [1, 1]} : vector<4x48xf32> to vector<4x16xf32>
    %288 = vector.extract_strided_slice %278 {offsets = [0, 16], sizes = [4, 16], strides = [1, 1]} : vector<4x48xf32> to vector<4x16xf32>
    %289 = arith.addf %287, %288 : vector<4x16xf32>
    %290 = arith.negf %289 : vector<4x16xf32>
    %291 = math.exp %290 : vector<4x16xf32>
    %cst_69 = arith.constant 1.000000e+00 : f32
    %292 = vector.broadcast %cst_69 : f32 to vector<4x16xf32>
    %293 = arith.addf %292, %291 : vector<4x16xf32>
    %294 = arith.divf %292, %293 : vector<4x16xf32>
    %295 = vector.extract_strided_slice %275 {offsets = [0, 32], sizes = [4, 16], strides = [1, 1]} : vector<4x48xf32> to vector<4x16xf32>
    %296 = vector.extract_strided_slice %278 {offsets = [0, 32], sizes = [4, 16], strides = [1, 1]} : vector<4x48xf32> to vector<4x16xf32>
    %297 = arith.mulf %286, %296 : vector<4x16xf32>
    %298 = arith.addf %295, %297 : vector<4x16xf32>
    %299 = math.tanh %298 : vector<4x16xf32>
    %cst_70 = arith.constant 1.000000e+00 : f32
    %300 = vector.broadcast %cst_70 : f32 to vector<4x16xf32>
    %301 = arith.subf %300, %294 : vector<4x16xf32>
    %302 = arith.mulf %301, %299 : vector<4x16xf32>
    %303 = arith.mulf %294, %242 : vector<4x16xf32>
    %304 = arith.addf %302, %303 : vector<4x16xf32>
    %305 = vector.extract_strided_slice %12 {offsets = [0, 4, 0], sizes = [4, 1, 48], strides = [1, 1, 1]} : vector<4x8x96xf32> to vector<4x1x48xf32>
    %306 = vector.shape_cast %305 : vector<4x1x48xf32> to vector<4x48xf32>
    %cst_71 = arith.constant dense<0.000000e+00> : vector<4x48xf32>
    %307 = tpu.matmul %273, %51, %cst_71 {dimension_numbers = #tpu.dot_dimension_numbers<[1], [0], [0], [1], [0, 0, 1, 1], [], []>} : vector<4x16xf32>, vector<16x48xf32>, vector<4x48xf32> -> vector<4x48xf32>
    %308 = vector.broadcast %52 : vector<1x48xf32> to vector<4x48xf32>
    %309 = arith.addf %307, %308 : vector<4x48xf32>
    %310 = vector.extract_strided_slice %306 {offsets = [0, 0], sizes = [4, 16], strides = [1, 1]} : vector<4x48xf32> to vector<4x16xf32>
    %311 = vector.extract_strided_slice %309 {offsets = [0, 0], sizes = [4, 16], strides = [1, 1]} : vector<4x48xf32> to vector<4x16xf32>
    %312 = arith.addf %310, %311 : vector<4x16xf32>
    %313 = arith.negf %312 : vector<4x16xf32>
    %314 = math.exp %313 : vector<4x16xf32>
    %cst_72 = arith.constant 1.000000e+00 : f32
    %315 = vector.broadcast %cst_72 : f32 to vector<4x16xf32>
    %316 = arith.addf %315, %314 : vector<4x16xf32>
    %317 = arith.divf %315, %316 : vector<4x16xf32>
    %318 = vector.extract_strided_slice %306 {offsets = [0, 16], sizes = [4, 16], strides = [1, 1]} : vector<4x48xf32> to vector<4x16xf32>
    %319 = vector.extract_strided_slice %309 {offsets = [0, 16], sizes = [4, 16], strides = [1, 1]} : vector<4x48xf32> to vector<4x16xf32>
    %320 = arith.addf %318, %319 : vector<4x16xf32>
    %321 = arith.negf %320 : vector<4x16xf32>
    %322 = math.exp %321 : vector<4x16xf32>
    %cst_73 = arith.constant 1.000000e+00 : f32
    %323 = vector.broadcast %cst_73 : f32 to vector<4x16xf32>
    %324 = arith.addf %323, %322 : vector<4x16xf32>
    %325 = arith.divf %323, %324 : vector<4x16xf32>
    %326 = vector.extract_strided_slice %306 {offsets = [0, 32], sizes = [4, 16], strides = [1, 1]} : vector<4x48xf32> to vector<4x16xf32>
    %327 = vector.extract_strided_slice %309 {offsets = [0, 32], sizes = [4, 16], strides = [1, 1]} : vector<4x48xf32> to vector<4x16xf32>
    %328 = arith.mulf %317, %327 : vector<4x16xf32>
    %329 = arith.addf %326, %328 : vector<4x16xf32>
    %330 = math.tanh %329 : vector<4x16xf32>
    %cst_74 = arith.constant 1.000000e+00 : f32
    %331 = vector.broadcast %cst_74 : f32 to vector<4x16xf32>
    %332 = arith.subf %331, %325 : vector<4x16xf32>
    %333 = arith.mulf %332, %330 : vector<4x16xf32>
    %334 = arith.mulf %325, %273 : vector<4x16xf32>
    %335 = arith.addf %333, %334 : vector<4x16xf32>
    %336 = vector.extract_strided_slice %12 {offsets = [0, 4, 48], sizes = [4, 1, 48], strides = [1, 1, 1]} : vector<4x8x96xf32> to vector<4x1x48xf32>
    %337 = vector.shape_cast %336 : vector<4x1x48xf32> to vector<4x48xf32>
    %cst_75 = arith.constant dense<0.000000e+00> : vector<4x48xf32>
    %338 = tpu.matmul %304, %53, %cst_75 {dimension_numbers = #tpu.dot_dimension_numbers<[1], [0], [0], [1], [0, 0, 1, 1], [], []>} : vector<4x16xf32>, vector<16x48xf32>, vector<4x48xf32> -> vector<4x48xf32>
    %339 = vector.broadcast %54 : vector<1x48xf32> to vector<4x48xf32>
    %340 = arith.addf %338, %339 : vector<4x48xf32>
    %341 = vector.extract_strided_slice %337 {offsets = [0, 0], sizes = [4, 16], strides = [1, 1]} : vector<4x48xf32> to vector<4x16xf32>
    %342 = vector.extract_strided_slice %340 {offsets = [0, 0], sizes = [4, 16], strides = [1, 1]} : vector<4x48xf32> to vector<4x16xf32>
    %343 = arith.addf %341, %342 : vector<4x16xf32>
    %344 = arith.negf %343 : vector<4x16xf32>
    %345 = math.exp %344 : vector<4x16xf32>
    %cst_76 = arith.constant 1.000000e+00 : f32
    %346 = vector.broadcast %cst_76 : f32 to vector<4x16xf32>
    %347 = arith.addf %346, %345 : vector<4x16xf32>
    %348 = arith.divf %346, %347 : vector<4x16xf32>
    %349 = vector.extract_strided_slice %337 {offsets = [0, 16], sizes = [4, 16], strides = [1, 1]} : vector<4x48xf32> to vector<4x16xf32>
    %350 = vector.extract_strided_slice %340 {offsets = [0, 16], sizes = [4, 16], strides = [1, 1]} : vector<4x48xf32> to vector<4x16xf32>
    %351 = arith.addf %349, %350 : vector<4x16xf32>
    %352 = arith.negf %351 : vector<4x16xf32>
    %353 = math.exp %352 : vector<4x16xf32>
    %cst_77 = arith.constant 1.000000e+00 : f32
    %354 = vector.broadcast %cst_77 : f32 to vector<4x16xf32>
    %355 = arith.addf %354, %353 : vector<4x16xf32>
    %356 = arith.divf %354, %355 : vector<4x16xf32>
    %357 = vector.extract_strided_slice %337 {offsets = [0, 32], sizes = [4, 16], strides = [1, 1]} : vector<4x48xf32> to vector<4x16xf32>
    %358 = vector.extract_strided_slice %340 {offsets = [0, 32], sizes = [4, 16], strides = [1, 1]} : vector<4x48xf32> to vector<4x16xf32>
    %359 = arith.mulf %348, %358 : vector<4x16xf32>
    %360 = arith.addf %357, %359 : vector<4x16xf32>
    %361 = math.tanh %360 : vector<4x16xf32>
    %cst_78 = arith.constant 1.000000e+00 : f32
    %362 = vector.broadcast %cst_78 : f32 to vector<4x16xf32>
    %363 = arith.subf %362, %356 : vector<4x16xf32>
    %364 = arith.mulf %363, %361 : vector<4x16xf32>
    %365 = arith.mulf %356, %304 : vector<4x16xf32>
    %366 = arith.addf %364, %365 : vector<4x16xf32>
    %367 = vector.extract_strided_slice %12 {offsets = [0, 5, 0], sizes = [4, 1, 48], strides = [1, 1, 1]} : vector<4x8x96xf32> to vector<4x1x48xf32>
    %368 = vector.shape_cast %367 : vector<4x1x48xf32> to vector<4x48xf32>
    %cst_79 = arith.constant dense<0.000000e+00> : vector<4x48xf32>
    %369 = tpu.matmul %335, %51, %cst_79 {dimension_numbers = #tpu.dot_dimension_numbers<[1], [0], [0], [1], [0, 0, 1, 1], [], []>} : vector<4x16xf32>, vector<16x48xf32>, vector<4x48xf32> -> vector<4x48xf32>
    %370 = vector.broadcast %52 : vector<1x48xf32> to vector<4x48xf32>
    %371 = arith.addf %369, %370 : vector<4x48xf32>
    %372 = vector.extract_strided_slice %368 {offsets = [0, 0], sizes = [4, 16], strides = [1, 1]} : vector<4x48xf32> to vector<4x16xf32>
    %373 = vector.extract_strided_slice %371 {offsets = [0, 0], sizes = [4, 16], strides = [1, 1]} : vector<4x48xf32> to vector<4x16xf32>
    %374 = arith.addf %372, %373 : vector<4x16xf32>
    %375 = arith.negf %374 : vector<4x16xf32>
    %376 = math.exp %375 : vector<4x16xf32>
    %cst_80 = arith.constant 1.000000e+00 : f32
    %377 = vector.broadcast %cst_80 : f32 to vector<4x16xf32>
    %378 = arith.addf %377, %376 : vector<4x16xf32>
    %379 = arith.divf %377, %378 : vector<4x16xf32>
    %380 = vector.extract_strided_slice %368 {offsets = [0, 16], sizes = [4, 16], strides = [1, 1]} : vector<4x48xf32> to vector<4x16xf32>
    %381 = vector.extract_strided_slice %371 {offsets = [0, 16], sizes = [4, 16], strides = [1, 1]} : vector<4x48xf32> to vector<4x16xf32>
    %382 = arith.addf %380, %381 : vector<4x16xf32>
    %383 = arith.negf %382 : vector<4x16xf32>
    %384 = math.exp %383 : vector<4x16xf32>
    %cst_81 = arith.constant 1.000000e+00 : f32
    %385 = vector.broadcast %cst_81 : f32 to vector<4x16xf32>
    %386 = arith.addf %385, %384 : vector<4x16xf32>
    %387 = arith.divf %385, %386 : vector<4x16xf32>
    %388 = vector.extract_strided_slice %368 {offsets = [0, 32], sizes = [4, 16], strides = [1, 1]} : vector<4x48xf32> to vector<4x16xf32>
    %389 = vector.extract_strided_slice %371 {offsets = [0, 32], sizes = [4, 16], strides = [1, 1]} : vector<4x48xf32> to vector<4x16xf32>
    %390 = arith.mulf %379, %389 : vector<4x16xf32>
    %391 = arith.addf %388, %390 : vector<4x16xf32>
    %392 = math.tanh %391 : vector<4x16xf32>
    %cst_82 = arith.constant 1.000000e+00 : f32
    %393 = vector.broadcast %cst_82 : f32 to vector<4x16xf32>
    %394 = arith.subf %393, %387 : vector<4x16xf32>
    %395 = arith.mulf %394, %392 : vector<4x16xf32>
    %396 = arith.mulf %387, %335 : vector<4x16xf32>
    %397 = arith.addf %395, %396 : vector<4x16xf32>
    %398 = vector.extract_strided_slice %12 {offsets = [0, 5, 48], sizes = [4, 1, 48], strides = [1, 1, 1]} : vector<4x8x96xf32> to vector<4x1x48xf32>
    %399 = vector.shape_cast %398 : vector<4x1x48xf32> to vector<4x48xf32>
    %cst_83 = arith.constant dense<0.000000e+00> : vector<4x48xf32>
    %400 = tpu.matmul %366, %53, %cst_83 {dimension_numbers = #tpu.dot_dimension_numbers<[1], [0], [0], [1], [0, 0, 1, 1], [], []>} : vector<4x16xf32>, vector<16x48xf32>, vector<4x48xf32> -> vector<4x48xf32>
    %401 = vector.broadcast %54 : vector<1x48xf32> to vector<4x48xf32>
    %402 = arith.addf %400, %401 : vector<4x48xf32>
    %403 = vector.extract_strided_slice %399 {offsets = [0, 0], sizes = [4, 16], strides = [1, 1]} : vector<4x48xf32> to vector<4x16xf32>
    %404 = vector.extract_strided_slice %402 {offsets = [0, 0], sizes = [4, 16], strides = [1, 1]} : vector<4x48xf32> to vector<4x16xf32>
    %405 = arith.addf %403, %404 : vector<4x16xf32>
    %406 = arith.negf %405 : vector<4x16xf32>
    %407 = math.exp %406 : vector<4x16xf32>
    %cst_84 = arith.constant 1.000000e+00 : f32
    %408 = vector.broadcast %cst_84 : f32 to vector<4x16xf32>
    %409 = arith.addf %408, %407 : vector<4x16xf32>
    %410 = arith.divf %408, %409 : vector<4x16xf32>
    %411 = vector.extract_strided_slice %399 {offsets = [0, 16], sizes = [4, 16], strides = [1, 1]} : vector<4x48xf32> to vector<4x16xf32>
    %412 = vector.extract_strided_slice %402 {offsets = [0, 16], sizes = [4, 16], strides = [1, 1]} : vector<4x48xf32> to vector<4x16xf32>
    %413 = arith.addf %411, %412 : vector<4x16xf32>
    %414 = arith.negf %413 : vector<4x16xf32>
    %415 = math.exp %414 : vector<4x16xf32>
    %cst_85 = arith.constant 1.000000e+00 : f32
    %416 = vector.broadcast %cst_85 : f32 to vector<4x16xf32>
    %417 = arith.addf %416, %415 : vector<4x16xf32>
    %418 = arith.divf %416, %417 : vector<4x16xf32>
    %419 = vector.extract_strided_slice %399 {offsets = [0, 32], sizes = [4, 16], strides = [1, 1]} : vector<4x48xf32> to vector<4x16xf32>
    %420 = vector.extract_strided_slice %402 {offsets = [0, 32], sizes = [4, 16], strides = [1, 1]} : vector<4x48xf32> to vector<4x16xf32>
    %421 = arith.mulf %410, %420 : vector<4x16xf32>
    %422 = arith.addf %419, %421 : vector<4x16xf32>
    %423 = math.tanh %422 : vector<4x16xf32>
    %cst_86 = arith.constant 1.000000e+00 : f32
    %424 = vector.broadcast %cst_86 : f32 to vector<4x16xf32>
    %425 = arith.subf %424, %418 : vector<4x16xf32>
    %426 = arith.mulf %425, %423 : vector<4x16xf32>
    %427 = arith.mulf %418, %366 : vector<4x16xf32>
    %428 = arith.addf %426, %427 : vector<4x16xf32>
    %429 = vector.extract_strided_slice %12 {offsets = [0, 6, 0], sizes = [4, 1, 48], strides = [1, 1, 1]} : vector<4x8x96xf32> to vector<4x1x48xf32>
    %430 = vector.shape_cast %429 : vector<4x1x48xf32> to vector<4x48xf32>
    %cst_87 = arith.constant dense<0.000000e+00> : vector<4x48xf32>
    %431 = tpu.matmul %397, %51, %cst_87 {dimension_numbers = #tpu.dot_dimension_numbers<[1], [0], [0], [1], [0, 0, 1, 1], [], []>} : vector<4x16xf32>, vector<16x48xf32>, vector<4x48xf32> -> vector<4x48xf32>
    %432 = vector.broadcast %52 : vector<1x48xf32> to vector<4x48xf32>
    %433 = arith.addf %431, %432 : vector<4x48xf32>
    %434 = vector.extract_strided_slice %430 {offsets = [0, 0], sizes = [4, 16], strides = [1, 1]} : vector<4x48xf32> to vector<4x16xf32>
    %435 = vector.extract_strided_slice %433 {offsets = [0, 0], sizes = [4, 16], strides = [1, 1]} : vector<4x48xf32> to vector<4x16xf32>
    %436 = arith.addf %434, %435 : vector<4x16xf32>
    %437 = arith.negf %436 : vector<4x16xf32>
    %438 = math.exp %437 : vector<4x16xf32>
    %cst_88 = arith.constant 1.000000e+00 : f32
    %439 = vector.broadcast %cst_88 : f32 to vector<4x16xf32>
    %440 = arith.addf %439, %438 : vector<4x16xf32>
    %441 = arith.divf %439, %440 : vector<4x16xf32>
    %442 = vector.extract_strided_slice %430 {offsets = [0, 16], sizes = [4, 16], strides = [1, 1]} : vector<4x48xf32> to vector<4x16xf32>
    %443 = vector.extract_strided_slice %433 {offsets = [0, 16], sizes = [4, 16], strides = [1, 1]} : vector<4x48xf32> to vector<4x16xf32>
    %444 = arith.addf %442, %443 : vector<4x16xf32>
    %445 = arith.negf %444 : vector<4x16xf32>
    %446 = math.exp %445 : vector<4x16xf32>
    %cst_89 = arith.constant 1.000000e+00 : f32
    %447 = vector.broadcast %cst_89 : f32 to vector<4x16xf32>
    %448 = arith.addf %447, %446 : vector<4x16xf32>
    %449 = arith.divf %447, %448 : vector<4x16xf32>
    %450 = vector.extract_strided_slice %430 {offsets = [0, 32], sizes = [4, 16], strides = [1, 1]} : vector<4x48xf32> to vector<4x16xf32>
    %451 = vector.extract_strided_slice %433 {offsets = [0, 32], sizes = [4, 16], strides = [1, 1]} : vector<4x48xf32> to vector<4x16xf32>
    %452 = arith.mulf %441, %451 : vector<4x16xf32>
    %453 = arith.addf %450, %452 : vector<4x16xf32>
    %454 = math.tanh %453 : vector<4x16xf32>
    %cst_90 = arith.constant 1.000000e+00 : f32
    %455 = vector.broadcast %cst_90 : f32 to vector<4x16xf32>
    %456 = arith.subf %455, %449 : vector<4x16xf32>
    %457 = arith.mulf %456, %454 : vector<4x16xf32>
    %458 = arith.mulf %449, %397 : vector<4x16xf32>
    %459 = arith.addf %457, %458 : vector<4x16xf32>
    %460 = vector.extract_strided_slice %12 {offsets = [0, 6, 48], sizes = [4, 1, 48], strides = [1, 1, 1]} : vector<4x8x96xf32> to vector<4x1x48xf32>
    %461 = vector.shape_cast %460 : vector<4x1x48xf32> to vector<4x48xf32>
    %cst_91 = arith.constant dense<0.000000e+00> : vector<4x48xf32>
    %462 = tpu.matmul %428, %53, %cst_91 {dimension_numbers = #tpu.dot_dimension_numbers<[1], [0], [0], [1], [0, 0, 1, 1], [], []>} : vector<4x16xf32>, vector<16x48xf32>, vector<4x48xf32> -> vector<4x48xf32>
    %463 = vector.broadcast %54 : vector<1x48xf32> to vector<4x48xf32>
    %464 = arith.addf %462, %463 : vector<4x48xf32>
    %465 = vector.extract_strided_slice %461 {offsets = [0, 0], sizes = [4, 16], strides = [1, 1]} : vector<4x48xf32> to vector<4x16xf32>
    %466 = vector.extract_strided_slice %464 {offsets = [0, 0], sizes = [4, 16], strides = [1, 1]} : vector<4x48xf32> to vector<4x16xf32>
    %467 = arith.addf %465, %466 : vector<4x16xf32>
    %468 = arith.negf %467 : vector<4x16xf32>
    %469 = math.exp %468 : vector<4x16xf32>
    %cst_92 = arith.constant 1.000000e+00 : f32
    %470 = vector.broadcast %cst_92 : f32 to vector<4x16xf32>
    %471 = arith.addf %470, %469 : vector<4x16xf32>
    %472 = arith.divf %470, %471 : vector<4x16xf32>
    %473 = vector.extract_strided_slice %461 {offsets = [0, 16], sizes = [4, 16], strides = [1, 1]} : vector<4x48xf32> to vector<4x16xf32>
    %474 = vector.extract_strided_slice %464 {offsets = [0, 16], sizes = [4, 16], strides = [1, 1]} : vector<4x48xf32> to vector<4x16xf32>
    %475 = arith.addf %473, %474 : vector<4x16xf32>
    %476 = arith.negf %475 : vector<4x16xf32>
    %477 = math.exp %476 : vector<4x16xf32>
    %cst_93 = arith.constant 1.000000e+00 : f32
    %478 = vector.broadcast %cst_93 : f32 to vector<4x16xf32>
    %479 = arith.addf %478, %477 : vector<4x16xf32>
    %480 = arith.divf %478, %479 : vector<4x16xf32>
    %481 = vector.extract_strided_slice %461 {offsets = [0, 32], sizes = [4, 16], strides = [1, 1]} : vector<4x48xf32> to vector<4x16xf32>
    %482 = vector.extract_strided_slice %464 {offsets = [0, 32], sizes = [4, 16], strides = [1, 1]} : vector<4x48xf32> to vector<4x16xf32>
    %483 = arith.mulf %472, %482 : vector<4x16xf32>
    %484 = arith.addf %481, %483 : vector<4x16xf32>
    %485 = math.tanh %484 : vector<4x16xf32>
    %cst_94 = arith.constant 1.000000e+00 : f32
    %486 = vector.broadcast %cst_94 : f32 to vector<4x16xf32>
    %487 = arith.subf %486, %480 : vector<4x16xf32>
    %488 = arith.mulf %487, %485 : vector<4x16xf32>
    %489 = arith.mulf %480, %428 : vector<4x16xf32>
    %490 = arith.addf %488, %489 : vector<4x16xf32>
    %491 = vector.extract_strided_slice %12 {offsets = [0, 7, 0], sizes = [4, 1, 48], strides = [1, 1, 1]} : vector<4x8x96xf32> to vector<4x1x48xf32>
    %492 = vector.shape_cast %491 : vector<4x1x48xf32> to vector<4x48xf32>
    %cst_95 = arith.constant dense<0.000000e+00> : vector<4x48xf32>
    %493 = tpu.matmul %459, %51, %cst_95 {dimension_numbers = #tpu.dot_dimension_numbers<[1], [0], [0], [1], [0, 0, 1, 1], [], []>} : vector<4x16xf32>, vector<16x48xf32>, vector<4x48xf32> -> vector<4x48xf32>
    %494 = vector.broadcast %52 : vector<1x48xf32> to vector<4x48xf32>
    %495 = arith.addf %493, %494 : vector<4x48xf32>
    %496 = vector.extract_strided_slice %492 {offsets = [0, 0], sizes = [4, 16], strides = [1, 1]} : vector<4x48xf32> to vector<4x16xf32>
    %497 = vector.extract_strided_slice %495 {offsets = [0, 0], sizes = [4, 16], strides = [1, 1]} : vector<4x48xf32> to vector<4x16xf32>
    %498 = arith.addf %496, %497 : vector<4x16xf32>
    %499 = arith.negf %498 : vector<4x16xf32>
    %500 = math.exp %499 : vector<4x16xf32>
    %cst_96 = arith.constant 1.000000e+00 : f32
    %501 = vector.broadcast %cst_96 : f32 to vector<4x16xf32>
    %502 = arith.addf %501, %500 : vector<4x16xf32>
    %503 = arith.divf %501, %502 : vector<4x16xf32>
    %504 = vector.extract_strided_slice %492 {offsets = [0, 16], sizes = [4, 16], strides = [1, 1]} : vector<4x48xf32> to vector<4x16xf32>
    %505 = vector.extract_strided_slice %495 {offsets = [0, 16], sizes = [4, 16], strides = [1, 1]} : vector<4x48xf32> to vector<4x16xf32>
    %506 = arith.addf %504, %505 : vector<4x16xf32>
    %507 = arith.negf %506 : vector<4x16xf32>
    %508 = math.exp %507 : vector<4x16xf32>
    %cst_97 = arith.constant 1.000000e+00 : f32
    %509 = vector.broadcast %cst_97 : f32 to vector<4x16xf32>
    %510 = arith.addf %509, %508 : vector<4x16xf32>
    %511 = arith.divf %509, %510 : vector<4x16xf32>
    %512 = vector.extract_strided_slice %492 {offsets = [0, 32], sizes = [4, 16], strides = [1, 1]} : vector<4x48xf32> to vector<4x16xf32>
    %513 = vector.extract_strided_slice %495 {offsets = [0, 32], sizes = [4, 16], strides = [1, 1]} : vector<4x48xf32> to vector<4x16xf32>
    %514 = arith.mulf %503, %513 : vector<4x16xf32>
    %515 = arith.addf %512, %514 : vector<4x16xf32>
    %516 = math.tanh %515 : vector<4x16xf32>
    %cst_98 = arith.constant 1.000000e+00 : f32
    %517 = vector.broadcast %cst_98 : f32 to vector<4x16xf32>
    %518 = arith.subf %517, %511 : vector<4x16xf32>
    %519 = arith.mulf %518, %516 : vector<4x16xf32>
    %520 = arith.mulf %511, %459 : vector<4x16xf32>
    %521 = arith.addf %519, %520 : vector<4x16xf32>
    %522 = vector.extract_strided_slice %12 {offsets = [0, 7, 48], sizes = [4, 1, 48], strides = [1, 1, 1]} : vector<4x8x96xf32> to vector<4x1x48xf32>
    %523 = vector.shape_cast %522 : vector<4x1x48xf32> to vector<4x48xf32>
    %cst_99 = arith.constant dense<0.000000e+00> : vector<4x48xf32>
    %524 = tpu.matmul %490, %53, %cst_99 {dimension_numbers = #tpu.dot_dimension_numbers<[1], [0], [0], [1], [0, 0, 1, 1], [], []>} : vector<4x16xf32>, vector<16x48xf32>, vector<4x48xf32> -> vector<4x48xf32>
    %525 = vector.broadcast %54 : vector<1x48xf32> to vector<4x48xf32>
    %526 = arith.addf %524, %525 : vector<4x48xf32>
    %527 = vector.extract_strided_slice %523 {offsets = [0, 0], sizes = [4, 16], strides = [1, 1]} : vector<4x48xf32> to vector<4x16xf32>
    %528 = vector.extract_strided_slice %526 {offsets = [0, 0], sizes = [4, 16], strides = [1, 1]} : vector<4x48xf32> to vector<4x16xf32>
    %529 = arith.addf %527, %528 : vector<4x16xf32>
    %530 = arith.negf %529 : vector<4x16xf32>
    %531 = math.exp %530 : vector<4x16xf32>
    %cst_100 = arith.constant 1.000000e+00 : f32
    %532 = vector.broadcast %cst_100 : f32 to vector<4x16xf32>
    %533 = arith.addf %532, %531 : vector<4x16xf32>
    %534 = arith.divf %532, %533 : vector<4x16xf32>
    %535 = vector.extract_strided_slice %523 {offsets = [0, 16], sizes = [4, 16], strides = [1, 1]} : vector<4x48xf32> to vector<4x16xf32>
    %536 = vector.extract_strided_slice %526 {offsets = [0, 16], sizes = [4, 16], strides = [1, 1]} : vector<4x48xf32> to vector<4x16xf32>
    %537 = arith.addf %535, %536 : vector<4x16xf32>
    %538 = arith.negf %537 : vector<4x16xf32>
    %539 = math.exp %538 : vector<4x16xf32>
    %cst_101 = arith.constant 1.000000e+00 : f32
    %540 = vector.broadcast %cst_101 : f32 to vector<4x16xf32>
    %541 = arith.addf %540, %539 : vector<4x16xf32>
    %542 = arith.divf %540, %541 : vector<4x16xf32>
    %543 = vector.extract_strided_slice %523 {offsets = [0, 32], sizes = [4, 16], strides = [1, 1]} : vector<4x48xf32> to vector<4x16xf32>
    %544 = vector.extract_strided_slice %526 {offsets = [0, 32], sizes = [4, 16], strides = [1, 1]} : vector<4x48xf32> to vector<4x16xf32>
    %545 = arith.mulf %534, %544 : vector<4x16xf32>
    %546 = arith.addf %543, %545 : vector<4x16xf32>
    %547 = math.tanh %546 : vector<4x16xf32>
    %cst_102 = arith.constant 1.000000e+00 : f32
    %548 = vector.broadcast %cst_102 : f32 to vector<4x16xf32>
    %549 = arith.subf %548, %542 : vector<4x16xf32>
    %550 = arith.mulf %549, %547 : vector<4x16xf32>
    %551 = arith.mulf %542, %490 : vector<4x16xf32>
    %552 = arith.addf %550, %551 : vector<4x16xf32>
    %553 = vector.shape_cast %87 : vector<4x16xf32> to vector<4x1x16xf32>
    %554 = vector.shape_cast %149 : vector<4x16xf32> to vector<4x1x16xf32>
    %555 = vector.shape_cast %211 : vector<4x16xf32> to vector<4x1x16xf32>
    %556 = vector.shape_cast %273 : vector<4x16xf32> to vector<4x1x16xf32>
    %557 = vector.shape_cast %335 : vector<4x16xf32> to vector<4x1x16xf32>
    %558 = vector.shape_cast %397 : vector<4x16xf32> to vector<4x1x16xf32>
    %559 = vector.shape_cast %459 : vector<4x16xf32> to vector<4x1x16xf32>
    %560 = vector.shape_cast %521 : vector<4x16xf32> to vector<4x1x16xf32>
    %561 = tpu.concatenate %553, %554, %555, %556, %557, %558, %559, %560 in 1 : vector<4x1x16xf32>, vector<4x1x16xf32>, vector<4x1x16xf32>, vector<4x1x16xf32>, vector<4x1x16xf32>, vector<4x1x16xf32>, vector<4x1x16xf32>, vector<4x1x16xf32> -> vector<4x8x16xf32>
    %562 = vector.shape_cast %561 : vector<4x8x16xf32> to vector<32x16xf32>
    %c0_103 = arith.constant 0 : index
    %c0_104 = arith.constant 0 : index
    %563 = vector.load %arg15[%c0_103, %c0_104] : memref<16x32xf32, #tpu.memory_space<vmem>>, vector<16x32xf32>
    %cst_105 = arith.constant dense<0.000000e+00> : vector<32x32xf32>
    %564 = tpu.matmul %562, %563, %cst_105 {dimension_numbers = #tpu.dot_dimension_numbers<[1], [0], [0], [1], [0, 0, 1, 1], [], []>} : vector<32x16xf32>, vector<16x32xf32>, vector<32x32xf32> -> vector<32x32xf32>
    %565 = vector.shape_cast %564 : vector<32x32xf32> to vector<4x8x32xf32>
    %c0_106 = arith.constant 0 : index
    %c0_107 = arith.constant 0 : index
    %566 = vector.load %arg16[%c0_106, %c0_107] : memref<128x32xf32, #tpu.memory_space<vmem>>, vector<128x32xf32>
    %c0_108 = arith.constant 0 : index
    %c0_109 = arith.constant 0 : index
    %567 = vector.load %arg17[%c0_108, %c0_109] : memref<1x32xf32, #tpu.memory_space<vmem>>, vector<1x32xf32>
    %c0_110 = arith.constant 0 : index
    %c0_111 = arith.constant 0 : index
    %568 = vector.load %arg18[%c0_110, %c0_111] : memref<1x32xf32, #tpu.memory_space<vmem>>, vector<1x32xf32>
    %c0_112 = arith.constant 0 : index
    %c0_113 = arith.constant 0 : index
    %569 = vector.load %arg19[%c0_112, %c0_113] : memref<1x1xf32, #tpu.memory_space<vmem>>, vector<1x1xf32>
    %570 = vector.shape_cast %6 : vector<4x32xf32> to vector<4x1x32xf32>
    %571 = vector.shape_cast %570 : vector<4x1x32xf32> to vector<4x1x32xf32>
    %572 = vector.broadcast %571 : vector<4x1x32xf32> to vector<4x8x32xf32>
    %573 = vector.broadcast %570 : vector<4x1x32xf32> to vector<4x8x32xf32>
    %574 = arith.subf %565, %573 : vector<4x8x32xf32>
    %575 = vector.broadcast %570 : vector<4x1x32xf32> to vector<4x8x32xf32>
    %576 = arith.mulf %565, %575 : vector<4x8x32xf32>
    %577 = tpu.concatenate %565, %572, %574, %576 in 2 : vector<4x8x32xf32>, vector<4x8x32xf32>, vector<4x8x32xf32>, vector<4x8x32xf32> -> vector<4x8x128xf32>
    %578 = vector.shape_cast %577 : vector<4x8x128xf32> to vector<32x128xf32>
    %cst_114 = arith.constant dense<0.000000e+00> : vector<32x32xf32>
    %579 = tpu.matmul %578, %566, %cst_114 {dimension_numbers = #tpu.dot_dimension_numbers<[1], [0], [0], [1], [0, 0, 1, 1], [], []>} : vector<32x128xf32>, vector<128x32xf32>, vector<32x32xf32> -> vector<32x32xf32>
    %580 = vector.broadcast %567 : vector<1x32xf32> to vector<32x32xf32>
    %581 = arith.addf %579, %580 : vector<32x32xf32>
    %cst_115 = arith.constant 0.000000e+00 : f32
    %582 = vector.broadcast %cst_115 : f32 to vector<32x32xf32>
    %583 = arith.maximumf %581, %582 : vector<32x32xf32>
    %584 = vector.shape_cast %583 : vector<32x32xf32> to vector<4x8x32xf32>
    %585 = vector.shape_cast %568 : vector<1x32xf32> to vector<1x1x32xf32>
    %586 = vector.broadcast %585 : vector<1x1x32xf32> to vector<4x8x32xf32>
    %587 = arith.mulf %584, %586 : vector<4x8x32xf32>
    %cst_116 = arith.constant dense<0.000000e+00> : vector<4x8xf32>
    %588 = vector.multi_reduction <add>, %587, %cst_116 [2] : vector<4x8x32xf32> to vector<4x8xf32>
    %589 = vector.broadcast %569 : vector<1x1xf32> to vector<4x8xf32>
    %590 = arith.addf %588, %589 : vector<4x8xf32>
    %cst_117 = arith.constant dense<0xFF800000> : vector<4xf32>
    %591 = vector.multi_reduction <maximumf>, %590, %cst_117 [1] : vector<4x8xf32> to vector<4xf32>
    %592 = vector.shape_cast %591 : vector<4xf32> to vector<4x1xf32>
    %593 = vector.broadcast %592 : vector<4x1xf32> to vector<4x8xf32>
    %594 = arith.subf %590, %593 : vector<4x8xf32>
    %595 = math.exp %594 : vector<4x8xf32>
    %cst_118 = arith.constant dense<0.000000e+00> : vector<4xf32>
    %596 = vector.multi_reduction <add>, %595, %cst_118 [1] : vector<4x8xf32> to vector<4xf32>
    %597 = vector.shape_cast %596 : vector<4xf32> to vector<4x1xf32>
    %598 = tpu.reciprocal %597 {approx = true} : vector<4x1xf32> -> vector<4x1xf32>
    %599 = vector.broadcast %598 : vector<4x1xf32> to vector<4x8xf32>
    %600 = arith.mulf %595, %599 : vector<4x8xf32>
    %cst_119 = arith.constant 0.000000e+00 : f32
    %601 = vector.broadcast %cst_119 : f32 to vector<4x32xf32>
    %cst_120 = arith.constant 0.000000e+00 : f32
    %602 = vector.broadcast %cst_120 : f32 to vector<4x32xf32>
    %cst_121 = arith.constant 0.000000e+00 : f32
    %603 = vector.broadcast %cst_121 : f32 to vector<4x32xf32>
    %cst_122 = arith.constant 0.000000e+00 : f32
    %604 = vector.broadcast %cst_122 : f32 to vector<4x32xf32>
    %605 = vector.extract_strided_slice %1 {offsets = [0, 0, 0], sizes = [4, 1, 32], strides = [1, 1, 1]} : vector<4x8x32xf32> to vector<4x1x32xf32>
    %606 = vector.shape_cast %605 : vector<4x1x32xf32> to vector<4x32xf32>
    %607 = vector.extract_strided_slice %50 {offsets = [0, 0], sizes = [4, 1], strides = [1, 1]} : vector<4x8xf32> to vector<4x1xf32>
    %608 = vector.broadcast %607 : vector<4x1xf32> to vector<4x32xf32>
    %609 = arith.mulf %608, %606 : vector<4x32xf32>
    %610 = arith.addf %601, %609 : vector<4x32xf32>
    %611 = vector.extract_strided_slice %600 {offsets = [0, 0], sizes = [4, 1], strides = [1, 1]} : vector<4x8xf32> to vector<4x1xf32>
    %612 = vector.broadcast %611 : vector<4x1xf32> to vector<4x32xf32>
    %613 = arith.mulf %612, %606 : vector<4x32xf32>
    %614 = arith.addf %602, %613 : vector<4x32xf32>
    %cst_123 = arith.constant 1.250000e-01 : f32
    %615 = vector.broadcast %cst_123 : f32 to vector<4x32xf32>
    %616 = arith.mulf %615, %606 : vector<4x32xf32>
    %617 = arith.addf %603, %616 : vector<4x32xf32>
    %cst_124 = arith.constant 0.0839805752 : f32
    %618 = vector.broadcast %cst_124 : f32 to vector<4x32xf32>
    %619 = arith.mulf %618, %606 : vector<4x32xf32>
    %620 = arith.addf %604, %619 : vector<4x32xf32>
    %621 = vector.extract_strided_slice %1 {offsets = [0, 1, 0], sizes = [4, 1, 32], strides = [1, 1, 1]} : vector<4x8x32xf32> to vector<4x1x32xf32>
    %622 = vector.shape_cast %621 : vector<4x1x32xf32> to vector<4x32xf32>
    %623 = vector.extract_strided_slice %50 {offsets = [0, 1], sizes = [4, 1], strides = [1, 1]} : vector<4x8xf32> to vector<4x1xf32>
    %624 = vector.broadcast %623 : vector<4x1xf32> to vector<4x32xf32>
    %625 = arith.mulf %624, %622 : vector<4x32xf32>
    %626 = arith.addf %610, %625 : vector<4x32xf32>
    %627 = vector.extract_strided_slice %600 {offsets = [0, 1], sizes = [4, 1], strides = [1, 1]} : vector<4x8xf32> to vector<4x1xf32>
    %628 = vector.broadcast %627 : vector<4x1xf32> to vector<4x32xf32>
    %629 = arith.mulf %628, %622 : vector<4x32xf32>
    %630 = arith.addf %614, %629 : vector<4x32xf32>
    %cst_125 = arith.constant 1.250000e-01 : f32
    %631 = vector.broadcast %cst_125 : f32 to vector<4x32xf32>
    %632 = arith.mulf %631, %622 : vector<4x32xf32>
    %633 = arith.addf %617, %632 : vector<4x32xf32>
    %cst_126 = arith.constant 0.0933117493 : f32
    %634 = vector.broadcast %cst_126 : f32 to vector<4x32xf32>
    %635 = arith.mulf %634, %622 : vector<4x32xf32>
    %636 = arith.addf %620, %635 : vector<4x32xf32>
    %637 = vector.extract_strided_slice %1 {offsets = [0, 2, 0], sizes = [4, 1, 32], strides = [1, 1, 1]} : vector<4x8x32xf32> to vector<4x1x32xf32>
    %638 = vector.shape_cast %637 : vector<4x1x32xf32> to vector<4x32xf32>
    %639 = vector.extract_strided_slice %50 {offsets = [0, 2], sizes = [4, 1], strides = [1, 1]} : vector<4x8xf32> to vector<4x1xf32>
    %640 = vector.broadcast %639 : vector<4x1xf32> to vector<4x32xf32>
    %641 = arith.mulf %640, %638 : vector<4x32xf32>
    %642 = arith.addf %626, %641 : vector<4x32xf32>
    %643 = vector.extract_strided_slice %600 {offsets = [0, 2], sizes = [4, 1], strides = [1, 1]} : vector<4x8xf32> to vector<4x1xf32>
    %644 = vector.broadcast %643 : vector<4x1xf32> to vector<4x32xf32>
    %645 = arith.mulf %644, %638 : vector<4x32xf32>
    %646 = arith.addf %630, %645 : vector<4x32xf32>
    %cst_127 = arith.constant 1.250000e-01 : f32
    %647 = vector.broadcast %cst_127 : f32 to vector<4x32xf32>
    %648 = arith.mulf %647, %638 : vector<4x32xf32>
    %649 = arith.addf %633, %648 : vector<4x32xf32>
    %cst_128 = arith.constant 0.103679717 : f32
    %650 = vector.broadcast %cst_128 : f32 to vector<4x32xf32>
    %651 = arith.mulf %650, %638 : vector<4x32xf32>
    %652 = arith.addf %636, %651 : vector<4x32xf32>
    %653 = vector.extract_strided_slice %1 {offsets = [0, 3, 0], sizes = [4, 1, 32], strides = [1, 1, 1]} : vector<4x8x32xf32> to vector<4x1x32xf32>
    %654 = vector.shape_cast %653 : vector<4x1x32xf32> to vector<4x32xf32>
    %655 = vector.extract_strided_slice %50 {offsets = [0, 3], sizes = [4, 1], strides = [1, 1]} : vector<4x8xf32> to vector<4x1xf32>
    %656 = vector.broadcast %655 : vector<4x1xf32> to vector<4x32xf32>
    %657 = arith.mulf %656, %654 : vector<4x32xf32>
    %658 = arith.addf %642, %657 : vector<4x32xf32>
    %659 = vector.extract_strided_slice %600 {offsets = [0, 3], sizes = [4, 1], strides = [1, 1]} : vector<4x8xf32> to vector<4x1xf32>
    %660 = vector.broadcast %659 : vector<4x1xf32> to vector<4x32xf32>
    %661 = arith.mulf %660, %654 : vector<4x32xf32>
    %662 = arith.addf %646, %661 : vector<4x32xf32>
    %cst_129 = arith.constant 1.250000e-01 : f32
    %663 = vector.broadcast %cst_129 : f32 to vector<4x32xf32>
    %664 = arith.mulf %663, %654 : vector<4x32xf32>
    %665 = arith.addf %649, %664 : vector<4x32xf32>
    %cst_130 = arith.constant 0.115199685 : f32
    %666 = vector.broadcast %cst_130 : f32 to vector<4x32xf32>
    %667 = arith.mulf %666, %654 : vector<4x32xf32>
    %668 = arith.addf %652, %667 : vector<4x32xf32>
    %669 = vector.extract_strided_slice %1 {offsets = [0, 4, 0], sizes = [4, 1, 32], strides = [1, 1, 1]} : vector<4x8x32xf32> to vector<4x1x32xf32>
    %670 = vector.shape_cast %669 : vector<4x1x32xf32> to vector<4x32xf32>
    %671 = vector.extract_strided_slice %50 {offsets = [0, 4], sizes = [4, 1], strides = [1, 1]} : vector<4x8xf32> to vector<4x1xf32>
    %672 = vector.broadcast %671 : vector<4x1xf32> to vector<4x32xf32>
    %673 = arith.mulf %672, %670 : vector<4x32xf32>
    %674 = arith.addf %658, %673 : vector<4x32xf32>
    %675 = vector.extract_strided_slice %600 {offsets = [0, 4], sizes = [4, 1], strides = [1, 1]} : vector<4x8xf32> to vector<4x1xf32>
    %676 = vector.broadcast %675 : vector<4x1xf32> to vector<4x32xf32>
    %677 = arith.mulf %676, %670 : vector<4x32xf32>
    %678 = arith.addf %662, %677 : vector<4x32xf32>
    %cst_131 = arith.constant 1.250000e-01 : f32
    %679 = vector.broadcast %cst_131 : f32 to vector<4x32xf32>
    %680 = arith.mulf %679, %670 : vector<4x32xf32>
    %681 = arith.addf %665, %680 : vector<4x32xf32>
    %cst_132 = arith.constant 0.127999648 : f32
    %682 = vector.broadcast %cst_132 : f32 to vector<4x32xf32>
    %683 = arith.mulf %682, %670 : vector<4x32xf32>
    %684 = arith.addf %668, %683 : vector<4x32xf32>
    %685 = vector.extract_strided_slice %1 {offsets = [0, 5, 0], sizes = [4, 1, 32], strides = [1, 1, 1]} : vector<4x8x32xf32> to vector<4x1x32xf32>
    %686 = vector.shape_cast %685 : vector<4x1x32xf32> to vector<4x32xf32>
    %687 = vector.extract_strided_slice %50 {offsets = [0, 5], sizes = [4, 1], strides = [1, 1]} : vector<4x8xf32> to vector<4x1xf32>
    %688 = vector.broadcast %687 : vector<4x1xf32> to vector<4x32xf32>
    %689 = arith.mulf %688, %686 : vector<4x32xf32>
    %690 = arith.addf %674, %689 : vector<4x32xf32>
    %691 = vector.extract_strided_slice %600 {offsets = [0, 5], sizes = [4, 1], strides = [1, 1]} : vector<4x8xf32> to vector<4x1xf32>
    %692 = vector.broadcast %691 : vector<4x1xf32> to vector<4x32xf32>
    %693 = arith.mulf %692, %686 : vector<4x32xf32>
    %694 = arith.addf %678, %693 : vector<4x32xf32>
    %cst_133 = arith.constant 1.250000e-01 : f32
    %695 = vector.broadcast %cst_133 : f32 to vector<4x32xf32>
    %696 = arith.mulf %695, %686 : vector<4x32xf32>
    %697 = arith.addf %681, %696 : vector<4x32xf32>
    %cst_134 = arith.constant 0.142221838 : f32
    %698 = vector.broadcast %cst_134 : f32 to vector<4x32xf32>
    %699 = arith.mulf %698, %686 : vector<4x32xf32>
    %700 = arith.addf %684, %699 : vector<4x32xf32>
    %701 = vector.extract_strided_slice %1 {offsets = [0, 6, 0], sizes = [4, 1, 32], strides = [1, 1, 1]} : vector<4x8x32xf32> to vector<4x1x32xf32>
    %702 = vector.shape_cast %701 : vector<4x1x32xf32> to vector<4x32xf32>
    %703 = vector.extract_strided_slice %50 {offsets = [0, 6], sizes = [4, 1], strides = [1, 1]} : vector<4x8xf32> to vector<4x1xf32>
    %704 = vector.broadcast %703 : vector<4x1xf32> to vector<4x32xf32>
    %705 = arith.mulf %704, %702 : vector<4x32xf32>
    %706 = arith.addf %690, %705 : vector<4x32xf32>
    %707 = vector.extract_strided_slice %600 {offsets = [0, 6], sizes = [4, 1], strides = [1, 1]} : vector<4x8xf32> to vector<4x1xf32>
    %708 = vector.broadcast %707 : vector<4x1xf32> to vector<4x32xf32>
    %709 = arith.mulf %708, %702 : vector<4x32xf32>
    %710 = arith.addf %694, %709 : vector<4x32xf32>
    %cst_135 = arith.constant 1.250000e-01 : f32
    %711 = vector.broadcast %cst_135 : f32 to vector<4x32xf32>
    %712 = arith.mulf %711, %702 : vector<4x32xf32>
    %713 = arith.addf %697, %712 : vector<4x32xf32>
    %cst_136 = arith.constant 0.158024266 : f32
    %714 = vector.broadcast %cst_136 : f32 to vector<4x32xf32>
    %715 = arith.mulf %714, %702 : vector<4x32xf32>
    %716 = arith.addf %700, %715 : vector<4x32xf32>
    %717 = vector.extract_strided_slice %1 {offsets = [0, 7, 0], sizes = [4, 1, 32], strides = [1, 1, 1]} : vector<4x8x32xf32> to vector<4x1x32xf32>
    %718 = vector.shape_cast %717 : vector<4x1x32xf32> to vector<4x32xf32>
    %719 = vector.extract_strided_slice %50 {offsets = [0, 7], sizes = [4, 1], strides = [1, 1]} : vector<4x8xf32> to vector<4x1xf32>
    %720 = vector.broadcast %719 : vector<4x1xf32> to vector<4x32xf32>
    %721 = arith.mulf %720, %718 : vector<4x32xf32>
    %722 = arith.addf %706, %721 : vector<4x32xf32>
    %723 = vector.extract_strided_slice %600 {offsets = [0, 7], sizes = [4, 1], strides = [1, 1]} : vector<4x8xf32> to vector<4x1xf32>
    %724 = vector.broadcast %723 : vector<4x1xf32> to vector<4x32xf32>
    %725 = arith.mulf %724, %718 : vector<4x32xf32>
    %726 = arith.addf %710, %725 : vector<4x32xf32>
    %cst_137 = arith.constant 1.250000e-01 : f32
    %727 = vector.broadcast %cst_137 : f32 to vector<4x32xf32>
    %728 = arith.mulf %727, %718 : vector<4x32xf32>
    %729 = arith.addf %713, %728 : vector<4x32xf32>
    %cst_138 = arith.constant 0.175582513 : f32
    %730 = vector.broadcast %cst_138 : f32 to vector<4x32xf32>
    %731 = arith.mulf %730, %718 : vector<4x32xf32>
    %732 = arith.addf %716, %731 : vector<4x32xf32>
    %733 = arith.mulf %722, %732 : vector<4x32xf32>
    %cst_139 = arith.constant dense<0.000000e+00> : vector<4xf32>
    %734 = vector.multi_reduction <add>, %733, %cst_139 [1] : vector<4x32xf32> to vector<4xf32>
    %735 = vector.shape_cast %734 : vector<4xf32> to vector<4x1xf32>
    %736 = arith.mulf %722, %729 : vector<4x32xf32>
    %cst_140 = arith.constant dense<0.000000e+00> : vector<4xf32>
    %737 = vector.multi_reduction <add>, %736, %cst_140 [1] : vector<4x32xf32> to vector<4xf32>
    %738 = vector.shape_cast %737 : vector<4xf32> to vector<4x1xf32>
    %739 = arith.subf %735, %738 : vector<4x1xf32>
    %cst_141 = arith.constant 0.000000e+00 : f32
    %740 = vector.broadcast %cst_141 : f32 to vector<4x1xf32>
    %741 = arith.maximumf %739, %740 : vector<4x1xf32>
    %742 = vector.broadcast %cst_141 : f32 to vector<4x1xf32>
    %743 = arith.subf %739, %742 : vector<4x1xf32>
    %744 = arith.cmpf one, %743, %743 : vector<4x1xf32>
    %745 = vector.broadcast %cst_141 : f32 to vector<4x1xf32>
    %746 = arith.addf %739, %745 : vector<4x1xf32>
    %747 = math.absf %743 : vector<4x1xf32>
    %cst_142 = arith.constant 0.000000e+00 : f32
    %748 = vector.broadcast %cst_142 : f32 to vector<4x1xf32>
    %749 = arith.subf %748, %747 : vector<4x1xf32>
    %750 = math.exp %749 : vector<4x1xf32>
    %751 = math.log1p %750 : vector<4x1xf32>
    %752 = arith.addf %741, %751 : vector<4x1xf32>
    %753 = arith.select %744, %746, %752 : vector<4x1xi1>, vector<4x1xf32>
    %754 = arith.mulf %729, %726 : vector<4x32xf32>
    %cst_143 = arith.constant dense<0.000000e+00> : vector<4xf32>
    %755 = vector.multi_reduction <add>, %754, %cst_143 [1] : vector<4x32xf32> to vector<4xf32>
    %756 = vector.shape_cast %755 : vector<4xf32> to vector<4x1xf32>
    %757 = arith.mulf %729, %722 : vector<4x32xf32>
    %cst_144 = arith.constant dense<0.000000e+00> : vector<4xf32>
    %758 = vector.multi_reduction <add>, %757, %cst_144 [1] : vector<4x32xf32> to vector<4xf32>
    %759 = vector.shape_cast %758 : vector<4xf32> to vector<4x1xf32>
    %760 = arith.subf %756, %759 : vector<4x1xf32>
    %cst_145 = arith.constant 0.000000e+00 : f32
    %761 = vector.broadcast %cst_145 : f32 to vector<4x1xf32>
    %762 = arith.maximumf %760, %761 : vector<4x1xf32>
    %763 = vector.broadcast %cst_145 : f32 to vector<4x1xf32>
    %764 = arith.subf %760, %763 : vector<4x1xf32>
    %765 = arith.cmpf one, %764, %764 : vector<4x1xf32>
    %766 = vector.broadcast %cst_145 : f32 to vector<4x1xf32>
    %767 = arith.addf %760, %766 : vector<4x1xf32>
    %768 = math.absf %764 : vector<4x1xf32>
    %cst_146 = arith.constant 0.000000e+00 : f32
    %769 = vector.broadcast %cst_146 : f32 to vector<4x1xf32>
    %770 = arith.subf %769, %768 : vector<4x1xf32>
    %771 = math.exp %770 : vector<4x1xf32>
    %772 = math.log1p %771 : vector<4x1xf32>
    %773 = arith.addf %762, %772 : vector<4x1xf32>
    %774 = arith.select %765, %767, %773 : vector<4x1xi1>, vector<4x1xf32>
    %775 = arith.addf %753, %774 : vector<4x1xf32>
    %776 = arith.mulf %726, %729 : vector<4x32xf32>
    %cst_147 = arith.constant dense<0.000000e+00> : vector<4xf32>
    %777 = vector.multi_reduction <add>, %776, %cst_147 [1] : vector<4x32xf32> to vector<4xf32>
    %778 = vector.shape_cast %777 : vector<4xf32> to vector<4x1xf32>
    %779 = arith.mulf %726, %732 : vector<4x32xf32>
    %cst_148 = arith.constant dense<0.000000e+00> : vector<4xf32>
    %780 = vector.multi_reduction <add>, %779, %cst_148 [1] : vector<4x32xf32> to vector<4xf32>
    %781 = vector.shape_cast %780 : vector<4xf32> to vector<4x1xf32>
    %782 = arith.subf %778, %781 : vector<4x1xf32>
    %cst_149 = arith.constant 0.000000e+00 : f32
    %783 = vector.broadcast %cst_149 : f32 to vector<4x1xf32>
    %784 = arith.maximumf %782, %783 : vector<4x1xf32>
    %785 = vector.broadcast %cst_149 : f32 to vector<4x1xf32>
    %786 = arith.subf %782, %785 : vector<4x1xf32>
    %787 = arith.cmpf one, %786, %786 : vector<4x1xf32>
    %788 = vector.broadcast %cst_149 : f32 to vector<4x1xf32>
    %789 = arith.addf %782, %788 : vector<4x1xf32>
    %790 = math.absf %786 : vector<4x1xf32>
    %cst_150 = arith.constant 0.000000e+00 : f32
    %791 = vector.broadcast %cst_150 : f32 to vector<4x1xf32>
    %792 = arith.subf %791, %790 : vector<4x1xf32>
    %793 = math.exp %792 : vector<4x1xf32>
    %794 = math.log1p %793 : vector<4x1xf32>
    %795 = arith.addf %784, %794 : vector<4x1xf32>
    %796 = arith.select %787, %789, %795 : vector<4x1xi1>, vector<4x1xf32>
    %797 = arith.addf %775, %796 : vector<4x1xf32>
    %798 = arith.mulf %732, %722 : vector<4x32xf32>
    %cst_151 = arith.constant dense<0.000000e+00> : vector<4xf32>
    %799 = vector.multi_reduction <add>, %798, %cst_151 [1] : vector<4x32xf32> to vector<4xf32>
    %800 = vector.shape_cast %799 : vector<4xf32> to vector<4x1xf32>
    %801 = arith.mulf %732, %726 : vector<4x32xf32>
    %cst_152 = arith.constant dense<0.000000e+00> : vector<4xf32>
    %802 = vector.multi_reduction <add>, %801, %cst_152 [1] : vector<4x32xf32> to vector<4xf32>
    %803 = vector.shape_cast %802 : vector<4xf32> to vector<4x1xf32>
    %804 = arith.subf %800, %803 : vector<4x1xf32>
    %cst_153 = arith.constant 0.000000e+00 : f32
    %805 = vector.broadcast %cst_153 : f32 to vector<4x1xf32>
    %806 = arith.maximumf %804, %805 : vector<4x1xf32>
    %807 = vector.broadcast %cst_153 : f32 to vector<4x1xf32>
    %808 = arith.subf %804, %807 : vector<4x1xf32>
    %809 = arith.cmpf one, %808, %808 : vector<4x1xf32>
    %810 = vector.broadcast %cst_153 : f32 to vector<4x1xf32>
    %811 = arith.addf %804, %810 : vector<4x1xf32>
    %812 = math.absf %808 : vector<4x1xf32>
    %cst_154 = arith.constant 0.000000e+00 : f32
    %813 = vector.broadcast %cst_154 : f32 to vector<4x1xf32>
    %814 = arith.subf %813, %812 : vector<4x1xf32>
    %815 = math.exp %814 : vector<4x1xf32>
    %816 = math.log1p %815 : vector<4x1xf32>
    %817 = arith.addf %806, %816 : vector<4x1xf32>
    %818 = arith.select %809, %811, %817 : vector<4x1xi1>, vector<4x1xf32>
    %819 = arith.addf %797, %818 : vector<4x1xf32>
    %820 = tpu.concatenate %722, %722 in 0 : vector<4x32xf32>, vector<4x32xf32> -> vector<8x32xf32>
    %821 = tpu.concatenate %726, %726 in 0 : vector<4x32xf32>, vector<4x32xf32> -> vector<8x32xf32>
    %822 = tpu.concatenate %552, %552 in 0 : vector<4x16xf32>, vector<4x16xf32> -> vector<8x16xf32>
    %823 = tpu.concatenate %822, %820, %821 in 1 : vector<8x16xf32>, vector<8x32xf32>, vector<8x32xf32> -> vector<8x80xf32>
    %c0_155 = arith.constant 0 : index
    %c0_156 = arith.constant 0 : index
    %824 = vector.load %arg22[%c0_155, %c0_156] : memref<80x16xf32, #tpu.memory_space<vmem>>, vector<80x16xf32>
    %cst_157 = arith.constant dense<0.000000e+00> : vector<8x16xf32>
    %825 = tpu.matmul %823, %824, %cst_157 {dimension_numbers = #tpu.dot_dimension_numbers<[1], [0], [0], [1], [0, 0, 1, 1], [], []>} : vector<8x80xf32>, vector<80x16xf32>, vector<8x16xf32> -> vector<8x16xf32>
    %c0_158 = arith.constant 0 : index
    %c0_159 = arith.constant 0 : index
    %826 = vector.load %arg23[%c0_158, %c0_159] : memref<1x16xf32, #tpu.memory_space<vmem>>, vector<1x16xf32>
    %827 = vector.broadcast %826 : vector<1x16xf32> to vector<8x16xf32>
    %828 = arith.addf %825, %827 : vector<8x16xf32>
    %cst_160 = arith.constant 0.000000e+00 : f32
    %829 = vector.broadcast %cst_160 : f32 to vector<8x16xf32>
    %830 = arith.maximumf %828, %829 : vector<8x16xf32>
    %c0_161 = arith.constant 0 : index
    %c0_162 = arith.constant 0 : index
    %831 = vector.load %arg24[%c0_161, %c0_162] : memref<1x16xf32, #tpu.memory_space<vmem>>, vector<1x16xf32>
    %832 = vector.broadcast %831 : vector<1x16xf32> to vector<8x16xf32>
    %833 = arith.mulf %830, %832 : vector<8x16xf32>
    %cst_163 = arith.constant dense<0.000000e+00> : vector<8xf32>
    %834 = vector.multi_reduction <add>, %833, %cst_163 [1] : vector<8x16xf32> to vector<8xf32>
    %835 = vector.shape_cast %834 : vector<8xf32> to vector<8x1xf32>
    %c0_164 = arith.constant 0 : index
    %c0_165 = arith.constant 0 : index
    %836 = vector.load %arg25[%c0_164, %c0_165] : memref<1x1xf32, #tpu.memory_space<vmem>>, vector<1x1xf32>
    %837 = vector.broadcast %836 : vector<1x1xf32> to vector<8x1xf32>
    %838 = arith.addf %835, %837 : vector<8x1xf32>
    %839 = arith.negf %838 : vector<8x1xf32>
    %840 = math.exp %839 : vector<8x1xf32>
    %cst_166 = arith.constant 1.000000e+00 : f32
    %841 = vector.broadcast %cst_166 : f32 to vector<8x1xf32>
    %842 = arith.addf %841, %840 : vector<8x1xf32>
    %843 = arith.divf %841, %842 : vector<8x1xf32>
    %844 = vector.broadcast %843 : vector<8x1xf32> to vector<8x32xf32>
    %845 = arith.mulf %844, %820 : vector<8x32xf32>
    %cst_167 = arith.constant 1.000000e+00 : f32
    %846 = vector.broadcast %cst_167 : f32 to vector<8x1xf32>
    %847 = arith.subf %846, %843 : vector<8x1xf32>
    %848 = vector.broadcast %847 : vector<8x1xf32> to vector<8x32xf32>
    %849 = arith.mulf %848, %821 : vector<8x32xf32>
    %850 = arith.addf %845, %849 : vector<8x32xf32>
    %c0_168 = arith.constant 0 : index
    %c0_169 = arith.constant 0 : index
    %c0_170 = arith.constant 0 : index
    %851 = vector.load %arg4[%c0_168, %c0_169, %c0_170] : memref<1x8x16xf32, #tpu.memory_space<vmem>>, vector<1x8x16xf32>
    %852 = vector.shape_cast %851 : vector<1x8x16xf32> to vector<8x16xf32>
    %c0_171 = arith.constant 0 : index
    %c0_172 = arith.constant 0 : index
    %c0_173 = arith.constant 0 : index
    %853 = vector.load %arg5[%c0_171, %c0_172, %c0_173] : memref<1x8x16xf32, #tpu.memory_space<vmem>>, vector<1x8x16xf32>
    %854 = vector.shape_cast %853 : vector<1x8x16xf32> to vector<8x16xf32>
    %855 = tpu.concatenate %850, %852, %854 in 1 : vector<8x32xf32>, vector<8x16xf32>, vector<8x16xf32> -> vector<8x64xf32>
    %c0_174 = arith.constant 0 : index
    %c0_175 = arith.constant 0 : index
    %856 = vector.load %arg26[%c0_174, %c0_175] : memref<64x8xf32, #tpu.memory_space<vmem>>, vector<64x8xf32>
    %cst_176 = arith.constant dense<0.000000e+00> : vector<8x8xf32>
    %857 = tpu.matmul %855, %856, %cst_176 {dimension_numbers = #tpu.dot_dimension_numbers<[1], [0], [0], [1], [0, 0, 1, 1], [], []>} : vector<8x64xf32>, vector<64x8xf32>, vector<8x8xf32> -> vector<8x8xf32>
    %c0_177 = arith.constant 0 : index
    %c0_178 = arith.constant 0 : index
    %858 = vector.load %arg27[%c0_177, %c0_178] : memref<1x8xf32, #tpu.memory_space<vmem>>, vector<1x8xf32>
    %859 = vector.broadcast %858 : vector<1x8xf32> to vector<8x8xf32>
    %860 = arith.addf %857, %859 : vector<8x8xf32>
    %c0_179 = arith.constant 0 : index
    %c0_180 = arith.constant 0 : index
    %861 = vector.load %arg28[%c0_179, %c0_180] : memref<8x8xf32, #tpu.memory_space<vmem>>, vector<8x8xf32>
    %cst_181 = arith.constant dense<0.000000e+00> : vector<8x8xf32>
    %862 = tpu.matmul %860, %861, %cst_181 {dimension_numbers = #tpu.dot_dimension_numbers<[1], [0], [0], [1], [0, 0, 1, 1], [], []>} : vector<8x8xf32>, vector<8x8xf32>, vector<8x8xf32> -> vector<8x8xf32>
    %c0_182 = arith.constant 0 : index
    %c0_183 = arith.constant 0 : index
    %863 = vector.load %arg29[%c0_182, %c0_183] : memref<1x8xf32, #tpu.memory_space<vmem>>, vector<1x8xf32>
    %864 = vector.broadcast %863 : vector<1x8xf32> to vector<8x8xf32>
    %865 = arith.addf %862, %864 : vector<8x8xf32>
    %866 = arith.negf %865 : vector<8x8xf32>
    %867 = math.exp %866 : vector<8x8xf32>
    %cst_184 = arith.constant 1.000000e+00 : f32
    %868 = vector.broadcast %cst_184 : f32 to vector<8x8xf32>
    %869 = arith.addf %868, %867 : vector<8x8xf32>
    %870 = arith.divf %868, %869 : vector<8x8xf32>
    %c0_185 = arith.constant 0 : index
    %c0_186 = arith.constant 0 : index
    %c0_187 = arith.constant 0 : index
    %871 = vector.load %arg30[%c0_185, %c0_186, %c0_187] : memref<1x4x32xf32, #tpu.memory_space<vmem>>, vector<1x4x32xf32>
    %872 = vector.shape_cast %871 : vector<1x4x32xf32> to vector<4x32xf32>
    %873 = vector.shape_cast %722 : vector<4x32xf32> to vector<1x4x32xf32>
    tpu.vector_store %arg30[%c0_185, %c0_186, %c0_187], %873 {strides = array<i32>} : memref<1x4x32xf32, #tpu.memory_space<vmem>>, vector<1x4x32xf32>,
    %c0_188 = arith.constant 0 : index
    %c0_189 = arith.constant 0 : index
    %c0_190 = arith.constant 0 : index
    %874 = vector.load %arg31[%c0_188, %c0_189, %c0_190] : memref<1x4x32xf32, #tpu.memory_space<vmem>>, vector<1x4x32xf32>
    %875 = vector.shape_cast %874 : vector<1x4x32xf32> to vector<4x32xf32>
    %876 = vector.shape_cast %726 : vector<4x32xf32> to vector<1x4x32xf32>
    tpu.vector_store %arg31[%c0_188, %c0_189, %c0_190], %876 {strides = array<i32>} : memref<1x4x32xf32, #tpu.memory_space<vmem>>, vector<1x4x32xf32>,
    %c0_191 = arith.constant 0 : index
    %c0_192 = arith.constant 0 : index
    %c0_193 = arith.constant 0 : index
    %877 = vector.load %arg32[%c0_191, %c0_192, %c0_193] : memref<1x4x1xf32, #tpu.memory_space<vmem>>, vector<1x4x1xf32>
    %878 = vector.shape_cast %877 : vector<1x4x1xf32> to vector<4x1xf32>
    %879 = vector.shape_cast %819 : vector<4x1xf32> to vector<1x4x1xf32>
    tpu.vector_store %arg32[%c0_191, %c0_192, %c0_193], %879 {strides = array<i32>} : memref<1x4x1xf32, #tpu.memory_space<vmem>>, vector<1x4x1xf32>,
    %c0_194 = arith.constant 0 : index
    %c0_195 = arith.constant 0 : index
    %c0_196 = arith.constant 0 : index
    %880 = vector.load %arg33[%c0_194, %c0_195, %c0_196] : memref<1x8x8xf32, #tpu.memory_space<vmem>>, vector<1x8x8xf32>
    %881 = vector.shape_cast %880 : vector<1x8x8xf32> to vector<8x8xf32>
    %882 = vector.shape_cast %870 : vector<8x8xf32> to vector<1x8x8xf32>
    tpu.vector_store %arg33[%c0_194, %c0_195, %c0_196], %882 {strides = array<i32>} : memref<1x8x8xf32, #tpu.memory_space<vmem>>, vector<1x8x8xf32>,
    return
  }
  func.func @transform_0(%arg0: i32) -> (i32, i32, i32, i32) {
    %c0_i32 = arith.constant 0 : i32
    %c0_i32_0 = arith.constant 0 : i32
    %c0_i32_1 = arith.constant 0 : i32
    %c0_i32_2 = arith.constant 0 : i32
    return %arg0, %c0_i32, %c0_i32_0, %c0_i32_1 : i32, i32, i32, i32
  }
  func.func @transform_1(%arg0: i32) -> (i32, i32, i32) {
    %c0_i32 = arith.constant 0 : i32
    %c0_i32_0 = arith.constant 0 : i32
    %c0_i32_1 = arith.constant 0 : i32
    return %arg0, %c0_i32, %c0_i32_0 : i32, i32, i32
  }
  func.func @transform_2(%arg0: i32) -> (i32, i32, i32) {
    %c0_i32 = arith.constant 0 : i32
    %c0_i32_0 = arith.constant 0 : i32
    %c0_i32_1 = arith.constant 0 : i32
    return %arg0, %c0_i32, %c0_i32_0 : i32, i32, i32
  }
  func.func @transform_3(%arg0: i32) -> (i32, i32, i32) {
    %c0_i32 = arith.constant 0 : i32
    %c0_i32_0 = arith.constant 0 : i32
    %c0_i32_1 = arith.constant 0 : i32
    return %arg0, %c0_i32, %c0_i32_0 : i32, i32, i32
  }
  func.func @transform_4(%arg0: i32) -> (i32, i32, i32) {
    %c0_i32 = arith.constant 0 : i32
    %c0_i32_0 = arith.constant 0 : i32
    %c0_i32_1 = arith.constant 0 : i32
    return %arg0, %c0_i32, %c0_i32_0 : i32, i32, i32
  }
  func.func @transform_5(%arg0: i32) -> (i32, i32) {
    %c0_i32 = arith.constant 0 : i32
    %c0_i32_0 = arith.constant 0 : i32
    %c0_i32_1 = arith.constant 0 : i32
    return %c0_i32, %c0_i32_0 : i32, i32
  }
  func.func @transform_6(%arg0: i32) -> (i32, i32) {
    %c0_i32 = arith.constant 0 : i32
    %c0_i32_0 = arith.constant 0 : i32
    %c0_i32_1 = arith.constant 0 : i32
    return %c0_i32, %c0_i32_0 : i32, i32
  }
  func.func @transform_7(%arg0: i32) -> (i32, i32) {
    %c0_i32 = arith.constant 0 : i32
    %c0_i32_0 = arith.constant 0 : i32
    %c0_i32_1 = arith.constant 0 : i32
    return %c0_i32, %c0_i32_0 : i32, i32
  }
  func.func @transform_8(%arg0: i32) -> (i32, i32) {
    %c0_i32 = arith.constant 0 : i32
    %c0_i32_0 = arith.constant 0 : i32
    %c0_i32_1 = arith.constant 0 : i32
    return %c0_i32, %c0_i32_0 : i32, i32
  }
  func.func @transform_9(%arg0: i32) -> (i32, i32) {
    %c0_i32 = arith.constant 0 : i32
    %c0_i32_0 = arith.constant 0 : i32
    %c0_i32_1 = arith.constant 0 : i32
    return %c0_i32, %c0_i32_0 : i32, i32
  }
  func.func @transform_10(%arg0: i32) -> (i32, i32) {
    %c0_i32 = arith.constant 0 : i32
    %c0_i32_0 = arith.constant 0 : i32
    %c0_i32_1 = arith.constant 0 : i32
    return %c0_i32, %c0_i32_0 : i32, i32
  }
  func.func @transform_11(%arg0: i32) -> (i32, i32) {
    %c0_i32 = arith.constant 0 : i32
    %c0_i32_0 = arith.constant 0 : i32
    %c0_i32_1 = arith.constant 0 : i32
    return %c0_i32, %c0_i32_0 : i32, i32
  }
  func.func @transform_12(%arg0: i32) -> (i32, i32) {
    %c0_i32 = arith.constant 0 : i32
    %c0_i32_0 = arith.constant 0 : i32
    %c0_i32_1 = arith.constant 0 : i32
    return %c0_i32, %c0_i32_0 : i32, i32
  }
  func.func @transform_13(%arg0: i32) -> (i32, i32) {
    %c0_i32 = arith.constant 0 : i32
    %c0_i32_0 = arith.constant 0 : i32
    %c0_i32_1 = arith.constant 0 : i32
    return %c0_i32, %c0_i32_0 : i32, i32
  }
  func.func @transform_14(%arg0: i32) -> (i32, i32) {
    %c0_i32 = arith.constant 0 : i32
    %c0_i32_0 = arith.constant 0 : i32
    %c0_i32_1 = arith.constant 0 : i32
    return %c0_i32, %c0_i32_0 : i32, i32
  }
  func.func @transform_15(%arg0: i32) -> (i32, i32) {
    %c0_i32 = arith.constant 0 : i32
    %c0_i32_0 = arith.constant 0 : i32
    %c0_i32_1 = arith.constant 0 : i32
    return %c0_i32, %c0_i32_0 : i32, i32
  }
  func.func @transform_16(%arg0: i32) -> (i32, i32) {
    %c0_i32 = arith.constant 0 : i32
    %c0_i32_0 = arith.constant 0 : i32
    %c0_i32_1 = arith.constant 0 : i32
    return %c0_i32, %c0_i32_0 : i32, i32
  }
  func.func @transform_17(%arg0: i32) -> (i32, i32) {
    %c0_i32 = arith.constant 0 : i32
    %c0_i32_0 = arith.constant 0 : i32
    %c0_i32_1 = arith.constant 0 : i32
    return %c0_i32, %c0_i32_0 : i32, i32
  }
  func.func @transform_18(%arg0: i32) -> (i32, i32) {
    %c0_i32 = arith.constant 0 : i32
    %c0_i32_0 = arith.constant 0 : i32
    %c0_i32_1 = arith.constant 0 : i32
    return %c0_i32, %c0_i32_0 : i32, i32
  }
  func.func @transform_19(%arg0: i32) -> (i32, i32) {
    %c0_i32 = arith.constant 0 : i32
    %c0_i32_0 = arith.constant 0 : i32
    %c0_i32_1 = arith.constant 0 : i32
    return %c0_i32, %c0_i32_0 : i32, i32
  }
  func.func @transform_20(%arg0: i32) -> (i32, i32) {
    %c0_i32 = arith.constant 0 : i32
    %c0_i32_0 = arith.constant 0 : i32
    %c0_i32_1 = arith.constant 0 : i32
    return %c0_i32, %c0_i32_0 : i32, i32
  }
  func.func @transform_21(%arg0: i32) -> (i32, i32) {
    %c0_i32 = arith.constant 0 : i32
    %c0_i32_0 = arith.constant 0 : i32
    %c0_i32_1 = arith.constant 0 : i32
    return %c0_i32, %c0_i32_0 : i32, i32
  }
  func.func @transform_22(%arg0: i32) -> (i32, i32) {
    %c0_i32 = arith.constant 0 : i32
    %c0_i32_0 = arith.constant 0 : i32
    %c0_i32_1 = arith.constant 0 : i32
    return %c0_i32, %c0_i32_0 : i32, i32
  }
  func.func @transform_23(%arg0: i32) -> (i32, i32) {
    %c0_i32 = arith.constant 0 : i32
    %c0_i32_0 = arith.constant 0 : i32
    %c0_i32_1 = arith.constant 0 : i32
    return %c0_i32, %c0_i32_0 : i32, i32
  }
  func.func @transform_24(%arg0: i32) -> (i32, i32) {
    %c0_i32 = arith.constant 0 : i32
    %c0_i32_0 = arith.constant 0 : i32
    %c0_i32_1 = arith.constant 0 : i32
    return %c0_i32, %c0_i32_0 : i32, i32
  }
  func.func @transform_25(%arg0: i32) -> (i32, i32) {
    %c0_i32 = arith.constant 0 : i32
    %c0_i32_0 = arith.constant 0 : i32
    %c0_i32_1 = arith.constant 0 : i32
    return %c0_i32, %c0_i32_0 : i32, i32
  }
  func.func @transform_26(%arg0: i32) -> (i32, i32) {
    %c0_i32 = arith.constant 0 : i32
    %c0_i32_0 = arith.constant 0 : i32
    %c0_i32_1 = arith.constant 0 : i32
    return %c0_i32, %c0_i32_0 : i32, i32
  }
  func.func @transform_27(%arg0: i32) -> (i32, i32) {
    %c0_i32 = arith.constant 0 : i32
    %c0_i32_0 = arith.constant 0 : i32
    %c0_i32_1 = arith.constant 0 : i32
    return %c0_i32, %c0_i32_0 : i32, i32
  }
  func.func @transform_28(%arg0: i32) -> (i32, i32) {
    %c0_i32 = arith.constant 0 : i32
    %c0_i32_0 = arith.constant 0 : i32
    %c0_i32_1 = arith.constant 0 : i32
    return %c0_i32, %c0_i32_0 : i32, i32
  }
  func.func @transform_29(%arg0: i32) -> (i32, i32, i32) {
    %c0_i32 = arith.constant 0 : i32
    %c0_i32_0 = arith.constant 0 : i32
    %c0_i32_1 = arith.constant 0 : i32
    return %arg0, %c0_i32, %c0_i32_0 : i32, i32, i32
  }
  func.func @transform_30(%arg0: i32) -> (i32, i32, i32) {
    %c0_i32 = arith.constant 0 : i32
    %c0_i32_0 = arith.constant 0 : i32
    %c0_i32_1 = arith.constant 0 : i32
    return %arg0, %c0_i32, %c0_i32_0 : i32, i32, i32
  }
  func.func @transform_31(%arg0: i32) -> (i32, i32, i32) {
    %c0_i32 = arith.constant 0 : i32
    %c0_i32_0 = arith.constant 0 : i32
    %c0_i32_1 = arith.constant 0 : i32
    return %arg0, %c0_i32, %c0_i32_0 : i32, i32, i32
  }
  func.func @transform_32(%arg0: i32) -> (i32, i32, i32) {
    %c0_i32 = arith.constant 0 : i32
    %c0_i32_0 = arith.constant 0 : i32
    %c0_i32_1 = arith.constant 0 : i32
    return %arg0, %c0_i32, %c0_i32_0 : i32, i32, i32
  }
}

</mosaic_0001>

<bundles_post_ra>
// kernel: tpu_custom_call.1
= control target key start
LH: loop header
LB: loop body
LE: loop exit
PB: predicated region body
PF: predicated region fallthrough
CT: control target
= control target key end

     0   :  { %s9152_s6 = smov 1   ;;  %s9153_s10 = smov 2   ;;  %s13087_s0 = inlined_call_operand.smem [shape: u32[33], index: -1, kind: input, shape index: {}] }
   0x1   :  { %s9200_s5 = sld [smem:[%s13087_s0]]   ;;  %s9154_s14 = smov 3  }
   0x2   :  { %s9205_s9 = sld [smem:[%s13087_s0 + %s9152_s6]]   ;;  %s9155_s18 = smov 4  }
   0x3   :  { %s9210_s13 = sld [smem:[%s13087_s0 + %s9153_s10]]   ;;  %s9156_s22 = smov 5  }
   0x4   :  { %s9215_s17 = sld [smem:[%s13087_s0 + %s9154_s14]]   ;;  %s9157_s26 = smov 6  }
   0x5   :  { %s9220_s21 = sld [smem:[%s13087_s0 + %s9155_s18]]   ;;  %s9158_s30 = smov 7  }
   0x6   :  { %s9225_s25 = sld [smem:[%s13087_s0 + %s9156_s22]]   ;;  %s9159_s4 = smov 8  }
   0x7   :  { %13316 = sst [smem:[#allocation12_spill]] %s9200_s5  ;;  %s9160_s10 = smov 9  }
   0x8   :  { %13317 = sst [smem:[#allocation13_spill]] %s9205_s9  ;;  %s9161_s15 = smov 10  }
   0x9   :  { %13318 = sst [smem:[#allocation14_spill]] %s9210_s13  ;;  %s9162_s20 = smov 11  }
   0xa   :  { %13319 = sst [smem:[#allocation15_spill]] %s9215_s17  ;;  %s9164_s1 = smov 13  }
   0xb   :  { %13320 = sst [smem:[#allocation16_spill]] %s9220_s21  ;;  %s9165_s7 = smov 14  }
   0xc   :  { %s9230_s29 = sld [smem:[%s13087_s0 + %s9157_s26]]   ;;  %s9163_s26 = smov 12  }
   0xd   :  { %s9235_s3 = sld [smem:[%s13087_s0 + %s9158_s30]]   ;;  %s9167_s22 = smov 16  }
   0xe   :  { %s9240_s8 = sld [smem:[%s13087_s0 + %s9159_s4]]   ;;  %s9168_s28 = smov 17  }
   0xf   :  { %s8148_s14 = sld [smem:[%s13087_s0 + %s9160_s10]]   ;;  %s9175_s17 = smov 26  }
  0x10   :  { %s9248_s19 = sld [smem:[%s13087_s0 + %s9161_s15]]   ;;  %s9166_s15 = smov 15  }
  0x11   :  { %s9253_s24 = sld [smem:[%s13087_s0 + %s9162_s20]]  }
  0x12   :  { %s9258_s30 = sld [smem:[%s13087_s0 + %s9163_s26]]  }
  0x13   :  { %13321 = sst [smem:[#allocation17_spill]] %s9235_s3 }
  0x14   :  { %13322 = sst [smem:[#allocation18_spill]] %s9240_s8 }
  0x15   :  { %s9263_s6 = sld [smem:[%s13087_s0 + %s9164_s1]]   ;;  %v71_v0 = vstv %s8148_s14  ;;  %s9170_s14 = smov 20  }
  0x16   :  { %13323 = sst [smem:[#allocation19_spill]] %s9248_s19  ;;  %72 = vst [vmem:[#allocation2] sm:$0x1] %v71_v0 }
  0x17   :  { %s9268_s12 = sld [smem:[%s13087_s0 + %s9165_s7]]   ;;  %s9169_s7 = smov 19  }
  0x18   :  { %s9273_s20 = sld [smem:[%s13087_s0 + %s9166_s15]]  }
  0x19   :  { %s9278_s27 = sld [smem:[%s13087_s0 + %s9167_s22]]   ;;  %s9171_s22 = smov 21  }
  0x1a   :  { %s9283_s4 = sld [smem:[%s13087_s0 + %s9168_s28]]   ;;  %s9172_s28 = smov 22  }
  0x1b   :  { %13324 = sst [smem:[#allocation20_spill]] %s9263_s6 }
  0x1c   :  { %s9288_s15 = sld [smem:[%s13087_s0 + %s9169_s7]]   ;;  %s9173_s7 = smov 23  }
  0x1d   :  { %13325 = sst [smem:[#allocation21_spill]] %s9268_s12 }
  0x1e   :  { %13326 = sst [smem:[#allocation22_spill]] %s9273_s20 }
  0x1f   :  { %13327 = sst [smem:[#allocation23_spill]] %s9278_s27 }
  0x20   :  { %13328 = sst [smem:[#allocation24_spill]] %s9283_s4 }
  0x21   :  { %s9293_s23 = sld [smem:[%s13087_s0 + %s9170_s14]]   ;;  %s9174_s14 = smov 25  }
  0x22   :  { %13329 = sst [smem:[#allocation25_spill]] %s9288_s15 }
  0x23   :  { %s9298_s21 = sld [smem:[%s13087_s0 + %s9171_s22]]   ;;  %s9183_s22 = smov 24  }
  0x24   :  { %s9303_s4 = sld [smem:[%s13087_s0 + %s9172_s28]]   ;;  %s9176_s28 = smov 27  }
  0x25   :  { %s9308_s27 = sld [smem:[%s13087_s0 + %s9173_s7]]   ;;  %s9177_s7 = smov 28  }
  0x26   :  { %s9313_s20 = sld [smem:[%s13087_s0 + %s9174_s14]]   ;;  %s9178_s14 = smov 29  }
  0x27   :  { %13330 = sst [smem:[#allocation26_spill]] %s9293_s23 }
  0x29   :  { %13331 = sst [smem:[#allocation27_spill]] %s9298_s21 }
  0x2a   :  { %13332 = sst [smem:[#allocation28_spill]] %s9303_s4 }
  0x2b   :  { %13333 = sst [smem:[#allocation29_spill]] %s9308_s27 }
  0x2c   :  { %13334 = sst [smem:[#allocation30_spill]] %s9313_s20 }
  0x2d   :  { %s9318_s21 = sld [smem:[%s13087_s0 + %s9175_s17]]   ;;  %s9179_s17 = smov 30  }
  0x2e   :  { %s9323_s4 = sld [smem:[%s13087_s0 + %s9176_s28]]   ;;  %s9180_s28 = smov 31  }
  0x2f   :  { %s9328_s27 = sld [smem:[%s13087_s0 + %s9177_s7]]   ;;  %s9181_s7 = smov 32  }
  0x30   :  { %s9333_s20 = sld [smem:[%s13087_s0 + %s9178_s14]]   ;;  %s9182_s14 = smov 18  }
  0x33   :  { %13335 = sst [smem:[#allocation31_spill]] %s9318_s21 }
  0x34   :  { %13336 = sst [smem:[#allocation32_spill]] %s9323_s4 }
  0x35   :  { %13337 = sst [smem:[#allocation33_spill]] %s9328_s27 }
  0x36   :  { %13338 = sst [smem:[#allocation34_spill]] %s9333_s20 }
  0x37   :  { %s9338_s21 = sld [smem:[%s13087_s0 + %s9179_s17]]  }
  0x38   :  { %s9343_s4 = sld [smem:[%s13087_s0 + %s9180_s28]]  }
  0x39   :  { %s9348_s27 = sld [smem:[%s13087_s0 + %s9181_s7]]  }
  0x3a   :  { %s8157_s20 = sld [smem:[%s13087_s0 + %s9182_s14]]  }
  0x3d   :  { %13339 = sst [smem:[#allocation35_spill]] %s9338_s21 }
  0x3e   :  { %s8163_s21 = sld [smem:[%s13087_s0 + %s9183_s22]]  }
  0x40   :  { %v73_v1 = vstv %s8157_s20 }
  0x41   :  { %74 = vst [vmem:[#allocation3] sm:$0x1] %v73_v1 }
  0x44   :  { %v75_v2 = vstv %s8163_s21 }
  0x45   :  { %76 = vst [vmem:[#allocation4] sm:$0x1] %v75_v2 }
  0x46   :  { %77 = vsyncpa [#allocation6], 0 }
  0x47   :  { %79 = vsyncpa [#allocation6 + $0x1], 0 }
  0x48   :  { %80 = vsyncpa [#allocation8], 0 }
  0x49   :  { %82 = vsyncpa [#allocation8 + $0x1], 0  ;;  %s9356_s28 = smov 0   ;;  %s9358_s1 = smov 0  }
  0x4a   :  { %s9360_s2 = smov 0   ;;  %s9362_s7 = smov 0  }
  0x4b LB: > { %s13340_s23 = sld [smem:[#allocation26_spill]]  ;;  %s9377_s0 = sadd.s32 4294967295, %s9150_s7   ;;  %s9146_s2 = sphi %s9360_s2, %s13873_s2   ;;  %s9142_s1 = sphi %s9358_s1, %s13872_s1   ;;  %s9138_s28 = sphi %s9356_s28, %s13871_s28   ;;  %s9150_s7 = sphi %s9362_s7, %s13874_s7  }
  0x4c   : > { %s13341_s15 = sld [smem:[#allocation25_spill]]  ;;  %s13093_s21 = sadd.s32 4294967294, %s9150_s7  }
  0x4d   : > { %s13342_s12 = sld [smem:[#allocation21_spill]]  ;;  %s9381_s20 = sadd.s32 1, %s9150_s7  }
  0x4e   : > { %s13343_s8 = sld [smem:[#allocation18_spill]]  ;;  %s729_s10 = sadd.s32 1, %s9146_s2 }
  0x4f   : > { %s13344_s6 = sld [smem:[#allocation20_spill]]  ;;  %s726_s11 = ssub.s32 %s9150_s7, %s9381_s20 }
  0x50   : > { %s13345_s3 = sld [smem:[#allocation17_spill]]  ;;  %p739_p0 = scmp.ne.s32.totalorder %s9146_s2, %s9142_s1 }
  0x51   : > { %s13346_s19 = sld [smem:[#allocation19_spill]]  ;;  %p727_p1 = scmp.eq.s32.totalorder %s726_s11, 0 }
  0x52   : > { %p740_p2 = scmp.eq.s32.totalorder %s9377_s0, 1  ;;  %p745_p3 = scmp.ne.s32.totalorder %s9142_s1, %s9138_s28 }
  0x53   : > { %p746_p4 = scmp.eq.s32.totalorder %s13093_s21, 1  ;;  %p8176_p7 = scmp.ge.s32.totalorder %s9150_s7, 1 }
  0x54   : > { %s9394_s14 = scalar_select %p727_p1, %s9146_s2, %s729_s10  }
  0x55   : > { %p9396_p5 = por %p740_p2, %p739_p0  ;;  %p9400_p6 = por %p746_p4, %p745_p3 }
  0x56   : > { %p950_p8 = scmp.lt.s32.totalorder %s9150_s7, 3 }
  0x58   : > { %p951_p9 = pnand %p8176_p7, %p950_p8 }
  0x5a   : > { %954 = sbr.rel (%p951_p9) target bundleno = 9153 (0x23c1), region = 136 }
  0x5f   : > { %s13349_s5 = sld [smem:[#allocation12_spill]]  ;;  %v1096_v3 = vld [vmem:[%s13346_s19 + $0x18] sm:$0xff]  ;;  %v1095_v4 = vld [vmem:[%s13346_s19 + $0x10] sm:$0xff]  ;;  %p1062_p10 = scmp.lt.s32.totalorder %s9377_s0, 1  ;;  %v1094_v5 = vld [vmem:[%s13346_s19 + $0x8] sm:$0xff]  ;;  %vm1101_vm0 = vcmask 261120  }
  0x60   : > { %1126 = vmatpush.msra.mxu0 %v1096_v3  ;;  %v1093_v6 = vld [vmem:[%s13346_s19] sm:$0xff]  ;;  %v9420_v8 = vld [vmem:[%s9258_s30 + $0x8] sm:$0xff]  ;;  %v9184_v13 = vmov 0.0   ;;  %v1146_v17 = vld [vmem:[%s9225_s25 + $0x18] sm:$0xff]  ;;  %s13094_s10 = smov 96   ;;  %s13096_s11 = smov 32  }
  0x61   : > { %s9411_s22 = scalar_select %p1062_p10, %s9377_s0, 1  ;;  %v9424_v9 = vld [vmem:[%s9258_s30] sm:$0xff]  ;;  %v1145_v18 = vld [vmem:[%s9225_s25 + $0x10] sm:$0xff]  ;;  %1159 = vmatpush.msra.mxu1 %v1146_v17  ;;  %v1144_v19 = vld [vmem:[%s9225_s25 + $0x8] sm:$0xff] }
  0x62   : > { %1127 = vmatpush.msra.mxu0 %v1095_v4  ;;  %v1143_v21 = vld [vmem:[%s9225_s25] sm:$0xff]  ;;  %v1425_v52 = vld [vmem:[%s13341_s15 + $0x8] sm:$0xff]  ;;  %s13350_s9 = sld [smem:[#allocation13_spill]]  ;;  %s13360_s19 = smov 48  }
  0x63   : > { %s8290_s17 = sshll.u32 %s9411_s22, 5  ;;  %1160 = vmatpush.msra.mxu1 %v1145_v18  ;;  %v9441_v22 = vld [vmem:[%s13344_s6] ss:$0 sm:$0xff]  ;;  %2034 = vmatpush.msra.mxu3 %v1425_v52  ;;  %s13363_s13 = sld [smem:[#allocation14_spill]] }
  0x64   : > { %1128 = vmatpush.msra.mxu0 %v1094_v5  ;;  %v8558_v28 = vld [vmem:[%s9253_s24] ss:$0 sm:$0xff] }
  0x65   : > { %s9416_s26 = scalar_lea.vmem %s13349_s5, %s8290_s17  ;;  %1161 = vmatpush.msra.mxu1 %v1144_v19  ;;  %v1424_v53 = vld [vmem:[%s13341_s15] sm:$0xff]  ;;  %s9519_s17 = sshll.u32 %s9411_s22, 2 }
  0x66   : > { %v1087_v7 = vld [vmem:[%s9416_s26] sm:$0xff]  ;;  %1129 = vmatpush.msra.mxu0 %v1093_v6  ;;  %v1088_v10 = vld [vmem:[%s9416_s26 + $0x8] sm:$0xff]  ;;  %v1089_v11 = vld [vmem:[%s9416_s26 + $0x10] sm:$0xff]  ;;  %2035 = vmatpush.msra.mxu3 %v1424_v53  ;;  %s13104_s5 = smov 48  }
  0x67   : > { %8187 = vmatmul.msk.f32.vlgmr.msra.gmra.mxu0 %vm1101_vm0, %v1087_v7  ;;  %v1090_v12 = vld [vmem:[%s9416_s26 + $0x18] sm:$0xff]  ;;  %1162 = vmatpush.msra.mxu1 %v1143_v21 }
  0x68   : > { %1448 = vmatpush.msrb.mxu0 %v9420_v8  ;;  %8191 = vmatmul.msk.f32.vlgmr.msra.gmra.mxu1 %vm1101_vm0, %v1087_v7  ;;  %s1070_s21 = scalar_lea.vmem %s13350_s9, %s9519_s17  ;;  %s13354_s9 = smov 16  }
  0x69   : > { %1631 = vmatpush.msrb.mxu1 %v1425_v52  ;;  %2243 = vmatpush.msrb.mxu3 %v9420_v8 }
  0x6a   : > { %1449 = vmatpush.msrb.mxu0 %v9424_v9 }
  0x6b   : > { %1632 = vmatpush.msrb.mxu1 %v1424_v53  ;;  %2244 = vmatpush.msrb.mxu3 %v9424_v9 }
  0x6c   : > { %2444 = vmatpush.msra.mxu0 %v1425_v52 }
  0x6d   : > { %2653 = vmatpush.msra.mxu1 %v9420_v8 }
  0x6e   : > { %2445 = vmatpush.msra.mxu0 %v1424_v53 }
  0x6f   : > { %8188 = vmatmul.msk.f32.gmra.mxu0 %vm1101_vm0, %v1088_v10  ;;  %2654 = vmatpush.msra.mxu1 %v9424_v9 }
  0x70   : > { %8192 = vmatmul.msk.f32.gmra.mxu1 %vm1101_vm0, %v1088_v10 }
  0x77   : > { %8189 = vmatmul.msk.f32.gmra.mxu0 %vm1101_vm0, %v1089_v11 }
  0x78   : > { %8193 = vmatmul.msk.f32.gmra.mxu1 %vm1101_vm0, %v1089_v11 }
  0x7f   : > { %8190 = vmatmul.msk.f32.gmra.mxu0 %vm1101_vm0, %v1090_v12 }
  0x80   : > { %8194 = vmatmul.msk.f32.gmra.mxu1 %vm1101_vm0, %v1090_v12 }
  0x87   : > { %1450 = vmatmul.f32.vlgmr.msrb.gmra.mxu0 %v9184_v13 }
  0x88   : > { %1633 = vmatmul.f32.vlgmr.msrb.gmra.mxu1 %v9184_v13  ;;  %3063 = vmatpush.msrb.mxu0 %v9420_v8 }
  0x89   : > { %3266 = vmatpush.msrb.mxu1 %v1425_v52 }
  0x8a   : > { %3064 = vmatpush.msrb.mxu0 %v9424_v9 }
  0x8b   : > { %3267 = vmatpush.msrb.mxu1 %v1424_v53 }
  0xe4   : > { %v1131_v14 = vpop.f32.mrf.mxu0 }
  0xe5   : > { %v9452_v29 = vadd.f32 %v8558_v28, %v1131_v14 }
  0xec   : > { %v1134_v15 = vpop.f32.mrf.mxu0 }
  0xed   : > { %v9454_v30 = vadd.f32 %v8558_v28, %v1134_v15 }
  0xf4   : > { %v1137_v16 = vpop.f32.mrf.mxu0 }
  0xf5   : > { %v9460_v36 = vadd.f32 %v8558_v28, %v1137_v16 }
  0xfc   : > { %v1140_v20 = vpop.f32.mrf.mxu0 }
  0xfd   : > { %v9458_v34 = vadd.f32 %v8558_v28, %v1140_v20 }
 0x104   : > { %v1451_v23 = vpop.f32.mrf.mxu0 }
 0x105   : > { %v1452_v24 = vadd.f32 %v9441_v22, %v1451_v23 }
 0x107   : > { %1542 = vrot.lane.b32.xlu1 %v1452_v24, %s13094_s10  ;;  %v1455_v25 = vrot.slane %v1452_v24, 1  ;;  %v1457_v26 = vrot.slane %v1452_v24, 3  ;;  %v1456_v27 = vrot.slane %v1452_v24, 2  ;;  %v1462_v31 = vadd.f32 %v1452_v24, %v9452_v29 }
 0x109   : > { %1544 = vrot.lane.b32.xlu0 %v1455_v25, %s13094_s10  ;;  %v1463_v32 = vadd.f32 %v1455_v25, %v9454_v30  ;;  %v8195_v33 = vmul.f32 -1.442695, %v1462_v31  ;;  %v1465_v37 = vadd.f32 %v1457_v26, %v9458_v34  ;;  %v1464_v38 = vadd.f32 %v1456_v27, %v9460_v36 }
 0x10b   : > { %v8196_v35 = vmul.f32 -1.442695, %v1463_v32  ;;  %8572 = vpow2.f32 %v8195_v33  ;;  %v8198_v39 = vmul.f32 -1.442695, %v1465_v37  ;;  %v8197_v41 = vmul.f32 -1.442695, %v1464_v38 }
 0x10d   : > { %8574 = vpow2.f32 %v8196_v35 }
 0x10e   : > { %8576 = vpow2.f32 %v8198_v39 }
 0x10f   : > { %1548 = vrot.lane.b32.xlu1 %v1457_v26, %s13094_s10  ;;  %8578 = vpow2.f32 %v8197_v41 }
 0x111   : > { %1546 = vrot.lane.b32.xlu0 %v1456_v27, %s13094_s10  ;;  %v8573_v40 = vpop.eup %8572  ;;  %s13098_s10 = smov 112  }
 0x112   : > { %v1478_v43 = vadd.f32 1.0, %v8573_v40 }
 0x113   : > { %v8575_v42 = vpop.eup %8574 }
 0x114   : > { %v1479_v44 = vadd.f32 1.0, %v8575_v42  ;;  %8580 = vrcp.f32 %v1478_v43  ;;  %v8577_v45 = vpop.eup %8576  ;;  %vm1487_vm2 = vweird.f32 %v1478_v43  ;;  %v1493_v1 = vand.u32 2147483648, %v1478_v43 }
 0x115   : > { %v8579_v46 = vpop.eup %8578  ;;  %v9464_v47 = vadd.f32 1.0, %v8577_v45  ;;  %v1491_v2 = vand.u32 2147483647, %v1478_v43 }
 0x116   : > { %8582 = vrcp.f32 %v1479_v44  ;;  %v9466_v49 = vadd.f32 1.0, %v8579_v46  ;;  %v1508_v5 = vand.u32 2147483648, %v1479_v44  ;;  %vm1502_vm5 = vweird.f32 %v1479_v44 }
 0x117   : > { %8584 = vrcp.f32 %v9464_v47  ;;  %v1506_v7 = vand.u32 2147483647, %v1479_v44  ;;  %v1494_v11 = vor.u32 1.1754944e-38, %v1493_v1  ;;  %vm1492_vm7 = vcmp.eq.f32.partialorder %v1491_v2, 8.507059e+37 }
 0x118   : > { %8586 = vrcp.f32 %v9466_v49  ;;  %v1509_v16 = vor.u32 1.1754944e-38, %v1508_v5  ;;  %vm1532_vm10 = vweird.f32 %v9464_v47  ;;  %v1538_v21 = vand.u32 2147483648, %v9464_v47 }
 0x119   : > { %vm1507_vm8 = vcmp.eq.f32.partialorder %v1506_v7, 8.507059e+37  ;;  %v1536_v24 = vand.u32 2147483647, %v9464_v47  ;;  %v1523_v26 = vand.u32 2147483648, %v9466_v49  ;;  %vm1517_vm13 = vweird.f32 %v9466_v49 }
 0x11a   : > { %v8581_v48 = vpop.eup %8580  ;;  %v1521_v28 = vand.u32 2147483647, %v9466_v49  ;;  %v1539_v31 = vor.u32 1.1754944e-38, %v1538_v21  ;;  %v1191_v21 = vld [vmem:[%s9230_s29 + $0x78] sm:$0xff] }
 0x11b   : > { %v1483_v51 = vmul.f32 %v8581_v48, %v1478_v43  ;;  %vm1488_vm1 = vweird.f32 %v8581_v48  ;;  %vm1537_vm15 = vcmp.eq.f32.partialorder %v1536_v24, 8.507059e+37  ;;  %v1524_v37 = vor.u32 1.1754944e-38, %v1523_v26  ;;  %1276 = vmatpush.msra.mxu2 %v1191_v21  ;;  %v1189_v24 = vld [vmem:[%s9230_s29 + $0x68] sm:$0xff]  ;;  %v1187_v26 = vld [vmem:[%s9230_s29 + $0x58] sm:$0xff] }
 0x11c   : > { %v8583_v50 = vpop.eup %8582  ;;  %vm1489_vm4 = vmor %vm1487_vm2, %vm1488_vm1  ;;  %vm1522_vm1 = vcmp.eq.f32.partialorder %v1521_v28, 8.507059e+37  ;;  %v1185_v28 = vld [vmem:[%s9230_s29 + $0x48] sm:$0xff]  ;;  %vm1348_vm2 = vcmask 1041409  }
 0x11d   : > { %v1498_v54 = vmul.f32 %v8583_v50, %v1479_v44  ;;  %v1484_v55 = vsub.f32 1.0, %v1483_v51  ;;  %v9474_v56 = vpop.eup %8584  ;;  %vm1503_vm3 = vweird.f32 %v8583_v50  ;;  %v9521_v44 = vpop.f32.mrf.mxu1 }
 0x11e   : > { %v9479_v58 = vpop.eup %8586  ;;  %v1528_v60 = vmul.f32 %v9474_v56, %v9464_v47  ;;  %vm1504_vm6 = vmor %vm1502_vm5, %vm1503_vm3  ;;  %vm1533_vm9 = vweird.f32 %v9474_v56  ;;  %vm1350_vm3 = vcmask 1042434   ;;  %vm13106_vm5 = vcmask 785408  }
 0x11f   : > { %v1499_v57 = vsub.f32 1.0, %v1498_v54  ;;  %v1485_v59 = vmul.f32 %v8581_v48, %v1484_v55  ;;  %v1513_v62 = vmul.f32 %v9479_v58, %v9466_v49  ;;  %vm1518_vm11 = vweird.f32 %v9479_v58  ;;  %vm1534_vm12 = vmor %vm1532_vm10, %vm1533_vm9 }
 0x120   : > { %v1529_v0 = vsub.f32 1.0, %v1528_v60  ;;  %vm1519_vm14 = vmor %vm1517_vm13, %vm1518_vm11 }
 0x121   : > { %v1500_v61 = vmul.f32 %v8583_v50, %v1499_v57  ;;  %v1486_v63 = vadd.f32 %v8581_v48, %v1485_v59  ;;  %v1514_v4 = vsub.f32 1.0, %v1513_v62 }
 0x122   : > { %v1530_v10 = vmul.f32 %v9474_v56, %v1529_v0 }
 0x123   : > { %v1501_v3 = vadd.f32 %v8583_v50, %v1500_v61  ;;  %v1490_v6 = vsel %vm1489_vm4, %v8581_v48, %v1486_v63  ;;  %v1515_v13 = vmul.f32 %v9479_v58, %v1514_v4  ;;  %v1091_v48 = vld [vmem:[%s1070_s21] sm:$0xf]  ;;  %s13100_s21 = smov 64   ;;  %vm1352_vm4 = vcmask 1043459  }
 0x124   : > { %v9489_v15 = vsel %vm1492_vm7, %v1494_v11, %v1490_v6  ;;  %v1531_v18 = vadd.f32 %v9474_v56, %v1530_v10  ;;  %v1196_v49 = vrot.slane %v1091_v48, 1  ;;  %v1199_v52 = vperm.slane %v1091_v48, 0  ;;  %v8560_v11 = vld [vmem:[%s13340_s23] ss:$0 sm:$0xff] }
 0x125   : > { %v1505_v12 = vsel %vm1504_vm6, %v8583_v50, %v1501_v3  ;;  %v1516_v25 = vadd.f32 %v9479_v58, %v1515_v13  ;;  %v9527_v51 = vpop.f32.mrf.mxu1  ;;  %v1197_v60 = vrot.slane %v1091_v48, 2  ;;  %v1198_v3 = vrot.slane %v1091_v48, 3 }
 0x126   : > { %v9494_v20 = vsel %vm1507_vm8, %v1509_v16, %v1505_v12  ;;  %v1535_v27 = vsel %vm1534_vm12, %v9474_v56, %v1531_v18  ;;  %v1200_v53 = vperm.slane %v1196_v49, 0  ;;  %v1207_v0 = vsub.f32 %v9521_v44, %v1199_v52 }
 0x127   : > { %v1520_v32 = vsel %vm1519_vm14, %v9479_v58, %v1516_v25  ;;  %v9509_v35 = vsel %vm1537_vm15, %v1539_v31, %v1535_v27  ;;  %v1201_v63 = vperm.slane %v1197_v60, 0  ;;  %v1202_v5 = vperm.slane %v1198_v3, 0  ;;  %v1188_v25 = vld [vmem:[%s9230_s29 + $0x60] sm:$0xff]  ;;  %v1186_v27 = vld [vmem:[%s9230_s29 + $0x50] sm:$0xff] }
 0x128   : > { %v9512_v40 = vsel %vm1522_vm1, %v1524_v37, %v1520_v32  ;;  %v8380_v55 = vpack.i.bf16 %v1200_v53, %v1199_v52  ;;  %v1208_v58 = vsub.f32 %v9527_v51, %v1200_v53  ;;  %v1211_v6 = vmul.f32 %v1199_v52, %v9521_v44  ;;  %v1184_v31 = vld [vmem:[%s9230_s29 + $0x40] sm:$0xff]  ;;  %v1183_v32 = vld [vmem:[%s9230_s29 + $0x38] sm:$0xff]  ;;  %v1181_v37 = vld [vmem:[%s9230_s29 + $0x28] sm:$0xff] }
 0x129   : > { %v1212_v7 = vmul.f32 %v1200_v53, %v9527_v51  ;;  %v1584_v49 = vsub.f32 1.0, %v9512_v40  ;;  %v1585_v52 = vsub.f32 1.0, %v9509_v35  ;;  %vm1263_vm6 = vcmask 523264  }
 0x12a   : > { %vm1430_vm7 = vcmask 130048  }
 0x12d   : > { %v9532_v57 = vpop.f32.mrf.mxu1 }
 0x12e   : > { %v1209_v2 = vsub.f32 %v9532_v57, %v1201_v63 }
 0x135   : > { %v9539_v1 = vpop.f32.mrf.mxu1 }
 0x136   : > { %v1210_v10 = vsub.f32 %v9539_v1, %v1202_v5 }
 0x13d   : > { %v1634_v12 = vpop.f32.mrf.mxu1 }
 0x13e   : > { %v9552_v13 = vadd.f32 %v8560_v11, %v1634_v12 }
 0x140   : > { %v1638_v16 = vrot.slane %v9552_v13, 1  ;;  %v1640_v18 = vrot.slane %v9552_v13, 3 }
 0x179   : > { %v1543_v14 = vpop.permute.xlu1 %1542 }
 0x17a   : > { %v1554_v17 = vmul.f32 %v1543_v14, %v9489_v15  ;;  %v1213_v14 = vmul.f32 %v1201_v63, %v9532_v57 }
 0x17b   : > { %v1545_v19 = vpop.permute.xlu0 %1544 }
 0x17c   : > { %1562 = vrot.lane.b32.xlu0 %v1554_v17, %s13096_s11  ;;  %v1555_v23 = vmul.f32 %v1545_v19, %v9494_v20  ;;  %v1214_v17 = vmul.f32 %v1202_v5, %v9539_v1  ;;  %v1639_v19 = vrot.slane %v9552_v13, 2 }
 0x17e   : > { %1564 = vrot.lane.b32.xlu2 %v1555_v23, %s13096_s11  ;;  %v1190_v23 = vld [vmem:[%s9230_s29 + $0x70] sm:$0xff] }
 0x17f   : > { %1277 = vmatpush.msra.mxu2 %v1190_v23 }
 0x181   : > { %v1549_v33 = vpop.permute.xlu1 %1548  ;;  %1278 = vmatpush.msra.mxu2 %v1189_v24 }
 0x182   : > { %v1557_v38 = vmul.f32 %v1549_v33, %v9509_v35  ;;  %v1182_v33 = vld [vmem:[%s9230_s29 + $0x30] sm:$0xff] }
 0x183   : > { %v1547_v39 = vpop.permute.xlu0 %1546  ;;  %1279 = vmatpush.msra.mxu2 %v1188_v25 }
 0x184   : > { %v1556_v41 = vmul.f32 %v1547_v39, %v9512_v40  ;;  %1568 = vrot.lane.b32.xlu1 %v1557_v38, %s13096_s11  ;;  %v1180_v38 = vld [vmem:[%s9230_s29 + $0x20] sm:$0xff]  ;;  %v1179_v39 = vld [vmem:[%s9230_s29 + $0x18] sm:$0xff] }
 0x185   : > { %1280 = vmatpush.msra.mxu2 %v1187_v26 }
 0x186   : > { %1566 = vrot.lane.b32.xlu2 %v1556_v41, %s13096_s11  ;;  %v1178_v41 = vld [vmem:[%s9230_s29 + $0x10] sm:$0xff] }
 0x187   : > { %1281 = vmatpush.msra.mxu2 %v1186_v27 }
 0x189   : > { %1282 = vmatpush.msra.mxu2 %v1185_v28 }
 0x18b   : > { %1283 = vmatpush.msra.mxu2 %v1184_v31 }
 0x18d   : > { %1284 = vmatpush.msra.mxu2 %v1183_v32 }
 0x18f   : > { %1285 = vmatpush.msra.mxu2 %v1182_v33 }
 0x191   : > { %1286 = vmatpush.msra.mxu2 %v1181_v37 }
 0x193   : > { %1287 = vmatpush.msra.mxu2 %v1180_v38 }
 0x195   : > { %1288 = vmatpush.msra.mxu2 %v1179_v39 }
 0x197   : > { %1289 = vmatpush.msra.mxu2 %v1178_v41 }
 0x1d8   : > { %v1565_v42 = vpop.permute.xlu2 %1564 }
 0x1d9   : > { %v1575_v43 = vadd.f32 %v1565_v42, %v9454_v30  ;;  %v1177_v42 = vld [vmem:[%s9230_s29 + $0x8] sm:$0xff] }
 0x1da   : > { %1290 = vmatpush.msra.mxu2 %v1177_v42 }
 0x1db   : > { %8588 = vtanh.f32 %v1575_v43  ;;  %v1176_v43 = vld [vmem:[%s9230_s29] sm:$0xff] }
 0x1dc   : > { %1291 = vmatpush.msra.mxu2 %v1176_v43  ;;  %v8562_v43 = vld [vmem:[%s13343_s8] ss:$0 sm:$0xff] }
 0x1de   : > { %1833 = vmatpush.msrb.mxu2 %v9420_v8  ;;  %v1609_v8 = vmul.f32 0.0, %v9509_v35 }
 0x1e0   : > { %v1567_v45 = vpop.permute.xlu2 %1566  ;;  %1834 = vmatpush.msrb.mxu2 %v9424_v9 }
 0x1e1   : > { %v8589_v46 = vpop.eup %8588  ;;  %v1576_v47 = vadd.f32 %v1567_v45, %v9460_v36 }
 0x1e2   : > { %1592 = vrot.lane.b32.xlu2 %v8589_v46, %s13098_s10 }
 0x1e3   : > { %8590 = vtanh.f32 %v1576_v47  ;;  %v1583_v47 = vsub.f32 1.0, %v9494_v20 }
 0x1e9   : > { %v8591_v50 = vpop.eup %8590 }
 0x1ea   : > { %1594 = vrot.lane.b32.xlu0 %v8591_v50, %s13098_s10 }
 0x1ee   : > { %v1563_v54 = vpop.permute.xlu0 %1562 }
 0x1ef   : > { %v1574_v56 = vadd.f32 %v1563_v54, %v9452_v29  ;;  %v1607_v54 = vmul.f32 0.0, %v9494_v20 }
 0x1f1   : > { %8592 = vtanh.f32 %v1574_v56  ;;  %v1608_v56 = vmul.f32 0.0, %v9512_v40 }
 0x1f2   : > { %8381 = vrot.lane.b32.xlu0 %v8380_v55, %s13096_s11  ;;  %s13351_s11 = smov 96  }
 0x1f6   : > { %v1569_v59 = vpop.permute.xlu1 %1568 }
 0x1f7   : > { %v8593_v61 = vpop.eup %8592  ;;  %v1577_v62 = vadd.f32 %v1569_v59, %v9458_v34  ;;  %v1582_v59 = vsub.f32 1.0, %v9489_v15 }
 0x1f8   : > { %1590 = vrot.lane.b32.xlu1 %v8593_v61, %s13098_s10 }
 0x1f9   : > { %8594 = vtanh.f32 %v1577_v62 }
 0x1fa   : > { %1233 = vrot.lane.b32.xlu0 %v1208_v58, %s13100_s21 }
 0x1ff   : > { %v8595_v4 = vpop.eup %8594 }
 0x200   : > { %1596 = vrot.lane.b32.xlu2 %v8595_v4, %s13098_s10  ;;  %1231 = vrot.lane.b32.xlu1 %v1207_v0, %s13100_s21  ;;  %s13352_s10 = smov 32  }
 0x202   : > { %1235 = vrot.lane.b32.xlu0 %v1209_v2, %s13100_s21 }
 0x208   : > { %1247 = vrot.lane.b32.xlu2 %v1211_v6, %s13351_s11  ;;  %1249 = vrot.lane.b32.xlu1 %v1212_v7, %s13351_s11 }
 0x20a   : > { %1237 = vrot.lane.b32.xlu0 %v1210_v10, %s13100_s21  ;;  %s13102_s21 = smov 16  }
 0x210   : > { %1219 = vrot.lane.b32.xlu2 %v1201_v63, %s13352_s10  ;;  %1251 = vrot.lane.b32.xlu1 %v1213_v14, %s13351_s11  ;;  %v1606_v63 = vmul.f32 0.0, %v9489_v15 }
 0x212   : > { %1643 = vrot.lane.b32.xlu0 %v1638_v16, %s13104_s5 }
 0x218   : > { %1221 = vrot.lane.b32.xlu2 %v1202_v5, %s13352_s10  ;;  %1253 = vrot.lane.b32.xlu1 %v1214_v17, %s13351_s11 }
 0x21a   : > { %1647 = vrot.lane.b32.xlu0 %v1640_v18, %s13104_s5 }
 0x220   : > { %1645 = vrot.lane.b32.xlu1 %v1639_v19, %s13104_s5 }
 0x222   : > { %1733 = vrot.lane.b32.xlu0 %v9552_v13, %s13102_s21 }
 0x228   : > { %1735 = vrot.lane.b32.xlu1 %v1638_v16, %s13102_s21 }
 0x230   : > { %1739 = vrot.lane.b32.xlu1 %v1640_v18, %s13102_s21  ;;  %s13353_s21 = smov 112  }
 0x23c   : > { %v1593_v45 = vpop.permute.xlu2 %1592 }
 0x23d   : > { %v1603_v50 = vmul.f32 %v1593_v45, %v1583_v47 }
 0x23f   : > { %v9595_v58 = vadd.f32 %v1607_v54, %v1603_v50 }
 0x241   : > { %v1809_v20 = vrot.slane %v9595_v58, 7 }
 0x25a   : > { %v1597_v48 = vpop.permute.xlu2 %1596 }
 0x25b   : > { %v1605_v55 = vmul.f32 %v1597_v48, %v1585_v52 }
 0x25c   : > { %v1595_v46 = vpop.permute.xlu0 %1594 }
 0x25d   : > { %v1604_v53 = vmul.f32 %v1595_v46, %v1584_v49  ;;  %v9601_v62 = vadd.f32 %v1609_v8, %v1605_v55 }
 0x25f   : > { %v9599_v60 = vadd.f32 %v1608_v56, %v1604_v53  ;;  %v1813_v4 = vrot.slane %v9601_v62, 5 }
 0x261   : > { %v1811_v40 = vrot.slane %v9599_v60, 6 }
 0x262   : > { %v1248_v6 = vpop.permute.xlu2 %1247 }
 0x264   : > { %v8382_v9 = vpop.permute.xlu0 %8381 }
 0x265   : > { %v8383_v35 = vunpack.i.l.bf16 %v8382_v9  ;;  %v8384_v16 = vunpack.i.h.bf16 %v8382_v9 }
 0x267   : > { %v1259_v10 = vsel %vm1101_vm0, %v9521_v44, %v8383_v35  ;;  %v1260_v17 = vsel %vm1101_vm0, %v9527_v51, %v8384_v16 }
 0x26a   : > { %v1591_v61 = vpop.permute.xlu1 %1590  ;;  %v1220_v23 = vpop.permute.xlu2 %1219 }
 0x26b   : > { %v1602_v0 = vmul.f32 %v1591_v61, %v1582_v59  ;;  %v1261_v25 = vsel %vm1101_vm0, %v9532_v57, %v1220_v23 }
 0x26c   : > { %v1234_v11 = vpop.permute.xlu0 %1233 }
 0x26d   : > { %v9605_v2 = vadd.f32 %v1606_v63, %v1602_v0  ;;  %v1265_v18 = vsel %vm1263_vm6, %v1260_v17, %v1234_v11 }
 0x26f   : > { %v1810_v3 = vsel %vm1348_vm2, %v1809_v20, %v9605_v2 }
 0x270   : > { %v1812_v15 = vsel %vm1350_vm3, %v1811_v40, %v1810_v3 }
 0x271   : > { %v1814_v5 = vsel %vm1352_vm4, %v1813_v4, %v1812_v15 }
 0x272   : > { %v1232_v7 = vpop.permute.xlu1 %1231  ;;  %1815 = vrot.lane.b32.xlu2 %v1814_v5, %s13353_s21  ;;  %v1222_v28 = vpop.permute.xlu2 %1221 }
 0x273   : > { %v1264_v12 = vsel %vm1263_vm6, %v1259_v10, %v1232_v7  ;;  %v1262_v32 = vsel %vm1101_vm0, %v9539_v1, %v1222_v28 }
 0x274   : > { %v1269_v14 = vsel %vm13106_vm5, %v1264_v12, %v1248_v6  ;;  %v1236_v24 = vpop.permute.xlu0 %1235 }
 0x275   : > { %1292 = vmatmul.f32.vlgmr.msra.gmra.mxu2 %v1269_v14  ;;  %v1266_v26 = vsel %vm1263_vm6, %v1261_v25, %v1236_v24 }
 0x27a   : > { %v1250_v21 = vpop.permute.xlu1 %1249  ;;  %1641 = vrot.lane.b32.xlu2 %v9552_v13, %s13104_s5  ;;  %s13359_s5 = smov 64  }
 0x27b   : > { %v1270_v44 = vsel %vm13106_vm5, %v1265_v18, %v1250_v21 }
 0x27c   : > { %v1238_v31 = vpop.permute.xlu0 %1237 }
 0x27d   : > { %1295 = vmatmul.f32.gmra.mxu2 %v1270_v44  ;;  %v1267_v33 = vsel %vm1263_vm6, %v1262_v32, %v1238_v31 }
 0x282   : > { %v1252_v27 = vpop.permute.xlu1 %1251  ;;  %1737 = vrot.lane.b32.xlu2 %v1639_v19, %s13354_s9  ;;  %v8561_v19 = vld [vmem:[%s13345_s3] ss:$0 sm:$0xff] }
 0x283   : > { %v1271_v51 = vsel %vm13106_vm5, %v1266_v26, %v1252_v27 }
 0x284   : > { %v1644_v54 = vpop.permute.xlu0 %1643 }
 0x285   : > { %1298 = vmatmul.f32.gmra.mxu2 %v1271_v51  ;;  %v1654_v56 = vadd.f32 %v1644_v54, %v9454_v30 }
 0x287   : > { %v8200_v9 = vmul.f32 -1.442695, %v1654_v56 }
 0x289   : > { %8596 = vpow2.f32 %v8200_v9 }
 0x28a   : > { %v1254_v57 = vpop.permute.xlu1 %1253 }
 0x28b   : > { %v1272_v37 = vsel %vm13106_vm5, %v1267_v33, %v1254_v57 }
 0x28c   : > { %v1648_v59 = vpop.permute.xlu0 %1647 }
 0x28d   : > { %1301 = vmatmul.f32.gmra.mxu2 %v1272_v37  ;;  %v1656_v0 = vadd.f32 %v1648_v59, %v9458_v34 }
 0x28f   : > { %v8202_v35 = vmul.f32 -1.442695, %v1656_v0  ;;  %v8597_v4 = vpop.eup %8596 }
 0x290   : > { %v1670_v5 = vadd.f32 1.0, %v8597_v4 }
 0x292   : > { %v1646_v55 = vpop.permute.xlu1 %1645  ;;  %vm1693_vm10 = vweird.f32 %v1670_v5 }
 0x293   : > { %v1655_v8 = vadd.f32 %v1646_v55, %v9460_v36 }
 0x295   : > { %v8201_v61 = vmul.f32 -1.442695, %v1655_v8 }
 0x297   : > { %8598 = vpow2.f32 %v8201_v61 }
 0x298   : > { %8600 = vpow2.f32 %v8202_v35 }
 0x29d   : > { %v8599_v15 = vpop.eup %8598 }
 0x29e   : > { %v1671_v6 = vadd.f32 1.0, %v8599_v15  ;;  %v8601_v7 = vpop.eup %8600 }
 0x29f   : > { %v9652_v11 = vadd.f32 1.0, %v8601_v7 }
 0x2a0   : > { %vm1708_vm12 = vweird.f32 %v1671_v6 }
 0x2a1   : > { %v1729_v0 = vand.u32 2147483648, %v9652_v11 }
 0x2a3   : > { %v1730_v7 = vor.u32 1.1754944e-38, %v1729_v0 }
 0x2cc   : > { %v1816_v38 = vpop.permute.xlu2 %1815 }
 0x2cd   : > { %8203 = vmatmul.msk.f32.vlgmr.msrb.gmra.mxu2 %vm1430_vm7, %v1816_v38  ;;  %v1697_v38 = vand.u32 2147483647, %v1670_v5 }
 0x2cf   : > { %vm1698_vm14 = vcmp.eq.f32.partialorder %v1697_v38, 8.507059e+37 }
 0x2d4   : > { %v1642_v63 = vpop.permute.xlu2 %1641 }
 0x2d5   : > { %v1653_v40 = vadd.f32 %v1642_v63, %v9452_v29  ;;  %v1727_v63 = vand.u32 2147483647, %v9652_v11 }
 0x2d7   : > { %v8199_v3 = vmul.f32 -1.442695, %v1653_v40 }
 0x2d9   : > { %8602 = vpow2.f32 %v8199_v3 }
 0x2da   : > { %8604 = vrcp.f32 %v1670_v5 }
 0x2db   : > { %8606 = vrcp.f32 %v1671_v6 }
 0x2dc   : > { %8608 = vrcp.f32 %v9652_v11  ;;  %v1738_v55 = vpop.permute.xlu2 %1737 }
 0x2df   : > { %v8603_v10 = vpop.eup %8602 }
 0x2e0   : > { %v9654_v12 = vadd.f32 1.0, %v8603_v10  ;;  %v8605_v14 = vpop.eup %8604 }
 0x2e1   : > { %v8607_v16 = vpop.eup %8606  ;;  %v1689_v17 = vmul.f32 %v8605_v14, %v1670_v5  ;;  %vm1694_vm8 = vweird.f32 %v8605_v14 }
 0x2e2   : > { %8610 = vrcp.f32 %v9654_v12  ;;  %v1704_v18 = vmul.f32 %v8607_v16, %v1671_v6  ;;  %v9658_v44 = vpop.eup %8608  ;;  %vm1709_vm9 = vweird.f32 %v8607_v16  ;;  %vm9669_vm11 = vmor %vm1693_vm10, %vm1694_vm8  ;;  %v1684_v40 = vand.u32 2147483648, %v9654_v12 }
 0x2e3   : > { %v1690_v21 = vsub.f32 1.0, %v1689_v17  ;;  %v1719_v26 = vmul.f32 %v9658_v44, %v9652_v11  ;;  %vm1710_vm13 = vmor %vm1708_vm12, %vm1709_vm9  ;;  %vm1724_vm1 = vweird.f32 %v9658_v44  ;;  %vm1723_vm9 = vweird.f32 %v9652_v11 }
 0x2e4   : > { %v1705_v23 = vsub.f32 1.0, %v1704_v18  ;;  %vm9697_vm10 = vmor %vm1723_vm9, %vm1724_vm1  ;;  %v1682_v4 = vand.u32 2147483647, %v9654_v12  ;;  %v1685_v10 = vor.u32 1.1754944e-38, %v1684_v40 }
 0x2e5   : > { %v1691_v25 = vmul.f32 %v8605_v14, %v1690_v21  ;;  %v1720_v31 = vsub.f32 1.0, %v1719_v26 }
 0x2e6   : > { %v1706_v27 = vmul.f32 %v8607_v16, %v1705_v23 }
 0x2e7   : > { %v1692_v28 = vadd.f32 %v8605_v14, %v1691_v25 }
 0x2e8   : > { %v9660_v24 = vpop.eup %8610  ;;  %v1707_v33 = vadd.f32 %v8607_v16, %v1706_v27 }
 0x2e9   : > { %v1674_v51 = vmul.f32 %v9660_v24, %v9654_v12  ;;  %vm1679_vm8 = vweird.f32 %v9660_v24 }
 0x2eb   : > { %v1675_v57 = vsub.f32 1.0, %v1674_v51 }
 0x2f8   : > { %v9638_v13 = vpop.f32.mrf.mxu2 }
 0x300   : > { %v1296_v39 = vpop.f32.mrf.mxu2 }
 0x301   : > { %v1297_v41 = vadd.f32 %v8561_v19, %v1296_v39  ;;  %v1714_v39 = vand.u32 2147483648, %v1671_v6 }
 0x303   : > { %v1306_v42 = vmax.f32 %v1297_v41, 0.0  ;;  %v1715_v54 = vor.u32 1.1754944e-38, %v1714_v39 }
 0x305   : > { %v9642_v45 = vmul.f32 %v8562_v43, %v1306_v42  ;;  %v1712_v42 = vand.u32 2147483647, %v1671_v6 }
 0x307   : > { %vm1713_vm15 = vcmp.eq.f32.partialorder %v1712_v42, 8.507059e+37 }
 0x308   : > { %v1299_v1 = vpop.f32.mrf.mxu2 }
 0x309   : > { %v1300_v46 = vadd.f32 %v8561_v19, %v1299_v1 }
 0x30b   : > { %v1307_v47 = vmax.f32 %v1300_v46, 0.0  ;;  %v1721_v46 = vmul.f32 %v9658_v44, %v1720_v31 }
 0x30d   : > { %v9644_v48 = vmul.f32 %v8562_v43, %v1307_v47  ;;  %v1711_v47 = vsel %vm1710_vm13, %v8607_v16, %v1707_v33  ;;  %v1722_v9 = vadd.f32 %v9658_v44, %v1721_v46  ;;  %vm1728_vm13 = vcmp.eq.f32.partialorder %v1727_v63, 8.507059e+37  ;;  %v1734_v16 = vpop.permute.xlu0 %1733 }
 0x30e   : > { %v9686_v8 = vsel %vm1713_vm15, %v1715_v54, %v1711_v47 }
 0x30f   : > { %v1747_v59 = vmul.f32 %v1738_v55, %v9686_v8 }
 0x310   : > { %v1302_v49 = vpop.f32.mrf.mxu2 }
 0x311   : > { %v1303_v50 = vadd.f32 %v8561_v19, %v1302_v49  ;;  %v1699_v19 = vand.u32 2147483648, %v1670_v5  ;;  %v1676_v49 = vmul.f32 %v9660_v24, %v1675_v57  ;;  %v1726_v5 = vsel %vm9697_vm10, %v9658_v44, %v1722_v9 }
 0x313   : > { %v1308_v52 = vmax.f32 %v1303_v50, 0.0  ;;  %v1736_v50 = vpop.permute.xlu1 %1735  ;;  %v1677_v61 = vadd.f32 %v9660_v24, %v1676_v49 }
 0x315   : > { %v9646_v53 = vmul.f32 %v8562_v43, %v1308_v52  ;;  %v1700_v52 = vor.u32 1.1754944e-38, %v1699_v19 }
 0x31b   : > { %v1740_v11 = vpop.permute.xlu1 %1739 }
 0x350   : > { %v1836_v32 = vpop.f32.mrf.mxu2 }
 0x351   : > { %v9667_v37 = vadd.f32 %v9441_v22, %v1836_v32  ;;  %v1696_v22 = vsel %vm9669_vm11, %v8605_v14, %v1692_v28  ;;  %vm1678_vm11 = vweird.f32 %v9654_v12  ;;  %v9711_v12 = vsel %vm1728_vm13, %v1730_v7, %v1726_v5 }
 0x352   : > { %v9683_v56 = vsel %vm1698_vm14, %v1700_v52, %v1696_v22  ;;  %vm1680_vm12 = vmor %vm1678_vm11, %vm1679_vm8  ;;  %vm1683_vm14 = vcmp.eq.f32.partialorder %v1682_v4, 8.507059e+37  ;;  %v1748_v17 = vmul.f32 %v1740_v11, %v9711_v12 }
 0x353   : > { %1929 = vrot.lane.b32.xlu1 %v9667_v37, %s13351_s11  ;;  %v1841_v43 = vrot.slane %v9667_v37, 1  ;;  %v1840_v1 = vrot.slane %v9667_v37, 7  ;;  %v1746_v35 = vmul.f32 %v1736_v50, %v9683_v56  ;;  %v1842_v15 = vrot.slane %v9667_v37, 2 }
 0x354   : > { %v1681_v6 = vsel %vm1680_vm12, %v9660_v24, %v1677_v61  ;;  %v1848_v51 = vadd.f32 %v9667_v37, %v9454_v30 }
 0x355   : > { %1931 = vrot.lane.b32.xlu0 %v1841_v43, %s13351_s11  ;;  %1927 = vrot.lane.b32.xlu2 %v1840_v1, %s13351_s11  ;;  %v9713_v14 = vsel %vm1683_vm14, %v1685_v10, %v1681_v6  ;;  %v1847_v21 = vadd.f32 %v1840_v1, %v9452_v29  ;;  %v1850_v23 = vadd.f32 %v1842_v15, %v9458_v34 }
 0x356   : > { %v1745_v18 = vmul.f32 %v1734_v16, %v9713_v14  ;;  %v1849_v28 = vadd.f32 %v1841_v43, %v9460_v36  ;;  %v8205_v32 = vmul.f32 -1.442695, %v1848_v51 }
 0x357   : > { %v8204_v44 = vmul.f32 -1.442695, %v1847_v21  ;;  %v8207_v24 = vmul.f32 -1.442695, %v1850_v23 }
 0x358   : > { %v8206_v57 = vmul.f32 -1.442695, %v1849_v28 }
 0x359   : > { %8612 = vpow2.f32 %v8204_v44 }
 0x35a   : > { %8614 = vpow2.f32 %v8207_v24 }
 0x35b   : > { %1757 = vrot.lane.b32.xlu1 %v1747_v59, %s13352_s10 }
 0x35d   : > { %1755 = vrot.lane.b32.xlu0 %v1746_v35, %s13352_s10  ;;  %1933 = vrot.lane.b32.xlu2 %v1842_v15, %s13351_s11 }
 0x35f   : > { %v8613_v25 = vpop.eup %8612 }
 0x360   : > { %v1863_v26 = vadd.f32 1.0, %v8613_v25  ;;  %v8615_v27 = vpop.eup %8614 }
 0x361   : > { %v1866_v31 = vadd.f32 1.0, %v8615_v27 }
 0x362   : > { %8616 = vrcp.f32 %v1863_v26  ;;  %v1878_v43 = vand.u32 2147483648, %v1863_v26  ;;  %vm1872_vm1 = vweird.f32 %v1863_v26  ;;  %v1876_v50 = vand.u32 2147483647, %v1863_v26 }
 0x363   : > { %8618 = vrcp.f32 %v1866_v31  ;;  %v1923_v35 = vand.u32 2147483648, %v1866_v31  ;;  %vm1917_vm11 = vweird.f32 %v1866_v31  ;;  %v1921_v3 = vand.u32 2147483647, %v1866_v31 }
 0x364   : > { %8620 = vpow2.f32 %v8205_v32  ;;  %v1879_v55 = vor.u32 1.1754944e-38, %v1878_v43  ;;  %vm1877_vm9 = vcmp.eq.f32.partialorder %v1876_v50, 8.507059e+37 }
 0x365   : > { %1759 = vrot.lane.b32.xlu0 %v1748_v17, %s13352_s10  ;;  %1753 = vrot.lane.b32.xlu2 %v1745_v18, %s13352_s10  ;;  %8622 = vpow2.f32 %v8206_v57  ;;  %v1924_v6 = vor.u32 1.1754944e-38, %v1923_v35  ;;  %vm1922_vm13 = vcmp.eq.f32.partialorder %v1921_v3, 8.507059e+37 }
 0x368   : > { %v8617_v33 = vpop.eup %8616 }
 0x369   : > { %v1868_v38 = vmul.f32 %v8617_v33, %v1863_v26  ;;  %v8619_v39 = vpop.eup %8618  ;;  %vm1873_vm15 = vweird.f32 %v8617_v33 }
 0x36a   : > { %v8621_v41 = vpop.eup %8620  ;;  %v1913_v22 = vmul.f32 %v8619_v39, %v1866_v31  ;;  %vm1874_vm8 = vmor %vm1872_vm1, %vm1873_vm15  ;;  %vm1918_vm10 = vweird.f32 %v8619_v39 }
 0x36b   : > { %v1869_v19 = vsub.f32 1.0, %v1868_v38  ;;  %v8623_v42 = vpop.eup %8622  ;;  %v1864_v46 = vadd.f32 1.0, %v8621_v41  ;;  %vm1919_vm12 = vmor %vm1917_vm11, %vm1918_vm10 }
 0x36c   : > { %v1865_v47 = vadd.f32 1.0, %v8623_v42  ;;  %v1914_v37 = vsub.f32 1.0, %v1913_v22 }
 0x36d   : > { %v1870_v1 = vmul.f32 %v8617_v33, %v1869_v19  ;;  %8624 = vrcp.f32 %v1864_v46  ;;  %vm1887_vm15 = vweird.f32 %v1864_v46  ;;  %v1893_v24 = vand.u32 2147483648, %v1864_v46 }
 0x36e   : > { %8626 = vrcp.f32 %v1865_v47  ;;  %v1915_v54 = vmul.f32 %v8619_v39, %v1914_v37  ;;  %v1891_v26 = vand.u32 2147483647, %v1864_v46  ;;  %v1908_v51 = vand.u32 2147483648, %v1865_v47 }
 0x36f   : > { %v1871_v49 = vadd.f32 %v8617_v33, %v1870_v1  ;;  %v1906_v31 = vand.u32 2147483647, %v1865_v47  ;;  %v1894_v32 = vor.u32 1.1754944e-38, %v1893_v24  ;;  %v1798_v24 = vmul.f32 0.0, %v9683_v56 }
 0x370   : > { %v1916_v0 = vadd.f32 %v8619_v39, %v1915_v54  ;;  %vm1892_vm11 = vcmp.eq.f32.partialorder %v1891_v26, 8.507059e+37  ;;  %v1909_v19 = vor.u32 1.1754944e-38, %v1908_v51 }
 0x371   : > { %v1875_v52 = vsel %vm1874_vm8, %v8617_v33, %v1871_v49 }
 0x372   : > { %v9724_v61 = vsel %vm1877_vm9, %v1879_v55, %v1875_v52  ;;  %v1920_v15 = vsel %vm1919_vm12, %v8619_v39, %v1916_v0  ;;  %vm1902_vm9 = vweird.f32 %v1865_v47  ;;  %vm1907_vm12 = vcmp.eq.f32.partialorder %v1906_v31, 8.507059e+37 }
 0x373   : > { %v8625_v9 = vpop.eup %8624  ;;  %v9728_v10 = vsel %vm1922_vm13, %v1924_v6, %v1920_v15  ;;  %v1797_v31 = vmul.f32 0.0, %v9713_v14  ;;  %vm4697_vm13 = vcmask 1040384  }
 0x374   : > { %v8627_v40 = vpop.eup %8626  ;;  %v1883_v4 = vmul.f32 %v8625_v9, %v1864_v46  ;;  %vm1888_vm14 = vweird.f32 %v8625_v9 }
 0x375   : > { %v1898_v5 = vmul.f32 %v8627_v40, %v1865_v47  ;;  %vm1903_vm1 = vweird.f32 %v8627_v40  ;;  %vm1889_vm8 = vmor %vm1887_vm15, %vm1888_vm14 }
 0x376   : > { %v1884_v7 = vsub.f32 1.0, %v1883_v4  ;;  %vm1904_vm10 = vmor %vm1902_vm9, %vm1903_vm1 }
 0x377   : > { %v1899_v17 = vsub.f32 1.0, %v1898_v5 }
 0x378   : > { %v1885_v18 = vmul.f32 %v8625_v9, %v1884_v7 }
 0x379   : > { %v1900_v21 = vmul.f32 %v8627_v40, %v1899_v17 }
 0x37a   : > { %v1886_v44 = vadd.f32 %v8625_v9, %v1885_v18 }
 0x37b   : > { %v1901_v27 = vadd.f32 %v8627_v40, %v1900_v21 }
 0x37c   : > { %v1890_v28 = vsel %vm1889_vm8, %v8625_v9, %v1886_v44  ;;  %v1776_v44 = vsub.f32 1.0, %v9711_v12 }
 0x37d   : > { %v1905_v33 = vsel %vm1904_vm10, %v8627_v40, %v1901_v27  ;;  %v9733_v38 = vsel %vm1892_vm11, %v1894_v32, %v1890_v28  ;;  %v1775_v27 = vsub.f32 1.0, %v9686_v8  ;;  %v1800_v28 = vmul.f32 0.0, %v9711_v12 }
 0x37e   : > { %v9736_v42 = vsel %vm1907_vm12, %v1909_v19, %v1905_v33  ;;  %v1799_v33 = vmul.f32 0.0, %v9686_v8 }
 0x3af   : > { %v1928_v59 = vpop.permute.xlu2 %1927 }
 0x3b0   : > { %v1939_v63 = vmul.f32 %v1928_v59, %v9724_v61 }
 0x3b2   : > { %1947 = vrot.lane.b32.xlu1 %v1939_v63, %s13352_s10 }
 0x3b7   : > { %v1934_v11 = vpop.permute.xlu2 %1933 }
 0x3b8   : > { %v1942_v16 = vmul.f32 %v1934_v11, %v9728_v10 }
 0x3ba   : > { %1953 = vrot.lane.b32.xlu1 %v1942_v16, %s13352_s10  ;;  %v1774_v16 = vsub.f32 1.0, %v9683_v56 }
 0x3bf   : > { %v1754_v23 = vpop.permute.xlu2 %1753 }
 0x3c0   : > { %v1765_v25 = vadd.f32 %v1754_v23, %v9452_v29  ;;  %v1773_v23 = vsub.f32 1.0, %v9713_v14 }
 0x3c2   : > { %8628 = vtanh.f32 %v1765_v25 }
 0x3c5   : > { %v1930_v57 = vpop.permute.xlu1 %1929 }
 0x3c6   : > { %v1940_v39 = vmul.f32 %v1930_v57, %v9733_v38 }
 0x3c7   : > { %v1932_v41 = vpop.permute.xlu0 %1931 }
 0x3c8   : > { %v8629_v1 = vpop.eup %8628  ;;  %v1941_v22 = vmul.f32 %v1932_v41, %v9736_v42  ;;  %1949 = vrot.lane.b32.xlu0 %v1940_v39, %s13352_s10 }
 0x3c9   : > { %1781 = vrot.lane.b32.xlu1 %v8629_v1, %s13353_s21 }
 0x3ca   : > { %1951 = vrot.lane.b32.xlu2 %v1941_v22, %s13352_s10 }
 0x3cd   : > { %v1758_v46 = vpop.permute.xlu1 %1757 }
 0x3ce   : > { %v1767_v47 = vadd.f32 %v1758_v46, %v9460_v36  ;;  %v1967_v46 = vsub.f32 1.0, %v9724_v61 }
 0x3cf   : > { %v1756_v49 = vpop.permute.xlu0 %1755 }
 0x3d0   : > { %8630 = vtanh.f32 %v1767_v47  ;;  %v1766_v37 = vadd.f32 %v1756_v49, %v9454_v30  ;;  %v1991_v47 = vrot.slane %v9605_v2, 7 }
 0x3d2   : > { %8632 = vtanh.f32 %v1766_v37 }
 0x3d6   : > { %v8631_v43 = vpop.eup %8630 }
 0x3d7   : > { %1785 = vrot.lane.b32.xlu0 %v8631_v43, %s13353_s21  ;;  %v1760_v50 = vpop.permute.xlu0 %1759  ;;  %v1969_v43 = vsub.f32 1.0, %v9736_v42 }
 0x3d8   : > { %v8633_v52 = vpop.eup %8632  ;;  %v1768_v54 = vadd.f32 %v1760_v50, %v9458_v34  ;;  %v1998_v50 = vmul.f32 %v1991_v47, %v9724_v61 }
 0x3d9   : > { %1783 = vrot.lane.b32.xlu2 %v8633_v52, %s13353_s21 }
 0x3da   : > { %8634 = vtanh.f32 %v1768_v54 }
 0x3e0   : > { %v8635_v55 = vpop.eup %8634 }
 0x3e1   : > { %1787 = vrot.lane.b32.xlu2 %v8635_v55, %s13353_s21  ;;  %v1992_v55 = vrot.slane %v9599_v60, 7 }
 0x424   : > { %v1952_v9 = vpop.permute.xlu2 %1951  ;;  %v1948_v59 = vpop.permute.xlu1 %1947 }
 0x425   : > { %v1961_v63 = vadd.f32 %v1952_v9, %v9460_v36  ;;  %v1959_v0 = vadd.f32 %v1948_v59, %v9452_v29  ;;  %v1968_v59 = vsub.f32 1.0, %v9733_v38 }
 0x427   : > { %8636 = vtanh.f32 %v1961_v63 }
 0x428   : > { %8638 = vtanh.f32 %v1959_v0  ;;  %v2000_v0 = vmul.f32 %v1992_v55, %v9736_v42 }
 0x42c   : > { %v1954_v40 = vpop.permute.xlu1 %1953 }
 0x42d   : > { %v8637_v35 = vpop.eup %8636  ;;  %v1962_v3 = vadd.f32 %v1954_v40, %v9458_v34 }
 0x42e   : > { %v8639_v4 = vpop.eup %8638  ;;  %1979 = vrot.lane.b32.xlu1 %v8637_v35, %s13353_s21 }
 0x42f   : > { %8640 = vtanh.f32 %v1962_v3  ;;  %1975 = vrot.lane.b32.xlu0 %v8639_v4, %s13353_s21  ;;  %v1999_v3 = vmul.f32 %v9733_v38, %v1809_v20  ;;  %v1970_v4 = vsub.f32 1.0, %v9728_v10 }
 0x433   : > { %v1784_v5 = vpop.permute.xlu2 %1783 }
 0x434   : > { %v1794_v21 = vmul.f32 %v1784_v5, %v1774_v16 }
 0x435   : > { %v8641_v15 = vpop.eup %8640 }
 0x436   : > { %v9761_v51 = vadd.f32 %v1798_v24, %v1794_v21  ;;  %v9825_v24 = vld [vmem:[%s9258_s30 + $0x8] sm:$0xff] }
 0x437   : > { %1981 = vrot.lane.b32.xlu0 %v8641_v15, %s13353_s21  ;;  %v1993_v15 = vrot.slane %v9601_v62, 7 }
 0x438   : > { %v2010_v56 = vrot.slane %v9761_v51, 7 }
 0x439   : > { %v2001_v42 = vmul.f32 %v1993_v15, %v9728_v10 }
 0x43a   : > { %v1950_v6 = vpop.permute.xlu0 %1949 }
 0x43b   : > { %v1960_v7 = vadd.f32 %v1950_v6, %v9454_v30  ;;  %v1788_v17 = vpop.permute.xlu2 %1787  ;;  %v1782_v18 = vpop.permute.xlu1 %1781 }
 0x43c   : > { %v1796_v25 = vmul.f32 %v1788_v17, %v1776_v44  ;;  %v1793_v26 = vmul.f32 %v1782_v18, %v1773_v23  ;;  %v9816_v44 = vld [vmem:[%s13341_s15 + $0x8] sm:$0xff]  ;;  %v9820_v23 = vld [vmem:[%s13341_s15] sm:$0xff] }
 0x43d   : > { %8642 = vtanh.f32 %v1960_v7 }
 0x43e   : > { %v9766_v19 = vadd.f32 %v1800_v28, %v1796_v25  ;;  %v9768_v39 = vadd.f32 %v1797_v31, %v1793_v26  ;;  %v9829_v25 = vld [vmem:[%s9258_s30] sm:$0xff] }
 0x43f   : > { %v9835_v28 = vld [vmem:[%s13344_s6] ss:$0 sm:$0xff] }
 0x440   : > { %v2014_v22 = vrot.slane %v9766_v19, 5  ;;  %v2011_v12 = vsel %vm1348_vm2, %v2010_v56, %v9768_v39 }
 0x443   : > { %v8643_v11 = vpop.eup %8642 }
 0x444   : > { %1977 = vrot.lane.b32.xlu2 %v8643_v11, %s13353_s21 }
 0x449   : > { %v1786_v32 = vpop.permute.xlu0 %1785 }
 0x44a   : > { %v1795_v57 = vmul.f32 %v1786_v32, %v1775_v27 }
 0x44c   : > { %v9770_v41 = vadd.f32 %v1799_v33, %v1795_v57 }
 0x44e   : > { %v2012_v1 = vrot.slane %v9770_v41, 6 }
 0x450   : > { %v2013_v8 = vsel %vm1350_vm3, %v2012_v1, %v2011_v12 }
 0x451   : > { %v2015_v14 = vsel %vm1352_vm4, %v2014_v22, %v2013_v8 }
 0x452   : > { %2016 = vrot.lane.b32.xlu1 %v2015_v14, %s13359_s5 }
 0x49e   : > { %v1978_v54 = vpop.permute.xlu2 %1977 }
 0x49f   : > { %v1988_v40 = vmul.f32 %v1978_v54, %v1968_v59 }
 0x4a0   : > { %v1980_v49 = vpop.permute.xlu1 %1979 }
 0x4a1   : > { %v1976_v37 = vpop.permute.xlu0 %1975  ;;  %v1989_v9 = vmul.f32 %v1980_v49, %v1969_v43  ;;  %v9799_v6 = vadd.f32 %v1999_v3, %v1988_v40 }
 0x4a2   : > { %v1987_v52 = vmul.f32 %v1976_v37, %v1967_v46 }
 0x4a3   : > { %v9791_v35 = vadd.f32 %v2000_v0, %v1989_v9 }
 0x4a4   : > { %v9788_v63 = vadd.f32 %v1998_v50, %v1987_v52 }
 0x4a5   : > { %v2221_v11 = vrot.slane %v9791_v35, 7 }
 0x4a6   : > { %v2219_v61 = vrot.slane %v9788_v63, 1 }
 0x4a8   : > { %v2220_v20 = vsel %vm1348_vm2, %v9799_v6, %v2219_v61 }
 0x4a9   : > { %v1982_v5 = vpop.permute.xlu0 %1981  ;;  %v2222_v18 = vsel %vm1350_vm3, %v2221_v11, %v2220_v20 }
 0x4aa   : > { %v1990_v7 = vmul.f32 %v1982_v5, %v1970_v4 }
 0x4ac   : > { %v2005_v16 = vadd.f32 %v2001_v42, %v1990_v7 }
 0x4ae   : > { %v9807_v38 = vsel %vm4697_vm13, %v9601_v62, %v2005_v16  ;;  %v2223_v17 = vrot.slane %v2005_v16, 6  ;;  %v2403_v55 = vrot.slane %v2005_v16, 7 }
 0x4b0   : > { %v2224_v10 = vsel %vm1352_vm4, %v2223_v17, %v2222_v18 }
 0x4b1   : > { %2225 = vrot.lane.b32.xlu2 %v2224_v10, %s13353_s21 }
 0x4c4   : > { %v2017_v21 = vpop.permute.xlu1 %2016 }
 0x4c5   : > { %8208 = vmatmul.msk.f32.vlgmr.msra.gmra.mxu3 %vm1430_vm7, %v2017_v21 }
 0x4c6   : > { %2854 = vmatpush.msra.mxu3 %v9816_v44 }
 0x4c8   : > { %2855 = vmatpush.msra.mxu3 %v9820_v23 }
 0x50b   : > { %v2226_v62 = vpop.permute.xlu2 %2225 }
 0x50c   : > { %8213 = vmatmul.msk.f32.vlgmr.msrb.gmra.mxu3 %vm1430_vm7, %v2226_v62 }
 0x50d   : > { %3478 = vmatpush.msrb.mxu3 %v9825_v24 }
 0x50f   : > { %3479 = vmatpush.msrb.mxu3 %v9829_v25 }
 0x548   : > { %v9832_v26 = vpop.f32.mrf.mxu3 }
 0x58f   : > { %v2246_v27 = vpop.f32.mrf.mxu3 }
 0x590   : > { %v2247_v31 = vadd.f32 %v9835_v28, %v2246_v27 }
 0x592   : > { %v2252_v32 = vrot.slane %v2247_v31, 1  ;;  %v2251_v33 = vrot.slane %v2247_v31, 7  ;;  %v2250_v57 = vrot.slane %v2247_v31, 6  ;;  %v2259_v4 = vadd.f32 %v2247_v31, %v9460_v36 }
 0x594   : > { %2343 = vrot.lane.b32.xlu2 %v2252_v32, %s13351_s11  ;;  %v2260_v1 = vadd.f32 %v2252_v32, %v9458_v34  ;;  %2339 = vrot.lane.b32.xlu1 %v2251_v33, %s13351_s11  ;;  %v2258_v0 = vadd.f32 %v2251_v33, %v9454_v30  ;;  %v2257_v40 = vadd.f32 %v2250_v57, %v9452_v29  ;;  %v8216_v15 = vmul.f32 -1.442695, %v2259_v4 }
 0x595   : > { %2337 = vrot.lane.b32.xlu0 %v2250_v57, %s13351_s11 }
 0x596   : > { %v8217_v22 = vmul.f32 -1.442695, %v2260_v1  ;;  %v8215_v3 = vmul.f32 -1.442695, %v2258_v0  ;;  %v8214_v61 = vmul.f32 -1.442695, %v2257_v40 }
 0x598   : > { %8644 = vpow2.f32 %v8217_v22 }
 0x59d   : > { %2341 = vrot.lane.b32.xlu0 %v2247_v31, %s13351_s11 }
 0x59e   : > { %v8645_v12 = vpop.eup %8644 }
 0x59f   : > { %v2276_v8 = vadd.f32 1.0, %v8645_v12 }
 0x5a1   : > { %8646 = vrcp.f32 %v2276_v8  ;;  %v2333_v49 = vand.u32 2147483648, %v2276_v8  ;;  %v2331_v43 = vand.u32 2147483647, %v2276_v8  ;;  %vm2327_vm15 = vweird.f32 %v2276_v8 }
 0x5a2   : > { %8648 = vpow2.f32 %v8215_v3 }
 0x5a3   : > { %v2334_v52 = vor.u32 1.1754944e-38, %v2333_v49  ;;  %vm2332_vm8 = vcmp.eq.f32.partialorder %v2331_v43, 8.507059e+37  ;;  %8650 = vpow2.f32 %v8214_v61 }
 0x5a4   : > { %8652 = vpow2.f32 %v8216_v15 }
 0x5a7   : > { %v8647_v14 = vpop.eup %8646 }
 0x5a8   : > { %v2323_v46 = vmul.f32 %v8647_v14, %v2276_v8  ;;  %vm2328_vm14 = vweird.f32 %v8647_v14  ;;  %v8649_v5 = vpop.eup %8648 }
 0x5a9   : > { %vm2329_vm1 = vmor %vm2327_vm15, %vm2328_vm14  ;;  %v8651_v42 = vpop.eup %8650  ;;  %v2274_v7 = vadd.f32 1.0, %v8649_v5 }
 0x5aa   : > { %v2324_v47 = vsub.f32 1.0, %v2323_v46  ;;  %v2273_v16 = vadd.f32 1.0, %v8651_v42  ;;  %v8653_v20 = vpop.eup %8652 }
 0x5ab   : > { %8654 = vrcp.f32 %v2274_v7  ;;  %v2275_v18 = vadd.f32 1.0, %v8653_v20  ;;  %vm2297_vm11 = vweird.f32 %v2274_v7  ;;  %v2301_v49 = vand.u32 2147483647, %v2274_v7 }
 0x5ac   : > { %v2325_v37 = vmul.f32 %v8647_v14, %v2324_v47  ;;  %8656 = vrcp.f32 %v2273_v16  ;;  %vm2282_vm14 = vweird.f32 %v2273_v16  ;;  %v2286_v43 = vand.u32 2147483647, %v2273_v16 }
 0x5ad   : > { %8658 = vrcp.f32 %v2275_v18 }
 0x5ae   : > { %v2326_v50 = vadd.f32 %v8647_v14, %v2325_v37  ;;  %v2288_v37 = vand.u32 2147483648, %v2273_v16 }
 0x5b0   : > { %v2330_v54 = vsel %vm2329_vm1, %v8647_v14, %v2326_v50  ;;  %v2303_v14 = vand.u32 2147483648, %v2274_v7  ;;  %vm2302_vm1 = vcmp.eq.f32.partialorder %v2301_v49, 8.507059e+37  ;;  %v2289_v0 = vor.u32 1.1754944e-38, %v2288_v37 }
 0x5b1   : > { %v9843_v9 = vsel %vm2332_vm8, %v2334_v52, %v2330_v54  ;;  %v8655_v21 = vpop.eup %8654  ;;  %vm2287_vm8 = vcmp.eq.f32.partialorder %v2286_v43, 8.507059e+37 }
 0x5b2   : > { %v9846_v59 = vmul.f32 %v2403_v55, %v9843_v9  ;;  %v8657_v62 = vpop.eup %8656  ;;  %v2293_v27 = vmul.f32 %v8655_v21, %v2274_v7  ;;  %vm2298_vm9 = vweird.f32 %v8655_v21  ;;  %v2304_v52 = vor.u32 1.1754944e-38, %v2303_v14 }
 0x5b3   : > { %v2278_v31 = vmul.f32 %v8657_v62, %v2273_v16  ;;  %v8659_v57 = vpop.eup %8658  ;;  %vm2283_vm10 = vweird.f32 %v8657_v62  ;;  %vm2299_vm12 = vmor %vm2297_vm11, %vm2298_vm9  ;;  %v2318_v7 = vand.u32 2147483648, %v2275_v18  ;;  %vm2312_vm9 = vweird.f32 %v2275_v18 }
 0x5b4   : > { %v2294_v32 = vsub.f32 1.0, %v2293_v27  ;;  %v2308_v12 = vmul.f32 %v8659_v57, %v2275_v18  ;;  %vm2284_vm15 = vmor %vm2282_vm14, %vm2283_vm10  ;;  %vm2313_vm5 = vweird.f32 %v8659_v57  ;;  %v2316_v16 = vand.u32 2147483647, %v2275_v18 }
 0x5b5   : > { %v2279_v33 = vsub.f32 1.0, %v2278_v31  ;;  %vm2314_vm10 = vmor %vm2312_vm9, %vm2313_vm5  ;;  %vm4702_vm5 = vcmask 1041408  }
 0x5b6   : > { %v2295_v1 = vmul.f32 %v8655_v21, %v2294_v32  ;;  %v2309_v47 = vsub.f32 1.0, %v2308_v12  ;;  %vm2317_vm11 = vcmp.eq.f32.partialorder %v2316_v16, 8.507059e+37 }
 0x5b7   : > { %v2280_v22 = vmul.f32 %v8657_v62, %v2279_v33 }
 0x5b8   : > { %v2296_v8 = vadd.f32 %v8655_v21, %v2295_v1  ;;  %v2310_v55 = vmul.f32 %v8659_v57, %v2309_v47  ;;  %v9864_v1 = vld [vmem:[%s13340_s23] ss:$0 sm:$0xff] }
 0x5b9   : > { %v2281_v46 = vadd.f32 %v8657_v62, %v2280_v22  ;;  %v9868_v22 = vadd.f32 %v9864_v1, %v9832_v26 }
 0x5ba   : > { %v2300_v50 = vsel %vm2299_vm12, %v8655_v21, %v2296_v8  ;;  %v2311_v42 = vadd.f32 %v8659_v57, %v2310_v55 }
 0x5bb   : > { %v2285_v54 = vsel %vm2284_vm15, %v8657_v62, %v2281_v46  ;;  %v2305_v3 = vsel %vm2302_vm1, %v2304_v52, %v2300_v50  ;;  %v2041_v12 = vrot.slane %v9868_v22, 7  ;;  %v2042_v8 = vrot.slane %v9868_v22, 1 }
 0x5bc   : > { %v2290_v15 = vsel %vm2287_vm8, %v2289_v0, %v2285_v54  ;;  %v2315_v20 = vsel %vm2314_vm10, %v8659_v57, %v2311_v42  ;;  %v2043_v14 = vrot.slane %v9868_v22, 2  ;;  %v2378_v50 = vsub.f32 1.0, %v2305_v3 }
 0x5bd   : > { %v2402_v52 = vrot.slane %v9799_v6, 7  ;;  %v2377_v55 = vsub.f32 1.0, %v2290_v15  ;;  %v2401_v0 = vrot.slane %v9788_v63, 7 }
 0x5ee   : > { %v2344_v17 = vpop.permute.xlu2 %2343 }
 0x5ef   : > { %v2352_v10 = vmul.f32 %v2344_v17, %v9843_v9  ;;  %v2319_v17 = vor.u32 1.1754944e-38, %v2318_v7  ;;  %v2408_v7 = vmul.f32 %v2401_v0, %v2290_v15 }
 0x5f1   : > { %2363 = vrot.lane.b32.xlu0 %v2352_v10, %s13352_s10  ;;  %v9855_v10 = vsel %vm2317_vm11, %v2319_v17, %v2315_v20 }
 0x606   : > { %v2340_v40 = vpop.permute.xlu1 %2339 }
 0x607   : > { %v2350_v61 = vmul.f32 %v2340_v40, %v2305_v3  ;;  %v2338_v4 = vpop.permute.xlu0 %2337  ;;  %v2380_v40 = vsub.f32 1.0, %v9843_v9  ;;  %v4698_v9 = vsel %vm4697_vm13, %v9605_v2, %v9788_v63 }
 0x608   : > { %v2349_v5 = vmul.f32 %v2338_v4, %v2290_v15 }
 0x609   : > { %2359 = vrot.lane.b32.xlu2 %v2350_v61, %s13352_s10  ;;  %v2409_v61 = vmul.f32 %v2402_v52, %v2305_v3 }
 0x60a   : > { %2357 = vrot.lane.b32.xlu1 %v2349_v5, %s13352_s10 }
 0x60f   : > { %v2342_v21 = vpop.permute.xlu0 %2341 }
 0x610   : > { %v2351_v62 = vmul.f32 %v2342_v21, %v9855_v10  ;;  %v4699_v21 = vsel %vm4697_vm13, %v9595_v58, %v9799_v6 }
 0x612   : > { %2361 = vrot.lane.b32.xlu1 %v2351_v62, %s13352_s10 }
 0x663   : > { %v2360_v27 = vpop.permute.xlu2 %2359  ;;  %v2364_v31 = vpop.permute.xlu0 %2363 }
 0x664   : > { %v2370_v32 = vadd.f32 %v2360_v27, %v9454_v30  ;;  %v2372_v33 = vadd.f32 %v2364_v31, %v9458_v34 }
 0x666   : > { %8660 = vtanh.f32 %v2370_v32 }
 0x667   : > { %8662 = vtanh.f32 %v2372_v33 }
 0x66c   : > { %v8661_v18 = vpop.eup %8660 }
 0x66d   : > { %v8663_v57 = vpop.eup %8662  ;;  %2387 = vrot.lane.b32.xlu0 %v8661_v18, %s13353_s21 }
 0x66e   : > { %2391 = vrot.lane.b32.xlu1 %v8663_v57, %s13353_s21  ;;  %v2410_v57 = vmul.f32 %v9855_v10, %v2221_v11 }
 0x675   : > { %2044 = vrot.lane.b32.xlu0 %v2041_v12, %s13360_s19 }
 0x676   : > { %2048 = vrot.lane.b32.xlu1 %v2042_v8, %s13360_s19 }
 0x67c   : > { %v2358_v46 = vpop.permute.xlu1 %2357 }
 0x67d   : > { %v2369_v47 = vadd.f32 %v2358_v46, %v9452_v29  ;;  %2050 = vrot.lane.b32.xlu0 %v2043_v14, %s13360_s19 }
 0x67f   : > { %8664 = vtanh.f32 %v2369_v47  ;;  %v4700_v47 = vsel %vm4697_vm13, %v9599_v60, %v9791_v35 }
 0x684   : > { %v2362_v49 = vpop.permute.xlu1 %2361 }
 0x685   : > { %v8665_v37 = vpop.eup %8664  ;;  %v2371_v26 = vadd.f32 %v2362_v49, %v9460_v36  ;;  %2140 = vrot.lane.b32.xlu0 %v2042_v8, %s13354_s9 }
 0x686   : > { %2385 = vrot.lane.b32.xlu2 %v8665_v37, %s13353_s21 }
 0x687   : > { %8666 = vtanh.f32 %v2371_v26 }
 0x68d   : > { %v8667_v43 = vpop.eup %8666 }
 0x68e   : > { %2389 = vrot.lane.b32.xlu2 %v8667_v43, %s13353_s21 }
 0x696   : > { %2046 = vrot.lane.b32.xlu2 %v9868_v22, %s13360_s19 }
 0x69e   : > { %2136 = vrot.lane.b32.xlu2 %v2041_v12, %s13354_s9 }
 0x6a6   : > { %2142 = vrot.lane.b32.xlu2 %v2043_v14, %s13354_s9 }
 0x6df   : > { %v2388_v54 = vpop.permute.xlu0 %2387 }
 0x6e0   : > { %v2398_v4 = vmul.f32 %v2388_v54, %v2378_v50  ;;  %v2386_v5 = vpop.permute.xlu2 %2385  ;;  %v2392_v42 = vpop.permute.xlu1 %2391 }
 0x6e1   : > { %v2397_v16 = vmul.f32 %v2386_v5, %v2377_v55  ;;  %v2400_v20 = vmul.f32 %v2392_v42, %v2380_v40 }
 0x6e2   : > { %v9888_v17 = vadd.f32 %v2409_v61, %v2398_v4 }
 0x6e3   : > { %v9893_v62 = vadd.f32 %v2408_v7, %v2397_v16  ;;  %v9896_v27 = vadd.f32 %v9846_v59, %v2400_v20  ;;  %v2379_v59 = vsub.f32 1.0, %v9855_v10 }
 0x6e4   : > { %v2630_v3 = vrot.slane %v9888_v17, 1  ;;  %v9904_v15 = vsel %vm4702_vm5, %v4699_v21, %v9888_v17 }
 0x6e5   : > { %v2629_v31 = vrot.slane %v9893_v62, 2  ;;  %v9909_v58 = vsel %vm4702_vm5, %v4698_v9, %v9893_v62  ;;  %v9914_v6 = vsel %vm4702_vm5, %v9807_v38, %v9896_v27  ;;  %v2633_v49 = vrot.slane %v9896_v27, 7 }
 0x6e7   : > { %v2045_v2 = vpop.permute.xlu0 %2044  ;;  %v2631_v63 = vsel %vm1348_vm2, %v2630_v3, %v2629_v31 }
 0x6e8   : > { %v2390_v32 = vpop.permute.xlu2 %2389  ;;  %v2049_v33 = vpop.permute.xlu1 %2048  ;;  %v2056_v18 = vadd.f32 %v2045_v2, %v9452_v29 }
 0x6e9   : > { %v2399_v12 = vmul.f32 %v2390_v32, %v2379_v59  ;;  %v2058_v8 = vadd.f32 %v2049_v33, %v9460_v36 }
 0x6ea   : > { %v8209_v14 = vmul.f32 -1.442695, %v2056_v18 }
 0x6eb   : > { %v9923_v46 = vadd.f32 %v2410_v57, %v2399_v12  ;;  %v8211_v38 = vmul.f32 -1.442695, %v2058_v8  ;;  %v2200_v8 = vrot.slane %v9768_v39, 7 }
 0x6ec   : > { %8668 = vpow2.f32 %v8209_v14 }
 0x6ed   : > { %v9931_v37 = vsel %vm4702_vm5, %v4700_v47, %v9923_v46  ;;  %8670 = vpow2.f32 %v8211_v38  ;;  %v2632_v11 = vsel %vm1350_vm3, %v9923_v46, %v2631_v63  ;;  %v2201_v47 = vrot.slane %v9770_v41, 7 }
 0x6ee   : > { %v2634_v10 = vsel %vm1352_vm4, %v2633_v49, %v2632_v11 }
 0x6ef   : > { %2635 = vrot.lane.b32.xlu1 %v2634_v10, %s13353_s21  ;;  %v2051_v26 = vpop.permute.xlu0 %2050 }
 0x6f0   : > { %v2059_v60 = vadd.f32 %v2051_v26, %v9458_v34  ;;  %v2047_v55 = vpop.permute.xlu2 %2046 }
 0x6f2   : > { %v8669_v35 = vpop.eup %8668  ;;  %v8212_v43 = vmul.f32 -1.442695, %v2059_v60 }
 0x6f3   : > { %v8671_v50 = vpop.eup %8670  ;;  %v2072_v52 = vadd.f32 1.0, %v8669_v35 }
 0x6f4   : > { %v2074_v54 = vadd.f32 1.0, %v8671_v50  ;;  %8672 = vpow2.f32 %v8212_v43 }
 0x6f5   : > { %8674 = vrcp.f32 %v2072_v52  ;;  %v2087_v16 = vand.u32 2147483648, %v2072_v52  ;;  %v2085_v9 = vand.u32 2147483647, %v2072_v52  ;;  %vm2081_vm14 = vweird.f32 %v2072_v52 }
 0x6f6   : > { %8676 = vrcp.f32 %v2074_v54  ;;  %v2117_v3 = vand.u32 2147483648, %v2074_v54  ;;  %v2115_v59 = vand.u32 2147483647, %v2074_v54  ;;  %vm2111_vm1 = vweird.f32 %v2074_v54 }
 0x6f7   : > { %2138 = vrot.lane.b32.xlu1 %v9868_v22, %s13354_s9  ;;  %v2088_v32 = vor.u32 1.1754944e-38, %v2087_v16  ;;  %vm2086_vm8 = vcmp.eq.f32.partialorder %v2085_v9, 8.507059e+37  ;;  %v2141_v26 = vpop.permute.xlu0 %2140 }
 0x6f8   : > { %v2137_v63 = vpop.permute.xlu2 %2136  ;;  %v2118_v57 = vor.u32 1.1754944e-38, %v2117_v3  ;;  %vm2116_vm10 = vcmp.eq.f32.partialorder %v2115_v59, 8.507059e+37 }
 0x6fa   : > { %v8673_v0 = vpop.eup %8672 }
 0x6fb   : > { %v8675_v40 = vpop.eup %8674  ;;  %v2075_v61 = vadd.f32 1.0, %v8673_v0 }
 0x6fc   : > { %v8677_v4 = vpop.eup %8676  ;;  %v2077_v5 = vmul.f32 %v8675_v40, %v2072_v52  ;;  %vm2082_vm13 = vweird.f32 %v8675_v40 }
 0x6fd   : > { %8678 = vrcp.f32 %v2075_v61  ;;  %v2107_v42 = vmul.f32 %v8677_v4, %v2074_v54  ;;  %vm2112_vm12 = vweird.f32 %v8677_v4  ;;  %vm2083_vm15 = vmor %vm2081_vm14, %vm2082_vm13  ;;  %v2130_v43 = vand.u32 2147483647, %v2075_v61 }
 0x6fe   : > { %v2078_v7 = vsub.f32 1.0, %v2077_v5  ;;  %vm2113_vm9 = vmor %vm2111_vm1, %vm2112_vm12  ;;  %v2132_v50 = vand.u32 2147483648, %v2075_v61  ;;  %vm2126_vm5 = vweird.f32 %v2075_v61 }
 0x6ff   : > { %v2108_v20 = vsub.f32 1.0, %v2107_v42  ;;  %vm2131_vm12 = vcmp.eq.f32.partialorder %v2130_v43, 8.507059e+37 }
 0x700   : > { %v2079_v21 = vmul.f32 %v8675_v40, %v2078_v7  ;;  %v2133_v0 = vor.u32 1.1754944e-38, %v2132_v50  ;;  %v2143_v5 = vpop.permute.xlu2 %2142 }
 0x701   : > { %v2109_v31 = vmul.f32 %v8677_v4, %v2108_v20  ;;  %v2057_v20 = vadd.f32 %v2047_v55, %v9454_v30 }
 0x702   : > { %v2080_v2 = vadd.f32 %v8675_v40, %v2079_v21 }
 0x703   : > { %v8679_v22 = vpop.eup %8678  ;;  %v2110_v33 = vadd.f32 %v8677_v4, %v2109_v31  ;;  %v8210_v21 = vmul.f32 -1.442695, %v2057_v20 }
 0x704   : > { %v2084_v18 = vsel %vm2083_vm15, %v8675_v40, %v2080_v2  ;;  %v2122_v12 = vmul.f32 %v8679_v22, %v2075_v61  ;;  %vm2127_vm11 = vweird.f32 %v8679_v22  ;;  %v2202_v40 = vrot.slane %v9766_v19, 7 }
 0x705   : > { %v9943_v14 = vsel %vm2086_vm8, %v2088_v32, %v2084_v18  ;;  %v2114_v38 = vsel %vm2113_vm9, %v8677_v4, %v2110_v33  ;;  %vm2128_vm13 = vmor %vm2126_vm5, %vm2127_vm11  ;;  %8680 = vpow2.f32 %v8210_v21 }
 0x706   : > { %v2148_v11 = vmul.f32 %v2137_v63, %v9943_v14  ;;  %v9947_v10 = vsel %vm2116_vm10, %v2118_v57, %v2114_v38  ;;  %v2123_v60 = vsub.f32 1.0, %v2122_v12  ;;  %v9955_v54 = vmul.f32 %v2200_v8, %v9943_v14 }
 0x707   : > { %v2150_v35 = vmul.f32 %v2141_v26, %v9947_v10  ;;  %v9952_v39 = vmul.f32 %v2201_v47, %v9947_v10 }
 0x708   : > { %v2124_v52 = vmul.f32 %v8679_v22, %v2123_v60  ;;  %2156 = vrot.lane.b32.xlu0 %v2148_v11, %s13352_s10 }
 0x709   : > { %2160 = vrot.lane.b32.xlu1 %v2150_v35, %s13352_s10 }
 0x70a   : > { %v2125_v41 = vadd.f32 %v8679_v22, %v2124_v52 }
 0x70b   : > { %v8681_v61 = vpop.eup %8680 }
 0x70c   : > { %v2129_v4 = vsel %vm2128_vm13, %v8679_v22, %v2125_v41  ;;  %v2073_v9 = vadd.f32 1.0, %v8681_v61  ;;  %v2178_v41 = vsub.f32 1.0, %v9947_v10  ;;  %v2176_v10 = vsub.f32 1.0, %v9943_v14 }
 0x70d   : > { %v9959_v42 = vsel %vm2131_vm12, %v2133_v0, %v2129_v4 }
 0x70e   : > { %v2151_v7 = vmul.f32 %v2143_v5, %v9959_v42  ;;  %v9963_v16 = vmul.f32 %v2202_v40, %v9959_v42  ;;  %8682 = vrcp.f32 %v2073_v9  ;;  %v2102_v63 = vand.u32 2147483648, %v2073_v9 }
 0x70f   : > { %vm2096_vm15 = vweird.f32 %v2073_v9  ;;  %v2100_v32 = vand.u32 2147483647, %v2073_v9 }
 0x710   : > { %2162 = vrot.lane.b32.xlu0 %v2151_v7, %s13352_s10  ;;  %v2103_v33 = vor.u32 1.1754944e-38, %v2102_v63 }
 0x711   : > { %vm2101_vm8 = vcmp.eq.f32.partialorder %v2100_v32, 8.507059e+37 }
 0x714   : > { %v8683_v19 = vpop.eup %8682 }
 0x715   : > { %v2092_v3 = vmul.f32 %v8683_v19, %v2073_v9  ;;  %vm2097_vm14 = vweird.f32 %v8683_v19 }
 0x716   : > { %vm2098_vm1 = vmor %vm2096_vm15, %vm2097_vm14 }
 0x717   : > { %v2093_v31 = vsub.f32 1.0, %v2092_v3 }
 0x719   : > { %v2094_v59 = vmul.f32 %v8683_v19, %v2093_v31 }
 0x71b   : > { %v2095_v22 = vadd.f32 %v8683_v19, %v2094_v59 }
 0x71d   : > { %v2099_v55 = vsel %vm2098_vm1, %v8683_v19, %v2095_v22 }
 0x71e   : > { %v9970_v18 = vsel %vm2101_vm8, %v2103_v33, %v2099_v55 }
 0x761   : > { %v2636_v2 = vpop.permute.xlu1 %2635 }
 0x762   : > { %8223 = vmatmul.msk.f32.vlgmr.msra.gmra.mxu1 %vm1430_vm7, %v2636_v2 }
 0x763   : > { %3894 = vmatpush.msra.mxu1 %v9825_v24 }
 0x765   : > { %3895 = vmatpush.msra.mxu1 %v9829_v25 }
 0x769   : > { %v2139_v57 = vpop.permute.xlu1 %2138 }
 0x76a   : > { %v2149_v12 = vmul.f32 %v2139_v57, %v9970_v18 }
 0x76c   : > { %2158 = vrot.lane.b32.xlu2 %v2149_v12, %s13352_s10 }
 0x77a   : > { %v2157_v8 = vpop.permute.xlu0 %2156 }
 0x77b   : > { %v2161_v38 = vpop.permute.xlu1 %2160  ;;  %v2168_v47 = vadd.f32 %v2157_v8, %v9452_v29 }
 0x77c   : > { %v2170_v24 = vadd.f32 %v2161_v38, %v9460_v36  ;;  %v2177_v38 = vsub.f32 1.0, %v9970_v18 }
 0x77d   : > { %8684 = vtanh.f32 %v2168_v47 }
 0x77e   : > { %8686 = vtanh.f32 %v2170_v24  ;;  %v2208_v24 = vmul.f32 %v9970_v18, %v2010_v56 }
 0x782   : > { %v2163_v11 = vpop.permute.xlu0 %2162 }
 0x783   : > { %v8685_v25 = vpop.eup %8684  ;;  %v2171_v26 = vadd.f32 %v2163_v11, %v9458_v34 }
 0x784   : > { %v8687_v60 = vpop.eup %8686  ;;  %2184 = vrot.lane.b32.xlu1 %v8685_v25, %s13353_s21 }
 0x785   : > { %8688 = vtanh.f32 %v2171_v26  ;;  %2188 = vrot.lane.b32.xlu2 %v8687_v60, %s13353_s21 }
 0x78b   : > { %v8689_v35 = vpop.eup %8688 }
 0x78c   : > { %2190 = vrot.lane.b32.xlu1 %v8689_v35, %s13353_s21 }
 0x7c6   : > { %v2159_v43 = vpop.permute.xlu2 %2158 }
 0x7c7   : > { %v2169_v50 = vadd.f32 %v2159_v43, %v9454_v30 }
 0x7c9   : > { %8690 = vtanh.f32 %v2169_v50 }
 0x7cf   : > { %v8691_v52 = vpop.eup %8690 }
 0x7d0   : > { %2186 = vrot.lane.b32.xlu0 %v8691_v52, %s13353_s21 }
 0x7df   : > { %v2656_v0 = vpop.f32.mrf.mxu1  ;;  %v2189_v40 = vpop.permute.xlu2 %2188 }
 0x7e0   : > { %v9984_v4 = vadd.f32 %v9835_v28, %v2656_v0  ;;  %v2198_v5 = vmul.f32 %v2189_v40, %v2178_v41 }
 0x7e2   : > { %v9987_v7 = vadd.f32 %v9952_v39, %v2198_v5  ;;  %v2660_v20 = vrot.slane %v9984_v4, 5  ;;  %v2661_v21 = vrot.slane %v9984_v4, 6  ;;  %v2179_v39 = vsub.f32 1.0, %v9959_v42 }
 0x7e3   : > { %v2670_v14 = vadd.f32 %v9984_v4, %v9458_v34 }
 0x7e4   : > { %2747 = vrot.lane.b32.xlu0 %v2660_v20, %s13351_s11  ;;  %2749 = vrot.lane.b32.xlu1 %v2661_v21, %s13351_s11  ;;  %v2667_v59 = vadd.f32 %v2660_v20, %v9452_v29  ;;  %v2668_v2 = vadd.f32 %v2661_v21, %v9454_v30  ;;  %v2422_v43 = vrot.slane %v9987_v7, 7 }
 0x7e6   : > { %v8224_v22 = vmul.f32 -1.442695, %v2667_v59  ;;  %v8225_v63 = vmul.f32 -1.442695, %v2668_v2 }
 0x7e8   : > { %8692 = vpow2.f32 %v8224_v22 }
 0x7e9   : > { %8694 = vpow2.f32 %v8225_v63 }
 0x7ec   : > { %2753 = vrot.lane.b32.xlu0 %v9984_v4, %s13351_s11 }
 0x7ee   : > { %v8693_v32 = vpop.eup %8692 }
 0x7ef   : > { %v8695_v55 = vpop.eup %8694  ;;  %v2683_v42 = vadd.f32 1.0, %v8693_v32 }
 0x7f0   : > { %v2684_v33 = vadd.f32 1.0, %v8695_v55 }
 0x7f1   : > { %vm2692_vm11 = vweird.f32 %v2683_v42  ;;  %v2696_v59 = vand.u32 2147483647, %v2683_v42 }
 0x7f2   : > { %vm2707_vm5 = vweird.f32 %v2684_v33 }
 0x7f3   : > { %vm2697_vm15 = vcmp.eq.f32.partialorder %v2696_v59, 8.507059e+37 }
 0x7f6   : > { %v2185_v61 = vpop.permute.xlu1 %2184 }
 0x7f7   : > { %v2196_v28 = vmul.f32 %v2185_v61, %v2176_v10 }
 0x7f9   : > { %v9997_v9 = vadd.f32 %v9955_v54, %v2196_v28  ;;  %v8227_v54 = vmul.f32 -1.442695, %v2670_v14  ;;  %v2662_v28 = vrot.slane %v9984_v4, 7 }
 0x7fb   : > { %8696 = vpow2.f32 %v8227_v54  ;;  %v2420_v60 = vrot.slane %v9997_v9, 1 }
 0x7fc   : > { %8698 = vrcp.f32 %v2683_v42 }
 0x7fd   : > { %8700 = vrcp.f32 %v2684_v33 }
 0x7fe   : > { %v2191_v19 = vpop.permute.xlu1 %2190 }
 0x7ff   : > { %v2199_v3 = vmul.f32 %v2191_v19, %v2179_v39  ;;  %v2713_v39 = vand.u32 2147483648, %v2684_v33  ;;  %v2698_v19 = vand.u32 2147483648, %v2683_v42 }
 0x801   : > { %v10001_v31 = vadd.f32 %v9963_v16, %v2199_v3  ;;  %v8697_v16 = vpop.eup %8696  ;;  %v2711_v3 = vand.u32 2147483647, %v2684_v33  ;;  %v2714_v14 = vor.u32 1.1754944e-38, %v2713_v39  ;;  %v2699_v54 = vor.u32 1.1754944e-38, %v2698_v19 }
 0x802   : > { %v2686_v57 = vadd.f32 1.0, %v8697_v16  ;;  %v8699_v12 = vpop.eup %8698 }
 0x803   : > { %v8701_v8 = vpop.eup %8700  ;;  %v2688_v26 = vmul.f32 %v8699_v12, %v2683_v42  ;;  %v2424_v50 = vrot.slane %v10001_v31, 6  ;;  %vm2693_vm9 = vweird.f32 %v8699_v12  ;;  %vm2712_vm14 = vcmp.eq.f32.partialorder %v2711_v3, 8.507059e+37 }
 0x804   : > { %8702 = vrcp.f32 %v2686_v57  ;;  %v2703_v25 = vmul.f32 %v8701_v8, %v2684_v33  ;;  %vm2708_vm10 = vweird.f32 %v8701_v8  ;;  %vm2694_vm13 = vmor %vm2692_vm11, %vm2693_vm9  ;;  %vm2737_vm8 = vweird.f32 %v2686_v57 }
 0x805   : > { %v2689_v0 = vsub.f32 1.0, %v2688_v26  ;;  %vm2709_vm12 = vmor %vm2707_vm5, %vm2708_vm10 }
 0x806   : > { %v2704_v41 = vsub.f32 1.0, %v2703_v25 }
 0x807   : > { %v2690_v5 = vmul.f32 %v8699_v12, %v2689_v0 }
 0x808   : > { %v2705_v18 = vmul.f32 %v8701_v8, %v2704_v41 }
 0x809   : > { %v2691_v10 = vadd.f32 %v8699_v12, %v2690_v5 }
 0x80a   : > { %v8703_v40 = vpop.eup %8702  ;;  %v2706_v21 = vadd.f32 %v8701_v8, %v2705_v18 }
 0x80b   : > { %v2733_v20 = vmul.f32 %v8703_v40, %v2686_v57  ;;  %v2695_v22 = vsel %vm2694_vm13, %v8699_v12, %v2691_v10  ;;  %vm2738_vm1 = vweird.f32 %v8703_v40  ;;  %v2741_v12 = vand.u32 2147483647, %v2686_v57 }
 0x80c   : > { %v2710_v2 = vsel %vm2709_vm12, %v8701_v8, %v2706_v21  ;;  %v10027_v55 = vsel %vm2697_vm15, %v2699_v54, %v2695_v22  ;;  %vm2739_vm9 = vmor %vm2737_vm8, %vm2738_vm1 }
 0x80d   : > { %v2734_v61 = vsub.f32 1.0, %v2733_v20  ;;  %v10025_v32 = vsel %vm2712_vm14, %v2714_v14, %v2710_v2  ;;  %vm2742_vm10 = vcmp.eq.f32.partialorder %v2741_v12, 8.507059e+37  ;;  %v2787_v12 = vsub.f32 1.0, %v10027_v55 }
 0x80e   : > { %vm4707_vm14 = vcmask 1042432  }
 0x80f   : > { %v2735_v63 = vmul.f32 %v8703_v40, %v2734_v61 }
 0x842   : > { %v2187_v47 = vpop.permute.xlu0 %2186 }
 0x843   : > { %v2197_v11 = vmul.f32 %v2187_v47, %v2177_v38  ;;  %v2736_v38 = vadd.f32 %v8703_v40, %v2735_v63  ;;  %v2743_v47 = vand.u32 2147483648, %v2686_v57 }
 0x845   : > { %v10012_v35 = vadd.f32 %v2208_v24, %v2197_v11  ;;  %v2740_v8 = vsel %vm2739_vm9, %v8703_v40, %v2736_v38  ;;  %v2744_v24 = vor.u32 1.1754944e-38, %v2743_v47 }
 0x847   : > { %v2421_v52 = vsel %vm1348_vm2, %v10012_v35, %v2420_v60  ;;  %v10033_v11 = vsel %vm2742_vm10, %v2744_v24, %v2740_v8  ;;  %v2669_v60 = vadd.f32 %v2662_v28, %v9460_v36  ;;  %v2811_v8 = vrot.slane %v9893_v62, 7 }
 0x848   : > { %v2423_v51 = vsel %vm1350_vm3, %v2422_v43, %v2421_v52 }
 0x849   : > { %v2425_v56 = vsel %vm1352_vm4, %v2424_v50, %v2423_v51  ;;  %v8226_v50 = vmul.f32 -1.442695, %v2669_v60 }
 0x84a   : > { %2426 = vrot.lane.b32.xlu2 %v2425_v56, %s13359_s5 }
 0x84b   : > { %8704 = vpow2.f32 %v8226_v50 }
 0x851   : > { %v8705_v52 = vpop.eup %8704 }
 0x852   : > { %2751 = vrot.lane.b32.xlu2 %v2662_v28, %s13351_s11  ;;  %v2685_v41 = vadd.f32 1.0, %v8705_v52 }
 0x854   : > { %8706 = vrcp.f32 %v2685_v41  ;;  %v2728_v5 = vand.u32 2147483648, %v2685_v41  ;;  %vm2722_vm5 = vweird.f32 %v2685_v41  ;;  %v2726_v20 = vand.u32 2147483647, %v2685_v41 }
 0x856   : > { %v2750_v4 = vpop.permute.xlu1 %2749  ;;  %v2748_v16 = vpop.permute.xlu0 %2747  ;;  %v2729_v10 = vor.u32 1.1754944e-38, %v2728_v5  ;;  %vm2727_vm12 = vcmp.eq.f32.partialorder %v2726_v20, 8.507059e+37  ;;  %v2790_v5 = vsub.f32 1.0, %v10033_v11 }
 0x857   : > { %v2760_v33 = vmul.f32 %v2750_v4, %v10025_v32  ;;  %v2759_v42 = vmul.f32 %v2748_v16, %v10027_v55 }
 0x859   : > { %2767 = vrot.lane.b32.xlu1 %v2759_v42, %s13352_s10 }
 0x85a   : > { %2769 = vrot.lane.b32.xlu2 %v2760_v33, %s13352_s10  ;;  %v8707_v57 = vpop.eup %8706 }
 0x85b   : > { %v2718_v0 = vmul.f32 %v8707_v57, %v2685_v41  ;;  %vm2723_vm11 = vweird.f32 %v8707_v57 }
 0x85c   : > { %vm2724_vm13 = vmor %vm2722_vm5, %vm2723_vm11 }
 0x85d   : > { %v2719_v51 = vsub.f32 1.0, %v2718_v0 }
 0x85e   : > { %v2754_v25 = vpop.permute.xlu0 %2753 }
 0x85f   : > { %v2762_v26 = vmul.f32 %v2754_v25, %v10033_v11  ;;  %v2720_v40 = vmul.f32 %v8707_v57, %v2719_v51  ;;  %v2788_v25 = vsub.f32 1.0, %v10025_v32 }
 0x861   : > { %2773 = vrot.lane.b32.xlu1 %v2762_v26, %s13352_s10  ;;  %v2721_v18 = vadd.f32 %v8707_v57, %v2720_v40  ;;  %v2812_v26 = vrot.slane %v9888_v17, 7 }
 0x863   : > { %v2725_v21 = vsel %vm2724_vm13, %v8707_v57, %v2721_v18  ;;  %v2819_v52 = vmul.f32 %v2812_v26, %v10025_v32 }
 0x864   : > { %v2730_v61 = vsel %vm2727_vm12, %v2729_v10, %v2725_v21 }
 0x865   : > { %v2789_v18 = vsub.f32 1.0, %v2730_v61 }
 0x8a4   : > { %v2427_v56 = vpop.permute.xlu2 %2426 }
 0x8a5   : > { %8218 = vmatmul.msk.f32.vlgmr.msra.gmra.mxu0 %vm1430_vm7, %v2427_v56 }
 0x8a6   : > { %3682 = vmatpush.msra.mxu0 %v9816_v44 }
 0x8a8   : > { %3683 = vmatpush.msra.mxu0 %v9820_v23 }
 0x8ac   : > { %v2752_v28 = vpop.permute.xlu2 %2751 }
 0x8ad   : > { %v2761_v39 = vmul.f32 %v2752_v28, %v2730_v61 }
 0x8af   : > { %2771 = vrot.lane.b32.xlu0 %v2761_v39, %s13352_s10  ;;  %v2821_v39 = vmul.f32 %v10033_v11, %v2633_v49 }
 0x8b4   : > { %v2770_v19 = vpop.permute.xlu2 %2769 }
 0x8b5   : > { %v2780_v3 = vadd.f32 %v2770_v19, %v9454_v30 }
 0x8b7   : > { %8708 = vtanh.f32 %v2780_v3 }
 0x8bd   : > { %v8709_v59 = vpop.eup %8708 }
 0x8be   : > { %2797 = vrot.lane.b32.xlu0 %v8709_v59, %s13353_s21 }
 0x8cb   : > { %v2768_v44 = vpop.permute.xlu1 %2767 }
 0x8cc   : > { %v2779_v2 = vadd.f32 %v2768_v44, %v9452_v29 }
 0x8ce   : > { %8710 = vtanh.f32 %v2779_v2 }
 0x8d3   : > { %v2774_v23 = vpop.permute.xlu1 %2773 }
 0x8d4   : > { %v8711_v22 = vpop.eup %8710  ;;  %v2782_v63 = vadd.f32 %v2774_v23, %v9458_v34 }
 0x8d5   : > { %2795 = vrot.lane.b32.xlu2 %v8711_v22, %s13353_s21 }
 0x8d6   : > { %8712 = vtanh.f32 %v2782_v63 }
 0x8dc   : > { %v8713_v14 = vpop.eup %8712 }
 0x8dd   : > { %2801 = vrot.lane.b32.xlu2 %v8713_v14, %s13353_s21 }
 0x921   : > { %v2772_v54 = vpop.permute.xlu0 %2771 }
 0x922   : > { %v2781_v4 = vadd.f32 %v2772_v54, %v9460_v36  ;;  %v2447_v16 = vpop.f32.mrf.mxu0 }
 0x923   : > { %v2448_v33 = vadd.f32 %v9864_v1, %v2447_v16  ;;  %v2818_v1 = vmul.f32 %v2811_v8, %v10027_v55 }
 0x924   : > { %8714 = vtanh.f32 %v2781_v4 }
 0x925   : > { %v2452_v42 = vrot.slane %v2448_v33, 7  ;;  %v2451_v47 = vrot.slane %v2448_v33, 6  ;;  %v2453_v40 = vrot.slane %v2448_v33, 1 }
 0x927   : > { %2456 = vrot.lane.b32.xlu2 %v2452_v42, %s13360_s19 }
 0x92a   : > { %v8715_v38 = vpop.eup %8714 }
 0x92b   : > { %2799 = vrot.lane.b32.xlu1 %v8715_v38, %s13353_s21 }
 0x92f   : > { %v2796_v24 = vpop.permute.xlu2 %2795  ;;  %2546 = vrot.lane.b32.xlu2 %v2451_v47, %s13354_s9 }
 0x930   : > { %v2807_v60 = vmul.f32 %v2796_v24, %v2787_v12  ;;  %v2798_v50 = vpop.permute.xlu0 %2797 }
 0x931   : > { %v2808_v41 = vmul.f32 %v2798_v50, %v2788_v25 }
 0x932   : > { %v10059_v57 = vadd.f32 %v2818_v1, %v2807_v60  ;;  %v2610_v1 = vrot.slane %v9997_v9, 7 }
 0x933   : > { %v10061_v0 = vadd.f32 %v2819_v52, %v2808_v41  ;;  %2454 = vrot.lane.b32.xlu1 %v2451_v47, %s13360_s19 }
 0x934   : > { %v3039_v62 = vrot.slane %v10059_v57, 3  ;;  %v10068_v17 = vsel %vm4707_vm14, %v9909_v58, %v10059_v57  ;;  %v2813_v58 = vrot.slane %v9923_v46, 7 }
 0x935   : > { %v3040_v55 = vrot.slane %v10061_v0, 2  ;;  %v10074_v32 = vsel %vm4707_vm14, %v9904_v15, %v10061_v0 }
 0x936   : > { %v2820_v21 = vmul.f32 %v2813_v58, %v2730_v61 }
 0x937   : > { %2550 = vrot.lane.b32.xlu2 %v2448_v33, %s13354_s9  ;;  %v3041_v51 = vsel %vm1348_vm2, %v3040_v55, %v3039_v62  ;;  %v2802_v56 = vpop.permute.xlu2 %2801 }
 0x938   : > { %v2810_v15 = vmul.f32 %v2802_v56, %v2790_v5 }
 0x93a   : > { %v10093_v46 = vadd.f32 %v2821_v39, %v2810_v15 }
 0x93b   : > { %2458 = vrot.lane.b32.xlu1 %v2448_v33, %s13360_s19 }
 0x943   : > { %2552 = vrot.lane.b32.xlu1 %v2453_v40, %s13354_s9 }
 0x981   : > { %v2457_v63 = vpop.permute.xlu2 %2456 }
 0x989   : > { %v2547_v25 = vpop.permute.xlu2 %2546 }
 0x991   : > { %v2551_v58 = vpop.permute.xlu2 %2550 }
 0x99d   : > { %v2800_v20 = vpop.permute.xlu1 %2799 }
 0x99e   : > { %v2809_v10 = vmul.f32 %v2800_v20, %v2789_v18 }
 0x9a0   : > { %v10082_v28 = vadd.f32 %v2820_v21, %v2809_v10  ;;  %v2467_v21 = vadd.f32 %v2457_v63, %v9454_v30 }
 0x9a2   : > { %v3042_v19 = vrot.slane %v10082_v28, 1  ;;  %v10091_v3 = vsel %vm4707_vm14, %v9931_v37, %v10082_v28  ;;  %v8220_v10 = vmul.f32 -1.442695, %v2467_v21 }
 0x9a4   : > { %v3043_v59 = vsel %vm1350_vm3, %v3042_v19, %v3041_v51 }
 0x9a5   : > { %v2455_v61 = vpop.permute.xlu1 %2454  ;;  %v3044_v44 = vsel %vm1352_vm4, %v10093_v46, %v3043_v59 }
 0x9a6   : > { %v2466_v2 = vadd.f32 %v2455_v61, %v9452_v29  ;;  %3045 = vrot.lane.b32.xlu0 %v3044_v44, %s13353_s21 }
 0x9a8   : > { %v8219_v27 = vmul.f32 -1.442695, %v2466_v2  ;;  %v9006_v2 = vld [vmem:[%s9258_s30 + $0x8] sm:$0xff] }
 0x9aa   : > { %8716 = vpow2.f32 %v8219_v27  ;;  %v9007_v27 = vld [vmem:[%s9258_s30] sm:$0xff] }
 0x9ad   : > { %v2459_v49 = vpop.permute.xlu1 %2458 }
 0x9ae   : > { %v2468_v11 = vadd.f32 %v2459_v49, %v9460_v36  ;;  %2460 = vrot.lane.b32.xlu0 %v2453_v40, %s13360_s19 }
 0x9b0   : > { %v8717_v37 = vpop.eup %8716  ;;  %v8221_v23 = vmul.f32 -1.442695, %v2468_v11 }
 0x9b1   : > { %v2482_v22 = vadd.f32 1.0, %v8717_v37 }
 0x9b2   : > { %8718 = vpow2.f32 %v8221_v23 }
 0x9b3   : > { %8720 = vrcp.f32 %v2482_v22  ;;  %v2497_v38 = vand.u32 2147483648, %v2482_v22  ;;  %v2495_v12 = vand.u32 2147483647, %v2482_v22  ;;  %vm2491_vm1 = vweird.f32 %v2482_v22 }
 0x9b5   : > { %v2498_v26 = vor.u32 1.1754944e-38, %v2497_v38  ;;  %vm2496_vm9 = vcmp.eq.f32.partialorder %v2495_v12, 8.507059e+37 }
 0x9b6   : > { %2548 = vrot.lane.b32.xlu0 %v2452_v42, %s13354_s9 }
 0x9b8   : > { %v8719_v14 = vpop.eup %8718 }
 0x9b9   : > { %v8721_v54 = vpop.eup %8720  ;;  %v2484_v4 = vadd.f32 1.0, %v8719_v14 }
 0x9ba   : > { %v2487_v16 = vmul.f32 %v8721_v54, %v2482_v22  ;;  %vm2492_vm15 = vweird.f32 %v8721_v54 }
 0x9bb   : > { %8722 = vrcp.f32 %v2484_v4  ;;  %vm2493_vm8 = vmor %vm2491_vm1, %vm2492_vm15  ;;  %v2527_v55 = vand.u32 2147483648, %v2484_v4  ;;  %v2525_v40 = vand.u32 2147483647, %v2484_v4  ;;  %vm2521_vm11 = vweird.f32 %v2484_v4 }
 0x9bc   : > { %v2488_v33 = vsub.f32 1.0, %v2487_v16  ;;  %8724 = vpow2.f32 %v8220_v10 }
 0x9bd   : > { %v2528_v9 = vor.u32 1.1754944e-38, %v2527_v55  ;;  %vm2526_vm13 = vcmp.eq.f32.partialorder %v2525_v40, 8.507059e+37 }
 0x9be   : > { %v2489_v47 = vmul.f32 %v8721_v54, %v2488_v33 }
 0x9c0   : > { %v2490_v8 = vadd.f32 %v8721_v54, %v2489_v47 }
 0x9c1   : > { %v8723_v24 = vpop.eup %8722 }
 0x9c2   : > { %v2517_v42 = vmul.f32 %v8723_v24, %v2484_v4  ;;  %v2494_v60 = vsel %vm2493_vm8, %v8721_v54, %v2490_v8  ;;  %vm2522_vm10 = vweird.f32 %v8723_v24  ;;  %v8725_v15 = vpop.eup %8724 }
 0x9c3   : > { %v10104_v50 = vsel %vm2496_vm9, %v2498_v26, %v2494_v60  ;;  %vm2523_vm5 = vmor %vm2521_vm11, %vm2522_vm10  ;;  %v2483_v39 = vadd.f32 1.0, %v8725_v15 }
 0x9c4   : > { %v2558_v52 = vmul.f32 %v2547_v25, %v10104_v50  ;;  %v2518_v41 = vsub.f32 1.0, %v2517_v42  ;;  %v10108_v62 = vmul.f32 %v2610_v1, %v10104_v50 }
 0x9c5   : > { %8726 = vrcp.f32 %v2483_v39  ;;  %v2512_v22 = vand.u32 2147483648, %v2483_v39  ;;  %vm2506_vm15 = vweird.f32 %v2483_v39  ;;  %v2510_v14 = vand.u32 2147483647, %v2483_v39 }
 0x9c6   : > { %2566 = vrot.lane.b32.xlu0 %v2558_v52, %s13352_s10  ;;  %v2519_v51 = vmul.f32 %v8723_v24, %v2518_v41 }
 0x9c7   : > { %v2513_v4 = vor.u32 1.1754944e-38, %v2512_v22  ;;  %vm2511_vm8 = vcmp.eq.f32.partialorder %v2510_v14, 8.507059e+37 }
 0x9c8   : > { %v2520_v56 = vadd.f32 %v8723_v24, %v2519_v51  ;;  %v2612_v51 = vrot.slane %v10001_v31, 7 }
 0x9ca   : > { %v2524_v18 = vsel %vm2523_vm5, %v8723_v24, %v2520_v56  ;;  %v2553_v56 = vpop.permute.xlu1 %2552 }
 0x9cb   : > { %v10111_v5 = vsel %vm2526_vm13, %v2528_v9, %v2524_v18  ;;  %v8727_v19 = vpop.eup %8726 }
 0x9cc   : > { %v2560_v20 = vmul.f32 %v2551_v58, %v10111_v5  ;;  %v2502_v59 = vmul.f32 %v8727_v19, %v2483_v39  ;;  %vm2507_vm12 = vweird.f32 %v8727_v19 }
 0x9cd   : > { %vm2508_vm1 = vmor %vm2506_vm15, %vm2507_vm12 }
 0x9ce   : > { %2570 = vrot.lane.b32.xlu0 %v2560_v20, %s13352_s10  ;;  %v2503_v44 = vsub.f32 1.0, %v2502_v59 }
 0x9d0   : > { %v2504_v49 = vmul.f32 %v8727_v19, %v2503_v44 }
 0x9d2   : > { %v2505_v23 = vadd.f32 %v8727_v19, %v2504_v49 }
 0x9d4   : > { %v2509_v54 = vsel %vm2508_vm1, %v8727_v19, %v2505_v23  ;;  %v2586_v23 = vsub.f32 1.0, %v10104_v50 }
 0x9d5   : > { %v10120_v16 = vsel %vm2511_vm8, %v2513_v4, %v2509_v54 }
 0xa18   : > { %v3046_v61 = vpop.permute.xlu0 %3045 }
 0xa19   : > { %8233 = vmatmul.msk.f32.vlgmr.msrb.gmra.mxu0 %vm1430_vm7, %v3046_v61 }
 0xa1a   : > { %4310 = vmatpush.msrb.mxu0 %v9006_v2 }
 0xa1c   : > { %4311 = vmatpush.msrb.mxu0 %v9007_v27  ;;  %v9008_v27 = vld [vmem:[%s13344_s6] ss:$0 sm:$0xff] }
 0xa20   : > { %v2461_v11 = vpop.permute.xlu0 %2460 }
 0xa21   : > { %v2469_v37 = vadd.f32 %v2461_v11, %v9458_v34 }
 0xa23   : > { %v8222_v63 = vmul.f32 -1.442695, %v2469_v37 }
 0xa25   : > { %8728 = vpow2.f32 %v8222_v63 }
 0xa28   : > { %v2549_v33 = vpop.permute.xlu0 %2548 }
 0xa29   : > { %v2559_v38 = vmul.f32 %v2549_v33, %v10120_v16  ;;  %v9009_v33 = vld [vmem:[%s13345_s3] ss:$0 sm:$0xff]  ;;  %s1074_s3 = scalar_lea.vmem %s13363_s13, %s9519_s17 }
 0xa2b   : > { %v8729_v47 = vpop.eup %8728  ;;  %2568 = vrot.lane.b32.xlu1 %v2559_v38, %s13352_s10  ;;  %v1294_v38 = vadd.f32 %v9009_v33, %v9638_v13 }
 0xa2c   : > { %v2485_v12 = vadd.f32 1.0, %v8729_v47 }
 0xa2d   : > { %v1305_v47 = vmax.f32 %v1294_v38, 0.0 }
 0xa2e   : > { %8730 = vrcp.f32 %v2485_v12  ;;  %v2542_v1 = vand.u32 2147483648, %v2485_v12  ;;  %v2540_v52 = vand.u32 2147483647, %v2485_v12  ;;  %vm2536_vm10 = vweird.f32 %v2485_v12 }
 0xa30   : > { %v2543_v55 = vor.u32 1.1754944e-38, %v2542_v1  ;;  %vm2541_vm5 = vcmp.eq.f32.partialorder %v2540_v52, 8.507059e+37 }
 0xa34   : > { %v8731_v8 = vpop.eup %8730 }
 0xa35   : > { %v2532_v24 = vmul.f32 %v8731_v8, %v2485_v12  ;;  %vm2537_vm9 = vweird.f32 %v8731_v8  ;;  %v9010_v12 = vld [vmem:[%s13343_s8] ss:$0 sm:$0xff] }
 0xa36   : > { %vm2538_vm11 = vmor %vm2536_vm10, %vm2537_vm9 }
 0xa37   : > { %v2533_v25 = vsub.f32 1.0, %v2532_v24 }
 0xa38   : > { %v2567_v26 = vpop.permute.xlu0 %2566 }
 0xa39   : > { %v2578_v42 = vadd.f32 %v2567_v26, %v9452_v29  ;;  %v2534_v60 = vmul.f32 %v8731_v8, %v2533_v25 }
 0xa3b   : > { %8732 = vtanh.f32 %v2578_v42  ;;  %v2535_v41 = vadd.f32 %v8731_v8, %v2534_v60 }
 0xa3d   : > { %v2539_v40 = vsel %vm2538_vm11, %v8731_v8, %v2535_v41  ;;  %v1312_v8 = vmul.f32 %v9010_v12, %v1305_v47 }
 0xa3e   : > { %v10126_v9 = vsel %vm2541_vm5, %v2543_v55, %v2539_v40 }
 0xa3f   : > { %v2561_v18 = vmul.f32 %v2553_v56, %v10126_v9  ;;  %v10130_v58 = vmul.f32 %v2612_v51, %v10126_v9  ;;  %v1316_v24 = vsel %vm1101_vm0, %v1312_v8, 0.0 }
 0xa40   : > { %v2571_v20 = vpop.permute.xlu0 %2570 }
 0xa41   : > { %v8733_v21 = vpop.eup %8732  ;;  %v2580_v10 = vadd.f32 %v2571_v20, %v9460_v36  ;;  %2572 = vrot.lane.b32.xlu2 %v2561_v18, %s13352_s10  ;;  %v2611_v18 = vrot.slane %v10012_v35, 7  ;;  %v2587_v20 = vsub.f32 1.0, %v10120_v16 }
 0xa42   : > { %2594 = vrot.lane.b32.xlu1 %v8733_v21, %s13353_s21 }
 0xa43   : > { %8734 = vtanh.f32 %v2580_v10 }
 0xa49   : > { %v8735_v31 = vpop.eup %8734 }
 0xa4a   : > { %2598 = vrot.lane.b32.xlu1 %v8735_v31, %s13353_s21  ;;  %v2618_v31 = vmul.f32 %v2611_v18, %v10120_v16 }
 0xa96   : > { %v3066_v44 = vpop.f32.mrf.mxu0 }
 0xa97   : > { %v3067_v49 = vadd.f32 %v9008_v27, %v3066_v44 }
 0xa99   : > { %v3071_v11 = vrot.slane %v3067_v49, 5  ;;  %v3070_v37 = vrot.slane %v3067_v49, 4  ;;  %v3073_v22 = vrot.slane %v3067_v49, 7  ;;  %v3072_v54 = vrot.slane %v3067_v49, 6 }
 0xa9b   : > { %v2573_v15 = vpop.permute.xlu2 %2572  ;;  %v3080_v50 = vadd.f32 %v3072_v54, %v9460_v36  ;;  %v3079_v1 = vadd.f32 %v3071_v11, %v9454_v30  ;;  %v3078_v60 = vadd.f32 %v3070_v37, %v9452_v29  ;;  %v3081_v52 = vadd.f32 %v3073_v22, %v9458_v34 }
 0xa9c   : > { %v2581_v39 = vadd.f32 %v2573_v15, %v9458_v34 }
 0xa9d   : > { %v2569_v19 = vpop.permute.xlu1 %2568  ;;  %v8236_v25 = vmul.f32 -1.442695, %v3080_v50  ;;  %v8235_v42 = vmul.f32 -1.442695, %v3079_v1  ;;  %v8234_v13 = vmul.f32 -1.442695, %v3078_v60 }
 0xa9e   : > { %8736 = vtanh.f32 %v2581_v39  ;;  %v2579_v59 = vadd.f32 %v2569_v19, %v9454_v30  ;;  %v8237_v51 = vmul.f32 -1.442695, %v3081_v52 }
 0xaa0   : > { %8738 = vtanh.f32 %v2579_v59 }
 0xaa1   : > { %8740 = vpow2.f32 %v8236_v25 }
 0xaa4   : > { %v8737_v61 = vpop.eup %8736 }
 0xaa5   : > { %2600 = vrot.lane.b32.xlu0 %v8737_v61, %s13353_s21 }
 0xaa6   : > { %v8739_v2 = vpop.eup %8738 }
 0xaa7   : > { %2596 = vrot.lane.b32.xlu2 %v8739_v2, %s13353_s21  ;;  %v8741_v26 = vpop.eup %8740 }
 0xaad   : > { %3160 = vrot.lane.b32.xlu0 %v3071_v11, %s13351_s11 }
 0xaaf   : > { %3158 = vrot.lane.b32.xlu2 %v3070_v37, %s13351_s11 }
 0xab4   : > { %v2595_v63 = vpop.permute.xlu1 %2594 }
 0xab5   : > { %v2606_v14 = vmul.f32 %v2595_v63, %v2586_v23  ;;  %3164 = vrot.lane.b32.xlu0 %v3073_v22, %s13351_s11 }
 0xab7   : > { %v10146_v4 = vadd.f32 %v10108_v62, %v2606_v14  ;;  %3162 = vrot.lane.b32.xlu2 %v3072_v54, %s13351_s11  ;;  %v3096_v62 = vadd.f32 1.0, %v8741_v26  ;;  %v2588_v26 = vsub.f32 1.0, %v10111_v5 }
 0xab9   : > { %8742 = vrcp.f32 %v3096_v62  ;;  %v2830_v61 = vrot.slane %v10146_v4, 2  ;;  %v3139_v37 = vand.u32 2147483648, %v3096_v62  ;;  %vm3133_vm12 = vweird.f32 %v3096_v62 }
 0xaba   : > { %8744 = vpow2.f32 %v8235_v42  ;;  %v3137_v22 = vand.u32 2147483647, %v3096_v62  ;;  %v2589_v42 = vsub.f32 1.0, %v10126_v9 }
 0xabb   : > { %8746 = vpow2.f32 %v8234_v13  ;;  %v3140_v33 = vor.u32 1.1754944e-38, %v3139_v37 }
 0xabc   : > { %8748 = vpow2.f32 %v8237_v51  ;;  %vm3138_vm1 = vcmp.eq.f32.partialorder %v3137_v22, 8.507059e+37  ;;  %v2599_v50 = vpop.permute.xlu1 %2598  ;;  %v2619_v51 = vmul.f32 %v10111_v5, %v2422_v43 }
 0xabd   : > { %v2608_v60 = vmul.f32 %v2599_v50, %v2588_v26  ;;  %v8563_v50 = vld [vmem:[#allocation2] ss:$0 sm:$0xff] }
 0xabf   : > { %v8743_v41 = vpop.eup %8742 }
 0xac0   : > { %v8745_v55 = vpop.eup %8744  ;;  %v3129_v40 = vmul.f32 %v8743_v41, %v3096_v62  ;;  %vm3134_vm13 = vweird.f32 %v8743_v41 }
 0xac1   : > { %v10157_v56 = vadd.f32 1.0, %v8745_v55  ;;  %v8747_v21 = vpop.eup %8746  ;;  %vm3135_vm15 = vmor %vm3133_vm12, %vm3134_vm13 }
 0xac2   : > { %v3130_v39 = vsub.f32 1.0, %v3129_v40  ;;  %v10163_v19 = vadd.f32 1.0, %v8747_v21  ;;  %v8749_v2 = vpop.eup %8748  ;;  %v10194_v21 = vadd.f32 %v2619_v51, %v2608_v60 }
 0xac3   : > { %8750 = vrcp.f32 %v10157_v56  ;;  %v10173_v23 = vadd.f32 1.0, %v8749_v2  ;;  %v3124_v55 = vand.u32 2147483648, %v10157_v56  ;;  %vm3118_vm9 = vweird.f32 %v10157_v56 }
 0xac4   : > { %v3131_v35 = vmul.f32 %v8743_v41, %v3130_v39  ;;  %8752 = vrcp.f32 %v10163_v19  ;;  %v3122_v9 = vand.u32 2147483647, %v10157_v56  ;;  %vm3103_vm13 = vweird.f32 %v10163_v19 }
 0xac5   : > { %8754 = vrcp.f32 %v10173_v23  ;;  %v3154_v22 = vand.u32 2147483648, %v10173_v23 }
 0xac6   : > { %v3132_v11 = vadd.f32 %v8743_v41, %v3131_v35  ;;  %vm3123_vm5 = vcmp.eq.f32.partialorder %v3122_v9, 8.507059e+37 }
 0xac8   : > { %v3136_v54 = vsel %vm3135_vm15, %v8743_v41, %v3132_v11 }
 0xac9   : > { %v8751_v49 = vpop.eup %8750  ;;  %v10178_v12 = vsel %vm3138_vm1, %v3140_v33, %v3136_v54  ;;  %v3155_v54 = vor.u32 1.1754944e-38, %v3154_v22 }
 0xaca   : > { %v3114_v63 = vmul.f32 %v8751_v49, %v10157_v56  ;;  %v8753_v14 = vpop.eup %8752  ;;  %vm3119_vm8 = vweird.f32 %v8751_v49  ;;  %v3107_v56 = vand.u32 2147483647, %v10163_v19 }
 0xacb   : > { %v3099_v47 = vmul.f32 %v8753_v14, %v10163_v19  ;;  %v8755_v62 = vpop.eup %8754  ;;  %vm3120_vm10 = vmor %vm3118_vm9, %vm3119_vm8  ;;  %vm3104_vm11 = vweird.f32 %v8753_v14  ;;  %vm3148_vm8 = vweird.f32 %v10173_v23 }
 0xacc   : > { %v3115_v38 = vsub.f32 1.0, %v3114_v63  ;;  %v3144_v18 = vmul.f32 %v8755_v62, %v10173_v23  ;;  %vm3105_vm12 = vmor %vm3103_vm13, %vm3104_vm11  ;;  %vm3108_vm15 = vcmp.eq.f32.partialorder %v3107_v56, 8.507059e+37  ;;  %vm3149_vm1 = vweird.f32 %v8755_v62 }
 0xacd   : > { %v3100_v1 = vsub.f32 1.0, %v3099_v47  ;;  %v3152_v63 = vand.u32 2147483647, %v10173_v23  ;;  %vm3150_vm9 = vmor %vm3148_vm8, %vm3149_vm1  ;;  %v1325_v23 = vsel %vm1101_vm0, %v9646_v53, 0.0  ;;  %v10234_v53 = vld [vmem:[%s13341_s15 + $0x8] sm:$0xff]  ;;  %vm13108_vm11 = vcmask 60416  }
 0xace   : > { %v3116_v25 = vmul.f32 %v8751_v49, %v3115_v38  ;;  %v3145_v5 = vsub.f32 1.0, %v3144_v18 }
 0xacf   : > { %v3101_v40 = vmul.f32 %v8753_v14, %v3100_v1 }
 0xad0   : > { %v3117_v41 = vadd.f32 %v8751_v49, %v3116_v25 }
 0xad1   : > { %v3102_v7 = vadd.f32 %v8753_v14, %v3101_v40 }
 0xad3   : > { %v3106_v2 = vsel %vm3105_vm12, %v8753_v14, %v3102_v7 }
 0xae0   : > { %1317 = vadd.xlane.f32.xlu2 %v1316_v24 }
 0xb01   : > { %v2597_v10 = vpop.permute.xlu2 %2596 }
 0xb02   : > { %v2607_v15 = vmul.f32 %v2597_v10, %v2587_v20 }
 0xb04   : > { %v10165_v59 = vadd.f32 %v2618_v31, %v2607_v15  ;;  %v3121_v31 = vsel %vm3120_vm10, %v8751_v49, %v3117_v41  ;;  %v3125_v15 = vor.u32 1.1754944e-38, %v3124_v55  ;;  %vm3153_vm10 = vcmp.eq.f32.partialorder %v3152_v63, 8.507059e+37 }
 0xb06   : > { %v2831_v44 = vrot.slane %v10165_v59, 1 }
 0xb08   : > { %v2832_v27 = vsel %vm1348_vm2, %v2831_v44, %v2830_v61  ;;  %v10206_v61 = vsel %vm3123_vm5, %v3125_v15, %v3121_v31  ;;  %v1342_v31 = vlaneseq  ;;  %vm4712_vm5 = vcmask 1043456  }
 0xb09   : > { %v10171_v16 = vpop.permute.xlu2 %3158  ;;  %v2833_v43 = vsel %vm1350_vm3, %v10194_v21, %v2832_v27  ;;  %v3146_v27 = vmul.f32 %v8755_v62, %v3145_v5 }
 0xb11   : > { %v3163_v8 = vpop.permute.xlu2 %3162 }
 0xb12   : > { %v3172_v24 = vmul.f32 %v3163_v8, %v10178_v12  ;;  %v1319_v8 = vsel %vm1101_vm0, %v9642_v45, 0.0 }
 0xb14   : > { %3182 = vrot.lane.b32.xlu0 %v3172_v24, %s13352_s10  ;;  %v1322_v24 = vsel %vm1101_vm0, %v9644_v48, 0.0 }
 0xb17   : > { %v2601_v13 = vpop.permute.xlu0 %2600 }
 0xb18   : > { %v2609_v52 = vmul.f32 %v2601_v13, %v2589_v42  ;;  %v10238_v42 = vld [vmem:[%s13341_s15] sm:$0xff] }
 0xb1a   : > { %v10190_v20 = vadd.f32 %v10130_v58, %v2609_v52  ;;  %v3109_v58 = vand.u32 2147483648, %v10163_v19  ;;  %v3147_v19 = vadd.f32 %v8755_v62, %v3146_v27 }
 0xb1c   : > { %v2834_v10 = vrot.slane %v10190_v20, 7  ;;  %v3110_v49 = vor.u32 1.1754944e-38, %v3109_v58  ;;  %v3151_v14 = vsel %vm3150_vm9, %v8755_v62, %v3147_v19  ;;  %v10248_v58 = vand.u32 127, %v1342_v31 }
 0xb1d   : > { %v10218_v38 = vsel %vm3153_vm10, %v3155_v54, %v3151_v14  ;;  %v3199_v14 = vsub.f32 1.0, %v10206_v61  ;;  %v3223_v54 = vrot.slane %v10061_v0, 7 }
 0xb1e   : > { %v2835_v39 = vsel %vm1352_vm4, %v2834_v10, %v2833_v43  ;;  %v10210_v11 = vsel %vm3108_vm15, %v3110_v49, %v3106_v2  ;;  %13361 = vst [vmem:[#allocation36_spill] sm:$0xff] %v10248_v58 }
 0xb1f   : > { %2836 = vrot.lane.b32.xlu1 %v2835_v39, %s13359_s5  ;;  %v3161_v44 = vpop.permute.xlu0 %3160  ;;  %v3170_v37 = vmul.f32 %v10171_v16, %v10210_v11  ;;  %v13110_v16 = vmov 0  }
 0xb20   : > { %v3171_v35 = vmul.f32 %v3161_v44, %v10206_v61  ;;  %8385 = vset.pattern.permute.xlu2 %v13110_v16  ;;  %8386 = vset.pattern.permute.xlu0 %v13110_v16 }
 0xb22   : > { %3180 = vrot.lane.b32.xlu2 %v3171_v35, %s13352_s10 }
 0xb27   : > { %3178 = vrot.lane.b32.xlu1 %v3170_v37, %s13352_s10  ;;  %v3165_v33 = vpop.permute.xlu0 %3164 }
 0xb28   : > { %v3173_v47 = vmul.f32 %v3165_v33, %v10218_v38 }
 0xb2f   : > { %3184 = vrot.lane.b32.xlu1 %v3173_v47, %s13352_s10  ;;  %v3231_v47 = vmul.f32 %v3223_v54, %v10206_v61  ;;  %v4711_v61 = vsel %vm4707_vm14, %v9914_v6, %v10093_v46 }
 0xb3e   : > { %1320 = vadd.xlane.f32.xlu0 %v1319_v8 }
 0xb4b   : > { %1326 = vadd.xlane.f32.xlu2 %v1325_v23 }
 0xb53   : > { %v1318_v25 = vpop.xlane.xlu2 %1317 }
 0xb59   : > { %1323 = vadd.xlane.f32.xlu1 %v1322_v24 }
 0xb63   : > { %1331 = vperm.xlu2 %8385, %v8563_v50   ;;  %v3201_v50 = vsub.f32 1.0, %v10218_v38 }
 0xb7c   : > { %v3181_v26 = vpop.permute.xlu2 %3180 }
 0xb7d   : > { %v3191_v1 = vadd.f32 %v3181_v26, %v9454_v30 }
 0xb7f   : > { %8756 = vtanh.f32 %v3191_v1 }
 0xb85   : > { %v8757_v62 = vpop.eup %8756 }
 0xb86   : > { %3208 = vrot.lane.b32.xlu1 %v8757_v62, %s13353_s21  ;;  %v3183_v13 = vpop.permute.xlu0 %3182 }
 0xb87   : > { %v3192_v52 = vadd.f32 %v3183_v13, %v9460_v36 }
 0xb91   : > { %v2837_v45 = vpop.permute.xlu1 %2836 }
 0xb92   : > { %8228 = vmatmul.msk.f32.vlgmr.msra.gmra.mxu3 %vm1430_vm7, %v2837_v45 }
 0xb93   : > { %4098 = vmatpush.msra.mxu3 %v10234_v53 }
 0xb95   : > { %4099 = vmatpush.msra.mxu3 %v10238_v42 }
 0xb99   : > { %v3179_v48 = vpop.permute.xlu1 %3178 }
 0xb9a   : > { %v3190_v60 = vadd.f32 %v3179_v48, %v9452_v29  ;;  %v3222_v48 = vrot.slane %v10059_v57, 7 }
 0xb9c   : > { %8758 = vtanh.f32 %v3190_v60 }
 0xb9d   : > { %8760 = vtanh.f32 %v3192_v52  ;;  %v10286_v52 = vld [vmem:[%s13340_s23] ss:$0 sm:$0xff] }
 0xba1   : > { %v3185_v41 = vpop.permute.xlu1 %3184 }
 0xba2   : > { %v8759_v55 = vpop.eup %8758  ;;  %v3193_v51 = vadd.f32 %v3185_v41, %v9458_v34  ;;  %v3230_v41 = vmul.f32 %v3222_v48, %v10210_v11 }
 0xba3   : > { %3206 = vrot.lane.b32.xlu0 %v8759_v55, %s13353_s21  ;;  %v8761_v40 = vpop.eup %8760 }
 0xba4   : > { %8762 = vtanh.f32 %v3193_v51 }
 0xbaa   : > { %v8763_v18 = vpop.eup %8762 }
 0xbab   : > { %3210 = vrot.lane.b32.xlu0 %v8761_v40, %s13353_s21  ;;  %3212 = vrot.lane.b32.xlu2 %v8763_v18, %s13353_s21  ;;  %v3200_v18 = vsub.f32 1.0, %v10178_v12 }
 0xbb1   : > { %v1321_v7 = vpop.xlane.xlu0 %1320 }
 0xbbe   : > { %v1327_v9 = vpop.xlane.xlu2 %1326 }
 0xbc6   : > { %v1332_v15 = vpop.permute.xlu2 %1331 }
 0xbc7   : > { %v1334_v43 = vadd.f32 %v1332_v15, %v1318_v25  ;;  %v1335_v5 = vadd.f32 %v1332_v15, %v1321_v7  ;;  %v10250_v56 = vadd.f32 %v1332_v15, %v1327_v9  ;;  %v3225_v25 = vrot.slane %v10093_v46, 7 }
 0xbc9   : > { %v1344_v44 = vperm.slane %v1334_v43, %v10248_v58  ;;  %v1345_v35 = vperm.slane %v1335_v5, %v10248_v58  ;;  %v1347_v49 = vperm.slane %v10250_v56, %v10248_v58  ;;  %v3233_v0 = vmul.f32 %v3225_v25, %v10218_v38 }
 0xbcb   : > { %v1349_v37 = vsel %vm1348_vm2, %v1345_v35, %v1344_v44 }
 0xbcc   : > { %v1324_v39 = vpop.xlane.xlu1 %1323 }
 0xbcd   : > { %v1336_v2 = vadd.f32 %v1332_v15, %v1324_v39 }
 0xbcf   : > { %v1346_v27 = vperm.slane %v1336_v2, %v10248_v58 }
 0xbd1   : > { %v1351_v19 = vsel %vm1350_vm3, %v1346_v27, %v1349_v37 }
 0xbd2   : > { %v1353_v22 = vsel %vm1352_vm4, %v1347_v49, %v1351_v19 }
 0xbd3   : > { %v1356_v63 = vsel %vm13108_vm11, %v1353_v22, -inf }
 0xbd4   : > { %1357 = vmax.xlane.f32.xlu1 %v1356_v63 }
 0xbf8   : > { %v3209_v33 = vpop.permute.xlu1 %3208 }
 0xbf9   : > { %v3219_v8 = vmul.f32 %v3209_v33, %v3199_v14 }
 0xbfb   : > { %v10264_v23 = vadd.f32 %v3231_v47, %v3219_v8 }
 0xbfd   : > { %v10269_v24 = vsel %vm4712_vm5, %v10074_v32, %v10264_v23  ;;  %v3198_v32 = vsub.f32 1.0, %v10210_v11  ;;  %v3454_v46 = vrot.slane %v10264_v23, 3  ;;  %v3224_v11 = vrot.slane %v10082_v28, 7 }
 0xbff   : > { %v3232_v7 = vmul.f32 %v3224_v11, %v10178_v12 }
 0xc05   : > { %v3213_v26 = vpop.permute.xlu2 %3212 }
 0xc06   : > { %v3221_v1 = vmul.f32 %v3213_v26, %v3201_v50 }
 0xc08   : > { %v10274_v62 = vadd.f32 %v3233_v0, %v3221_v1 }
 0xc0a   : > { %v10281_v45 = vsel %vm4712_vm5, %v4711_v61, %v10274_v62 }
 0xc15   : > { %v2857_v60 = vpop.f32.mrf.mxu3  ;;  %v3207_v13 = vpop.permute.xlu0 %3206 }
 0xc16   : > { %v10289_v38 = vadd.f32 %v10286_v52, %v2857_v60  ;;  %v3218_v55 = vmul.f32 %v3207_v13, %v3198_v32 }
 0xc18   : > { %v10292_v51 = vadd.f32 %v3230_v41, %v3218_v55  ;;  %v2863_v6 = vrot.slane %v10289_v38, 7  ;;  %v2861_v0 = vrot.slane %v10289_v38, 5 }
 0xc1a   : > { %v3453_v40 = vrot.slane %v10292_v51, 4  ;;  %v10300_v57 = vsel %vm4712_vm5, %v10068_v17, %v10292_v51  ;;  %2868 = vrot.lane.b32.xlu1 %v2863_v6, %s13360_s19 }
 0xc1c   : > { %v3455_v9 = vsel %vm1348_vm2, %v3454_v46, %v3453_v40 }
 0xc1d   : > { %v3211_v15 = vpop.permute.xlu0 %3210 }
 0xc1e   : > { %v3220_v39 = vmul.f32 %v3211_v15, %v3200_v18 }
 0xc20   : > { %v10307_v44 = vadd.f32 %v3232_v7, %v3220_v39 }
 0xc22   : > { %v3456_v35 = vrot.slane %v10307_v44, 2  ;;  %v10313_v17 = vsel %vm4712_vm5, %v10091_v3, %v10307_v44  ;;  %2960 = vrot.lane.b32.xlu1 %v2863_v6, %s13354_s9 }
 0xc24   : > { %v3457_v27 = vsel %vm1350_vm3, %v3456_v35, %v3455_v9 }
 0xc47   : > { %v1358_v28 = vpop.xlane.xlu1 %1357 }
 0xc48   : > { %v1360_v49 = vperm.slane %v1358_v28, 0  ;;  %v1361_v37 = vperm.slane %v1358_v28, 1  ;;  %v1362_v19 = vperm.slane %v1358_v28, 2  ;;  %v1363_v47 = vperm.slane %v1358_v28, 3 }
 0xc4a   : > { %v1368_v22 = vsub.f32 %v1334_v43, %v1360_v49  ;;  %v1369_v12 = vsub.f32 %v1335_v5, %v1361_v37  ;;  %v1370_v54 = vsub.f32 %v1336_v2, %v1362_v19  ;;  %v1371_v50 = vsub.f32 %v10250_v56, %v1363_v47 }
 0xc4b   : > { %v3458_v5 = vrot.slane %v10274_v62, 1  ;;  %v2862_v56 = vrot.slane %v10289_v38, 6 }
 0xc4c   : > { %v1372_v63 = vmul.f32 1.442695, %v1368_v22  ;;  %v1374_v14 = vmul.f32 1.442695, %v1369_v12  ;;  %v1376_v33 = vmul.f32 1.442695, %v1370_v54 }
 0xc4d   : > { %v1378_v43 = vmul.f32 1.442695, %v1371_v50  ;;  %v3459_v2 = vsel %vm1352_vm4, %v3458_v5, %v3457_v27 }
 0xc4e   : > { %8764 = vpow2.f32 %v1372_v63 }
 0xc4f   : > { %8766 = vpow2.f32 %v1374_v14 }
 0xc50   : > { %8768 = vpow2.f32 %v1376_v33 }
 0xc51   : > { %8770 = vpow2.f32 %v1378_v43 }
 0xc54   : > { %v10317_v8 = vpop.eup %8764 }
 0xc55   : > { %v10319_v3 = vpop.eup %8766  ;;  %1385 = vperm.xlu0 %8386, %v10317_v8  }
 0xc56   : > { %1388 = vperm.xlu2 %8385, %v10319_v3   ;;  %v10325_v25 = vpop.eup %8768 }
 0xc57   : > { %v10330_v26 = vpop.eup %8770 }
 0xc5d   : > { %1391 = vperm.xlu0 %8386, %v10325_v25  }
 0xc5e   : > { %3460 = vrot.lane.b32.xlu2 %v3459_v2, %s13353_s21 }
 0xc66   : > { %1394 = vperm.xlu2 %8385, %v10330_v26  }
 0xc6e   : > { %2864 = vrot.lane.b32.xlu2 %v2861_v0, %s13360_s19 }
 0xc76   : > { %2866 = vrot.lane.b32.xlu2 %v2862_v56, %s13360_s19 }
 0xc7e   : > { %2870 = vrot.lane.b32.xlu2 %v10289_v38, %s13360_s19 }
 0xc86   : > { %2956 = vrot.lane.b32.xlu2 %v2861_v0, %s13354_s9 }
 0xc8c   : > { %v2869_v61 = vpop.permute.xlu1 %2868 }
 0xc8d   : > { %v2878_v48 = vadd.f32 %v2869_v61, %v9460_v36 }
 0xc8e   : > { %2958 = vrot.lane.b32.xlu2 %v2862_v56, %s13354_s9 }
 0xc8f   : > { %v8231_v60 = vmul.f32 -1.442695, %v2878_v48 }
 0xc91   : > { %8772 = vpow2.f32 %v8231_v60 }
 0xc97   : > { %v8773_v6 = vpop.eup %8772 }
 0xc98   : > { %v10344_v18 = vadd.f32 1.0, %v8773_v6 }
 0xc9a   : > { %vm2931_vm8 = vweird.f32 %v10344_v18 }
 0xcb0   : > { %v1389_v1 = vpop.permute.xlu2 %1388 }
 0xcb1   : > { %v1397_v9 = vperm.slane %v1389_v1, %v10248_v58 }
 0xcb8   : > { %v3461_v32 = vpop.permute.xlu2 %3460 }
 0xcb9   : > { %8243 = vmatmul.msk.f32.vlgmr.msrb.gmra.mxu3 %vm1430_vm7, %v3461_v32 }
 0xcc0   : > { %v1395_v13 = vpop.permute.xlu2 %1394 }
 0xcc1   : > { %v1399_v35 = vperm.slane %v1395_v13, %v10248_v58 }
 0xcc7   : > { %v1386_v41 = vpop.permute.xlu0 %1385 }
 0xcc8   : > { %v2865_v55 = vpop.permute.xlu2 %2864  ;;  %v1396_v11 = vperm.slane %v1386_v41, %v10248_v58 }
 0xcc9   : > { %v2876_v46 = vadd.f32 %v2865_v55, %v9452_v29 }
 0xcca   : > { %v1400_v28 = vsel %vm1348_vm2, %v1397_v9, %v1396_v11  ;;  %v2937_v11 = vand.u32 2147483648, %v10344_v18 }
 0xccb   : > { %v8229_v40 = vmul.f32 -1.442695, %v2876_v46 }
 0xccd   : > { %8774 = vpow2.f32 %v8229_v40  ;;  %v3020_v40 = vrot.slane %v10146_v4, 7 }
 0xcce   : > { %8776 = vrcp.f32 %v10344_v18 }
 0xccf   : > { %v1392_v15 = vpop.permute.xlu0 %1391 }
 0xcd0   : > { %v1398_v7 = vperm.slane %v1392_v15, %v10248_v58  ;;  %v2867_v39 = vpop.permute.xlu2 %2866  ;;  %v2935_v15 = vand.u32 2147483647, %v10344_v18 }
 0xcd1   : > { %v2877_v27 = vadd.f32 %v2867_v39, %v9454_v30 }
 0xcd2   : > { %v1401_v49 = vsel %vm1350_vm3, %v1398_v7, %v1400_v28 }
 0xcd3   : > { %v8775_v37 = vpop.eup %8774  ;;  %v8230_v19 = vmul.f32 -1.442695, %v2877_v27  ;;  %v1402_v22 = vsel %vm1352_vm4, %v1399_v35, %v1401_v49 }
 0xcd4   : > { %v2892_v12 = vadd.f32 1.0, %v8775_v37  ;;  %v1404_v63 = vsel %vm13108_vm11, %v1402_v22, 0.0  ;;  %v8777_v14 = vpop.eup %8776  ;;  %v2938_v37 = vor.u32 1.1754944e-38, %v2937_v11 }
 0xcd5   : > { %8778 = vpow2.f32 %v8230_v19  ;;  %1405 = vadd.xlane.f32.xlu0 %v1404_v63  ;;  %v2927_v54 = vmul.f32 %v8777_v14, %v10344_v18  ;;  %vm2932_vm12 = vweird.f32 %v8777_v14 }
 0xcd6   : > { %8780 = vrcp.f32 %v2892_v12  ;;  %v2907_v56 = vand.u32 2147483648, %v2892_v12  ;;  %v2905_v32 = vand.u32 2147483647, %v2892_v12  ;;  %vm2901_vm13 = vweird.f32 %v2892_v12  ;;  %vm2933_vm9 = vmor %vm2931_vm8, %vm2932_vm12 }
 0xcd7   : > { %v2928_v5 = vsub.f32 1.0, %v2927_v54 }
 0xcd8   : > { %v2871_v33 = vpop.permute.xlu2 %2870  ;;  %v2908_v13 = vor.u32 1.1754944e-38, %v2907_v56  ;;  %vm2906_vm1 = vcmp.eq.f32.partialorder %v2905_v32, 8.507059e+37 }
 0xcd9   : > { %v2929_v1 = vmul.f32 %v8777_v14, %v2928_v5 }
 0xcdb   : > { %v8779_v47 = vpop.eup %8778  ;;  %v2930_v55 = vadd.f32 %v8777_v14, %v2929_v1 }
 0xcdc   : > { %v8781_v50 = vpop.eup %8780  ;;  %v2893_v43 = vadd.f32 1.0, %v8779_v47 }
 0xcdd   : > { %v2897_v2 = vmul.f32 %v8781_v50, %v2892_v12  ;;  %vm2902_vm14 = vweird.f32 %v8781_v50  ;;  %v2934_v28 = vsel %vm2933_vm9, %v8777_v14, %v2930_v55  ;;  %v3021_v12 = vrot.slane %v10165_v59, 7  ;;  %v2961_v14 = vpop.permute.xlu1 %2960 }
 0xcde   : > { %8782 = vrcp.f32 %v2893_v43  ;;  %vm2903_vm15 = vmor %vm2901_vm13, %vm2902_vm14  ;;  %v2922_v35 = vand.u32 2147483648, %v2893_v43  ;;  %v2920_v4 = vand.u32 2147483647, %v2893_v43  ;;  %vm2936_vm14 = vcmp.eq.f32.partialorder %v2935_v15, 8.507059e+37 }
 0xcdf   : > { %v2898_v0 = vsub.f32 1.0, %v2897_v2  ;;  %vm2916_vm13 = vweird.f32 %v2893_v43  ;;  %v10371_v19 = vsel %vm2936_vm14, %v2938_v37, %v2934_v28 }
 0xce0   : > { %v2957_v41 = vpop.permute.xlu2 %2956  ;;  %v2923_v22 = vor.u32 1.1754944e-38, %v2922_v35 }
 0xce1   : > { %v2899_v61 = vmul.f32 %v8781_v50, %v2898_v0 }
 0xce3   : > { %v2900_v48 = vadd.f32 %v8781_v50, %v2899_v61 }
 0xce4   : > { %v8783_v60 = vpop.eup %8782 }
 0xce5   : > { %v2904_v6 = vsel %vm2903_vm15, %v8781_v50, %v2900_v48  ;;  %v2912_v46 = vmul.f32 %v8783_v60, %v2893_v43  ;;  %vm2917_vm10 = vweird.f32 %v8783_v60  ;;  %vm2921_vm15 = vcmp.eq.f32.partialorder %v2920_v4, 8.507059e+37 }
 0xce6   : > { %v10359_v9 = vsel %vm2906_vm1, %v2908_v13, %v2904_v6  ;;  %vm2918_vm12 = vmor %vm2916_vm13, %vm2917_vm10  ;;  %v2970_v50 = vmul.f32 %v2961_v14, %v10371_v19  ;;  %v2879_v43 = vadd.f32 %v2871_v33, %v9458_v34 }
 0xce7   : > { %v2968_v7 = vmul.f32 %v2957_v41, %v10359_v9  ;;  %v2913_v39 = vsub.f32 1.0, %v2912_v46  ;;  %v10366_v27 = vmul.f32 %v3020_v40, %v10359_v9 }
 0xce8   : > { %v2959_v47 = vpop.permute.xlu2 %2958  ;;  %v8232_v2 = vmul.f32 -1.442695, %v2879_v43  ;;  %v2998_v43 = vsub.f32 1.0, %v10371_v19 }
 0xce9   : > { %v2914_v49 = vmul.f32 %v8783_v60, %v2913_v39  ;;  %2976 = vrot.lane.b32.xlu2 %v2968_v7, %s13352_s10  ;;  %2962 = vrot.lane.b32.xlu0 %v10289_v38, %s13354_s9 }
 0xcea   : > { %8784 = vpow2.f32 %v8232_v2  ;;  %v3022_v2 = vrot.slane %v10194_v21, 7 }
 0xceb   : > { %v2915_v18 = vadd.f32 %v8783_v60, %v2914_v49 }
 0xced   : > { %v2919_v63 = vsel %vm2918_vm12, %v8783_v60, %v2915_v18  ;;  %v2996_v18 = vsub.f32 1.0, %v10359_v9 }
 0xcee   : > { %v10374_v54 = vsel %vm2921_vm15, %v2923_v22, %v2919_v63 }
 0xcef   : > { %v2969_v38 = vmul.f32 %v2959_v47, %v10374_v54  ;;  %v3028_v5 = vmul.f32 %v3021_v12, %v10374_v54  ;;  %v2997_v9 = vsub.f32 1.0, %v10374_v54 }
 0xcf0   : > { %v8785_v59 = vpop.eup %8784 }
 0xcf1   : > { %2980 = vrot.lane.b32.xlu2 %v2970_v50, %s13352_s10  ;;  %2978 = vrot.lane.b32.xlu1 %v2969_v38, %s13352_s10  ;;  %v2895_v0 = vadd.f32 1.0, %v8785_v59 }
 0xcf3   : > { %8786 = vrcp.f32 %v2895_v0  ;;  %v2952_v33 = vand.u32 2147483648, %v2895_v0  ;;  %vm2946_vm8 = vweird.f32 %v2895_v0  ;;  %v2950_v6 = vand.u32 2147483647, %v2895_v0 }
 0xcf5   : > { %v2953_v11 = vor.u32 1.1754944e-38, %v2952_v33  ;;  %vm2951_vm10 = vcmp.eq.f32.partialorder %v2950_v6, 8.507059e+37 }
 0xcf9   : > { %v8787_v61 = vpop.eup %8786 }
 0xcfa   : > { %v2942_v32 = vmul.f32 %v8787_v61, %v2895_v0  ;;  %vm2947_vm1 = vweird.f32 %v8787_v61  ;;  %v3029_v0 = vmul.f32 %v3022_v2, %v10371_v19 }
 0xcfb   : > { %vm2948_vm9 = vmor %vm2946_vm8, %vm2947_vm1 }
 0xcfc   : > { %v2943_v60 = vsub.f32 1.0, %v2942_v32 }
 0xcfe   : > { %v2944_v13 = vmul.f32 %v8787_v61, %v2943_v60 }
 0xd00   : > { %v2945_v55 = vadd.f32 %v8787_v61, %v2944_v13 }
 0xd02   : > { %v2949_v40 = vsel %vm2948_vm9, %v8787_v61, %v2945_v55 }
 0xd03   : > { %v2954_v39 = vsel %vm2951_vm10, %v2953_v11, %v2949_v40 }
 0xd04   : > { %v2999_v21 = vsub.f32 1.0, %v2954_v39  ;;  %v3030_v54 = vmul.f32 %v2954_v39, %v2834_v10 }
 0xd43   : > { %v2977_v56 = vpop.permute.xlu2 %2976 }
 0xd44   : > { %v2988_v1 = vadd.f32 %v2977_v56, %v9452_v29 }
 0xd46   : > { %8788 = vtanh.f32 %v2988_v1 }
 0xd48   : > { %v10384_v41 = vpop.xlane.xlu0 %1405 }
 0xd4b   : > { %v2981_v46 = vpop.permute.xlu2 %2980 }
 0xd4c   : > { %v8789_v48 = vpop.eup %8788  ;;  %v2990_v15 = vadd.f32 %v2981_v46, %v9460_v36 }
 0xd4d   : > { %3004 = vrot.lane.b32.xlu2 %v8789_v48, %s13353_s21 }
 0xd4e   : > { %8790 = vtanh.f32 %v2990_v15 }
 0xd54   : > { %v8791_v4 = vpop.eup %8790 }
 0xd5b   : > { %v2963_v7 = vpop.permute.xlu0 %2962 }
 0xd5c   : > { %v2971_v35 = vmul.f32 %v2963_v7, %v2954_v39 }
 0xd5e   : > { %2982 = vrot.lane.b32.xlu1 %v2971_v35, %s13352_s10 }
 0xd63   : > { %v2979_v28 = vpop.permute.xlu1 %2978 }
 0xd64   : > { %v2989_v49 = vadd.f32 %v2979_v28, %v9454_v30 }
 0xd66   : > { %8792 = vtanh.f32 %v2989_v49  ;;  %3008 = vrot.lane.b32.xlu1 %v8791_v4, %s13353_s21 }
 0xd6c   : > { %v8793_v37 = vpop.eup %8792 }
 0xd6d   : > { %3006 = vrot.lane.b32.xlu0 %v8793_v37, %s13353_s21 }
 0xda7   : > { %v3005_v22 = vpop.permute.xlu2 %3004 }
 0xda8   : > { %v3016_v12 = vmul.f32 %v3005_v22, %v2996_v18 }
 0xdaa   : > { %v10393_v63 = vadd.f32 %v10366_v27, %v3016_v12 }
 0xdac   : > { %v3242_v32 = vrot.slane %v10393_v63, 3 }
 0xdd0   : > { %v2983_v14 = vpop.permute.xlu1 %2982 }
 0xdd1   : > { %v2991_v47 = vadd.f32 %v2983_v14, %v9458_v34 }
 0xdd3   : > { %8794 = vtanh.f32 %v2991_v47 }
 0xdd8   : > { %v3009_v38 = vpop.permute.xlu1 %3008 }
 0xdd9   : > { %v8795_v50 = vpop.eup %8794  ;;  %v3018_v59 = vmul.f32 %v3009_v38, %v2998_v43 }
 0xdda   : > { %3010 = vrot.lane.b32.xlu2 %v8795_v50, %s13353_s21 }
 0xddb   : > { %v10401_v1 = vadd.f32 %v3029_v0, %v3018_v59 }
 0xddd   : > { %v3245_v60 = vrot.slane %v10401_v1, 1 }
 0xddf   : > { %v3007_v56 = vpop.permute.xlu0 %3006 }
 0xde0   : > { %v3017_v27 = vmul.f32 %v3007_v56, %v2997_v9 }
 0xde2   : > { %v3032_v61 = vadd.f32 %v3028_v5, %v3017_v27 }
 0xde4   : > { %v3243_v48 = vrot.slane %v3032_v61, 2  ;;  %v3434_v9 = vrot.slane %v3032_v61, 7 }
 0xde6   : > { %v3244_v13 = vsel %vm1348_vm2, %v3243_v48, %v3242_v32 }
 0xde7   : > { %v3246_v55 = vsel %vm1350_vm3, %v3245_v60, %v3244_v13 }
 0xe34   : > { %v3011_v33 = vpop.permute.xlu2 %3010 }
 0xe35   : > { %v3019_v19 = vmul.f32 %v3011_v33, %v2999_v21 }
 0xe37   : > { %v10409_v6 = vadd.f32 %v3030_v54, %v3019_v19 }
 0xe39   : > { %v3247_v5 = vsel %vm1352_vm4, %v10409_v6, %v3246_v55 }
 0xe3a   : > { %3248 = vrot.lane.b32.xlu0 %v3247_v5, %s13359_s5 }
 0xeac   : > { %v3249_v46 = vpop.permute.xlu0 %3248 }
 0xead   : > { %8238 = vmatmul.msk.f32.vlgmr.msrb.gmra.mxu1 %vm1430_vm7, %v3249_v46 }
 0xeae   : > { %4514 = vmatpush.msrb.mxu1 %v10234_v53 }
 0xeb0   : > { %4515 = vmatpush.msrb.mxu1 %v10238_v42 }
 0xf2a   : > { %v3269_v40 = vpop.f32.mrf.mxu1 }
 0xf2b   : > { %v3270_v11 = vadd.f32 %v10286_v52, %v3269_v40 }
 0xf2d   : > { %v3275_v20 = vrot.slane %v3270_v11, 6  ;;  %v3274_v10 = vrot.slane %v3270_v11, 5  ;;  %v3273_v15 = vrot.slane %v3270_v11, 4  ;;  %v3276_v7 = vrot.slane %v3270_v11, 7 }
 0xf2f   : > { %3281 = vrot.lane.b32.xlu0 %v3275_v20, %s13360_s19  ;;  %3279 = vrot.lane.b32.xlu2 %v3274_v10, %s13360_s19 }
 0xf30   : > { %3277 = vrot.lane.b32.xlu1 %v3273_v15, %s13360_s19 }
 0xf37   : > { %3371 = vrot.lane.b32.xlu0 %v3274_v10, %s13354_s9  ;;  %3369 = vrot.lane.b32.xlu2 %v3273_v15, %s13354_s9 }
 0xf38   : > { %3283 = vrot.lane.b32.xlu1 %v3276_v7, %s13360_s19 }
 0xf3f   : > { %3375 = vrot.lane.b32.xlu2 %v3276_v7, %s13354_s9 }
 0xf40   : > { %3373 = vrot.lane.b32.xlu1 %v3275_v20, %s13354_s9 }
 0xf89   : > { %v3280_v53 = vpop.permute.xlu2 %3279 }
 0xf8a   : > { %v3290_v42 = vadd.f32 %v3280_v53, %v9454_v30 }
 0xf8c   : > { %v8240_v52 = vmul.f32 -1.442695, %v3290_v42 }
 0xf8e   : > { %8796 = vpow2.f32 %v8240_v52 }
 0xf94   : > { %v8797_v39 = vpop.eup %8796 }
 0xf95   : > { %v3306_v35 = vadd.f32 1.0, %v8797_v39 }
 0xf97   : > { %8798 = vrcp.f32 %v3306_v35  ;;  %v3335_v18 = vand.u32 2147483648, %v3306_v35  ;;  %v3333_v47 = vand.u32 2147483647, %v3306_v35  ;;  %vm3329_vm13 = vweird.f32 %v3306_v35 }
 0xf99   : > { %v3336_v59 = vor.u32 1.1754944e-38, %v3335_v18  ;;  %vm3334_vm15 = vcmp.eq.f32.partialorder %v3333_v47, 8.507059e+37 }
 0xf9d   : > { %v8799_v28 = vpop.eup %8798 }
 0xf9e   : > { %v3325_v49 = vmul.f32 %v8799_v28, %v3306_v35  ;;  %vm3330_vm14 = vweird.f32 %v8799_v28 }
 0xf9f   : > { %vm3331_vm12 = vmor %vm3329_vm13, %vm3330_vm14 }
 0xfa0   : > { %v3326_v4 = vsub.f32 1.0, %v3325_v49 }
 0xfa1   : > { %v3282_v37 = vpop.permute.xlu0 %3281 }
 0xfa2   : > { %v3291_v22 = vadd.f32 %v3282_v37, %v9460_v36  ;;  %v3278_v12 = vpop.permute.xlu1 %3277  ;;  %v3327_v14 = vmul.f32 %v8799_v28, %v3326_v4  ;;  %v3435_v37 = vrot.slane %v10401_v1, 7 }
 0xfa3   : > { %v3289_v50 = vadd.f32 %v3278_v12, %v9452_v29 }
 0xfa4   : > { %v8241_v38 = vmul.f32 -1.442695, %v3291_v22  ;;  %v3328_v43 = vadd.f32 %v8799_v28, %v3327_v14 }
 0xfa5   : > { %v8239_v2 = vmul.f32 -1.442695, %v3289_v50 }
 0xfa6   : > { %8800 = vpow2.f32 %v8241_v38  ;;  %v3332_v0 = vsel %vm3331_vm12, %v8799_v28, %v3328_v43  ;;  %v3433_v38 = vrot.slane %v10393_v63, 7  ;;  %v3370_v43 = vpop.permute.xlu2 %3369 }
 0xfa7   : > { %8802 = vpow2.f32 %v8239_v2  ;;  %v10429_v56 = vsel %vm3334_vm15, %v3336_v59, %v3332_v0 }
 0xfa8   : > { %v10432_v27 = vmul.f32 %v3434_v9, %v10429_v56 }
 0xfa9   : > { %v3372_v32 = vpop.permute.xlu0 %3371 }
 0xfaa   : > { %v3382_v48 = vmul.f32 %v3372_v32, %v10429_v56  ;;  %v3284_v60 = vpop.permute.xlu1 %3283 }
 0xfab   : > { %v3292_v13 = vadd.f32 %v3284_v60, %v9458_v34 }
 0xfac   : > { %v8801_v55 = vpop.eup %8800  ;;  %3391 = vrot.lane.b32.xlu1 %v3382_v48, %s13352_s10 }
 0xfad   : > { %v8803_v21 = vpop.eup %8802  ;;  %v3307_v61 = vadd.f32 1.0, %v8801_v55  ;;  %v8242_v33 = vmul.f32 -1.442695, %v3292_v13 }
 0xfae   : > { %v3305_v54 = vadd.f32 1.0, %v8803_v21 }
 0xfaf   : > { %8804 = vrcp.f32 %v3307_v61  ;;  %v3348_v7 = vand.u32 2147483647, %v3307_v61  ;;  %v3350_v53 = vand.u32 2147483648, %v3307_v61  ;;  %vm3344_vm9 = vweird.f32 %v3307_v61 }
 0xfb0   : > { %8806 = vrcp.f32 %v3305_v54  ;;  %v3320_v52 = vand.u32 2147483648, %v3305_v54  ;;  %v3318_v35 = vand.u32 2147483647, %v3305_v54  ;;  %vm3314_vm14 = vweird.f32 %v3305_v54 }
 0xfb1   : > { %8808 = vpow2.f32 %v8242_v33  ;;  %v3351_v49 = vor.u32 1.1754944e-38, %v3350_v53  ;;  %vm3349_vm13 = vcmp.eq.f32.partialorder %v3348_v7, 8.507059e+37  ;;  %v10465_v53 = vld [vmem:[%s13344_s6] ss:$0 sm:$0xff] }
 0xfb2   : > { %v3321_v22 = vor.u32 1.1754944e-38, %v3320_v52  ;;  %v3374_v14 = vpop.permute.xlu1 %3373  ;;  %vm3319_vm15 = vcmp.eq.f32.partialorder %v3318_v35, 8.507059e+37 }
 0xfb5   : > { %v8805_v19 = vpop.eup %8804 }
 0xfb6   : > { %v8807_v5 = vpop.eup %8806  ;;  %v3340_v46 = vmul.f32 %v8805_v19, %v3307_v61  ;;  %vm3345_vm1 = vweird.f32 %v8805_v19  ;;  %v3436_v61 = vrot.slane %v10409_v6, 7 }
 0xfb7   : > { %v8809_v40 = vpop.eup %8808  ;;  %v3310_v11 = vmul.f32 %v8807_v5, %v3305_v54  ;;  %vm3315_vm8 = vweird.f32 %v8807_v5  ;;  %vm3346_vm10 = vmor %vm3344_vm9, %vm3345_vm1  ;;  %v3376_v54 = vpop.permute.xlu2 %3375 }
 0xfb8   : > { %v3308_v20 = vadd.f32 1.0, %v8809_v40  ;;  %v3341_v10 = vsub.f32 1.0, %v3340_v46  ;;  %vm3316_vm12 = vmor %vm3314_vm14, %vm3315_vm8 }
 0xfb9   : > { %v3311_v15 = vsub.f32 1.0, %v3310_v11 }
 0xfba   : > { %8810 = vrcp.f32 %v3308_v20  ;;  %v3342_v42 = vmul.f32 %v8805_v19, %v3341_v10  ;;  %v3365_v63 = vand.u32 2147483648, %v3308_v20  ;;  %v3363_v13 = vand.u32 2147483647, %v3308_v20 }
 0xfbb   : > { %v3312_v39 = vmul.f32 %v8807_v5, %v3311_v15  ;;  %vm3359_vm8 = vweird.f32 %v3308_v20  ;;  %v3481_v15 = vpop.f32.mrf.mxu3 }
 0xfbc   : > { %v3343_v28 = vadd.f32 %v8805_v19, %v3342_v42  ;;  %v3366_v21 = vor.u32 1.1754944e-38, %v3365_v63  ;;  %v10468_v42 = vadd.f32 %v10465_v53, %v3481_v15 }
 0xfbd   : > { %v3313_v4 = vadd.f32 %v8807_v5, %v3312_v39 }
 0xfbe   : > { %v3347_v18 = vsel %vm3346_vm10, %v8805_v19, %v3343_v28  ;;  %vm3364_vm10 = vcmp.eq.f32.partialorder %v3363_v13, 8.507059e+37  ;;  %v3486_v52 = vrot.slane %v10468_v42, 4  ;;  %v3485_v39 = vrot.slane %v10468_v42, 3 }
 0xfbf   : > { %v10438_v12 = vsel %vm3349_vm13, %v3351_v49, %v3347_v18  ;;  %v3317_v47 = vsel %vm3316_vm12, %v8807_v5, %v3313_v4  ;;  %v3488_v49 = vrot.slane %v10468_v42, 6 }
 0xfc0   : > { %v8811_v50 = vpop.eup %8810  ;;  %v3383_v2 = vmul.f32 %v3374_v14, %v10438_v12  ;;  %v10442_v59 = vsel %vm3319_vm15, %v3321_v22, %v3317_v47  ;;  %v10445_v9 = vmul.f32 %v3435_v37, %v10438_v12  ;;  %v3487_v14 = vrot.slane %v10468_v42, 5 }
 0xfc1   : > { %v3355_v1 = vmul.f32 %v8811_v50, %v3308_v20  ;;  %v3381_v0 = vmul.f32 %v3370_v43, %v10442_v59  ;;  %v10450_v32 = vmul.f32 %v3433_v38, %v10442_v59  ;;  %vm3360_vm1 = vweird.f32 %v8811_v50 }
 0xfc2   : > { %3393 = vrot.lane.b32.xlu2 %v3383_v2, %s13352_s10  ;;  %vm3361_vm9 = vmor %vm3359_vm8, %vm3360_vm1  ;;  %v3493_v47 = vadd.f32 %v3485_v39, %v9452_v29  ;;  %v3496_v38 = vadd.f32 %v3488_v49, %v9458_v34 }
 0xfc3   : > { %v3356_v48 = vsub.f32 1.0, %v3355_v1  ;;  %3389 = vrot.lane.b32.xlu0 %v3381_v0, %s13352_s10 }
 0xfc4   : > { %v8247_v43 = vmul.f32 -1.442695, %v3496_v38 }
 0xfc5   : > { %v3357_v60 = vmul.f32 %v8811_v50, %v3356_v48  ;;  %v3494_v48 = vadd.f32 %v3486_v52, %v9454_v30 }
 0xfc7   : > { %v3358_v55 = vadd.f32 %v8811_v50, %v3357_v60  ;;  %v8245_v60 = vmul.f32 -1.442695, %v3494_v48 }
 0xfc9   : > { %v3362_v33 = vsel %vm3361_vm9, %v8811_v50, %v3358_v55  ;;  %v8244_v50 = vmul.f32 -1.442695, %v3493_v47 }
 0xfca   : > { %v10454_v19 = vsel %vm3364_vm10, %v3366_v21, %v3362_v33 }
 0xfcb   : > { %v3384_v5 = vmul.f32 %v3376_v54, %v10454_v19  ;;  %v10458_v46 = vmul.f32 %v3436_v61, %v10454_v19 }
 0xfcd   : > { %3395 = vrot.lane.b32.xlu0 %v3384_v5, %s13352_s10 }
0x101c   : > { %v3394_v40 = vpop.permute.xlu2 %3393 }
0x101d   : > { %v3403_v11 = vadd.f32 %v3394_v40, %v9460_v36 }
0x101e   : > { %v3392_v20 = vpop.permute.xlu1 %3391 }
0x101f   : > { %8812 = vtanh.f32 %v3403_v11  ;;  %v3402_v6 = vadd.f32 %v3392_v20, %v9454_v30  ;;  %v3410_v11 = vsub.f32 1.0, %v10429_v56 }
0x1021   : > { %8814 = vtanh.f32 %v3402_v6 }
0x1025   : > { %v8813_v10 = vpop.eup %8812 }
0x1026   : > { %3421 = vrot.lane.b32.xlu0 %v8813_v10, %s13353_s21 }
0x1027   : > { %v8815_v7 = vpop.eup %8814 }
0x1028   : > { %3419 = vrot.lane.b32.xlu2 %v8815_v7, %s13353_s21 }
0x102e   : > { %3575 = vrot.lane.b32.xlu0 %v3486_v52, %s13351_s11 }
0x1030   : > { %3573 = vrot.lane.b32.xlu2 %v3485_v39, %s13351_s11 }
0x1035   : > { %v3390_v35 = vpop.permute.xlu0 %3389 }
0x1036   : > { %v3401_v28 = vadd.f32 %v3390_v35, %v9452_v29 }
0x1038   : > { %8816 = vtanh.f32 %v3401_v28  ;;  %3579 = vrot.lane.b32.xlu2 %v3488_v49, %s13351_s11 }
0x103e   : > { %v8817_v4 = vpop.eup %8816 }
0x103f   : > { %v3396_v37 = vpop.permute.xlu0 %3395  ;;  %3417 = vrot.lane.b32.xlu1 %v8817_v4, %s13353_s21 }
0x1040   : > { %v3404_v18 = vadd.f32 %v3396_v37, %v9458_v34 }
0x1042   : > { %8818 = vtanh.f32 %v3404_v18 }
0x1043   : > { %8820 = vpow2.f32 %v8244_v50 }
0x1044   : > { %8822 = vpow2.f32 %v8247_v43 }
0x1048   : > { %v8819_v22 = vpop.eup %8818 }
0x1049   : > { %3423 = vrot.lane.b32.xlu1 %v8819_v22, %s13353_s21  ;;  %v8821_v2 = vpop.eup %8820 }
0x104a   : > { %v3509_v1 = vadd.f32 1.0, %v8821_v2  ;;  %v8823_v0 = vpop.eup %8822  ;;  %v3495_v2 = vadd.f32 %v3487_v14, %v9460_v36 }
0x104b   : > { %v3512_v63 = vadd.f32 1.0, %v8823_v0 }
0x104c   : > { %8824 = vrcp.f32 %v3509_v1  ;;  %v3524_v7 = vand.u32 2147483648, %v3509_v1  ;;  %vm3518_vm13 = vweird.f32 %v3509_v1  ;;  %v3522_v52 = vand.u32 2147483647, %v3509_v1 }
0x104d   : > { %8826 = vrcp.f32 %v3512_v63  ;;  %v3569_v22 = vand.u32 2147483648, %v3512_v63  ;;  %vm3563_vm8 = vweird.f32 %v3512_v63 }
0x104e   : > { %8828 = vpow2.f32 %v8245_v60  ;;  %v3525_v28 = vor.u32 1.1754944e-38, %v3524_v7  ;;  %vm3523_vm15 = vcmp.eq.f32.partialorder %v3522_v52, 8.507059e+37 }
0x104f   : > { %v3570_v38 = vor.u32 1.1754944e-38, %v3569_v22 }
0x1051   : > { %3577 = vrot.lane.b32.xlu1 %v3487_v14, %s13351_s11 }
0x1052   : > { %v8825_v13 = vpop.eup %8824 }
0x1053   : > { %v3514_v55 = vmul.f32 %v8825_v13, %v3509_v1  ;;  %v8827_v61 = vpop.eup %8826  ;;  %vm3519_vm14 = vweird.f32 %v8825_v13 }
0x1054   : > { %v8829_v33 = vpop.eup %8828  ;;  %v3559_v5 = vmul.f32 %v8827_v61, %v3512_v63  ;;  %vm3520_vm12 = vmor %vm3518_vm13, %vm3519_vm14  ;;  %vm3564_vm1 = vweird.f32 %v8827_v61 }
0x1055   : > { %v3515_v21 = vsub.f32 1.0, %v3514_v55  ;;  %v3510_v40 = vadd.f32 1.0, %v8829_v33  ;;  %vm3565_vm9 = vmor %vm3563_vm8, %vm3564_vm1  ;;  %v3411_v55 = vsub.f32 1.0, %v10438_v12 }
0x1056   : > { %v3560_v15 = vsub.f32 1.0, %v3559_v5 }
0x1057   : > { %v3516_v54 = vmul.f32 %v8825_v13, %v3515_v21  ;;  %8830 = vrcp.f32 %v3510_v40  ;;  %vm3533_vm13 = vweird.f32 %v3510_v40  ;;  %v3537_v14 = vand.u32 2147483647, %v3510_v40 }
0x1058   : > { %v3561_v35 = vmul.f32 %v8827_v61, %v3560_v15 }
0x1059   : > { %v3517_v10 = vadd.f32 %v8825_v13, %v3516_v54 }
0x105a   : > { %v3562_v18 = vadd.f32 %v8827_v61, %v3561_v35 }
0x105b   : > { %v3521_v39 = vsel %vm3520_vm12, %v8825_v13, %v3517_v10  ;;  %v8246_v13 = vmul.f32 -1.442695, %v3495_v2 }
0x105c   : > { %v10490_v4 = vsel %vm3523_vm15, %v3525_v28, %v3521_v39  ;;  %v3566_v50 = vsel %vm3565_vm9, %v8827_v61, %v3562_v18  ;;  %v3539_v61 = vand.u32 2147483648, %v3510_v40  ;;  %vm3538_vm15 = vcmp.eq.f32.partialorder %v3537_v14, 8.507059e+37 }
0x105d   : > { %v8831_v49 = vpop.eup %8830  ;;  %8832 = vpow2.f32 %v8246_v13 }
0x105e   : > { %v3529_v47 = vmul.f32 %v8831_v49, %v3510_v40  ;;  %vm3534_vm14 = vweird.f32 %v8831_v49 }
0x105f   : > { %vm3535_vm12 = vmor %vm3533_vm13, %vm3534_vm14  ;;  %vm4717_vm14 = vcmask 1044480  }
0x1060   : > { %v3530_v43 = vsub.f32 1.0, %v3529_v47 }
0x1062   : > { %v3531_v60 = vmul.f32 %v8831_v49, %v3530_v43 }
0x1064   : > { %v3532_v33 = vadd.f32 %v8831_v49, %v3531_v60 }
0x1066   : > { %v3536_v5 = vsel %vm3535_vm12, %v8831_v49, %v3532_v33 }
0x1082   : > { %v3420_v20 = vpop.permute.xlu2 %3419 }
0x1083   : > { %v3430_v6 = vmul.f32 %v3420_v20, %v3410_v11  ;;  %v3540_v11 = vor.u32 1.1754944e-38, %v3539_v61  ;;  %v8833_v20 = vpop.eup %8832 }
0x1084   : > { %v3511_v15 = vadd.f32 1.0, %v8833_v20 }
0x1085   : > { %v10488_v42 = vadd.f32 %v10432_v27, %v3430_v6  ;;  %v3567_v27 = vand.u32 2147483647, %v3512_v63  ;;  %v10503_v6 = vsel %vm3538_vm15, %v3540_v11, %v3536_v5 }
0x1086   : > { %8834 = vrcp.f32 %v3511_v15  ;;  %vm3548_vm8 = vweird.f32 %v3511_v15  ;;  %v3552_v2 = vand.u32 2147483647, %v3511_v15 }
0x1087   : > { %vm3568_vm10 = vcmp.eq.f32.partialorder %v3567_v27, 8.507059e+37  ;;  %v3658_v49 = vrot.slane %v10488_v42, 3 }
0x1088   : > { %v10495_v1 = vsel %vm3568_vm10, %v3570_v38, %v3566_v50  ;;  %vm3553_vm10 = vcmp.eq.f32.partialorder %v3552_v2, 8.507059e+37 }
0x108a   : > { %v3574_v56 = vpop.permute.xlu2 %3573 }
0x108b   : > { %v3585_v37 = vmul.f32 %v3574_v56, %v10490_v4 }
0x108c   : > { %v8835_v7 = vpop.eup %8834 }
0x108d   : > { %3593 = vrot.lane.b32.xlu0 %v3585_v37, %s13352_s10  ;;  %v3544_v52 = vmul.f32 %v8835_v7, %v3511_v15  ;;  %vm3549_vm1 = vweird.f32 %v8835_v7 }
0x108e   : > { %vm3550_vm9 = vmor %vm3548_vm8, %vm3549_vm1 }
0x108f   : > { %v3545_v28 = vsub.f32 1.0, %v3544_v52  ;;  %v3638_v52 = vrot.slane %v10264_v23, 7 }
0x1091   : > { %v3546_v18 = vmul.f32 %v8835_v7, %v3545_v28 }
0x1092   : > { %v3580_v0 = vpop.permute.xlu2 %3579 }
0x1093   : > { %v3588_v48 = vmul.f32 %v3580_v0, %v10495_v1  ;;  %v3547_v38 = vadd.f32 %v8835_v7, %v3546_v18 }
0x1095   : > { %3599 = vrot.lane.b32.xlu0 %v3588_v48, %s13352_s10  ;;  %v3551_v48 = vsel %vm3550_vm9, %v8835_v7, %v3547_v38  ;;  %v3640_v38 = vrot.slane %v10274_v62, 7 }
0x1097   : > { %v3648_v2 = vmul.f32 %v3640_v38, %v10495_v1 }
0x1098   : > { %v3422_v63 = vpop.permute.xlu0 %3421 }
0x1099   : > { %v3431_v21 = vmul.f32 %v3422_v63, %v3411_v55 }
0x109b   : > { %v10501_v54 = vadd.f32 %v10445_v9, %v3431_v21  ;;  %v3409_v9 = vsub.f32 1.0, %v10442_v59  ;;  %v3412_v59 = vsub.f32 1.0, %v10454_v19 }
0x109d   : > { %v3660_v37 = vrot.slane %v10501_v54, 2 }
0x10a0   : > { %v3576_v10 = vpop.permute.xlu0 %3575 }
0x10a1   : > { %v3586_v12 = vmul.f32 %v3576_v10, %v10503_v6 }
0x10a3   : > { %3595 = vrot.lane.b32.xlu1 %v3586_v12, %s13352_s10 }
0x10b1   : > { %v3418_v39 = vpop.permute.xlu1 %3417 }
0x10b2   : > { %v3429_v40 = vmul.f32 %v3418_v39, %v3409_v9  ;;  %v3614_v9 = vsub.f32 1.0, %v10503_v6 }
0x10b4   : > { %v10509_v35 = vadd.f32 %v10450_v32, %v3429_v40  ;;  %v3554_v32 = vand.u32 2147483648, %v3511_v15  ;;  %v3646_v40 = vmul.f32 %v3638_v52, %v10503_v6 }
0x10b6   : > { %v3657_v56 = vrot.slane %v10509_v35, 4  ;;  %v3555_v60 = vor.u32 1.1754944e-38, %v3554_v32 }
0x10b8   : > { %v3659_v22 = vsel %vm1348_vm2, %v3658_v49, %v3657_v56  ;;  %v3556_v55 = vsel %vm3553_vm10, %v3555_v60, %v3551_v48  ;;  %v3613_v49 = vsub.f32 1.0, %v10490_v4  ;;  %v3637_v56 = vrot.slane %v10292_v51, 7 }
0x10b9   : > { %v3661_v27 = vsel %vm1350_vm3, %v3660_v37, %v3659_v22  ;;  %v3615_v60 = vsub.f32 1.0, %v3556_v55 }
0x10ba   : > { %v3645_v22 = vmul.f32 %v3637_v56, %v10490_v4  ;;  %v3616_v4 = vsub.f32 1.0, %v10495_v1 }
0x10bb   : > { %v3424_v47 = vpop.permute.xlu1 %3423 }
0x10bc   : > { %v3432_v50 = vmul.f32 %v3424_v47, %v3412_v59 }
0x10be   : > { %v10518_v43 = vadd.f32 %v10458_v46, %v3432_v50 }
0x10c0   : > { %v3662_v0 = vrot.slane %v10518_v43, 1 }
0x10c2   : > { %v3663_v13 = vsel %vm1352_vm4, %v3662_v0, %v3661_v27 }
0x10c3   : > { %v3578_v19 = vpop.permute.xlu1 %3577 }
0x10c4   : > { %v3587_v63 = vmul.f32 %v3578_v19, %v3556_v55 }
0x10c6   : > { %3597 = vrot.lane.b32.xlu2 %v3587_v63, %s13352_s10 }
0x10ff   : > { %v3594_v21 = vpop.permute.xlu0 %3593 }
0x1100   : > { %v3605_v33 = vadd.f32 %v3594_v21, %v9452_v29 }
0x1102   : > { %8836 = vtanh.f32 %v3605_v33 }
0x1107   : > { %v3600_v46 = vpop.permute.xlu0 %3599 }
0x1108   : > { %v8837_v61 = vpop.eup %8836  ;;  %v3608_v14 = vadd.f32 %v3600_v46, %v9458_v34 }
0x1109   : > { %3621 = vrot.lane.b32.xlu1 %v8837_v61, %s13353_s21 }
0x110a   : > { %8838 = vtanh.f32 %v3608_v14  ;;  %v10581_v14 = vld [vmem:[%s13340_s23] ss:$0 sm:$0xff] }
0x1110   : > { %v8839_v5 = vpop.eup %8838 }
0x1111   : > { %3627 = vrot.lane.b32.xlu1 %v8839_v5, %s13353_s21 }
0x1115   : > { %v3596_v11 = vpop.permute.xlu1 %3595 }
0x1116   : > { %v3606_v20 = vadd.f32 %v3596_v11, %v9454_v30 }
0x1118   : > { %8840 = vtanh.f32 %v3606_v20 }
0x111e   : > { %v8841_v10 = vpop.eup %8840 }
0x111f   : > { %3623 = vrot.lane.b32.xlu2 %v8841_v10, %s13353_s21 }
0x1120   : > { %v3598_v12 = vpop.permute.xlu2 %3597 }
0x1121   : > { %v3607_v15 = vadd.f32 %v3598_v12, %v9460_v36 }
0x1123   : > { %8842 = vtanh.f32 %v3607_v15 }
0x1127   : > { %3664 = vrot.lane.b32.xlu2 %v3663_v13, %s13359_s5  ;;  %v3639_v13 = vrot.slane %v10307_v44, 7 }
0x1129   : > { %v8843_v7 = vpop.eup %8842  ;;  %v3647_v63 = vmul.f32 %v3639_v13, %v3556_v55 }
0x112a   : > { %3625 = vrot.lane.b32.xlu0 %v8843_v7, %s13353_s21 }
0x1179   : > { %v3624_v39 = vpop.permute.xlu2 %3623 }
0x117a   : > { %v3634_v28 = vmul.f32 %v3624_v39, %v3614_v9 }
0x117b   : > { %v3622_v37 = vpop.permute.xlu1 %3621 }
0x117c   : > { %v10537_v18 = vadd.f32 %v3646_v40, %v3634_v28  ;;  %v3633_v27 = vmul.f32 %v3622_v37, %v3613_v49 }
0x117e   : > { %v10540_v59 = vadd.f32 %v3645_v22, %v3633_v27  ;;  %v10545_v23 = vsel %vm4717_vm14, %v10269_v24, %v10537_v18  ;;  %v3870_v6 = vrot.slane %v10537_v18, 4 }
0x1180   : > { %v3869_v47 = vrot.slane %v10540_v59, 5  ;;  %v10552_v51 = vsel %vm4717_vm14, %v10300_v57, %v10540_v59 }
0x1181   : > { %v3665_v50 = vpop.permute.xlu2 %3664 }
0x1182   : > { %8248 = vmatmul.msk.f32.vlgmr.msra.gmra.mxu0 %vm1430_vm7, %v3665_v50  ;;  %v3871_v32 = vsel %vm1348_vm2, %v3870_v6, %v3869_v47 }
0x1183   : > { %v3628_v24 = vpop.permute.xlu1 %3627 }
0x1184   : > { %v3636_v0 = vmul.f32 %v3628_v24, %v3616_v4 }
0x1186   : > { %v10559_v48 = vadd.f32 %v3648_v2, %v3636_v0 }
0x1188   : > { %v10564_v57 = vsel %vm4717_vm14, %v10281_v45, %v10559_v48  ;;  %v3874_v46 = vrot.slane %v10559_v48, 2 }
0x119c   : > { %v3626_v19 = vpop.permute.xlu0 %3625 }
0x119d   : > { %v3635_v62 = vmul.f32 %v3626_v19, %v3615_v60 }
0x119f   : > { %v10567_v21 = vadd.f32 %v3647_v63, %v3635_v62 }
0x11a1   : > { %v3872_v33 = vrot.slane %v10567_v21, 3  ;;  %v10573_v1 = vsel %vm4717_vm14, %v10313_v17, %v10567_v21 }
0x11a3   : > { %v3873_v45 = vsel %vm1350_vm3, %v3872_v33, %v3871_v32  ;;  %v3851_v32 = vrot.slane %v10501_v54, 7 }
0x11a4   : > { %v10578_v61 = vsel %vm1352_vm4, %v3874_v46, %v3873_v45 }
0x11ff   : > { %v3685_v44 = vpop.f32.mrf.mxu0 }
0x1200   : > { %v3686_v55 = vadd.f32 %v10581_v14, %v3685_v44 }
0x1202   : > { %v3691_v5 = vrot.slane %v3686_v55, 5  ;;  %v3690_v11 = vrot.slane %v3686_v55, 4  ;;  %v3689_v20 = vrot.slane %v3686_v55, 3  ;;  %v3692_v17 = vrot.slane %v3686_v55, 6 }
0x1204   : > { %3697 = vrot.lane.b32.xlu2 %v3691_v5, %s13360_s19  ;;  %3695 = vrot.lane.b32.xlu1 %v3690_v11, %s13360_s19 }
0x1205   : > { %3693 = vrot.lane.b32.xlu0 %v3689_v20, %s13360_s19 }
0x120c   : > { %3787 = vrot.lane.b32.xlu2 %v3690_v11, %s13354_s9  ;;  %3785 = vrot.lane.b32.xlu1 %v3689_v20, %s13354_s9 }
0x120d   : > { %3699 = vrot.lane.b32.xlu0 %v3692_v17, %s13360_s19 }
0x1214   : > { %3791 = vrot.lane.b32.xlu1 %v3692_v17, %s13354_s9 }
0x1215   : > { %3789 = vrot.lane.b32.xlu0 %v3691_v5, %s13354_s9 }
0x125e   : > { %v3698_v10 = vpop.permute.xlu2 %3697 }
0x125f   : > { %v3707_v12 = vadd.f32 %v3698_v10, %v9460_v36 }
0x1261   : > { %v8251_v15 = vmul.f32 -1.442695, %v3707_v12 }
0x1263   : > { %8844 = vpow2.f32 %v8251_v15 }
0x1269   : > { %v8845_v7 = vpop.eup %8844 }
0x126a   : > { %v3723_v9 = vadd.f32 1.0, %v8845_v7 }
0x126c   : > { %8846 = vrcp.f32 %v3723_v9  ;;  %v3766_v49 = vand.u32 2147483648, %v3723_v9  ;;  %v3764_v27 = vand.u32 2147483647, %v3723_v9  ;;  %vm3760_vm12 = vweird.f32 %v3723_v9 }
0x126e   : > { %v3767_v38 = vor.u32 1.1754944e-38, %v3766_v49  ;;  %vm3765_vm1 = vcmp.eq.f32.partialorder %v3764_v27, 8.507059e+37 }
0x1272   : > { %v8847_v52 = vpop.eup %8846 }
0x1273   : > { %v3756_v39 = vmul.f32 %v8847_v52, %v3723_v9  ;;  %vm3761_vm13 = vweird.f32 %v8847_v52 }
0x1274   : > { %vm3762_vm15 = vmor %vm3760_vm12, %vm3761_vm13 }
0x1275   : > { %v3757_v40 = vsub.f32 1.0, %v3756_v39 }
0x1276   : > { %v3696_v28 = vpop.permute.xlu1 %3695 }
0x1277   : > { %v3694_v56 = vpop.permute.xlu0 %3693  ;;  %v3706_v37 = vadd.f32 %v3696_v28, %v9454_v30  ;;  %v3758_v22 = vmul.f32 %v8847_v52, %v3757_v40 }
0x1278   : > { %v3705_v6 = vadd.f32 %v3694_v56, %v9452_v29 }
0x1279   : > { %v8250_v47 = vmul.f32 -1.442695, %v3706_v37  ;;  %v3759_v50 = vadd.f32 %v8847_v52, %v3758_v22 }
0x127a   : > { %v8249_v4 = vmul.f32 -1.442695, %v3705_v6 }
0x127b   : > { %8848 = vpow2.f32 %v8250_v47  ;;  %v3763_v24 = vsel %vm3762_vm15, %v8847_v52, %v3759_v50  ;;  %v3850_v47 = vrot.slane %v10488_v42, 7  ;;  %v3849_v50 = vrot.slane %v10509_v35, 7 }
0x127c   : > { %8850 = vpow2.f32 %v8249_v4  ;;  %v10596_v2 = vsel %vm3765_vm1, %v3767_v38, %v3763_v24  ;;  %v3788_v4 = vpop.permute.xlu2 %3787 }
0x127d   : > { %v10599_v0 = vmul.f32 %v3851_v32, %v10596_v2 }
0x127e   : > { %v3786_v32 = vpop.permute.xlu1 %3785 }
0x127f   : > { %v3700_v60 = vpop.permute.xlu0 %3699 }
0x1280   : > { %v3708_v13 = vadd.f32 %v3700_v60, %v9458_v34 }
0x1281   : > { %v8849_v19 = vpop.eup %8848 }
0x1282   : > { %v8851_v63 = vpop.eup %8850  ;;  %v3722_v62 = vadd.f32 1.0, %v8849_v19  ;;  %v8252_v33 = vmul.f32 -1.442695, %v3708_v13 }
0x1283   : > { %v3721_v46 = vadd.f32 1.0, %v8851_v63 }
0x1284   : > { %8852 = vrcp.f32 %v3722_v62  ;;  %v3749_v15 = vand.u32 2147483647, %v3722_v62  ;;  %v3751_v9 = vand.u32 2147483648, %v3722_v62  ;;  %vm3745_vm10 = vweird.f32 %v3722_v62 }
0x1285   : > { %8854 = vrcp.f32 %v3721_v46  ;;  %v3736_v7 = vand.u32 2147483648, %v3721_v46  ;;  %v3734_v39 = vand.u32 2147483647, %v3721_v46  ;;  %vm3730_vm14 = vweird.f32 %v3721_v46 }
0x1286   : > { %8856 = vpow2.f32 %v8252_v33  ;;  %v3752_v37 = vor.u32 1.1754944e-38, %v3751_v9  ;;  %vm3750_vm1 = vcmp.eq.f32.partialorder %v3749_v15, 8.507059e+37 }
0x1287   : > { %v3790_v54 = vpop.permute.xlu0 %3789  ;;  %v3737_v56 = vor.u32 1.1754944e-38, %v3736_v7  ;;  %vm3735_vm15 = vcmp.eq.f32.partialorder %v3734_v39, 8.507059e+37 }
0x1288   : > { %v3799_v45 = vmul.f32 %v3790_v54, %v10596_v2 }
0x128a   : > { %v8853_v44 = vpop.eup %8852  ;;  %3809 = vrot.lane.b32.xlu1 %v3799_v45, %s13352_s10  ;;  %v3852_v45 = vrot.slane %v10518_v43, 7 }
0x128b   : > { %v8855_v55 = vpop.eup %8854  ;;  %v3741_v5 = vmul.f32 %v8853_v44, %v3722_v62  ;;  %vm3746_vm8 = vweird.f32 %v8853_v44 }
0x128c   : > { %v8857_v11 = vpop.eup %8856  ;;  %v3726_v20 = vmul.f32 %v8855_v55, %v3721_v46  ;;  %vm3731_vm9 = vweird.f32 %v8855_v55  ;;  %vm3747_vm13 = vmor %vm3745_vm10, %vm3746_vm8 }
0x128d   : > { %v3742_v17 = vsub.f32 1.0, %v3741_v5  ;;  %v3724_v10 = vadd.f32 1.0, %v8857_v11  ;;  %vm3732_vm12 = vmor %vm3730_vm14, %vm3731_vm9  ;;  %v3792_v5 = vpop.permute.xlu1 %3791 }
0x128e   : > { %v3727_v12 = vsub.f32 1.0, %v3726_v20 }
0x128f   : > { %8858 = vrcp.f32 %v3724_v10  ;;  %v3743_v40 = vmul.f32 %v8853_v44, %v3742_v17  ;;  %v3781_v42 = vand.u32 2147483648, %v3724_v10  ;;  %v3779_v33 = vand.u32 2147483647, %v3724_v10 }
0x1290   : > { %v3728_v52 = vmul.f32 %v8855_v55, %v3727_v12  ;;  %vm3775_vm9 = vweird.f32 %v3724_v10 }
0x1291   : > { %v3744_v49 = vadd.f32 %v8853_v44, %v3743_v40  ;;  %v3782_v54 = vor.u32 1.1754944e-38, %v3781_v42  ;;  %vm3780_vm14 = vcmp.eq.f32.partialorder %v3779_v33, 8.507059e+37 }
0x1292   : > { %v3729_v28 = vadd.f32 %v8855_v55, %v3728_v52  ;;  %3876 = vrot.lane.b32.xlu1 %v10578_v61, %s13353_s21 }
0x1293   : > { %v3748_v27 = vsel %vm3747_vm13, %v8853_v44, %v3744_v49 }
0x1294   : > { %v3733_v22 = vsel %vm3732_vm12, %v8855_v55, %v3729_v28  ;;  %v10608_v24 = vsel %vm3750_vm1, %v3752_v37, %v3748_v27  ;;  %v3827_v37 = vsub.f32 1.0, %v10596_v2 }
0x1295   : > { %v8859_v6 = vpop.eup %8858  ;;  %v3738_v38 = vsel %vm3735_vm15, %v3737_v56, %v3733_v22  ;;  %v3798_v13 = vmul.f32 %v3788_v4, %v10608_v24  ;;  %v10612_v63 = vmul.f32 %v3850_v47, %v10608_v24  ;;  %v3826_v2 = vsub.f32 1.0, %v10608_v24 }
0x1296   : > { %v3797_v61 = vmul.f32 %v3786_v32, %v3738_v38  ;;  %v3771_v60 = vmul.f32 %v8859_v6, %v3724_v10  ;;  %v3857_v19 = vmul.f32 %v3849_v50, %v3738_v38  ;;  %vm3776_vm8 = vweird.f32 %v8859_v6 }
0x1297   : > { %3807 = vrot.lane.b32.xlu0 %v3798_v13, %s13352_s10  ;;  %vm3777_vm10 = vmor %vm3775_vm9, %vm3776_vm8  ;;  %v3825_v47 = vsub.f32 1.0, %v3738_v38 }
0x1298   : > { %v3772_v62 = vsub.f32 1.0, %v3771_v60  ;;  %3805 = vrot.lane.b32.xlu2 %v3797_v61, %s13352_s10 }
0x129a   : > { %v3773_v35 = vmul.f32 %v8859_v6, %v3772_v62 }
0x129c   : > { %v3774_v46 = vadd.f32 %v8859_v6, %v3773_v35 }
0x129e   : > { %v3778_v44 = vsel %vm3777_vm10, %v8859_v6, %v3774_v46 }
0x129f   : > { %v3783_v55 = vsel %vm3780_vm14, %v3782_v54, %v3778_v44 }
0x12a0   : > { %v3800_v11 = vmul.f32 %v3792_v5, %v3783_v55  ;;  %v3860_v20 = vmul.f32 %v3852_v45, %v3783_v55  ;;  %v3828_v61 = vsub.f32 1.0, %v3783_v55 }
0x12a2   : > { %3811 = vrot.lane.b32.xlu2 %v3800_v11, %s13352_s10 }
0x12f2   : > { %v3806_v17 = vpop.permute.xlu2 %3805 }
0x12f3   : > { %v3817_v12 = vadd.f32 %v3806_v17, %v9452_v29 }
0x12f5   : > { %8860 = vtanh.f32 %v3817_v12 }
0x12fb   : > { %v8861_v15 = vpop.eup %8860 }
0x12fc   : > { %v3812_v7 = vpop.permute.xlu2 %3811  ;;  %3833 = vrot.lane.b32.xlu0 %v8861_v15, %s13353_s21  ;;  %v3810_v10 = vpop.permute.xlu1 %3809 }
0x12fd   : > { %v3820_v9 = vadd.f32 %v3812_v7, %v9458_v34  ;;  %v3819_v43 = vadd.f32 %v3810_v10, %v9460_v36 }
0x12ff   : > { %8862 = vtanh.f32 %v3820_v9 }
0x1300   : > { %8864 = vtanh.f32 %v3819_v43 }
0x1304   : > { %v3877_v52 = vpop.permute.xlu1 %3876 }
0x1305   : > { %v8863_v39 = vpop.eup %8862  ;;  %8253 = vmatmul.msk.f32.vlgmr.msra.gmra.mxu1 %vm1430_vm7, %v3877_v52 }
0x1306   : > { %v8865_v40 = vpop.eup %8864  ;;  %3839 = vrot.lane.b32.xlu0 %v8863_v39, %s13353_s21 }
0x1307   : > { %3837 = vrot.lane.b32.xlu2 %v8865_v40, %s13353_s21 }
0x1309   : > { %v3808_v28 = vpop.permute.xlu0 %3807 }
0x130a   : > { %v3818_v49 = vadd.f32 %v3808_v28, %v9454_v30 }
0x130c   : > { %8866 = vtanh.f32 %v3818_v49 }
0x1312   : > { %v8867_v56 = vpop.eup %8866 }
0x1313   : > { %3835 = vrot.lane.b32.xlu1 %v8867_v56, %s13353_s21  ;;  %v4053_v56 = vrot.slane %v10540_v59, 7 }
0x1361   : > { %v3838_v22 = vpop.permute.xlu2 %3837 }
0x1362   : > { %v3847_v27 = vmul.f32 %v3838_v22, %v3827_v37 }
0x1364   : > { %v10629_v6 = vadd.f32 %v10599_v0, %v3847_v27 }
0x1366   : > { %v4076_v55 = vrot.slane %v10629_v6, 3 }
0x136e   : > { %v3834_v50 = vpop.permute.xlu0 %3833 }
0x136f   : > { %v3845_v4 = vmul.f32 %v3834_v50, %v3825_v47 }
0x1371   : > { %v10631_v32 = vadd.f32 %v3857_v19, %v3845_v4 }
0x1378   : > { %v3840_v60 = vpop.permute.xlu0 %3839 }
0x1379   : > { %v3848_v13 = vmul.f32 %v3840_v60, %v3828_v61 }
0x137b   : > { %v10633_v62 = vadd.f32 %v3860_v20, %v3848_v13 }
0x137d   : > { %v4078_v5 = vrot.slane %v10633_v62, 2 }
0x1382   : > { %v3897_v42 = vpop.f32.mrf.mxu1 }
0x1383   : > { %v3898_v35 = vadd.f32 %v10465_v53, %v3897_v42  ;;  %v4073_v53 = vrot.slane %v10631_v32, 5 }
0x1385   : > { %v3903_v33 = vrot.slane %v3898_v35, 4  ;;  %v3902_v46 = vrot.slane %v3898_v35, 3  ;;  %v3901_v54 = vrot.slane %v3898_v35, 2  ;;  %v3836_v0 = vpop.permute.xlu1 %3835  ;;  %v3904_v20 = vrot.slane %v3898_v35, 5 }
0x1386   : > { %v3846_v45 = vmul.f32 %v3836_v0, %v3826_v2 }
0x1387   : > { %3993 = vrot.lane.b32.xlu1 %v3903_v33, %s13351_s11  ;;  %3991 = vrot.lane.b32.xlu0 %v3902_v46, %s13351_s11  ;;  %v3909_v38 = vadd.f32 %v3901_v54, %v9452_v29  ;;  %v3912_v27 = vadd.f32 %v3904_v20, %v9458_v34  ;;  %v3911_v4 = vadd.f32 %v3903_v33, %v9460_v36 }
0x1388   : > { %3989 = vrot.lane.b32.xlu2 %v3901_v54, %s13351_s11  ;;  %v10642_v19 = vadd.f32 %v10612_v63, %v3846_v45  ;;  %v3910_v61 = vadd.f32 %v3902_v46, %v9454_v30 }
0x1389   : > { %v8254_v44 = vmul.f32 -1.442695, %v3909_v38  ;;  %v8257_v47 = vmul.f32 -1.442695, %v3912_v27  ;;  %v8256_v13 = vmul.f32 -1.442695, %v3911_v4 }
0x138a   : > { %v4074_v24 = vrot.slane %v10642_v19, 4  ;;  %v8255_v42 = vmul.f32 -1.442695, %v3910_v61 }
0x138b   : > { %8868 = vpow2.f32 %v8254_v44 }
0x138c   : > { %v4075_v11 = vsel %vm1348_vm2, %v4074_v24, %v4073_v53 }
0x138d   : > { %v4077_v17 = vsel %vm1350_vm3, %v4076_v55, %v4075_v11 }
0x138e   : > { %v10651_v12 = vsel %vm1352_vm4, %v4078_v5, %v4077_v17 }
0x1390   : > { %3995 = vrot.lane.b32.xlu2 %v3904_v20, %s13351_s11 }
0x1391   : > { %v8869_v63 = vpop.eup %8868 }
0x1392   : > { %v3925_v15 = vadd.f32 1.0, %v8869_v63 }
0x1394   : > { %8870 = vrcp.f32 %v3925_v15  ;;  %v3940_v43 = vand.u32 2147483648, %v3925_v15  ;;  %v3938_v39 = vand.u32 2147483647, %v3925_v15  ;;  %vm3934_vm12 = vweird.f32 %v3925_v15 }
0x1395   : > { %8872 = vpow2.f32 %v8257_v47 }
0x1396   : > { %v3941_v28 = vor.u32 1.1754944e-38, %v3940_v43  ;;  %vm3939_vm1 = vcmp.eq.f32.partialorder %v3938_v39, 8.507059e+37 }
0x139a   : > { %v8871_v7 = vpop.eup %8870 }
0x139b   : > { %v3930_v10 = vmul.f32 %v8871_v7, %v3925_v15  ;;  %vm3935_vm13 = vweird.f32 %v8871_v7  ;;  %v8873_v50 = vpop.eup %8872 }
0x139c   : > { %vm3936_vm15 = vmor %vm3934_vm12, %vm3935_vm13  ;;  %v3928_v60 = vadd.f32 1.0, %v8873_v50 }
0x139d   : > { %v3931_v9 = vsub.f32 1.0, %v3930_v10 }
0x139e   : > { %8874 = vrcp.f32 %v3928_v60  ;;  %v3985_v5 = vand.u32 2147483648, %v3928_v60  ;;  %vm3979_vm9 = vweird.f32 %v3928_v60  ;;  %v3983_v11 = vand.u32 2147483647, %v3928_v60 }
0x139f   : > { %v3932_v52 = vmul.f32 %v8871_v7, %v3931_v9  ;;  %8876 = vpow2.f32 %v8256_v13 }
0x13a0   : > { %8878 = vpow2.f32 %v8255_v42  ;;  %v3986_v15 = vor.u32 1.1754944e-38, %v3985_v5  ;;  %vm3984_vm14 = vcmp.eq.f32.partialorder %v3983_v11, 8.507059e+37 }
0x13a1   : > { %v3933_v40 = vadd.f32 %v8871_v7, %v3932_v52 }
0x13a3   : > { %v3937_v49 = vsel %vm3936_vm15, %v8871_v7, %v3933_v40 }
0x13a4   : > { %v10655_v37 = vsel %vm3939_vm1, %v3941_v28, %v3937_v49  ;;  %v8875_v59 = vpop.eup %8874 }
0x13a5   : > { %v10658_v22 = vmul.f32 %v4053_v56, %v10655_v37  ;;  %v8877_v35 = vpop.eup %8876  ;;  %v3975_v54 = vmul.f32 %v8875_v59, %v3928_v60  ;;  %vm3980_vm8 = vweird.f32 %v8875_v59 }
0x13a6   : > { %v8879_v2 = vpop.eup %8878  ;;  %v3927_v0 = vadd.f32 1.0, %v8877_v35  ;;  %vm3981_vm10 = vmor %vm3979_vm9, %vm3980_vm8 }
0x13a7   : > { %v3926_v45 = vadd.f32 1.0, %v8879_v2  ;;  %v3976_v38 = vsub.f32 1.0, %v3975_v54 }
0x13a8   : > { %8880 = vrcp.f32 %v3927_v0  ;;  %vm3964_vm15 = vweird.f32 %v3927_v0  ;;  %v3970_v27 = vand.u32 2147483648, %v3927_v0  ;;  %v3968_v50 = vand.u32 2147483647, %v3927_v0 }
0x13a9   : > { %8882 = vrcp.f32 %v3926_v45  ;;  %v3977_v44 = vmul.f32 %v8875_v59, %v3976_v38  ;;  %v3955_v56 = vand.u32 2147483648, %v3926_v45  ;;  %vm3949_vm1 = vweird.f32 %v3926_v45 }
0x13aa   : > { %v3953_v47 = vand.u32 2147483647, %v3926_v45  ;;  %v3971_v13 = vor.u32 1.1754944e-38, %v3970_v27 }
0x13ab   : > { %v3978_v55 = vadd.f32 %v8875_v59, %v3977_v44  ;;  %v3956_v60 = vor.u32 1.1754944e-38, %v3955_v56 }
0x13ad   : > { %v3982_v63 = vsel %vm3981_vm10, %v8875_v59, %v3978_v55  ;;  %vm3954_vm10 = vcmp.eq.f32.partialorder %v3953_v47, 8.507059e+37 }
0x13ae   : > { %v8881_v53 = vpop.eup %8880  ;;  %v10665_v7 = vsel %vm3984_vm14, %v3986_v15, %v3982_v63  ;;  %vm3969_vm14 = vcmp.eq.f32.partialorder %v3968_v50, 8.507059e+37  ;;  %v4055_v15 = vrot.slane %v10567_v21, 7 }
0x13af   : > { %v8883_v24 = vpop.eup %8882  ;;  %v3960_v17 = vmul.f32 %v8881_v53, %v3927_v0  ;;  %vm3965_vm13 = vweird.f32 %v8881_v53 }
0x13b0   : > { %v3945_v20 = vmul.f32 %v8883_v24, %v3926_v45  ;;  %vm3950_vm12 = vweird.f32 %v8883_v24  ;;  %vm3966_vm8 = vmor %vm3964_vm15, %vm3965_vm13  ;;  %vm4722_vm13 = vcmask 1045504  }
0x13b1   : > { %v3961_v43 = vsub.f32 1.0, %v3960_v17  ;;  %vm3951_vm9 = vmor %vm3949_vm1, %vm3950_vm12 }
0x13b2   : > { %v3946_v9 = vsub.f32 1.0, %v3945_v20 }
0x13b3   : > { %v3962_v40 = vmul.f32 %v8881_v53, %v3961_v43 }
0x13b4   : > { %v3947_v39 = vmul.f32 %v8883_v24, %v3946_v9  ;;  %v4054_v9 = vrot.slane %v10537_v18, 7 }
0x13b5   : > { %v3963_v49 = vadd.f32 %v8881_v53, %v3962_v40 }
0x13b6   : > { %v3948_v28 = vadd.f32 %v8883_v24, %v3947_v39  ;;  %v4029_v39 = vsub.f32 1.0, %v10655_v37 }
0x13b7   : > { %v3967_v61 = vsel %vm3966_vm8, %v8881_v53, %v3963_v49 }
0x13b8   : > { %v3952_v4 = vsel %vm3951_vm9, %v8883_v24, %v3948_v28  ;;  %v3972_v35 = vsel %vm3969_vm14, %v3971_v13, %v3967_v61 }
0x13b9   : > { %v3957_v59 = vsel %vm3954_vm10, %v3956_v60, %v3952_v4  ;;  %v4031_v63 = vsub.f32 1.0, %v3972_v35  ;;  %v4063_v40 = vmul.f32 %v4055_v15, %v3972_v35 }
0x13ba   : > { %v4062_v49 = vmul.f32 %v4054_v9, %v3957_v59 }
0x13e2   : > { %v3990_v33 = vpop.permute.xlu2 %3989 }
0x13e3   : > { %v4001_v46 = vmul.f32 %v3990_v33, %v10655_v37 }
0x13e5   : > { %4009 = vrot.lane.b32.xlu0 %v4001_v46, %s13352_s10 }
0x13ea   : > { %v3996_v10 = vpop.permute.xlu2 %3995 }
0x13eb   : > { %v4004_v52 = vmul.f32 %v3996_v10, %v10665_v7  ;;  %v4030_v10 = vsub.f32 1.0, %v3957_v59 }
0x13ed   : > { %4015 = vrot.lane.b32.xlu0 %v4004_v52, %s13352_s10 }
0x13f9   : > { %v3992_v42 = vpop.permute.xlu0 %3991  ;;  %v3994_v2 = vpop.permute.xlu1 %3993 }
0x13fa   : > { %v4002_v54 = vmul.f32 %v3992_v42, %v3957_v59  ;;  %v4003_v38 = vmul.f32 %v3994_v2, %v3972_v35  ;;  %v4032_v42 = vsub.f32 1.0, %v10665_v7  ;;  %v4056_v59 = vrot.slane %v10559_v48, 7 }
0x13fc   : > { %4011 = vrot.lane.b32.xlu1 %v4002_v54, %s13352_s10  ;;  %4013 = vrot.lane.b32.xlu2 %v4003_v38, %s13352_s10 }
0x1456   : > { %v4014_v45 = vpop.permute.xlu2 %4013 }
0x1457   : > { %v4010_v44 = vpop.permute.xlu0 %4009  ;;  %v4023_v0 = vadd.f32 %v4014_v45, %v9460_v36 }
0x1458   : > { %v4021_v53 = vadd.f32 %v4010_v44, %v9452_v29 }
0x1459   : > { %8884 = vtanh.f32 %v4023_v0 }
0x145a   : > { %8886 = vtanh.f32 %v4021_v53 }
0x145f   : > { %v8885_v33 = vpop.eup %8884  ;;  %v4016_v24 = vpop.permute.xlu0 %4015 }
0x1460   : > { %v8887_v46 = vpop.eup %8886  ;;  %v4024_v55 = vadd.f32 %v4016_v24, %v9458_v34  ;;  %4041 = vrot.lane.b32.xlu0 %v8885_v33, %s13353_s21 }
0x1461   : > { %4037 = vrot.lane.b32.xlu1 %v8887_v46, %s13353_s21 }
0x1462   : > { %8888 = vtanh.f32 %v4024_v55 }
0x1468   : > { %v8889_v5 = vpop.eup %8888 }
0x1469   : > { %4043 = vrot.lane.b32.xlu1 %v8889_v5, %s13353_s21 }
0x146e   : > { %v4012_v11 = vpop.permute.xlu1 %4011 }
0x146f   : > { %v4022_v20 = vadd.f32 %v4012_v11, %v9454_v30 }
0x1471   : > { %8890 = vtanh.f32 %v4022_v20 }
0x1477   : > { %v8891_v17 = vpop.eup %8890 }
0x1478   : > { %4039 = vrot.lane.b32.xlu2 %v8891_v17, %s13353_s21 }
0x1480   : > { %4080 = vrot.lane.b32.xlu2 %v10651_v12, %s13359_s5 }
0x14d2   : > { %v4042_v43 = vpop.permute.xlu0 %4041  ;;  %v4040_v52 = vpop.permute.xlu2 %4039 }
0x14d3   : > { %v4051_v28 = vmul.f32 %v4042_v43, %v4031_v63  ;;  %v4050_v56 = vmul.f32 %v4040_v52, %v4030_v10  ;;  %v4038_v27 = vpop.permute.xlu1 %4037 }
0x14d4   : > { %v4049_v47 = vmul.f32 %v4038_v27, %v4029_v39  ;;  %v4267_v27 = vrot.slane %v10629_v6, 7 }
0x14d5   : > { %v10684_v50 = vadd.f32 %v4063_v40, %v4051_v28  ;;  %v10686_v4 = vadd.f32 %v4062_v49, %v4050_v56 }
0x14d6   : > { %v10689_v21 = vadd.f32 %v10658_v22, %v4049_v47 }
0x14d7   : > { %v4288_v18 = vrot.slane %v10684_v50, 4  ;;  %v4286_v12 = vrot.slane %v10686_v4, 5  ;;  %v10702_v60 = vsel %vm4722_vm13, %v10573_v1, %v10684_v50  ;;  %v10707_v22 = vsel %vm4722_vm13, %v10545_v23, %v10686_v4 }
0x14d8   : > { %v4285_v37 = vrot.slane %v10689_v21, 6  ;;  %v10697_v61 = vsel %vm4722_vm13, %v10552_v51, %v10689_v21  ;;  %v4064_v1 = vmul.f32 %v4056_v59, %v10665_v7 }
0x14da   : > { %v4081_v13 = vpop.permute.xlu2 %4080  ;;  %v4287_v35 = vsel %vm1348_vm2, %v4286_v12, %v4285_v37 }
0x14db   : > { %v4044_v2 = vpop.permute.xlu1 %4043  ;;  %8258 = vmatmul.msk.f32.vlgmr.msra.gmra.mxu3 %vm1430_vm7, %v4081_v13  ;;  %v4289_v51 = vsel %vm1350_vm3, %v4288_v18, %v4287_v35 }
0x14dc   : > { %v4052_v54 = vmul.f32 %v4044_v2, %v4032_v42 }
0x14de   : > { %v10715_v38 = vadd.f32 %v4064_v1, %v4052_v54 }
0x14e0   : > { %v4290_v23 = vrot.slane %v10715_v38, 3  ;;  %v10721_v45 = vsel %vm4722_vm13, %v10564_v57, %v10715_v38 }
0x14e2   : > { %v10724_v48 = vsel %vm1352_vm4, %v4290_v23, %v4289_v51 }
0x155e   : > { %v4101_v44 = vpop.f32.mrf.mxu3 }
0x155f   : > { %v4102_v0 = vadd.f32 %v10581_v14, %v4101_v44 }
0x1561   : > { %v4107_v53 = vrot.slane %v4102_v0, 4  ;;  %v4106_v33 = vrot.slane %v4102_v0, 3  ;;  %v4105_v24 = vrot.slane %v4102_v0, 2  ;;  %v4108_v7 = vrot.slane %v4102_v0, 5 }
0x1563   : > { %4113 = vrot.lane.b32.xlu2 %v4107_v53, %s13360_s19  ;;  %4111 = vrot.lane.b32.xlu1 %v4106_v33, %s13360_s19 }
0x1564   : > { %4109 = vrot.lane.b32.xlu0 %v4105_v24, %s13360_s19 }
0x156b   : > { %4203 = vrot.lane.b32.xlu2 %v4106_v33, %s13354_s9  ;;  %4201 = vrot.lane.b32.xlu1 %v4105_v24, %s13354_s9 }
0x156c   : > { %4115 = vrot.lane.b32.xlu0 %v4108_v7, %s13360_s19 }
0x1573   : > { %4207 = vrot.lane.b32.xlu1 %v4108_v7, %s13354_s9 }
0x1574   : > { %4205 = vrot.lane.b32.xlu0 %v4107_v53, %s13354_s9 }
0x15bd   : > { %v4114_v57 = vpop.permute.xlu2 %4113 }
0x15be   : > { %v4123_v14 = vadd.f32 %v4114_v57, %v9460_v36 }
0x15c0   : > { %v8261_v46 = vmul.f32 -1.442695, %v4123_v14 }
0x15c2   : > { %8892 = vpow2.f32 %v8261_v46 }
0x15c8   : > { %v8893_v55 = vpop.eup %8892 }
0x15c9   : > { %v4139_v5 = vadd.f32 1.0, %v8893_v55 }
0x15cb   : > { %8894 = vrcp.f32 %v4139_v5  ;;  %v4182_v15 = vand.u32 2147483648, %v4139_v5  ;;  %v4180_v52 = vand.u32 2147483647, %v4139_v5  ;;  %vm4176_vm15 = vweird.f32 %v4139_v5 }
0x15cd   : > { %v4183_v56 = vor.u32 1.1754944e-38, %v4182_v15  ;;  %vm4181_vm8 = vcmp.eq.f32.partialorder %v4180_v52, 8.507059e+37  ;;  %v4265_v52 = vrot.slane %v10631_v32, 7 }
0x15d1   : > { %v8895_v11 = vpop.eup %8894 }
0x15d2   : > { %v4172_v20 = vmul.f32 %v8895_v11, %v4139_v5  ;;  %vm4177_vm12 = vweird.f32 %v8895_v11 }
0x15d3   : > { %vm4178_vm1 = vmor %vm4176_vm15, %vm4177_vm12 }
0x15d4   : > { %v4173_v17 = vsub.f32 1.0, %v4172_v20 }
0x15d5   : > { %v4112_v63 = vpop.permute.xlu1 %4111 }
0x15d6   : > { %v4110_v10 = vpop.permute.xlu0 %4109  ;;  %v4122_v9 = vadd.f32 %v4112_v63, %v9454_v30  ;;  %v4174_v43 = vmul.f32 %v8895_v11, %v4173_v17 }
0x15d7   : > { %v4121_v39 = vadd.f32 %v4110_v10, %v9452_v29 }
0x15d8   : > { %v8260_v40 = vmul.f32 -1.442695, %v4122_v9  ;;  %v4175_v28 = vadd.f32 %v8895_v11, %v4174_v43 }
0x15d9   : > { %v8259_v49 = vmul.f32 -1.442695, %v4121_v39  ;;  %v4266_v39 = vrot.slane %v10642_v19, 7 }
0x15da   : > { %8896 = vpow2.f32 %v8260_v40  ;;  %v4179_v47 = vsel %vm4178_vm1, %v8895_v11, %v4175_v28  ;;  %v4204_v40 = vpop.permute.xlu2 %4203 }
0x15db   : > { %8898 = vpow2.f32 %v8259_v49  ;;  %v10739_v18 = vsel %vm4181_vm8, %v4183_v56, %v4179_v47 }
0x15dc   : > { %v10742_v12 = vmul.f32 %v4267_v27, %v10739_v18 }
0x15dd   : > { %v4202_v49 = vpop.permute.xlu1 %4201 }
0x15de   : > { %v4116_v37 = vpop.permute.xlu0 %4115 }
0x15df   : > { %v4124_v13 = vadd.f32 %v4116_v37, %v9458_v34 }
0x15e0   : > { %v8897_v42 = vpop.eup %8896 }
0x15e1   : > { %v8899_v59 = vpop.eup %8898  ;;  %v4138_v35 = vadd.f32 1.0, %v8897_v42  ;;  %v8262_v2 = vmul.f32 -1.442695, %v4124_v13 }
0x15e2   : > { %v4137_v51 = vadd.f32 1.0, %v8899_v59 }
0x15e3   : > { %8900 = vrcp.f32 %v4138_v35  ;;  %v4165_v57 = vand.u32 2147483647, %v4138_v35  ;;  %v4167_v46 = vand.u32 2147483648, %v4138_v35  ;;  %vm4161_vm14 = vweird.f32 %v4138_v35 }
0x15e4   : > { %8902 = vrcp.f32 %v4137_v51  ;;  %v4152_v14 = vand.u32 2147483648, %v4137_v51  ;;  %v4150_v5 = vand.u32 2147483647, %v4137_v51  ;;  %vm4146_vm13 = vweird.f32 %v4137_v51 }
0x15e5   : > { %8904 = vpow2.f32 %v8262_v2  ;;  %v4168_v15 = vor.u32 1.1754944e-38, %v4167_v46  ;;  %vm4166_vm8 = vcmp.eq.f32.partialorder %v4165_v57, 8.507059e+37 }
0x15e6   : > { %v4206_v6 = vpop.permute.xlu0 %4205  ;;  %v4153_v63 = vor.u32 1.1754944e-38, %v4152_v14  ;;  %vm4151_vm1 = vcmp.eq.f32.partialorder %v4150_v5, 8.507059e+37 }
0x15e7   : > { %v4215_v1 = vmul.f32 %v4206_v6, %v10739_v18 }
0x15e9   : > { %v8901_v54 = vpop.eup %8900  ;;  %4225 = vrot.lane.b32.xlu1 %v4215_v1, %s13352_s10 }
0x15ea   : > { %v8903_v23 = vpop.eup %8902  ;;  %v4157_v44 = vmul.f32 %v8901_v54, %v4138_v35  ;;  %vm4162_vm9 = vweird.f32 %v8901_v54 }
0x15eb   : > { %v8905_v0 = vpop.eup %8904  ;;  %v4142_v53 = vmul.f32 %v8903_v23, %v4137_v51  ;;  %vm4147_vm10 = vweird.f32 %v8903_v23  ;;  %vm4163_vm12 = vmor %vm4161_vm14, %vm4162_vm9  ;;  %v4268_v51 = vrot.slane %v10633_v62, 7 }
0x15ec   : > { %v4158_v33 = vsub.f32 1.0, %v4157_v44  ;;  %v4140_v24 = vadd.f32 1.0, %v8905_v0  ;;  %vm4148_vm15 = vmor %vm4146_vm13, %vm4147_vm10 }
0x15ed   : > { %v4143_v7 = vsub.f32 1.0, %v4142_v53 }
0x15ee   : > { %8906 = vrcp.f32 %v4140_v24  ;;  %v4159_v11 = vmul.f32 %v8901_v54, %v4158_v33  ;;  %v4197_v32 = vand.u32 2147483648, %v4140_v24  ;;  %v4195_v59 = vand.u32 2147483647, %v4140_v24 }
0x15ef   : > { %v4144_v55 = vmul.f32 %v8903_v23, %v4143_v7  ;;  %vm4191_vm10 = vweird.f32 %v4140_v24 }
0x15f0   : > { %v4160_v17 = vadd.f32 %v8901_v54, %v4159_v11  ;;  %v4198_v2 = vor.u32 1.1754944e-38, %v4197_v32  ;;  %vm4196_vm13 = vcmp.eq.f32.partialorder %v4195_v59, 8.507059e+37 }
0x15f1   : > { %v4145_v20 = vadd.f32 %v8903_v23, %v4144_v55  ;;  %4292 = vrot.lane.b32.xlu1 %v10724_v48, %s13353_s21 }
0x15f2   : > { %v4164_v9 = vsel %vm4163_vm12, %v8901_v54, %v4160_v17  ;;  %v4208_v54 = vpop.permute.xlu1 %4207  ;;  %v4243_v17 = vsub.f32 1.0, %v10739_v18 }
0x15f3   : > { %v4149_v10 = vsel %vm4148_vm15, %v8903_v23, %v4145_v20  ;;  %v10751_v56 = vsel %vm4166_vm8, %v4168_v15, %v4164_v9 }
0x15f4   : > { %v8907_v43 = vpop.eup %8906  ;;  %v4154_v28 = vsel %vm4151_vm1, %v4153_v63, %v4149_v10  ;;  %v4214_v47 = vmul.f32 %v4204_v40, %v10751_v56  ;;  %v10755_v13 = vmul.f32 %v4266_v39, %v10751_v56  ;;  %v4242_v18 = vsub.f32 1.0, %v10751_v56 }
0x15f5   : > { %v4213_v48 = vmul.f32 %v4202_v49, %v4154_v28  ;;  %v4187_v27 = vmul.f32 %v8907_v43, %v4140_v24  ;;  %v4273_v37 = vmul.f32 %v4265_v52, %v4154_v28  ;;  %vm4192_vm9 = vweird.f32 %v8907_v43 }
0x15f6   : > { %4223 = vrot.lane.b32.xlu0 %v4214_v47, %s13352_s10  ;;  %vm4193_vm14 = vmor %vm4191_vm10, %vm4192_vm9  ;;  %v4241_v9 = vsub.f32 1.0, %v4154_v28 }
0x15f7   : > { %v4188_v42 = vsub.f32 1.0, %v4187_v27  ;;  %4221 = vrot.lane.b32.xlu2 %v4213_v48, %s13352_s10 }
0x15f9   : > { %v4189_v19 = vmul.f32 %v8907_v43, %v4188_v42  ;;  %v9016_v42 = vld [vmem:[%s13344_s6] ss:$0 sm:$0xff]  ;;  %s13825_s6 = sld [smem:[#allocation16_spill]] }
0x15fb   : > { %v4190_v35 = vadd.f32 %v8907_v43, %v4189_v19 }
0x15fd   : > { %v4194_v6 = vsel %vm4193_vm14, %v8907_v43, %v4190_v35 }
0x15fe   : > { %v4199_v1 = vsel %vm4196_vm13, %v4198_v2, %v4194_v6 }
0x15ff   : > { %v4216_v23 = vmul.f32 %v4208_v54, %v4199_v1  ;;  %v4276_v44 = vmul.f32 %v4268_v51, %v4199_v1  ;;  %v4244_v40 = vsub.f32 1.0, %v4199_v1 }
0x1601   : > { %4227 = vrot.lane.b32.xlu2 %v4216_v23, %s13352_s10 }
0x1651   : > { %v4222_v0 = vpop.permute.xlu2 %4221 }
0x1652   : > { %v4233_v53 = vadd.f32 %v4222_v0, %v9452_v29 }
0x1654   : > { %8908 = vtanh.f32 %v4233_v53 }
0x165a   : > { %v8909_v33 = vpop.eup %8908 }
0x165b   : > { %v4228_v7 = vpop.permute.xlu2 %4227  ;;  %4249 = vrot.lane.b32.xlu0 %v8909_v33, %s13353_s21  ;;  %v4226_v24 = vpop.permute.xlu1 %4225 }
0x165c   : > { %v4236_v57 = vadd.f32 %v4228_v7, %v9458_v34  ;;  %v4235_v62 = vadd.f32 %v4226_v24, %v9460_v36 }
0x165e   : > { %8910 = vtanh.f32 %v4236_v57 }
0x165f   : > { %8912 = vtanh.f32 %v4235_v62 }
0x1663   : > { %v4293_v14 = vpop.permute.xlu1 %4292 }
0x1664   : > { %v8911_v46 = vpop.eup %8910  ;;  %8263 = vmatmul.msk.f32.vlgmr.msrb.gmra.mxu0 %vm1430_vm7, %v4293_v14 }
0x1665   : > { %v8913_v55 = vpop.eup %8912  ;;  %4255 = vrot.lane.b32.xlu0 %v8911_v46, %s13353_s21 }
0x1666   : > { %4253 = vrot.lane.b32.xlu2 %v8913_v55, %s13353_s21 }
0x1668   : > { %v4224_v5 = vpop.permute.xlu0 %4223 }
0x1669   : > { %v4234_v11 = vadd.f32 %v4224_v5, %v9454_v30 }
0x166b   : > { %8914 = vtanh.f32 %v4234_v11 }
0x1671   : > { %v8915_v20 = vpop.eup %8914 }
0x1672   : > { %4251 = vrot.lane.b32.xlu1 %v8915_v20, %s13353_s21  ;;  %v4469_v20 = vrot.slane %v10689_v21, 7 }
0x16c0   : > { %v4254_v63 = vpop.permute.xlu2 %4253 }
0x16c1   : > { %v4263_v15 = vmul.f32 %v4254_v63, %v4243_v17 }
0x16c3   : > { %v10772_v10 = vadd.f32 %v10742_v12, %v4263_v15 }
0x16c5   : > { %v4492_v1 = vrot.slane %v10772_v10, 4 }
0x16cd   : > { %v4250_v43 = vpop.permute.xlu0 %4249 }
0x16ce   : > { %v4261_v52 = vmul.f32 %v4250_v43, %v4241_v9 }
0x16d0   : > { %v10774_v39 = vadd.f32 %v4273_v37, %v4261_v52 }
0x16d2   : > { %v4489_v6 = vrot.slane %v10774_v39, 6 }
0x16d7   : > { %v4256_v49 = vpop.permute.xlu0 %4255 }
0x16d8   : > { %v4264_v48 = vmul.f32 %v4256_v49, %v4244_v40 }
0x16da   : > { %v10776_v27 = vadd.f32 %v4276_v44, %v4264_v48 }
0x16dc   : > { %v4494_v54 = vrot.slane %v10776_v27, 3 }
0x16e1   : > { %v4313_v47 = vpop.f32.mrf.mxu0 }
0x16e2   : > { %v4314_v32 = vadd.f32 %v9016_v42, %v4313_v47 }
0x16e4   : > { %v4319_v19 = vrot.slane %v4314_v32, 3  ;;  %v4318_v59 = vrot.slane %v4314_v32, 2  ;;  %v4317_v35 = vrot.slane %v4314_v32, 1  ;;  %v4252_v12 = vpop.permute.xlu1 %4251  ;;  %v4320_v44 = vrot.slane %v4314_v32, 4 }
0x16e5   : > { %v4262_v2 = vmul.f32 %v4252_v12, %v4242_v18 }
0x16e6   : > { %4409 = vrot.lane.b32.xlu1 %v4319_v19, %s13351_s11  ;;  %4407 = vrot.lane.b32.xlu0 %v4318_v59, %s13351_s11  ;;  %v4325_v28 = vadd.f32 %v4317_v35, %v9452_v29  ;;  %v4328_v15 = vadd.f32 %v4320_v44, %v9458_v34  ;;  %v4327_v52 = vadd.f32 %v4319_v19, %v9460_v36 }
0x16e7   : > { %4405 = vrot.lane.b32.xlu2 %v4317_v35, %s13351_s11  ;;  %v10785_v37 = vadd.f32 %v10755_v13, %v4262_v2  ;;  %v4326_v40 = vadd.f32 %v4318_v59, %v9454_v30 }
0x16e8   : > { %v8264_v51 = vmul.f32 -1.442695, %v4325_v28  ;;  %v8267_v9 = vmul.f32 -1.442695, %v4328_v15  ;;  %v8266_v48 = vmul.f32 -1.442695, %v4327_v52 }
0x16e9   : > { %v4490_v56 = vrot.slane %v10785_v37, 5  ;;  %v8265_v47 = vmul.f32 -1.442695, %v4326_v40 }
0x16ea   : > { %8916 = vpow2.f32 %v8264_v51 }
0x16eb   : > { %v4491_v23 = vsel %vm1348_vm2, %v4490_v56, %v4489_v6 }
0x16ec   : > { %v4493_v0 = vsel %vm1350_vm3, %v4492_v1, %v4491_v23 }
0x16ed   : > { %v10794_v53 = vsel %vm1352_vm4, %v4494_v54, %v4493_v0 }
0x16ef   : > { %4411 = vrot.lane.b32.xlu2 %v4320_v44, %s13351_s11 }
0x16f0   : > { %v8917_v13 = vpop.eup %8916 }
0x16f1   : > { %v4341_v33 = vadd.f32 1.0, %v8917_v13 }
0x16f3   : > { %8918 = vrcp.f32 %v4341_v33  ;;  %v4356_v62 = vand.u32 2147483648, %v4341_v33  ;;  %v4354_v46 = vand.u32 2147483647, %v4341_v33  ;;  %vm4350_vm15 = vweird.f32 %v4341_v33 }
0x16f4   : > { %8920 = vpow2.f32 %v8267_v9 }
0x16f5   : > { %v4357_v5 = vor.u32 1.1754944e-38, %v4356_v62  ;;  %vm4355_vm8 = vcmp.eq.f32.partialorder %v4354_v46, 8.507059e+37 }
0x16f9   : > { %v8919_v7 = vpop.eup %8918 }
0x16fa   : > { %v4346_v24 = vmul.f32 %v8919_v7, %v4341_v33  ;;  %vm4351_vm12 = vweird.f32 %v8919_v7  ;;  %v8921_v43 = vpop.eup %8920 }
0x16fb   : > { %vm4352_vm1 = vmor %vm4350_vm15, %vm4351_vm12  ;;  %v4344_v49 = vadd.f32 1.0, %v8921_v43 }
0x16fc   : > { %v4347_v57 = vsub.f32 1.0, %v4346_v24 }
0x16fd   : > { %8922 = vrcp.f32 %v4344_v49  ;;  %v4401_v1 = vand.u32 2147483648, %v4344_v49  ;;  %vm4395_vm10 = vweird.f32 %v4344_v49  ;;  %v4399_v54 = vand.u32 2147483647, %v4344_v49 }
0x16fe   : > { %v4348_v14 = vmul.f32 %v8919_v7, %v4347_v57  ;;  %8924 = vpow2.f32 %v8266_v48 }
0x16ff   : > { %8926 = vpow2.f32 %v8265_v47  ;;  %v4402_v13 = vor.u32 1.1754944e-38, %v4401_v1  ;;  %vm4400_vm13 = vcmp.eq.f32.partialorder %v4399_v54, 8.507059e+37 }
0x1700   : > { %v4349_v55 = vadd.f32 %v8919_v7, %v4348_v14 }
0x1702   : > { %v4353_v11 = vsel %vm4352_vm1, %v8919_v7, %v4349_v55 }
0x1703   : > { %v10798_v17 = vsel %vm4355_vm8, %v4357_v5, %v4353_v11  ;;  %v8923_v21 = vpop.eup %8922 }
0x1704   : > { %v10801_v63 = vmul.f32 %v4469_v20, %v10798_v17  ;;  %v8925_v42 = vpop.eup %8924  ;;  %v4391_v18 = vmul.f32 %v8923_v21, %v4344_v49  ;;  %vm4396_vm9 = vweird.f32 %v8923_v21 }
0x1705   : > { %v8927_v32 = vpop.eup %8926  ;;  %v4343_v35 = vadd.f32 1.0, %v8925_v42  ;;  %vm4397_vm14 = vmor %vm4395_vm10, %vm4396_vm9 }
0x1706   : > { %v4342_v12 = vadd.f32 1.0, %v8927_v32  ;;  %v4392_v2 = vsub.f32 1.0, %v4391_v18 }
0x1707   : > { %8928 = vrcp.f32 %v4343_v35  ;;  %vm4380_vm1 = vweird.f32 %v4343_v35  ;;  %v4386_v20 = vand.u32 2147483648, %v4343_v35  ;;  %v4384_v9 = vand.u32 2147483647, %v4343_v35 }
0x1708   : > { %8930 = vrcp.f32 %v4342_v12  ;;  %v4393_v28 = vmul.f32 %v8923_v21, %v4392_v2  ;;  %v4371_v11 = vand.u32 2147483648, %v4342_v12  ;;  %vm4365_vm8 = vweird.f32 %v4342_v12 }
0x1709   : > { %v4369_v15 = vand.u32 2147483647, %v4342_v12  ;;  %v4387_v49 = vor.u32 1.1754944e-38, %v4386_v20 }
0x170a   : > { %v4394_v56 = vadd.f32 %v8923_v21, %v4393_v28  ;;  %v4372_v40 = vor.u32 1.1754944e-38, %v4371_v11 }
0x170c   : > { %v4398_v0 = vsel %vm4397_vm14, %v8923_v21, %v4394_v56  ;;  %vm4370_vm14 = vcmp.eq.f32.partialorder %v4369_v15, 8.507059e+37 }
0x170d   : > { %v8929_v51 = vpop.eup %8928  ;;  %v10808_v33 = vsel %vm4400_vm13, %v4402_v13, %v4398_v0  ;;  %vm4385_vm13 = vcmp.eq.f32.partialorder %v4384_v9, 8.507059e+37  ;;  %v4470_v0 = vrot.slane %v10686_v4, 7 }
0x170e   : > { %v8931_v6 = vpop.eup %8930  ;;  %v4376_v44 = vmul.f32 %v8929_v51, %v4343_v35  ;;  %vm4381_vm12 = vweird.f32 %v8929_v51 }
0x170f   : > { %v4361_v23 = vmul.f32 %v8931_v6, %v4342_v12  ;;  %vm4366_vm15 = vweird.f32 %v8931_v6  ;;  %vm4382_vm9 = vmor %vm4380_vm1, %vm4381_vm12  ;;  %vm4727_vm12 = vcmask 1046528  }
0x1710   : > { %v4377_v57 = vsub.f32 1.0, %v4376_v44  ;;  %vm4367_vm10 = vmor %vm4365_vm8, %vm4366_vm15 }
0x1711   : > { %v4362_v24 = vsub.f32 1.0, %v4361_v23  ;;  %v4471_v23 = vrot.slane %v10684_v50, 7 }
0x1712   : > { %v4378_v46 = vmul.f32 %v8929_v51, %v4377_v57 }
0x1713   : > { %v4363_v14 = vmul.f32 %v8931_v6, %v4362_v24  ;;  %v4445_v24 = vsub.f32 1.0, %v10798_v17 }
0x1714   : > { %v4379_v5 = vadd.f32 %v8929_v51, %v4378_v46 }
0x1715   : > { %v4364_v55 = vadd.f32 %v8931_v6, %v4363_v14 }
0x1716   : > { %v4383_v52 = vsel %vm4382_vm9, %v8929_v51, %v4379_v5 }
0x1717   : > { %v4368_v43 = vsel %vm4367_vm10, %v8931_v6, %v4364_v55  ;;  %v4388_v21 = vsel %vm4385_vm13, %v4387_v49, %v4383_v52 }
0x1718   : > { %v4373_v47 = vsel %vm4370_vm14, %v4372_v40, %v4368_v43  ;;  %v4447_v54 = vsub.f32 1.0, %v4388_v21  ;;  %v4479_v57 = vmul.f32 %v4471_v23, %v4388_v21  ;;  %v9017_v43 = vld [vmem:[%s13340_s23] ss:$0 sm:$0xff] }
0x1719   : > { %v4446_v44 = vsub.f32 1.0, %v4373_v47  ;;  %v4478_v14 = vmul.f32 %v4470_v0, %v4373_v47 }
0x1741   : > { %v4406_v19 = vpop.permute.xlu2 %4405 }
0x1742   : > { %v4417_v59 = vmul.f32 %v4406_v19, %v10798_v17 }
0x1744   : > { %4425 = vrot.lane.b32.xlu0 %v4417_v59, %s13352_s10 }
0x1749   : > { %v4412_v7 = vpop.permute.xlu2 %4411 }
0x174a   : > { %v4420_v62 = vmul.f32 %v4412_v7, %v10808_v33 }
0x174c   : > { %4431 = vrot.lane.b32.xlu0 %v4420_v62, %s13352_s10 }
0x1758   : > { %v4408_v48 = vpop.permute.xlu0 %4407  ;;  %v4410_v42 = vpop.permute.xlu1 %4409 }
0x1759   : > { %v4418_v32 = vmul.f32 %v4408_v48, %v4373_v47  ;;  %v4419_v18 = vmul.f32 %v4410_v42, %v4388_v21 }
0x175b   : > { %4427 = vrot.lane.b32.xlu1 %v4418_v32, %s13352_s10  ;;  %4429 = vrot.lane.b32.xlu2 %v4419_v18, %s13352_s10 }
0x17b5   : > { %v4430_v12 = vpop.permute.xlu2 %4429 }
0x17b6   : > { %v4426_v2 = vpop.permute.xlu0 %4425  ;;  %v4439_v35 = vadd.f32 %v4430_v12, %v9460_v36 }
0x17b7   : > { %v4437_v28 = vadd.f32 %v4426_v2, %v9452_v29 }
0x17b8   : > { %8932 = vtanh.f32 %v4439_v35 }
0x17b9   : > { %8934 = vtanh.f32 %v4437_v28 }
0x17be   : > { %v8933_v51 = vpop.eup %8932  ;;  %v4432_v1 = vpop.permute.xlu0 %4431 }
0x17bf   : > { %v8935_v19 = vpop.eup %8934  ;;  %4457 = vrot.lane.b32.xlu0 %v8933_v51, %s13353_s21 }
0x17c0   : > { %4453 = vrot.lane.b32.xlu1 %v8935_v19, %s13353_s21 }
0x17cd   : > { %v4428_v6 = vpop.permute.xlu1 %4427 }
0x17ce   : > { %v4438_v59 = vadd.f32 %v4428_v6, %v9454_v30 }
0x17d0   : > { %8936 = vtanh.f32 %v4438_v59 }
0x17d6   : > { %v8937_v56 = vpop.eup %8936 }
0x17d7   : > { %4455 = vrot.lane.b32.xlu2 %v8937_v56, %s13353_s21  ;;  %v10853_v56 = vshrl.u32 %v1342_v31, 7 }
0x17d9   : > { %13362 = vst [vmem:[#allocation37_spill] sm:$0xff] %v10853_v56  ;;  %8397 = vset.pattern.permute.xlu1 %v10853_v56  ;;  %8403 = vset.pattern.permute.xlu2 %v10853_v56 }
0x17df   : > { %4496 = vrot.lane.b32.xlu2 %v10794_v53, %s13359_s5 }
0x1831   : > { %v4458_v13 = vpop.permute.xlu0 %4457  ;;  %v4456_v7 = vpop.permute.xlu2 %4455 }
0x1832   : > { %v4467_v62 = vmul.f32 %v4458_v13, %v4447_v54  ;;  %v4466_v46 = vmul.f32 %v4456_v7, %v4446_v44  ;;  %v4454_v55 = vpop.permute.xlu1 %4453  ;;  %v4683_v13 = vrot.slane %v10772_v10, 7 }
0x1833   : > { %v4465_v5 = vmul.f32 %v4454_v55, %v4445_v24 }
0x1834   : > { %v4483_v53 = vadd.f32 %v4479_v57, %v4467_v62  ;;  %v4482_v11 = vadd.f32 %v4478_v14, %v4466_v46 }
0x1835   : > { %v4481_v20 = vadd.f32 %v10801_v63, %v4465_v5 }
0x1836   : > { %v10828_v50 = vsel %vm4727_vm12, %v10702_v60, %v4483_v53  ;;  %v10832_v4 = vsel %vm4727_vm12, %v10707_v22, %v4482_v11 }
0x1837   : > { %v10836_v17 = vsel %vm4727_vm12, %v10697_v61, %v4481_v20  ;;  %v4440_v61 = vadd.f32 %v4432_v1, %v9458_v34 }
0x1839   : > { %v4497_v15 = vpop.permute.xlu2 %4496  ;;  %8938 = vtanh.f32 %v4440_v61 }
0x183a   : > { %8268 = vmatmul.msk.f32.vlgmr.msrb.gmra.mxu1 %vm1430_vm7, %v4497_v15 }
0x183f   : > { %v8939_v22 = vpop.eup %8938 }
0x18b7   : > { %v4517_v9 = vpop.f32.mrf.mxu1 }
0x18b8   : > { %v4518_v52 = vadd.f32 %v9017_v43, %v4517_v9 }
0x18ba   : > { %v4523_v40 = vrot.slane %v4518_v52, 3  ;;  %v4522_v63 = vrot.slane %v4518_v52, 2  ;;  %v4521_v49 = vrot.slane %v4518_v52, 1  ;;  %v4524_v60 = vrot.slane %v4518_v52, 4 }
0x18bc   : > { %4529 = vrot.lane.b32.xlu2 %v4523_v40, %s13360_s19  ;;  %4527 = vrot.lane.b32.xlu1 %v4522_v63, %s13360_s19 }
0x18bd   : > { %4525 = vrot.lane.b32.xlu0 %v4521_v49, %s13360_s19 }
0x18c4   : > { %4619 = vrot.lane.b32.xlu2 %v4522_v63, %s13354_s9  ;;  %4617 = vrot.lane.b32.xlu1 %v4521_v49, %s13354_s9  ;;  %v4472_v49 = vrot.slane %v10715_v38, 7 }
0x18c5   : > { %4531 = vrot.lane.b32.xlu0 %v4524_v60, %s13360_s19 }
0x18cc   : > { %4623 = vrot.lane.b32.xlu1 %v4524_v60, %s13354_s9 }
0x18cd   : > { %4621 = vrot.lane.b32.xlu0 %v4523_v40, %s13354_s9 }
0x18d4   : > { %4459 = vrot.lane.b32.xlu1 %v8939_v22, %s13353_s21  ;;  %v4448_v22 = vsub.f32 1.0, %v10808_v33 }
0x1916   : > { %v4530_v48 = vpop.permute.xlu2 %4529 }
0x1917   : > { %v4539_v47 = vadd.f32 %v4530_v48, %v9460_v36 }
0x1919   : > { %v8271_v21 = vmul.f32 -1.442695, %v4539_v47  ;;  %v4480_v47 = vmul.f32 %v4472_v49, %v10808_v33  ;;  %v10905_v49 = vadd.s32 16, %v10853_v56 }
0x191b   : > { %8940 = vpow2.f32 %v8271_v21  ;;  %13364 = vst [vmem:[#allocation38_spill] sm:$0xff] %v10905_v49 }
0x1921   : > { %v8941_v42 = vpop.eup %8940 }
0x1922   : > { %v4555_v32 = vadd.f32 1.0, %v8941_v42 }
0x1924   : > { %8942 = vrcp.f32 %v4555_v32  ;;  %v4596_v28 = vand.u32 2147483647, %v4555_v32  ;;  %v4598_v51 = vand.u32 2147483648, %v4555_v32  ;;  %vm4592_vm1 = vweird.f32 %v4555_v32 }
0x1926   : > { %v4599_v0 = vor.u32 1.1754944e-38, %v4598_v51  ;;  %vm4597_vm9 = vcmp.eq.f32.partialorder %v4596_v28, 8.507059e+37 }
0x192a   : > { %v8943_v18 = vpop.eup %8942 }
0x192b   : > { %v4588_v12 = vmul.f32 %v8943_v18, %v4555_v32  ;;  %vm4593_vm15 = vweird.f32 %v8943_v18 }
0x192c   : > { %vm4594_vm8 = vmor %vm4592_vm1, %vm4593_vm15 }
0x192d   : > { %v4589_v2 = vsub.f32 1.0, %v4588_v12 }
0x192e   : > { %v4528_v35 = vpop.permute.xlu1 %4527 }
0x192f   : > { %v4526_v19 = vpop.permute.xlu0 %4525  ;;  %v4538_v6 = vadd.f32 %v4528_v35, %v9454_v30  ;;  %v4590_v59 = vmul.f32 %v8943_v18, %v4589_v2 }
0x1930   : > { %v4537_v1 = vadd.f32 %v4526_v19, %v9452_v29 }
0x1931   : > { %v8270_v54 = vmul.f32 -1.442695, %v4538_v6  ;;  %v4591_v23 = vadd.f32 %v8943_v18, %v4590_v59 }
0x1932   : > { %v8269_v44 = vmul.f32 -1.442695, %v4537_v1 }
0x1933   : > { %8944 = vpow2.f32 %v8270_v54  ;;  %v4595_v7 = vsel %vm4594_vm8, %v8943_v18, %v4591_v23 }
0x1934   : > { %8946 = vpow2.f32 %v8269_v44  ;;  %v10859_v31 = vsel %vm4597_vm9, %v4599_v0, %v4595_v7  ;;  %v4681_v44 = vrot.slane %v10774_v39, 7  ;;  %v4620_v0 = vpop.permute.xlu2 %4619 }
0x1935   : > { %v10862_v24 = vmul.f32 %v4683_v13, %v10859_v31 }
0x1936   : > { %v4618_v57 = vpop.permute.xlu1 %4617 }
0x1937   : > { %v4532_v62 = vpop.permute.xlu0 %4531 }
0x1938   : > { %v4540_v14 = vadd.f32 %v4532_v62, %v9458_v34 }
0x1939   : > { %v8945_v46 = vpop.eup %8944 }
0x193a   : > { %v8947_v55 = vpop.eup %8946  ;;  %v4554_v5 = vadd.f32 1.0, %v8945_v46  ;;  %v8272_v53 = vmul.f32 -1.442695, %v4540_v14 }
0x193b   : > { %v4553_v11 = vadd.f32 1.0, %v8947_v55  ;;  %v10887_v55 = vld [vmem:[%s9416_s26] sm:$0xff] }
0x193c   : > { %8948 = vrcp.f32 %v4554_v5  ;;  %v4581_v42 = vand.u32 2147483647, %v4554_v5  ;;  %v4583_v32 = vand.u32 2147483648, %v4554_v5  ;;  %vm4577_vm13 = vweird.f32 %v4554_v5 }
0x193d   : > { %8950 = vrcp.f32 %v4553_v11  ;;  %v4566_v18 = vand.u32 2147483647, %v4553_v11  ;;  %v4568_v12 = vand.u32 2147483648, %v4553_v11  ;;  %vm4562_vm15 = vweird.f32 %v4553_v11 }
0x193e   : > { %8952 = vpow2.f32 %v8272_v53  ;;  %v10865_v10 = vpop.permute.xlu1 %4623  ;;  %vm4582_vm9 = vcmp.eq.f32.partialorder %v4581_v42, 8.507059e+37  ;;  %v4584_v6 = vor.u32 1.1754944e-38, %v4583_v32  ;;  %v1092_v53 = vld [vmem:[%s1074_s3] sm:$0xf]  ;;  %s13435_s3 = sld [smem:[#allocation22_spill]] }
0x193f   : > { %v4622_v20 = vpop.permute.xlu0 %4621  ;;  %v4569_v33 = vor.u32 1.1754944e-38, %v4568_v12  ;;  %vm4567_vm11 = vcmp.eq.f32.partialorder %v4566_v18, 8.507059e+37  ;;  %v8564_v42 = vld [vmem:[#allocation3] ss:$0 sm:$0xff]  ;;  %v10935_v18 = vadd.s32 24, %v10853_v56 }
0x1940   : > { %v4631_v15 = vmul.f32 %v4622_v20, %v10859_v31 }
0x1941   : > { %13365 = vst [vmem:[#allocation39_spill] sm:$0xff] %v10935_v18 }
0x1942   : > { %v8949_v9 = vpop.eup %8948  ;;  %4641 = vrot.lane.b32.xlu1 %v4631_v15, %s13352_s10 }
0x1943   : > { %v8951_v43 = vpop.eup %8950  ;;  %v4573_v52 = vmul.f32 %v8949_v9, %v4554_v5  ;;  %vm4578_vm10 = vweird.f32 %v8949_v9 }
0x1944   : > { %v8953_v40 = vpop.eup %8952  ;;  %v4558_v63 = vmul.f32 %v8951_v43, %v4553_v11  ;;  %vm4563_vm14 = vweird.f32 %v8951_v43  ;;  %vm4579_vm1 = vmor %vm4577_vm13, %vm4578_vm10  ;;  %vm13447_vm13 = vcmask 785408  }
0x1945   : > { %v4574_v60 = vsub.f32 1.0, %v4573_v52  ;;  %v4556_v61 = vadd.f32 1.0, %v8953_v40  ;;  %vm4564_vm8 = vmor %vm4562_vm15, %vm4563_vm14  ;;  %v4684_v40 = vrot.slane %v10776_v27, 7 }
0x1946   : > { %v4559_v48 = vsub.f32 1.0, %v4558_v63  ;;  %v4460_v21 = vpop.permute.xlu1 %4459  ;;  %vm13449_vm15 = vmmov %vm13447_vm13 }
0x1947   : > { %8954 = vrcp.f32 %v4556_v61  ;;  %v4468_v35 = vmul.f32 %v4460_v21, %v4448_v22  ;;  %v4575_v28 = vmul.f32 %v8949_v9, %v4574_v60  ;;  %v4611_v20 = vand.u32 2147483647, %v4556_v61 }
0x1948   : > { %v4560_v2 = vmul.f32 %v8951_v43, %v4559_v48  ;;  %v4803_v21 = vrot.slane %v1092_v53, 1 }
0x1949   : > { %v4484_v51 = vadd.f32 %v4480_v47, %v4468_v35  ;;  %v4576_v19 = vadd.f32 %v8949_v9, %v4575_v28  ;;  %vm4612_vm14 = vcmp.eq.f32.partialorder %v4611_v20, 8.507059e+37  ;;  %v10952_v28 = vadd.s32 8, %v10853_v56 }
0x194a   : > { %v4561_v38 = vadd.f32 %v8951_v43, %v4560_v2  ;;  %4738 = vrot.lane.b32.xlu1 %v10836_v17, %s13353_s21  ;;  %v4682_v17 = vrot.slane %v10785_v37, 7  ;;  %v10946_v2 = vld [vmem:[%s9416_s26 + $0x8] sm:$0xff] }
0x194b   : > { %v4580_v1 = vsel %vm4579_vm1, %v8949_v9, %v4576_v19  ;;  %v10876_v54 = vsel %vm4727_vm12, %v10721_v45, %v4484_v51  ;;  %v10890_v45 = vperm.slane %v10887_v55, 0  ;;  %vm4607_vm12 = vweird.f32 %v4556_v61  ;;  %13366 = vst [vmem:[#allocation40_spill] sm:$0xff] %v10952_v28 }
0x194c   : > { %v4565_v59 = vsel %vm4564_vm8, %v8951_v43, %v4561_v38  ;;  %v10882_v7 = vsel %vm4582_vm9, %v4584_v6, %v4580_v1  ;;  %v4804_v9 = vrot.slane %v1092_v53, 2  ;;  %v4805_v43 = vrot.slane %v1092_v53, 3  ;;  %v10958_v38 = vld [vmem:[%s9416_s26 + $0x18] sm:$0xff]  ;;  %v4733_v1 = vld [vmem:[%s13342_s12 + $0x8] sm:$0xff]  ;;  %vm13450_vm9 = vmmov %vm13447_vm13 }
0x194d   : > { %v8955_v23 = vpop.eup %8954  ;;  %v10880_v13 = vsel %vm4567_vm11, %v4569_v33, %v4565_v59  ;;  %v4630_v46 = vmul.f32 %v4620_v0, %v10882_v7  ;;  %v10898_v37 = vmul.f32 %v4682_v17, %v10882_v7  ;;  %v10949_v35 = vperm.slane %v10946_v2, 0  ;;  %4768 = vmatpush.msra.mxu2 %v4733_v1 }
0x194e   : > { %v4629_v62 = vmul.f32 %v4618_v57, %v10880_v13  ;;  %v4603_v14 = vmul.f32 %v8955_v23, %v4556_v61  ;;  %v10895_v39 = vmul.f32 %v4681_v44, %v10880_v13  ;;  %v4613_v57 = vand.u32 2147483648, %v4556_v61  ;;  %v4732_v44 = vld [vmem:[%s13342_s12] sm:$0xff] }
0x194f   : > { %4639 = vrot.lane.b32.xlu0 %v4630_v46, %s13352_s10  ;;  %vm4608_vm11 = vweird.f32 %v8955_v23  ;;  %v10913_v61 = vperm.slane %v4804_v9, 0  ;;  %v10915_v48 = vperm.slane %v4805_v43, 0  ;;  %v10961_v51 = vperm.slane %v10958_v38, 0  ;;  %4769 = vmatpush.msra.mxu2 %v4732_v44 }
0x1950   : > { %v4604_v5 = vsub.f32 1.0, %v4603_v14  ;;  %4637 = vrot.lane.b32.xlu2 %v4629_v62, %s13352_s10  ;;  %vm4609_vm10 = vmor %vm4607_vm12, %vm4608_vm11  ;;  %v4614_v52 = vor.u32 1.1754944e-38, %v4613_v57  ;;  %v10966_v19 = vperm.slane %v10946_v2, 1  ;;  %v10975_v6 = vperm.slane %v10887_v55, 1 }
0x1951   : > { %v8392_v27 = vpack.i.bf16 %v10915_v48, %v10913_v61  ;;  %v10981_v59 = vperm.slane %v10958_v38, 3  ;;  %v11019_v9 = vperm.slane %v10958_v38, 1  ;;  %vm7649_vm1 = vcmask 1045509   ;;  %vm13452_vm12 = vmmov %vm13450_vm9 }
0x1952   : > { %v4605_v11 = vmul.f32 %v8955_v23, %v4604_v5  ;;  %5029 = vperm.xlu1 %8397, %v10890_v45   ;;  %vm7651_vm8 = vcmask 1046534   ;;  %vm7653_vm11 = vcmask 1047559  }
0x1954   : > { %v4606_v15 = vadd.f32 %v8955_v23, %v4605_v11 }
0x1956   : > { %v4610_v63 = vsel %vm4609_vm10, %v8955_v23, %v4606_v15  ;;  %v10988_v23 = vperm.slane %v10887_v55, 5  ;;  %vm13513_vm10 = vcmask 60416  }
0x1957   : > { %v10907_v60 = vsel %vm4612_vm14, %v4614_v52, %v4610_v63  ;;  %4742 = vrot.lane.b32.xlu0 %v10828_v50, %s13353_s21  ;;  %v10928_v50 = vperm.slane %v1092_v53, 0  ;;  %v11036_v63 = vperm.slane %v10887_v55, 2  ;;  %vm6971_vm14 = vcmask 130112  }
0x1958   : > { %v4632_v22 = vmul.f32 %v10865_v10, %v10907_v60  ;;  %v10918_v47 = vmul.f32 %v4684_v40, %v10907_v60  ;;  %v10930_v10 = vperm.slane %v4803_v21, 0  ;;  %v11047_v21 = vperm.slane %v10946_v2, 2 }
0x195a   : > { %4643 = vrot.lane.b32.xlu2 %v4632_v22, %s13352_s10  ;;  %8398 = vset.pattern.permute.xlu1 %v10905_v49  ;;  %v8387_v32 = vpack.i.bf16 %v10930_v10, %v10928_v50 }
0x195f   : > { %8393 = vrot.lane.b32.xlu0 %v8392_v27, %s13352_s10 }
0x1962   : > { %4740 = vrot.lane.b32.xlu2 %v10832_v4, %s13353_s21  ;;  %5041 = vperm.xlu1 %8398, %v10890_v45   ;;  %v10940_v4 = vld [vmem:[%s9416_s26 + $0x10] sm:$0xff] }
0x1963   : > { %v5074_v12 = vperm.slane %v10940_v4, 0  ;;  %v10972_v33 = vperm.slane %v10940_v4, 2 }
0x1967   : > { %4936 = vperm.xlu0 %8386, %v8564_v42  }
0x196a   : > { %8388 = vrot.lane.b32.xlu2 %v8387_v32, %s13352_s10  ;;  %8399 = vset.pattern.permute.xlu1 %v10935_v18 }
0x196f   : > { %8402 = vset.pattern.permute.xlu0 %v10935_v18 }
0x1972   : > { %5079 = vperm.xlu2 %8403, %v5074_v12   ;;  %5047 = vperm.xlu1 %8399, %v10890_v45  }
0x1977   : > { %5072 = vperm.xlu0 %8402, %v10949_v35  }
0x197a   : > { %8407 = vset.pattern.permute.xlu2 %v10905_v49  ;;  %8400 = vset.pattern.permute.xlu1 %v10952_v28 }
0x197f   : > { %5097 = vperm.xlu0 %8402, %v5074_v12  }
0x1982   : > { %5116 = vperm.xlu2 %8407, %v10961_v51   ;;  %5060 = vperm.xlu1 %8400, %v10949_v35  }
0x1987   : > { %5276 = vperm.xlu0 %8402, %v10966_v19  }
0x198a   : > { %8409 = vset.pattern.permute.xlu2 %v10853_v56  ;;  %8401 = vset.pattern.permute.xlu1 %v10905_v49 }
0x198f   : > { %5525 = vperm.xlu0 %8402, %v10972_v33  }
0x1992   : > { %5233 = vperm.xlu2 %8409, %v10975_v6   ;;  %5066 = vperm.xlu1 %8401, %v10949_v35  }
0x1997   : > { %5770 = vperm.xlu0 %8402, %v10981_v59  }
0x199a   : > { %8411 = vset.pattern.permute.xlu2 %v10935_v18  ;;  %8404 = vset.pattern.permute.xlu1 %v10952_v28 }
0x199f   : > { %6135 = vperm.xlu0 %8402, %v10988_v23  }
0x19a2   : > { %5251 = vperm.xlu2 %8411, %v10975_v6   ;;  %5085 = vperm.xlu1 %8404, %v5074_v12  }
0x19aa   : > { %8413 = vset.pattern.permute.xlu2 %v10952_v28  ;;  %8405 = vset.pattern.permute.xlu1 %v10905_v49  ;;  %v4638_v17 = vpop.permute.xlu2 %4637 }
0x19ab   : > { %v4649_v0 = vadd.f32 %v4638_v17, %v9452_v29  ;;  %v5278_v29 = vperm.slane %v10940_v4, 1  ;;  %v4660_v17 = vsub.f32 1.0, %v10907_v60 }
0x19ad   : > { %8956 = vtanh.f32 %v4649_v0 }
0x19b2   : > { %5264 = vperm.xlu2 %8413, %v10966_v19   ;;  %5091 = vperm.xlu1 %8405, %v5074_v12   ;;  %v4657_v12 = vsub.f32 1.0, %v10880_v13  ;;  %v11072_v13 = vperm.slane %v10958_v38, 2 }
0x19b3   : > { %v8957_v62 = vpop.eup %8956 }
0x19b4   : > { %v4644_v14 = vpop.permute.xlu2 %4643  ;;  %4665 = vrot.lane.b32.xlu0 %v8957_v62, %s13353_s21  ;;  %v10998_v46 = vpop.permute.xlu1 %4641 }
0x19b5   : > { %v4652_v5 = vadd.f32 %v4644_v14, %v9458_v34 }
0x19b7   : > { %8958 = vtanh.f32 %v4652_v5 }
0x19ba   : > { %8415 = vset.pattern.permute.xlu2 %v10853_v56  ;;  %8406 = vset.pattern.permute.xlu1 %v10853_v56 }
0x19bc   : > { %v4739_v57 = vpop.permute.xlu1 %4738  ;;  %v4741_v20 = vpop.permute.xlu2 %4740 }
0x19bd   : > { %v8959_v53 = vpop.eup %8958  ;;  %8273 = vmatmul.msk.f32.vlgmr.msra.gmra.mxu2 %vm1430_vm7, %v4739_v57 }
0x19be   : > { %4671 = vrot.lane.b32.xlu0 %v8959_v53, %s13353_s21 }
0x19c1   : > { %v11007_v11 = vpop.permute.xlu0 %4639 }
0x19c2   : > { %5283 = vperm.xlu2 %8415, %v5278_v29   ;;  %5104 = vperm.xlu1 %8406, %v10961_v51  }
0x19c5   : > { %8274 = vmatmul.msk.f32.gmra.mxu2 %vm1430_vm7, %v4741_v20 }
0x19c9   : > { %v4743_v34 = vpop.permute.xlu0 %4742 }
0x19ca   : > { %8417 = vset.pattern.permute.xlu2 %v10905_v49  ;;  %8408 = vset.pattern.permute.xlu1 %v10935_v18 }
0x19cd   : > { %8275 = vmatmul.msk.f32.gmra.mxu2 %vm1430_vm7, %v4743_v34  ;;  %v11094_v34 = vperm.slane %v10946_v2, 6 }
0x19d1   : > { %v11014_v15 = vpop.permute.xlu0 %8393 }
0x19d2   : > { %5295 = vperm.xlu2 %8417, %v5278_v29   ;;  %5122 = vperm.xlu1 %8408, %v10961_v51  }
0x19d9   : > { %v11023_v43 = vpop.permute.xlu0 %4936 }
0x19da   : > { %8419 = vset.pattern.permute.xlu2 %v10952_v28  ;;  %8410 = vset.pattern.permute.xlu1 %v10952_v28 }
0x19e2   : > { %5314 = vperm.xlu2 %8419, %v11019_v9   ;;  %5239 = vperm.xlu1 %8410, %v10975_v6  }
0x19e9   : > { %v11027_v52 = vpop.permute.xlu0 %5072 }
0x19ea   : > { %8421 = vset.pattern.permute.xlu2 %v10935_v18  ;;  %8412 = vset.pattern.permute.xlu1 %v10853_v56  ;;  %13367 = vst [vmem:[#allocation41_spill] sm:$0xff] %v11027_v52 }
0x19f1   : > { %v11031_v40 = vpop.permute.xlu0 %5097 }
0x19f2   : > { %5326 = vperm.xlu2 %8421, %v11019_v9   ;;  %5258 = vperm.xlu1 %8412, %v10966_v19   ;;  %13368 = vst [vmem:[#allocation42_spill] sm:$0xff] %v11031_v40  ;;  %v11228_v40 = vperm.slane %v10887_v55, 7 }
0x19f9   : > { %v11038_v22 = vpop.permute.xlu0 %5276 }
0x19fa   : > { %8423 = vset.pattern.permute.xlu2 %v10905_v49  ;;  %8414 = vset.pattern.permute.xlu1 %v10905_v49  ;;  %13369 = vst [vmem:[#allocation43_spill] sm:$0xff] %v11038_v22 }
0x1a01   : > { %v11042_v27 = vpop.permute.xlu0 %5525 }
0x1a02   : > { %5469 = vperm.xlu2 %8423, %v11036_v63   ;;  %5270 = vperm.xlu1 %8414, %v10966_v19   ;;  %13370 = vst [vmem:[#allocation44_spill] sm:$0xff] %v11042_v27 }
0x1a09   : > { %v11050_v42 = vpop.permute.xlu0 %5770 }
0x1a0a   : > { %8425 = vset.pattern.permute.xlu2 %v10853_v56  ;;  %8416 = vset.pattern.permute.xlu1 %v10952_v28  ;;  %13371 = vst [vmem:[#allocation45_spill] sm:$0xff] %v11050_v42  ;;  %v11142_v42 = vperm.slane %v10940_v4, 5 }
0x1a11   : > { %v11054_v32 = vpop.permute.xlu0 %6135 }
0x1a12   : > { %5482 = vperm.xlu2 %8425, %v11047_v21   ;;  %5289 = vperm.xlu1 %8416, %v5278_v29   ;;  %13372 = vst [vmem:[#allocation46_spill] sm:$0xff] %v11054_v32 }
0x1a1a   : > { %8427 = vset.pattern.permute.xlu2 %v10935_v18  ;;  %8418 = vset.pattern.permute.xlu1 %v10935_v18 }
0x1a22   : > { %5500 = vperm.xlu2 %8427, %v11047_v21   ;;  %5301 = vperm.xlu1 %8418, %v5278_v29  }
0x1a26   : > { %v4666_v19 = vpop.permute.xlu0 %4665 }
0x1a27   : > { %v4677_v1 = vmul.f32 %v4666_v19, %v4657_v12  ;;  %v11116_v12 = vpop.permute.xlu1 %5029  ;;  %v5428_v19 = vmul.f32 0.09331175, %v10887_v55 }
0x1a28   : > { %13373 = vst [vmem:[#allocation47_spill] sm:$0xff] %v11116_v12 }
0x1a29   : > { %v11059_v44 = vadd.f32 %v10895_v39, %v4677_v1  ;;  %v5216_v1 = vmul.f32 0.083980575, %v10887_v55 }
0x1a2a   : > { %8429 = vset.pattern.permute.xlu2 %v10952_v28  ;;  %8420 = vset.pattern.permute.xlu1 %v10905_v49 }
0x1a30   : > { %v4672_v0 = vpop.permute.xlu0 %4671 }
0x1a31   : > { %v4680_v62 = vmul.f32 %v4672_v0, %v4660_v17  ;;  %v5436_v17 = vrot.slane %v5428_v19, 1  ;;  %v5648_v0 = vmul.f32 0.10367972, %v10887_v55  ;;  %v6088_v19 = vmul.f32 0.12799965, %v10887_v55 }
0x1a32   : > { %5513 = vperm.xlu2 %8429, %v10972_v33   ;;  %5320 = vperm.xlu1 %8420, %v11019_v9  }
0x1a33   : > { %v11067_v14 = vadd.f32 %v10918_v47, %v4680_v62  ;;  %v5444_v62 = vadd.f32 %v5436_v17, %v5216_v1  ;;  %v6096_v17 = vrot.slane %v6088_v19, 4  ;;  %v11152_v19 = vperm.slane %v10940_v4, 3 }
0x1a3a   : > { %8431 = vset.pattern.permute.xlu2 %v10853_v56  ;;  %8422 = vset.pattern.permute.xlu1 %v10853_v56 }
0x1a40   : > { %v11074_v39 = vpop.f32.mrf.mxu2 }
0x1a41   : > { %v4814_v5 = vsub.f32 %v11074_v39, %v10928_v50  ;;  %v4818_v47 = vmul.f32 %v10928_v50, %v11074_v39  ;;  %v11100_v50 = vperm.slane %v10940_v4, 7 }
0x1a42   : > { %5532 = vperm.xlu2 %8431, %v11072_v13   ;;  %5457 = vperm.xlu1 %8422, %v11036_v63  }
0x1a48   : > { %v11078_v60 = vpop.f32.mrf.mxu2 }
0x1a49   : > { %v4819_v57 = vmul.f32 %v10930_v10, %v11078_v60  ;;  %v4815_v53 = vsub.f32 %v11078_v60, %v10930_v10  ;;  %v11106_v10 = vperm.slane %v10887_v55, 3 }
0x1a4a   : > { %8433 = vset.pattern.permute.xlu2 %v10905_v49  ;;  %8424 = vset.pattern.permute.xlu1 %v10935_v18 }
0x1a4b   : > { %v8479_v29 = vpack.i.bf16 %v4819_v57, %v4818_v47  ;;  %v11090_v20 = vpack.i.bf16 %v4815_v53, %v4814_v5  ;;  %v5656_v5 = vrot.slane %v5648_v0, 2  ;;  %v5868_v47 = vmul.f32 0.115199685, %v10887_v55 }
0x1a4c   : > { %v11132_v57 = vperm.slane %v10946_v2, 4  ;;  %v6308_v0 = vmul.f32 0.14222184, %v10887_v55 }
0x1a4d   : > { %8480 = vrot.lane.b32.xlu0 %v8479_v29, %s13351_s11  ;;  %v5664_v53 = vadd.f32 %v5656_v5, %v5444_v62  ;;  %v5876_v29 = vrot.slane %v5868_v47, 3  ;;  %v6528_v5 = vmul.f32 0.15802427, %v10887_v55 }
0x1a4e   : > { %v6316_v62 = vrot.slane %v6308_v0, 5 }
0x1a4f   : > { %v5884_v1 = vadd.f32 %v5876_v29, %v5664_v53  ;;  %v6536_v53 = vrot.slane %v6528_v5, 6  ;;  %v6748_v29 = vmul.f32 0.17558251, %v10887_v55 }
0x1a51   : > { %v6104_v32 = vadd.f32 %v6096_v17, %v5884_v1  ;;  %v11155_v1 = vperm.slane %v10958_v38, 6  ;;  %v6756_v0 = vrot.slane %v6748_v29, 7 }
0x1a52   : > { %5544 = vperm.xlu2 %8433, %v11072_v13   ;;  %5475 = vperm.xlu1 %8424, %v11036_v63  }
0x1a53   : > { %v6324_v47 = vadd.f32 %v6316_v62, %v6104_v32 }
0x1a55   : > { %6380 = vperm.xlu0 %8402, %v11094_v34   ;;  %v6544_v17 = vadd.f32 %v6536_v53, %v6324_v47 }
0x1a57   : > { %v6764_v32 = vadd.f32 %v6756_v0, %v6544_v17  ;;  %v11193_v17 = vperm.slane %v10887_v55, 4 }
0x1a59   : > { %v11162_v62 = vperm.slane %v6764_v32, 0 }
0x1a5a   : > { %8435 = vset.pattern.permute.xlu2 %v10952_v28  ;;  %8426 = vset.pattern.permute.xlu1 %v10952_v28 }
0x1a5d   : > { %6625 = vperm.xlu0 %8402, %v11100_v50  }
0x1a62   : > { %5683 = vperm.xlu2 %8435, %v11106_v10   ;;  %5488 = vperm.xlu1 %8426, %v11047_v21  }
0x1a65   : > { %8515 = vset.pattern.permute.xlu0 %v10853_v56 }
0x1a6a   : > { %8437 = vset.pattern.permute.xlu2 %v10935_v18  ;;  %8428 = vset.pattern.permute.xlu1 %v10853_v56 }
0x1a6d   : > { %5054 = vperm.xlu0 %8515, %v10949_v35   ;;  %v11124_v35 = vpop.permute.xlu1 %5041 }
0x1a6e   : > { %13374 = vst [vmem:[#allocation48_spill] sm:$0xff] %v11124_v35 }
0x1a72   : > { %5695 = vperm.xlu2 %8437, %v11106_v10   ;;  %5507 = vperm.xlu1 %8428, %v10972_v33  }
0x1a75   : > { %5308 = vperm.xlu0 %8515, %v11019_v9   ;;  %v11129_v9 = vperm.slane %v10946_v2, 3  ;;  %v11137_v16 = vpop.permute.xlu1 %5047 }
0x1a76   : > { %13375 = vst [vmem:[#allocation49_spill] sm:$0xff] %v11137_v16 }
0x1a7a   : > { %8439 = vset.pattern.permute.xlu2 %v10905_v49  ;;  %8430 = vset.pattern.permute.xlu1 %v10905_v49 }
0x1a7d   : > { %5677 = vperm.xlu0 %8515, %v11106_v10  }
0x1a82   : > { %5714 = vperm.xlu2 %8439, %v11129_v9   ;;  %5519 = vperm.xlu1 %8430, %v10972_v33   ;;  %v11147_v33 = vpop.permute.xlu1 %5060 }
0x1a83   : > { %13376 = vst [vmem:[#allocation50_spill] sm:$0xff] %v11147_v33 }
0x1a85   : > { %5922 = vperm.xlu0 %8515, %v11132_v57  }
0x1a8a   : > { %8441 = vset.pattern.permute.xlu2 %v10853_v56  ;;  %8432 = vset.pattern.permute.xlu1 %v10952_v28  ;;  %v11159_v27 = vpop.permute.xlu1 %5066 }
0x1a8b   : > { %13377 = vst [vmem:[#allocation51_spill] sm:$0xff] %v11159_v27  ;;  %v11216_v27 = vperm.slane %v10958_v38, 5 }
0x1a8d   : > { %6167 = vperm.xlu0 %8515, %v11142_v42  }
0x1a92   : > { %5727 = vperm.xlu2 %8441, %v11152_v19   ;;  %5538 = vperm.xlu1 %8432, %v11072_v13   ;;  %v11166_v5 = vpop.permute.xlu1 %5085 }
0x1a93   : > { %13378 = vst [vmem:[#allocation52_spill] sm:$0xff] %v11166_v5  ;;  %v11207_v5 = vpop.permute.xlu2 %8388 }
0x1a95   : > { %6412 = vperm.xlu0 %8515, %v11155_v1  }
0x1a9a   : > { %8443 = vset.pattern.permute.xlu2 %v10935_v18  ;;  %8434 = vset.pattern.permute.xlu1 %v10935_v18  ;;  %v11171_v47 = vpop.permute.xlu1 %5091 }
0x1a9b   : > { %13379 = vst [vmem:[#allocation53_spill] sm:$0xff] %v11171_v47  ;;  %v11221_v33 = vpop.permute.xlu2 %5079 }
0x1a9c   : > { %13385 = vst [vmem:[#allocation59_spill] sm:$0xff] %v11221_v33 }
0x1a9d   : > { %6777 = vperm.xlu0 %8515, %v11162_v62  }
0x1aa2   : > { %5745 = vperm.xlu2 %8443, %v11152_v19   ;;  %5550 = vperm.xlu1 %8434, %v11072_v13   ;;  %v11176_v53 = vpop.permute.xlu1 %5104 }
0x1aa3   : > { %13380 = vst [vmem:[#allocation54_spill] sm:$0xff] %v11176_v53  ;;  %v11204_v53 = vperm.slane %v10940_v4, 4 }
0x1aa5   : > { %8520 = vset.pattern.permute.xlu0 %v10952_v28 }
0x1aaa   : > { %8445 = vset.pattern.permute.xlu2 %v10952_v28  ;;  %8436 = vset.pattern.permute.xlu1 %v10905_v49  ;;  %v11181_v29 = vpop.permute.xlu1 %5122 }
0x1aab   : > { %13381 = vst [vmem:[#allocation55_spill] sm:$0xff] %v11181_v29  ;;  %v5869_v29 = vmul.f32 0.115199685, %v10946_v2 }
0x1aad   : > { %5035 = vperm.xlu0 %8520, %v10890_v45   ;;  %v5429_v45 = vmul.f32 0.09331175, %v10946_v2  ;;  %v5877_v47 = vrot.slane %v5869_v29, 3 }
0x1aaf   : > { %v5437_v0 = vrot.slane %v5429_v45, 1  ;;  %v6089_v45 = vmul.f32 0.12799965, %v10946_v2 }
0x1ab2   : > { %5758 = vperm.xlu2 %8445, %v10981_v59   ;;  %5689 = vperm.xlu1 %8436, %v11106_v10   ;;  %v11188_v13 = vpop.permute.xlu1 %5239  ;;  %v5217_v10 = vmul.f32 0.083980575, %v10946_v2 }
0x1ab3   : > { %13382 = vst [vmem:[#allocation56_spill] sm:$0xff] %v11188_v13 }
0x1ab5   : > { %5110 = vperm.xlu0 %8520, %v10961_v51   ;;  %v5649_v51 = vmul.f32 0.10367972, %v10946_v2 }
0x1aba   : > { %8447 = vset.pattern.permute.xlu2 %v10853_v56  ;;  %8438 = vset.pattern.permute.xlu1 %v10853_v56  ;;  %v11199_v32 = vpop.permute.xlu1 %5258 }
0x1abb   : > { %4744 = vrot.lane.b32.xlu1 %v10876_v54, %s13353_s21  ;;  %13383 = vst [vmem:[#allocation57_spill] sm:$0xff] %v11199_v32  ;;  %v5445_v54 = vadd.f32 %v5437_v0, %v5217_v10  ;;  %v6097_v0 = vrot.slane %v6089_v45, 4  ;;  %v6749_v45 = vmul.f32 0.17558251, %v10946_v2 }
0x1abd   : > { %5463 = vperm.xlu0 %8520, %v11036_v63   ;;  %v5657_v63 = vrot.slane %v5649_v51, 2  ;;  %v6309_v51 = vmul.f32 0.14222184, %v10946_v2 }
0x1abf   : > { %v5665_v13 = vadd.f32 %v5657_v63, %v5445_v54  ;;  %v6317_v54 = vrot.slane %v6309_v51, 5  ;;  %v6529_v63 = vmul.f32 0.15802427, %v10946_v2 }
0x1ac1   : > { %v5885_v10 = vadd.f32 %v5877_v47, %v5665_v13  ;;  %v6537_v13 = vrot.slane %v6529_v63, 6 }
0x1ac2   : > { %5897 = vperm.xlu2 %8447, %v11193_v17   ;;  %v11211_v32 = vpop.permute.xlu1 %5270 }
0x1ac3   : > { %5702 = vperm.xlu1 %8438, %v11129_v9   ;;  %13384 = vst [vmem:[#allocation58_spill] sm:$0xff] %v11211_v32  ;;  %v6105_v29 = vadd.f32 %v6097_v0, %v5885_v10  ;;  %v6757_v0 = vrot.slane %v6749_v45, 7 }
0x1ac5   : > { %5708 = vperm.xlu0 %8520, %v11129_v9   ;;  %v6325_v47 = vadd.f32 %v6317_v54, %v6105_v29 }
0x1ac7   : > { %v6545_v10 = vadd.f32 %v6537_v13, %v6325_v47 }
0x1aca   : > { %8449 = vset.pattern.permute.xlu2 %v10905_v49  ;;  %v11223_v32 = vpop.permute.xlu1 %5289 }
0x1acb   : > { %8440 = vset.pattern.permute.xlu1 %v10935_v18  ;;  %13386 = vst [vmem:[#allocation60_spill] sm:$0xff] %v11223_v32  ;;  %v6765_v32 = vadd.f32 %v6757_v0, %v6545_v10 }
0x1acd   : > { %5953 = vperm.xlu0 %8520, %v11204_v53   ;;  %v11237_v29 = vperm.slane %v6765_v32, 0 }
0x1ad2   : > { %5909 = vperm.xlu2 %8449, %v11193_v17   ;;  %v11234_v51 = vpop.permute.xlu1 %5301 }
0x1ad3   : > { %5720 = vperm.xlu1 %8440, %v11129_v9   ;;  %v11232_v9 = vpop.permute.xlu2 %5116  ;;  %13388 = vst [vmem:[#allocation62_spill] sm:$0xff] %v11234_v51 }
0x1ad4   : > { %13387 = vst [vmem:[#allocation61_spill] sm:$0xff] %v11232_v9 }
0x1ad5   : > { %6198 = vperm.xlu0 %8520, %v11216_v27  }
0x1ada   : > { %8451 = vset.pattern.permute.xlu2 %v10952_v28  ;;  %v11243_v63 = vpop.permute.xlu1 %5320 }
0x1adb   : > { %8442 = vset.pattern.permute.xlu1 %v10952_v28  ;;  %v11241_v54 = vpop.permute.xlu2 %5233  ;;  %13390 = vst [vmem:[#allocation64_spill] sm:$0xff] %v11243_v63 }
0x1adc   : > { %13389 = vst [vmem:[#allocation63_spill] sm:$0xff] %v11241_v54 }
0x1add   : > { %6563 = vperm.xlu0 %8520, %v11228_v40  }
0x1ae2   : > { %5928 = vperm.xlu2 %8451, %v11132_v57   ;;  %v11250_v13 = vpop.permute.xlu1 %5457 }
0x1ae3   : > { %5733 = vperm.xlu1 %8442, %v11152_v19   ;;  %v11248_v47 = vpop.permute.xlu2 %5251  ;;  %13392 = vst [vmem:[#allocation66_spill] sm:$0xff] %v11250_v13 }
0x1ae4   : > { %13391 = vst [vmem:[#allocation65_spill] sm:$0xff] %v11248_v47 }
0x1ae5   : > { %6808 = vperm.xlu0 %8520, %v11237_v29  }
0x1aea   : > { %8453 = vset.pattern.permute.xlu2 %v10935_v18  ;;  %v11257_v45 = vpop.permute.xlu1 %5475 }
0x1aeb   : > { %8444 = vset.pattern.permute.xlu1 %v10853_v56  ;;  %v11255_v32 = vpop.permute.xlu2 %5264  ;;  %13394 = vst [vmem:[#allocation68_spill] sm:$0xff] %v11257_v45 }
0x1aec   : > { %13393 = vst [vmem:[#allocation67_spill] sm:$0xff] %v11255_v32 }
0x1aed   : > { %8525 = vset.pattern.permute.xlu0 %v10905_v49 }
0x1af2   : > { %5940 = vperm.xlu2 %8453, %v11132_v57   ;;  %v11264_v0 = vpop.permute.xlu1 %5488 }
0x1af3   : > { %5752 = vperm.xlu1 %8444, %v10981_v59   ;;  %v11262_v10 = vpop.permute.xlu2 %5283  ;;  %13396 = vst [vmem:[#allocation70_spill] sm:$0xff] %v11264_v0 }
0x1af4   : > { %13395 = vst [vmem:[#allocation69_spill] sm:$0xff] %v11262_v10 }
0x1af5   : > { %5245 = vperm.xlu0 %8525, %v10975_v6   ;;  %v5967_v6 = vperm.slane %v10958_v38, 4 }
0x1afa   : > { %8455 = vset.pattern.permute.xlu2 %v10905_v49  ;;  %v11271_v51 = vpop.permute.xlu1 %5507 }
0x1afb   : > { %8446 = vset.pattern.permute.xlu1 %v10905_v49  ;;  %v11269_v63 = vpop.permute.xlu2 %5295  ;;  %13398 = vst [vmem:[#allocation72_spill] sm:$0xff] %v11271_v51 }
0x1afc   : > { %13397 = vst [vmem:[#allocation71_spill] sm:$0xff] %v11269_v63 }
0x1afd   : > { %5494 = vperm.xlu0 %8525, %v11047_v21  }
0x1b02   : > { %5959 = vperm.xlu2 %8455, %v11204_v53   ;;  %v11279_v0 = vpop.permute.xlu1 %5519 }
0x1b03   : > { %5764 = vperm.xlu1 %8446, %v10981_v59   ;;  %v11277_v45 = vpop.permute.xlu2 %5314  ;;  %13400 = vst [vmem:[#allocation74_spill] sm:$0xff] %v11279_v0 }
0x1b04   : > { %13399 = vst [vmem:[#allocation73_spill] sm:$0xff] %v11277_v45 }
0x1b05   : > { %5739 = vperm.xlu0 %8525, %v11152_v19  }
0x1b0a   : > { %8457 = vset.pattern.permute.xlu2 %v10853_v56  ;;  %v11284_v21 = vpop.permute.xlu1 %5538 }
0x1b0b   : > { %8448 = vset.pattern.permute.xlu1 %v10952_v28  ;;  %v11282_v59 = vpop.permute.xlu2 %5326  ;;  %13402 = vst [vmem:[#allocation76_spill] sm:$0xff] %v11284_v21 }
0x1b0c   : > { %13401 = vst [vmem:[#allocation75_spill] sm:$0xff] %v11282_v59 }
0x1b0d   : > { %5984 = vperm.xlu0 %8525, %v5967_v6  }
0x1b12   : > { %5972 = vperm.xlu2 %8457, %v5967_v6  }
0x1b13   : > { %5903 = vperm.xlu1 %8448, %v11193_v17   ;;  %v11288_v19 = vpop.permute.xlu2 %5469 }
0x1b14   : > { %13403 = vst [vmem:[#allocation77_spill] sm:$0xff] %v11288_v19  ;;  %v11290_v51 = vpop.permute.xlu1 %5550 }
0x1b15   : > { %13404 = vst [vmem:[#allocation78_spill] sm:$0xff] %v11290_v51 }
0x1b1a   : > { %8459 = vset.pattern.permute.xlu2 %v10935_v18 }
0x1b1b   : > { %8450 = vset.pattern.permute.xlu1 %v10935_v18  ;;  %v11293_v0 = vpop.permute.xlu2 %5482 }
0x1b22   : > { %5990 = vperm.xlu2 %8459, %v5967_v6  }
0x1b23   : > { %5915 = vperm.xlu1 %8450, %v11193_v17   ;;  %v11299_v59 = vpop.permute.xlu2 %5500 }
0x1b24   : > { %v11295_v13 = vpop.permute.xlu1 %5689  ;;  %13406 = vst [vmem:[#allocation80_spill] sm:$0xff] %v11299_v59 }
0x1b25   : > { %13405 = vst [vmem:[#allocation79_spill] sm:$0xff] %v11295_v13  ;;  %v6137_v13 = vperm.slane %v10946_v2, 5 }
0x1b2a   : > { %8461 = vset.pattern.permute.xlu2 %v10952_v28 }
0x1b2b   : > { %8452 = vset.pattern.permute.xlu1 %v10905_v49  ;;  %v11304_v51 = vpop.permute.xlu2 %5513 }
0x1b2c   : > { %13407 = vst [vmem:[#allocation81_spill] sm:$0xff] %v11304_v51 }
0x1b2d   : > { %v4745_v21 = vpop.permute.xlu1 %4744 }
0x1b2e   : > { %8276 = vmatmul.msk.f32.gmra.mxu2 %vm1430_vm7, %v4745_v21 }
0x1b32   : > { %6123 = vperm.xlu2 %8461, %v10988_v23  }
0x1b33   : > { %5934 = vperm.xlu1 %8452, %v11132_v57   ;;  %v11308_v17 = vpop.permute.xlu2 %5532 }
0x1b34   : > { %13408 = vst [vmem:[#allocation82_spill] sm:$0xff] %v11308_v17 }
0x1b3a   : > { %8463 = vset.pattern.permute.xlu2 %v10853_v56 }
0x1b3b   : > { %8454 = vset.pattern.permute.xlu1 %v10853_v56  ;;  %v11312_v59 = vpop.permute.xlu2 %5544 }
0x1b3c   : > { %13409 = vst [vmem:[#allocation83_spill] sm:$0xff] %v11312_v59 }
0x1b42   : > { %6142 = vperm.xlu2 %8463, %v6137_v13  }
0x1b43   : > { %5947 = vperm.xlu1 %8454, %v11204_v53   ;;  %v11316_v57 = vpop.permute.xlu2 %5683 }
0x1b44   : > { %13410 = vst [vmem:[#allocation84_spill] sm:$0xff] %v11316_v57  ;;  %v4650_v57 = vadd.f32 %v11007_v11, %v9454_v30 }
0x1b4a   : > { %8465 = vset.pattern.permute.xlu2 %v10905_v49 }
0x1b4b   : > { %8456 = vset.pattern.permute.xlu1 %v10935_v18  ;;  %v11319_v21 = vpop.permute.xlu2 %5695 }
0x1b4c   : > { %13411 = vst [vmem:[#allocation85_spill] sm:$0xff] %v11319_v21  ;;  %v11352_v21 = vperm.slane %v10887_v55, 6 }
0x1b52   : > { %6154 = vperm.xlu2 %8465, %v6137_v13  }
0x1b53   : > { %5965 = vperm.xlu1 %8456, %v11204_v53   ;;  %v11323_v17 = vpop.permute.xlu2 %5714 }
0x1b54   : > { %13412 = vst [vmem:[#allocation86_spill] sm:$0xff] %v11323_v17 }
0x1b5a   : > { %8467 = vset.pattern.permute.xlu2 %v10952_v28 }
0x1b5b   : > { %8458 = vset.pattern.permute.xlu1 %v10952_v28  ;;  %v11326_v59 = vpop.permute.xlu2 %5727 }
0x1b5c   : > { %13413 = vst [vmem:[#allocation87_spill] sm:$0xff] %v11326_v59 }
0x1b62   : > { %6173 = vperm.xlu2 %8467, %v11142_v42  }
0x1b63   : > { %5978 = vperm.xlu1 %8458, %v5967_v6   ;;  %v11330_v51 = vpop.permute.xlu2 %5745  ;;  %v4651_v6 = vadd.f32 %v10998_v46, %v9460_v36 }
0x1b64   : > { %13414 = vst [vmem:[#allocation88_spill] sm:$0xff] %v11330_v51 }
0x1b65   : > { %8960 = vtanh.f32 %v4651_v6 }
0x1b66   : > { %8962 = vtanh.f32 %v4650_v57  ;;  %v11409_v57 = vperm.slane %v10940_v4, 6  ;;  %v4659_v4 = vsub.f32 1.0, %v10859_v31 }
0x1b67   : > { %8964 = vrcp.f32 %v10384_v41 }
0x1b6a   : > { %8469 = vset.pattern.permute.xlu2 %v10935_v18 }
0x1b6b   : > { %8460 = vset.pattern.permute.xlu1 %v10853_v56  ;;  %v11334_v53 = vpop.permute.xlu2 %5758  ;;  %v8961_v59 = vpop.eup %8960 }
0x1b6c   : > { %13415 = vst [vmem:[#allocation89_spill] sm:$0xff] %v11334_v53 }
0x1b72   : > { %6185 = vperm.xlu2 %8469, %v11142_v42  }
0x1b73   : > { %6117 = vperm.xlu1 %8460, %v10988_v23   ;;  %v11338_v17 = vpop.permute.xlu2 %5897 }
0x1b74   : > { %13416 = vst [vmem:[#allocation90_spill] sm:$0xff] %v11338_v17 }
0x1b7a   : > { %8471 = vset.pattern.permute.xlu2 %v10905_v49 }
0x1b7b   : > { %8462 = vset.pattern.permute.xlu1 %v10905_v49  ;;  %v11344_v51 = vpop.permute.xlu2 %5909 }
0x1b7c   : > { %13417 = vst [vmem:[#allocation91_spill] sm:$0xff] %v11344_v51 }
0x1b82   : > { %6204 = vperm.xlu2 %8471, %v11216_v27  }
0x1b83   : > { %6129 = vperm.xlu1 %8462, %v10988_v23   ;;  %v11349_v53 = vpop.permute.xlu2 %5928 }
0x1b84   : > { %13418 = vst [vmem:[#allocation92_spill] sm:$0xff] %v11349_v53 }
0x1b8a   : > { %8478 = vset.pattern.permute.xlu2 %v10853_v56 }
0x1b8b   : > { %4669 = vrot.lane.b32.xlu2 %v8961_v59, %s13353_s21  ;;  %8464 = vset.pattern.permute.xlu1 %v10952_v28  ;;  %v11355_v36 = vpop.permute.xlu2 %5940  ;;  %v11363_v59 = vpop.f32.mrf.mxu2 }
0x1b8c   : > { %13419 = vst [vmem:[#allocation93_spill] sm:$0xff] %v11355_v36  ;;  %v4816_v36 = vsub.f32 %v11363_v59, %v10913_v61 }
0x1b93   : > { %6337 = vperm.xlu2 %8478, %v11352_v21   ;;  %6148 = vperm.xlu1 %8464, %v6137_v13   ;;  %v11359_v23 = vpop.permute.xlu2 %5959 }
0x1b94   : > { %13420 = vst [vmem:[#allocation94_spill] sm:$0xff] %v11359_v23 }
0x1b9b   : > { %8466 = vset.pattern.permute.xlu1 %v10935_v18  ;;  %8495 = vset.pattern.permute.xlu2 %v10935_v18  ;;  %v11361_v46 = vpop.permute.xlu2 %5972 }
0x1b9c   : > { %13421 = vst [vmem:[#allocation95_spill] sm:$0xff] %v11361_v46  ;;  %v11377_v46 = vpop.permute.xlu1 %5702 }
0x1b9d   : > { %13424 = vst [vmem:[#allocation98_spill] sm:$0xff] %v11377_v46  ;;  %v4784_v46 = vld [vmem:[%s13435_s3 + $0x8] sm:$0xff] }
0x1ba3   : > { %6160 = vperm.xlu1 %8466, %v6137_v13   ;;  %v11366_v55 = vpop.permute.xlu2 %5990 }
0x1ba4   : > { %13422 = vst [vmem:[#allocation96_spill] sm:$0xff] %v11366_v55  ;;  %v11383_v51 = vpop.permute.xlu1 %5720 }
0x1ba5   : > { %13426 = vst [vmem:[#allocation100_spill] sm:$0xff] %v11383_v51  ;;  %v11478_v51 = vperm.slane %v10946_v2, 7  ;;  %v4658_v2 = vsub.f32 1.0, %v10882_v7 }
0x1bab   : > { %8468 = vset.pattern.permute.xlu1 %v10905_v49  ;;  %v11375_v23 = vpop.permute.xlu2 %6123 }
0x1bac   : > { %13423 = vst [vmem:[#allocation97_spill] sm:$0xff] %v11375_v23 }
0x1bb1   : > { %v11368_v6 = vpop.f32.mrf.mxu2 }
0x1bb2   : > { %v4817_v53 = vsub.f32 %v11368_v6, %v10915_v48 }
0x1bb3   : > { %6179 = vperm.xlu1 %8468, %v11142_v42   ;;  %v11381_v55 = vpop.permute.xlu2 %6142 }
0x1bb4   : > { %v8484_v13 = vpack.i.bf16 %v4817_v53, %v4816_v36  ;;  %13425 = vst [vmem:[#allocation99_spill] sm:$0xff] %v11381_v55  ;;  %v11391_v53 = vpop.permute.xlu1 %5733  ;;  %v8963_v36 = vpop.eup %8962 }
0x1bb5   : > { %13428 = vst [vmem:[#allocation102_spill] sm:$0xff] %v11391_v53  ;;  %v4790_v53 = vld [vmem:[%s13435_s3 + $0x38] sm:$0xff] }
0x1bb6   : > { %8485 = vrot.lane.b32.xlu2 %v8484_v13, %s13359_s5 }
0x1bbb   : > { %8470 = vset.pattern.permute.xlu1 %v10853_v56  ;;  %v11389_v42 = vpop.permute.xlu2 %6154 }
0x1bbc   : > { %13427 = vst [vmem:[#allocation101_spill] sm:$0xff] %v11389_v42  ;;  %v11398_v55 = vpop.permute.xlu1 %5752 }
0x1bbd   : > { %13430 = vst [vmem:[#allocation104_spill] sm:$0xff] %v11398_v55  ;;  %v4821_v55 = vmul.f32 %v10915_v48, %v11368_v6 }
0x1bbe   : > { %6355 = vperm.xlu2 %8495, %v11352_v21  }
0x1bc3   : > { %6192 = vperm.xlu1 %8470, %v11216_v27   ;;  %v11395_v13 = vpop.permute.xlu2 %6173 }
0x1bc4   : > { %13429 = vst [vmem:[#allocation103_spill] sm:$0xff] %v11395_v13  ;;  %v11405_v11 = vpop.permute.xlu1 %5764 }
0x1bc5   : > { %13432 = vst [vmem:[#allocation106_spill] sm:$0xff] %v11405_v11 }
0x1bc6   : > { %8497 = vset.pattern.permute.xlu2 %v10952_v28 }
0x1bcb   : > { %4667 = vrot.lane.b32.xlu1 %v8963_v36, %s13353_s21  ;;  %s13454_s21 = sld [smem:[#allocation24_spill]] }
0x1bcc   : > { %8477 = vset.pattern.permute.xlu1 %v10935_v18  ;;  %v11403_v30 = vpop.permute.xlu2 %6185  ;;  %v11414_v13 = vpop.permute.xlu1 %5903 }
0x1bcd   : > { %13431 = vst [vmem:[#allocation105_spill] sm:$0xff] %v11403_v30 }
0x1bce   : > { %6368 = vperm.xlu2 %8497, %v11094_v34  }
0x1bd3   : > { %8473 = vrot.lane.b32.xlu1 %v11090_v20, %s13359_s5  ;;  %v4820_v20 = vmul.f32 %v10913_v61, %v11363_v59 }
0x1bd5   : > { %v8489_v11 = vpack.i.bf16 %v4821_v55, %v4820_v20  ;;  %v4796_v20 = vld [vmem:[%s13435_s3 + $0x68] sm:$0xff] }
0x1bd6   : > { %8499 = vset.pattern.permute.xlu2 %v10853_v56 }
0x1bdb   : > { %6210 = vperm.xlu1 %8477, %v11216_v27   ;;  %v11424_v27 = vpop.permute.xlu1 %5915 }
0x1bdc   : > { %v11412_v36 = vpop.permute.xlu2 %6204  ;;  %13434 = vst [vmem:[#allocation108_spill] sm:$0xff] %v11424_v27 }
0x1bdd   : > { %13433 = vst [vmem:[#allocation107_spill] sm:$0xff] %v11412_v36 }
0x1bde   : > { %6387 = vperm.xlu2 %8499, %v11409_v57  }
0x1be3   : > { %8494 = vset.pattern.permute.xlu1 %v10952_v28  ;;  %v11431_v61 = vpop.permute.xlu1 %5934 }
0x1be4   : > { %8490 = vrot.lane.b32.xlu1 %v8489_v11, %s13351_s11  ;;  %13436 = vst [vmem:[#allocation109_spill] sm:$0xff] %v11431_v61  ;;  %v4797_v11 = vld [vmem:[%s13435_s3 + $0x70] sm:$0xff]  ;;  %s13453_s11 = sld [smem:[#allocation23_spill]] }
0x1be5   : > { %v4670_v36 = vpop.permute.xlu2 %4669 }
0x1be6   : > { %v4679_v30 = vmul.f32 %v4670_v36, %v4659_v4  ;;  %8501 = vset.pattern.permute.xlu2 %v10905_v49  ;;  %v4795_v4 = vld [vmem:[%s13435_s3 + $0x60] sm:$0xff] }
0x1be8   : > { %v11428_v48 = vadd.f32 %v10862_v24, %v4679_v30  ;;  %v4798_v30 = vld [vmem:[%s13435_s3 + $0x78] sm:$0xff] }
0x1be9   : > { %4881 = vmatpush.msrb.mxu3 %v4798_v30 }
0x1beb   : > { %v11435_v31 = vpop.permute.xlu1 %5947  ;;  %4882 = vmatpush.msrb.mxu3 %v4797_v11  ;;  %v4791_v11 = vld [vmem:[%s13435_s3 + $0x40] sm:$0xff] }
0x1bec   : > { %6343 = vperm.xlu1 %8494, %v11352_v21   ;;  %13437 = vst [vmem:[#allocation110_spill] sm:$0xff] %v11435_v31 }
0x1bed   : > { %4883 = vmatpush.msrb.mxu3 %v4796_v20 }
0x1bee   : > { %6399 = vperm.xlu2 %8501, %v11409_v57  }
0x1bef   : > { %4884 = vmatpush.msrb.mxu3 %v4795_v4  ;;  %v4788_v4 = vld [vmem:[%s13435_s3 + $0x28] sm:$0xff] }
0x1bf3   : > { %v11439_v24 = vpop.permute.xlu1 %5965 }
0x1bf4   : > { %8496 = vset.pattern.permute.xlu1 %v10853_v56  ;;  %13438 = vst [vmem:[#allocation111_spill] sm:$0xff] %v11439_v24  ;;  %v4792_v24 = vld [vmem:[%s13435_s3 + $0x48] sm:$0xff] }
0x1bf6   : > { %8503 = vset.pattern.permute.xlu2 %v10952_v28 }
0x1bfb   : > { %v11443_v55 = vpop.permute.xlu1 %5978 }
0x1bfc   : > { %6362 = vperm.xlu1 %8496, %v11094_v34   ;;  %13439 = vst [vmem:[#allocation112_spill] sm:$0xff] %v11443_v55  ;;  %v4794_v55 = vld [vmem:[%s13435_s3 + $0x58] sm:$0xff] }
0x1bfd   : > { %4885 = vmatpush.msrb.mxu3 %v4794_v55  ;;  %v4789_v55 = vld [vmem:[%s13435_s3 + $0x30] sm:$0xff] }
0x1bfe   : > { %6418 = vperm.xlu2 %8503, %v11155_v1  }
0x1c03   : > { %v11449_v36 = vpop.permute.xlu1 %6117 }
0x1c04   : > { %8498 = vset.pattern.permute.xlu1 %v10905_v49  ;;  %13440 = vst [vmem:[#allocation113_spill] sm:$0xff] %v11449_v36 }
0x1c06   : > { %8505 = vset.pattern.permute.xlu2 %v10935_v18 }
0x1c0b   : > { %v11457_v30 = vpop.permute.xlu1 %6129 }
0x1c0c   : > { %6374 = vperm.xlu1 %8498, %v11094_v34   ;;  %v4793_v34 = vld [vmem:[%s13435_s3 + $0x50] sm:$0xff]  ;;  %13441 = vst [vmem:[#allocation114_spill] sm:$0xff] %v11457_v30 }
0x1c0d   : > { %4886 = vmatpush.msrb.mxu3 %v4793_v34  ;;  %v4787_v34 = vld [vmem:[%s13435_s3 + $0x20] sm:$0xff] }
0x1c0e   : > { %6430 = vperm.xlu2 %8505, %v11155_v1  }
0x1c0f   : > { %4887 = vmatpush.msrb.mxu3 %v4792_v24  ;;  %v4786_v24 = vld [vmem:[%s13435_s3 + $0x18] sm:$0xff] }
0x1c11   : > { %4888 = vmatpush.msrb.mxu3 %v4791_v11  ;;  %v4785_v11 = vld [vmem:[%s13435_s3 + $0x10] sm:$0xff] }
0x1c13   : > { %v11464_v20 = vpop.permute.xlu1 %6148  ;;  %4889 = vmatpush.msrb.mxu3 %v4790_v53  ;;  %v4783_v53 = vld [vmem:[%s13435_s3] sm:$0xff] }
0x1c14   : > { %8500 = vset.pattern.permute.xlu1 %v10952_v28  ;;  %13442 = vst [vmem:[#allocation115_spill] sm:$0xff] %v11464_v20  ;;  %v8396_v20 = vunpack.i.h.bf16 %v11014_v15 }
0x1c15   : > { %4890 = vmatpush.msrb.mxu3 %v4789_v55 }
0x1c16   : > { %8507 = vset.pattern.permute.xlu2 %v10905_v49 }
0x1c17   : > { %4891 = vmatpush.msrb.mxu3 %v4788_v4 }
0x1c19   : > { %4892 = vmatpush.msrb.mxu3 %v4787_v34 }
0x1c1b   : > { %v11472_v31 = vpop.permute.xlu1 %6160  ;;  %4893 = vmatpush.msrb.mxu3 %v4786_v24  ;;  %v8481_v24 = vpop.permute.xlu0 %8480 }
0x1c1c   : > { %6393 = vperm.xlu1 %8500, %v11409_v57   ;;  %13443 = vst [vmem:[#allocation116_spill] sm:$0xff] %v11472_v31 }
0x1c1d   : > { %4894 = vmatpush.msrb.mxu3 %v4785_v11  ;;  %v8390_v11 = vunpack.i.l.bf16 %v11207_v5 }
0x1c1e   : > { %6569 = vperm.xlu2 %8507, %v11228_v40  }
0x1c1f   : > { %4895 = vmatpush.msrb.mxu3 %v4784_v46 }
0x1c21   : > { %4896 = vmatpush.msrb.mxu3 %v4783_v53 }
0x1c24   : > { %8502 = vset.pattern.permute.xlu1 %v10935_v18 }
0x1c25   : > { %v11482_v55 = vpop.permute.xlu1 %6179 }
0x1c26   : > { %8509 = vset.pattern.permute.xlu2 %v10853_v56  ;;  %13444 = vst [vmem:[#allocation117_spill] sm:$0xff] %v11482_v55 }
0x1c2c   : > { %6405 = vperm.xlu1 %8502, %v11409_v57  }
0x1c2e   : > { %6582 = vperm.xlu2 %8509, %v11478_v51  }
0x1c34   : > { %8504 = vset.pattern.permute.xlu1 %v10905_v49 }
0x1c35   : > { %v11486_v4 = vpop.permute.xlu1 %6192 }
0x1c36   : > { %13445 = vst [vmem:[#allocation118_spill] sm:$0xff] %v11486_v4  ;;  %8511 = vset.pattern.permute.xlu2 %v10935_v18  ;;  %v8482_v4 = vunpack.i.l.bf16 %v8481_v24 }
0x1c3c   : > { %6424 = vperm.xlu1 %8504, %v11155_v1   ;;  %v4866_v1 = vsel %vm1101_vm0, %v11074_v39, %v8390_v11 }
0x1c3d   : > { %v4668_v34 = vpop.permute.xlu1 %4667 }
0x1c3e   : > { %v4678_v46 = vmul.f32 %v4668_v34, %v4658_v2  ;;  %6600 = vperm.xlu2 %8511, %v11478_v51   ;;  %v11499_v2 = vpop.permute.xlu2 %6337 }
0x1c3f   : > { %13446 = vst [vmem:[#allocation119_spill] sm:$0xff] %v11499_v2 }
0x1c40   : > { %v4694_v57 = vadd.f32 %v10898_v37, %v4678_v46  ;;  %v8391_v46 = vunpack.i.h.bf16 %v11207_v5 }
0x1c42   : > { %v4867_v31 = vsel %vm1101_vm0, %v11078_v60, %v8391_v46  ;;  %v7671_v5 = vrot.slane %v4694_v57, 6  ;;  %v7670_v60 = vrot.slane %v11059_v44, 7  ;;  %v7673_v46 = vrot.slane %v11428_v48, 5 }
0x1c44   : > { %8506 = vset.pattern.permute.xlu1 %v10853_v56 }
0x1c45   : > { %v8474_v53 = vpop.permute.xlu1 %8473 }
0x1c46   : > { %v8475_v55 = vunpack.i.l.bf16 %v8474_v53  ;;  %8513 = vset.pattern.permute.xlu2 %v10952_v28  ;;  %v8476_v37 = vunpack.i.h.bf16 %v8474_v53  ;;  %v8486_v11 = vpop.permute.xlu2 %8485 }
0x1c47   : > { %v8487_v53 = vunpack.i.l.bf16 %v8486_v11  ;;  %v8488_v61 = vunpack.i.h.bf16 %v8486_v11 }
0x1c48   : > { %v4870_v7 = vsel %vm1263_vm6, %v4866_v1, %v8475_v55  ;;  %v4871_v39 = vsel %vm1263_vm6, %v4867_v31, %v8476_v37  ;;  %v8483_v55 = vunpack.i.h.bf16 %v8481_v24  ;;  %v7678_v37 = vrot.slane %v11059_v44, 3 }
0x1c49   : > { %v4874_v34 = vsel %vm13447_vm13, %v4870_v7, %v8482_v4  ;;  %v8395_v4 = vunpack.i.l.bf16 %v11014_v15  ;;  %v7679_v7 = vrot.slane %v4694_v57, 2  ;;  %v7681_v57 = vrot.slane %v11428_v48, 1 }
0x1c4a   : > { %4897 = vmatmul.f32.vlgmr.msrb.gmra.mxu3 %v4874_v34  ;;  %v4875_v1 = vsel %vm13449_vm15, %v4871_v39, %v8483_v55  ;;  %v7675_v55 = vrot.slane %v11067_v14, 4  ;;  %vm6975_vm13 = vcmask 195712   ;;  %vm13682_vm15 = vmmov %vm13513_vm10 }
0x1c4b   : > { %v4868_v31 = vsel %vm1101_vm0, %v11363_v59, %v8395_v4  ;;  %v6627_v59 = vperm.slane %v10958_v38, 7  ;;  %v7680_v44 = vsel %vm7649_vm1, %v7679_v7, %v7678_v37 }
0x1c4c   : > { %6557 = vperm.xlu1 %8506, %v11228_v40   ;;  %v4872_v39 = vsel %vm1263_vm6, %v4868_v31, %v8487_v53  ;;  %v7682_v31 = vsel %vm7651_vm8, %v7681_v57, %v7680_v44 }
0x1c4d   : > { %v11506_v42 = vpop.permute.xlu1 %6210  ;;  %v7683_v48 = vsel %vm7653_vm11, %v11067_v14, %v7682_v31 }
0x1c4e   : > { %13448 = vst [vmem:[#allocation120_spill] sm:$0xff] %v11506_v42  ;;  %6613 = vperm.xlu2 %8513, %v11100_v50   ;;  %v7672_v42 = vsel %vm1348_vm2, %v7671_v5, %v7670_v60 }
0x1c4f   : > { %v7674_v4 = vsel %vm1350_vm3, %v7673_v46, %v7672_v42  ;;  %v4869_v42 = vsel %vm1101_vm0, %v11368_v6, %v8396_v20  ;;  %v8565_v20 = vld [vmem:[%s13453_s11] ss:$0 sm:$0xff] }
0x1c50   : > { %v7676_v53 = vsel %vm1352_vm4, %v7675_v55, %v7674_v4  ;;  %v4873_v15 = vsel %vm1263_vm6, %v4869_v42, %v8488_v61  ;;  %v8566_v46 = vld [vmem:[%s13454_s21] ss:$0 sm:$0xff]  ;;  %s13824_s21 = sld [smem:[#allocation27_spill]] }
0x1c51   : > { %v11534_v38 = vsel %vm4712_vm5, %v7676_v53, %v7683_v48 }
0x1c52   : > { %4900 = vmatmul.f32.gmra.mxu3 %v4875_v1  ;;  %13451 = vst [vmem:[#allocation121_spill] sm:$0xff] %v11534_v38 }
0x1c54   : > { %8508 = vset.pattern.permute.xlu1 %v10935_v18 }
0x1c56   : > { %v8491_v34 = vpop.permute.xlu1 %8490  ;;  %8516 = vset.pattern.permute.xlu2 %v10853_v56 }
0x1c57   : > { %v8492_v24 = vunpack.i.l.bf16 %v8491_v34  ;;  %v8493_v5 = vunpack.i.h.bf16 %v8491_v34 }
0x1c59   : > { %v4876_v1 = vsel %vm13450_vm9, %v4872_v39, %v8492_v24  ;;  %v4877_v7 = vsel %vm13452_vm12, %v4873_v15, %v8493_v5  ;;  %vm6979_vm9 = vcmask 261312  }
0x1c5a   : > { %4903 = vmatmul.f32.gmra.mxu3 %v4876_v1 }
0x1c5c   : > { %6575 = vperm.xlu1 %8508, %v11228_v40   ;;  %v9022_v40 = vld [vmem:[%s9416_s26 + $0x10] sm:$0xff] }
0x1c5d   : > { %v5430_v14 = vmul.f32 0.09331175, %v9022_v40  ;;  %v5650_v61 = vmul.f32 0.10367972, %v9022_v40  ;;  %v5870_v60 = vmul.f32 0.115199685, %v9022_v40 }
0x1c5e   : > { %6632 = vperm.xlu2 %8516, %v6627_v59   ;;  %v6310_v44 = vmul.f32 0.14222184, %v9022_v40  ;;  %v6530_v15 = vmul.f32 0.15802427, %v9022_v40 }
0x1c5f   : > { %v5438_v6 = vrot.slane %v5430_v14, 1  ;;  %v5658_v34 = vrot.slane %v5650_v61, 2  ;;  %v5878_v55 = vrot.slane %v5870_v60, 3 }
0x1c60   : > { %v6318_v42 = vrot.slane %v6310_v44, 5 }
0x1c62   : > { %4906 = vmatmul.f32.gmra.mxu3 %v4877_v7  ;;  %v9023_v7 = vld [vmem:[%s9416_s26 + $0x18] sm:$0xff] }
0x1c63   : > { %v5431_v14 = vmul.f32 0.09331175, %v9023_v7 }
0x1c64   : > { %8510 = vset.pattern.permute.xlu1 %v10952_v28 }
0x1c65   : > { %v5439_v61 = vrot.slane %v5431_v14, 1  ;;  %v6091_v14 = vmul.f32 0.12799965, %v9023_v7 }
0x1c66   : > { %8518 = vset.pattern.permute.xlu2 %v10905_v49 }
0x1c6c   : > { %6588 = vperm.xlu1 %8510, %v11478_v51  }
0x1c6e   : > { %6644 = vperm.xlu2 %8518, %v6627_v59  }
0x1c74   : > { %8512 = vset.pattern.permute.xlu1 %v10853_v56 }
0x1c76   : > { %8521 = vset.pattern.permute.xlu2 %v10952_v28 }
0x1c7c   : > { %6607 = vperm.xlu1 %8512, %v11100_v50  }
0x1c7e   : > { %6783 = vperm.xlu2 %8521, %v11162_v62  }
0x1c84   : > { %8514 = vset.pattern.permute.xlu1 %v10905_v49 }
0x1c86   : > { %8523 = vset.pattern.permute.xlu2 %v10935_v18 }
0x1c8c   : > { %6619 = vperm.xlu1 %8514, %v11100_v50   ;;  %v5218_v50 = vmul.f32 0.083980575, %v9022_v40 }
0x1c8e   : > { %6795 = vperm.xlu2 %8523, %v11162_v62   ;;  %v5446_v11 = vadd.f32 %v5438_v6, %v5218_v50  ;;  %v5219_v6 = vmul.f32 0.083980575, %v9023_v7 }
0x1c90   : > { %v5666_v39 = vadd.f32 %v5658_v34, %v5446_v11  ;;  %v5651_v34 = vmul.f32 0.10367972, %v9023_v7 }
0x1c94   : > { %8517 = vset.pattern.permute.xlu1 %v10952_v28 }
0x1c96   : > { %8526 = vset.pattern.permute.xlu2 %v10905_v49 }
0x1c9c   : > { %6638 = vperm.xlu1 %8517, %v6627_v59  }
0x1ca4   : > { %8519 = vset.pattern.permute.xlu1 %v10935_v18 }
0x1cac   : > { %6650 = vperm.xlu1 %8519, %v6627_v59   ;;  %v5886_v59 = vadd.f32 %v5878_v55, %v5666_v39  ;;  %v5447_v55 = vadd.f32 %v5439_v61, %v5219_v6  ;;  %v11567_v61 = vpop.permute.xlu0 %6380 }
0x1cad   : > { %13455 = vst [vmem:[#allocation122_spill] sm:$0xff] %v11567_v61 }
0x1cb4   : > { %8522 = vset.pattern.permute.xlu1 %v10905_v49 }
0x1cbc   : > { %6789 = vperm.xlu1 %8522, %v11162_v62   ;;  %v6090_v62 = vmul.f32 0.12799965, %v9022_v40 }
0x1cbe   : > { %v6098_v4 = vrot.slane %v6090_v62, 4  ;;  %v5659_v62 = vrot.slane %v5651_v34, 2 }
0x1cc0   : > { %v6106_v5 = vadd.f32 %v6098_v4, %v5886_v59 }
0x1cc2   : > { %v6326_v60 = vadd.f32 %v6318_v42, %v6106_v5  ;;  %v6099_v42 = vrot.slane %v6091_v14, 4 }
0x1cc4   : > { %8524 = vset.pattern.permute.xlu1 %v10853_v56 }
0x1ccc   : > { %6802 = vperm.xlu1 %8524, %v11237_v29  }
0x1ccd   : > { %v4898_v24 = vpop.f32.mrf.mxu3 }
0x1cce   : > { %v4899_v37 = vadd.f32 %v8565_v20, %v4898_v24  ;;  %v6538_v24 = vrot.slane %v6530_v15, 6  ;;  %v6311_v15 = vmul.f32 0.14222184, %v9023_v7 }
0x1cd0   : > { %v4910_v57 = vmax.f32 %v4899_v37, 0.0  ;;  %v6750_v37 = vmul.f32 0.17558251, %v9022_v40  ;;  %v6546_v4 = vadd.f32 %v6538_v24, %v6326_v60  ;;  %v6319_v60 = vrot.slane %v6311_v15, 5 }
0x1cd1   : > { %v6531_v24 = vmul.f32 0.15802427, %v9023_v7 }
0x1cd2   : > { %v4917_v1 = vmul.f32 %v8566_v46, %v4910_v57  ;;  %v5871_v57 = vmul.f32 0.115199685, %v9023_v7  ;;  %v6758_v44 = vrot.slane %v6750_v37, 7 }
0x1cd4   : > { %8527 = vset.pattern.permute.xlu1 %v10935_v18  ;;  %v4921_v53 = vsel %vm1101_vm0, %v4917_v1, 0.0  ;;  %v6766_v5 = vadd.f32 %v6758_v44, %v6546_v4  ;;  %v11570_v44 = vpop.permute.xlu0 %6625 }
0x1cd5   : > { %v4901_v31 = vpop.f32.mrf.mxu3  ;;  %4922 = vadd.xlane.f32.xlu2 %v4921_v53  ;;  %13456 = vst [vmem:[#allocation123_spill] sm:$0xff] %v11570_v44 }
0x1cd6   : > { %v4902_v48 = vadd.f32 %v8565_v20, %v4901_v31  ;;  %v5667_v31 = vadd.f32 %v5659_v62, %v5447_v55  ;;  %v6822_v34 = vperm.slane %v6766_v5, 0  ;;  %v6539_v62 = vrot.slane %v6531_v24, 6 }
0x1cd8   : > { %v4911_v50 = vmax.f32 %v4902_v48, 0.0  ;;  %v5879_v48 = vrot.slane %v5871_v57, 3  ;;  %v6751_v57 = vmul.f32 0.17558251, %v9023_v7 }
0x1cda   : > { %v4918_v11 = vmul.f32 %v8566_v46, %v4911_v50  ;;  %v5887_v40 = vadd.f32 %v5879_v48, %v5667_v31  ;;  %v6759_v4 = vrot.slane %v6751_v57, 7  ;;  %v11594_v48 = vpop.permute.xlu1 %6343 }
0x1cdb   : > { %13463 = vst [vmem:[#allocation129_spill] sm:$0xff] %v11594_v48 }
0x1cdc   : > { %6820 = vperm.xlu1 %8527, %v11237_v29   ;;  %v4924_v39 = vsel %vm1101_vm0, %v4918_v11, 0.0 }
0x1cdd   : > { %v4904_v1 = vpop.f32.mrf.mxu3  ;;  %4925 = vadd.xlane.f32.xlu0 %v4924_v39 }
0x1cde   : > { %v4905_v59 = vadd.f32 %v8565_v20, %v4904_v1  ;;  %v6107_v1 = vadd.f32 %v6099_v42, %v5887_v40 }
0x1ce0   : > { %v4912_v53 = vmax.f32 %v4905_v59, 0.0  ;;  %v6327_v55 = vadd.f32 %v6319_v60, %v6107_v1 }
0x1ce2   : > { %v4919_v50 = vmul.f32 %v8566_v46, %v4912_v53  ;;  %v6547_v59 = vadd.f32 %v6539_v62, %v6327_v55  ;;  %v11602_v42 = vpop.permute.xlu1 %6362 }
0x1ce3   : > { %13466 = vst [vmem:[#allocation132_spill] sm:$0xff] %v11602_v42 }
0x1ce4   : > { %8529 = vset.pattern.permute.xlu1 %v10952_v28  ;;  %v4927_v40 = vsel %vm1101_vm0, %v4919_v50, 0.0 }
0x1ce5   : > { %v4907_v11 = vpop.f32.mrf.mxu3 }
0x1ce6   : > { %v4908_v6 = vadd.f32 %v8565_v20, %v4907_v11  ;;  %v6767_v20 = vadd.f32 %v6759_v4, %v6547_v59 }
0x1ce8   : > { %v4913_v39 = vmax.f32 %v4908_v6, 0.0  ;;  %v11575_v53 = vperm.slane %v6767_v20, 0 }
0x1cea   : > { %v4920_v37 = vmul.f32 %v8566_v46, %v4913_v39  ;;  %13457 = vst [vmem:[#allocation124_spill] sm:$0xff] %v11575_v53  ;;  %v11577_v46 = vpop.permute.xlu0 %5054  ;;  %v11608_v6 = vpop.permute.xlu1 %6374 }
0x1ceb   : > { %13469 = vst [vmem:[#allocation135_spill] sm:$0xff] %v11608_v6 }
0x1cec   : > { %6833 = vperm.xlu1 %8529, %v6822_v34   ;;  %v4930_v62 = vsel %vm1101_vm0, %v4920_v37, 0.0 }
0x1ced   : > { %6814 = vperm.xlu2 %8526, %v11237_v29  }
0x1cf1   : > { %6349 = vperm.xlu0 %8525, %v11352_v21   ;;  %v13459_v21 = vmov 0  }
0x1cf2   : > { %v11581_v29 = vpop.permute.xlu0 %5308  ;;  %v11614_v1 = vpop.permute.xlu1 %6393 }
0x1cf3   : > { %13458 = vst [vmem:[#allocation125_spill] sm:$0xff] %v11581_v29 }
0x1cf4   : > { %8531 = vset.pattern.permute.xlu1 %v10853_v56  ;;  %13472 = vst [vmem:[#allocation138_spill] sm:$0xff] %v11614_v1 }
0x1cf5   : > { %8528 = vset.pattern.permute.xlu2 %v10853_v56 }
0x1cf9   : > { %6594 = vperm.xlu0 %8525, %v11478_v51   ;;  %v11591_v51 = vpop.permute.xlu2 %6355 }
0x1cfa   : > { %v11586_v7 = vpop.permute.xlu0 %5677  ;;  %13462 = vst [vmem:[#allocation128_spill] sm:$0xff] %v11591_v51  ;;  %v11621_v24 = vpop.permute.xlu1 %6405 }
0x1cfb   : > { %13460 = vst [vmem:[#allocation126_spill] sm:$0xff] %v11586_v7 }
0x1cfc   : > { %6852 = vperm.xlu1 %8531, %v11575_v53   ;;  %13475 = vst [vmem:[#allocation141_spill] sm:$0xff] %v11621_v24 }
0x1cfd   : > { %6827 = vperm.xlu2 %8528, %v6822_v34  }
0x1d01   : > { %6839 = vperm.xlu0 %8525, %v6822_v34   ;;  %v11598_v5 = vpop.permute.xlu2 %6368 }
0x1d02   : > { %v11589_v31 = vpop.permute.xlu0 %5922  ;;  %13465 = vst [vmem:[#allocation131_spill] sm:$0xff] %v11598_v5  ;;  %v11629_v59 = vpop.permute.xlu1 %6424 }
0x1d03   : > { %13461 = vst [vmem:[#allocation127_spill] sm:$0xff] %v11589_v31 }
0x1d04   : > { %8533 = vset.pattern.permute.xlu1 %v10905_v49  ;;  %13478 = vst [vmem:[#allocation144_spill] sm:$0xff] %v11629_v59 }
0x1d05   : > { %8530 = vset.pattern.permute.xlu2 %v10935_v18 }
0x1d09   : > { %8536 = vset.pattern.permute.xlu0 %v13459_v21  ;;  %v11606_v11 = vpop.permute.xlu2 %6387 }
0x1d0a   : > { %v11596_v14 = vpop.permute.xlu0 %6167  ;;  %13468 = vst [vmem:[#allocation134_spill] sm:$0xff] %v11606_v11  ;;  %v11633_v20 = vpop.permute.xlu1 %6557 }
0x1d0b   : > { %13464 = vst [vmem:[#allocation130_spill] sm:$0xff] %v11596_v14 }
0x1d0c   : > { %13480 = vst [vmem:[#allocation146_spill] sm:$0xff] %v11633_v20 }
0x1d0d   : > { %6845 = vperm.xlu2 %8530, %v6822_v34  }
0x1d11   : > { %v11612_v39 = vpop.permute.xlu2 %6399 }
0x1d12   : > { %v11604_v15 = vpop.permute.xlu0 %6412  ;;  %13471 = vst [vmem:[#allocation137_spill] sm:$0xff] %v11612_v39 }
0x1d13   : > { %13467 = vst [vmem:[#allocation133_spill] sm:$0xff] %v11604_v15 }
0x1d15   : > { %8532 = vset.pattern.permute.xlu2 %v10952_v28  ;;  %v11639_v28 = vpop.permute.xlu1 %6575 }
0x1d16   : > { %13483 = vst [vmem:[#allocation149_spill] sm:$0xff] %v11639_v28 }
0x1d19   : > { %v11618_v50 = vpop.permute.xlu2 %6418 }
0x1d1a   : > { %v11610_v34 = vpop.permute.xlu0 %6777  ;;  %13474 = vst [vmem:[#allocation140_spill] sm:$0xff] %v11618_v50 }
0x1d1b   : > { %13470 = vst [vmem:[#allocation136_spill] sm:$0xff] %v11610_v34 }
0x1d1d   : > { %6858 = vperm.xlu2 %8532, %v11575_v53  }
0x1d21   : > { %v11623_v55 = vpop.permute.xlu2 %6430 }
0x1d22   : > { %v11616_v60 = vpop.permute.xlu0 %5035  ;;  %13476 = vst [vmem:[#allocation142_spill] sm:$0xff] %v11623_v55 }
0x1d23   : > { %13473 = vst [vmem:[#allocation139_spill] sm:$0xff] %v11616_v60 }
0x1d25   : > { %8534 = vset.pattern.permute.xlu2 %v13459_v21 }
0x1d26   : > { %4928 = vadd.xlane.f32.xlu1 %v4927_v40 }
0x1d29   : > { %v11631_v4 = vpop.permute.xlu2 %6569 }
0x1d2a   : > { %v11626_v57 = vpop.permute.xlu0 %5110  ;;  %13479 = vst [vmem:[#allocation145_spill] sm:$0xff] %v11631_v4 }
0x1d2b   : > { %13477 = vst [vmem:[#allocation143_spill] sm:$0xff] %v11626_v57  ;;  %v8965_v57 = vpop.eup %8964 }
0x1d31   : > { %v11637_v49 = vpop.permute.xlu2 %6582 }
0x1d32   : > { %v11635_v40 = vpop.permute.xlu0 %5463  ;;  %13482 = vst [vmem:[#allocation148_spill] sm:$0xff] %v11637_v49 }
0x1d33   : > { %13481 = vst [vmem:[#allocation147_spill] sm:$0xff] %v11635_v40 }
0x1d39   : > { %v11643_v37 = vpop.permute.xlu2 %6600 }
0x1d3a   : > { %v11641_v56 = vpop.permute.xlu0 %5708  ;;  %13485 = vst [vmem:[#allocation151_spill] sm:$0xff] %v11643_v37 }
0x1d3b   : > { %13484 = vst [vmem:[#allocation150_spill] sm:$0xff] %v11641_v56 }
0x1d3f   : > { %6864 = vperm.xlu1 %8533, %v11575_v53  }
0x1d41   : > { %v11649_v55 = vpop.permute.xlu2 %6613 }
0x1d42   : > { %v11647_v38 = vpop.permute.xlu0 %5953  ;;  %13488 = vst [vmem:[#allocation154_spill] sm:$0xff] %v11649_v55 }
0x1d43   : > { %13487 = vst [vmem:[#allocation153_spill] sm:$0xff] %v11647_v38 }
0x1d46   : > { %4931 = vadd.xlane.f32.xlu2 %v4930_v62  ;;  %v11645_v62 = vpop.permute.xlu1 %6588 }
0x1d47   : > { %8535 = vset.pattern.permute.xlu1 %v13459_v21  ;;  %13486 = vst [vmem:[#allocation152_spill] sm:$0xff] %v11645_v62  ;;  %v1412_v62 = vperm.slane %v8965_v57, 3 }
0x1d49   : > { %v11653_v59 = vpop.permute.xlu2 %6632 }
0x1d4a   : > { %13490 = vst [vmem:[#allocation156_spill] sm:$0xff] %v11653_v59  ;;  %v11655_v50 = vpop.permute.xlu0 %6198 }
0x1d4b   : > { %13491 = vst [vmem:[#allocation157_spill] sm:$0xff] %v11655_v50 }
0x1d4e   : > { %v11651_v15 = vpop.permute.xlu1 %6607 }
0x1d4f   : > { %13489 = vst [vmem:[#allocation155_spill] sm:$0xff] %v11651_v15 }
0x1d51   : > { %v11659_v21 = vpop.permute.xlu2 %6644 }
0x1d52   : > { %13493 = vst [vmem:[#allocation159_spill] sm:$0xff] %v11659_v21  ;;  %v11663_v39 = vpop.permute.xlu0 %6563 }
0x1d53   : > { %13495 = vst [vmem:[#allocation161_spill] sm:$0xff] %v11663_v39 }
0x1d56   : > { %v11657_v44 = vpop.permute.xlu1 %6619 }
0x1d57   : > { %13492 = vst [vmem:[#allocation158_spill] sm:$0xff] %v11657_v44 }
0x1d59   : > { %v11665_v24 = vpop.permute.xlu2 %6783 }
0x1d5a   : > { %13496 = vst [vmem:[#allocation162_spill] sm:$0xff] %v11665_v24  ;;  %v11669_v53 = vpop.permute.xlu0 %6808 }
0x1d5b   : > { %13498 = vst [vmem:[#allocation164_spill] sm:$0xff] %v11669_v53 }
0x1d5e   : > { %v11661_v1 = vpop.permute.xlu1 %6638 }
0x1d5f   : > { %13494 = vst [vmem:[#allocation160_spill] sm:$0xff] %v11661_v1 }
0x1d61   : > { %v11671_v55 = vpop.permute.xlu2 %6795 }
0x1d62   : > { %13499 = vst [vmem:[#allocation165_spill] sm:$0xff] %v11671_v55  ;;  %v11675_v59 = vpop.permute.xlu0 %5245  ;;  %v1409_v55 = vperm.slane %v8965_v57, 0 }
0x1d63   : > { %13501 = vst [vmem:[#allocation167_spill] sm:$0xff] %v11675_v59 }
0x1d66   : > { %v11667_v49 = vpop.permute.xlu1 %6650 }
0x1d67   : > { %13497 = vst [vmem:[#allocation163_spill] sm:$0xff] %v11667_v49 }
0x1d69   : > { %v4923_v50 = vpop.xlane.xlu2 %4922 }
0x1d6a   : > { %v11679_v21 = vpop.permute.xlu0 %5494 }
0x1d6b   : > { %13503 = vst [vmem:[#allocation169_spill] sm:$0xff] %v11679_v21 }
0x1d6e   : > { %v11673_v38 = vpop.permute.xlu1 %6789 }
0x1d6f   : > { %13500 = vst [vmem:[#allocation166_spill] sm:$0xff] %v11673_v38  ;;  %v1411_v38 = vperm.slane %v8965_v57, 2 }
0x1d71   : > { %v11681_v1 = vpop.permute.xlu2 %6814 }
0x1d72   : > { %13504 = vst [vmem:[#allocation170_spill] sm:$0xff] %v11681_v1  ;;  %v11685_v42 = vpop.permute.xlu0 %5739 }
0x1d73   : > { %13506 = vst [vmem:[#allocation172_spill] sm:$0xff] %v11685_v42 }
0x1d76   : > { %v11677_v44 = vpop.permute.xlu1 %6802 }
0x1d77   : > { %13502 = vst [vmem:[#allocation168_spill] sm:$0xff] %v11677_v44 }
0x1d79   : > { %v11687_v49 = vpop.permute.xlu2 %6827 }
0x1d7a   : > { %13507 = vst [vmem:[#allocation173_spill] sm:$0xff] %v11687_v49  ;;  %v11691_v11 = vpop.permute.xlu0 %5984  ;;  %v11706_v49 = vadd.f32 %v11023_v43, %v4923_v50 }
0x1d7b   : > { %13509 = vst [vmem:[#allocation175_spill] sm:$0xff] %v11691_v11 }
0x1d7e   : > { %v11683_v15 = vpop.permute.xlu1 %6820 }
0x1d7f   : > { %13505 = vst [vmem:[#allocation171_spill] sm:$0xff] %v11683_v15 }
0x1d81   : > { %v11693_v53 = vpop.permute.xlu2 %6845 }
0x1d82   : > { %13510 = vst [vmem:[#allocation176_spill] sm:$0xff] %v11693_v53  ;;  %v4926_v31 = vpop.xlane.xlu0 %4925 }
0x1d83   : > { %v11700_v1 = vadd.f32 %v11023_v43, %v4926_v31 }
0x1d86   : > { %v11689_v37 = vpop.permute.xlu1 %6833 }
0x1d87   : > { %13508 = vst [vmem:[#allocation174_spill] sm:$0xff] %v11689_v37  ;;  %v4948_v37 = vperm.slane %v11700_v1, %v10248_v58 }
0x1d89   : > { %v11697_v44 = vpop.permute.xlu2 %6858 }
0x1d8a   : > { %13512 = vst [vmem:[#allocation178_spill] sm:$0xff] %v11697_v44  ;;  %v4947_v44 = vperm.slane %v11706_v49, %v10248_v58 }
0x1d8c   : > { %v4951_v31 = vsel %vm1348_vm2, %v4948_v37, %v4947_v44  ;;  %v1419_v44 = vmul.f32 %v10325_v25, %v1411_v38  ;;  %v1420_v37 = vmul.f32 %v10330_v26, %v1412_v62 }
0x1d8e   : > { %v11695_v14 = vpop.permute.xlu1 %6852  ;;  %v11740_v25 = vperm.slane %v1419_v44, 1  ;;  %v11742_v26 = vperm.slane %v1420_v37, 1  ;;  %v11754_v6 = vperm.slane %v1419_v44, 7  ;;  %v11762_v28 = vperm.slane %v1419_v44, 5 }
0x1d8f   : > { %13511 = vst [vmem:[#allocation177_spill] sm:$0xff] %v11695_v14  ;;  %v11764_v4 = vperm.slane %v1420_v37, 6  ;;  %v11768_v51 = vperm.slane %v1419_v44, 4 }
0x1d90   : > { %13517 = vst [vmem:[#allocation182_spill] sm:$0xff] %v11754_v6 }
0x1d91   : > { %13521 = vst [vmem:[#allocation186_spill] sm:$0xff] %v11762_v28 }
0x1d92   : > { %13522 = vst [vmem:[#allocation187_spill] sm:$0xff] %v11764_v4 }
0x1d93   : > { %13523 = vst [vmem:[#allocation188_spill] sm:$0xff] %v11768_v51  ;;  %v11786_v51 = vperm.slane %v1419_v44, 6 }
0x1d95   : > { %13528 = vst [vmem:[#allocation193_spill] sm:$0xff] %v11786_v51 }
0x1d99   : > { %v4929_v61 = vpop.xlane.xlu1 %4928 }
0x1d9a   : > { %v11703_v15 = vadd.f32 %v11023_v43, %v4929_v61 }
0x1d9c   : > { %v4949_v53 = vperm.slane %v11703_v15, %v10248_v58 }
0x1d9e   : > { %v4952_v50 = vsel %vm1350_vm3, %v4949_v53, %v4951_v31 }
0x1db1   : > { %v11776_v6 = vpop.permute.xlu1 %6864 }
0x1db2   : > { %13526 = vst [vmem:[#allocation191_spill] sm:$0xff] %v11776_v6 }
0x1db9   : > { %v4932_v14 = vpop.xlane.xlu2 %4931 }
0x1dba   : > { %v11715_v11 = vadd.f32 %v11023_v43, %v4932_v14  ;;  %v1410_v43 = vperm.slane %v8965_v57, 1  ;;  %v1417_v14 = vmul.f32 %v10317_v8, %v1409_v55  ;;  %v11736_v57 = vperm.slane %v1420_v37, 3 }
0x1dbb   : > { %v11748_v55 = vperm.slane %v1420_v37, 2 }
0x1dbc   : > { %v4950_v61 = vperm.slane %v11715_v11, %v10248_v58  ;;  %v1418_v53 = vmul.f32 %v10319_v3, %v1410_v43  ;;  %v5020_v31 = vperm.slane %v1417_v14, 0  ;;  %v5224_v41 = vperm.slane %v1417_v14, 1  ;;  %13514 = vst [vmem:[#allocation179_spill] sm:$0xff] %v11736_v57 }
0x1dbd   : > { %v11734_v58 = vperm.slane %v1419_v44, 2  ;;  %v11738_v8 = vperm.slane %v1417_v14, 5  ;;  %v11744_v3 = vperm.slane %v1417_v14, 2  ;;  %13515 = vst [vmem:[#allocation180_spill] sm:$0xff] %v11748_v55  ;;  %v11750_v62 = vperm.slane %v1417_v14, 3 }
0x1dbe   : > { %v4953_v42 = vsel %vm1352_vm4, %v4950_v61, %v4952_v50  ;;  %v5022_v61 = vperm.slane %v1419_v44, 0  ;;  %v11728_v50 = vperm.slane %v1420_v37, 0  ;;  %v11746_v38 = vperm.slane %v1418_v53, 2 }
0x1dbf   : > { %v4955_v18 = vsel %vm13513_vm10, %v4953_v42, -inf  ;;  %v11732_v42 = vperm.slane %v1418_v53, 1  ;;  %v11752_v43 = vperm.slane %v1418_v53, 6  ;;  %v11756_v29 = vperm.slane %v1418_v53, 3 }
0x1dc0   : > { %4956 = vmax.xlane.f32.xlu1 %v4955_v18  ;;  %v11730_v18 = vperm.slane %v1418_v53, 0  ;;  %v11758_v57 = vperm.slane %v1419_v44, 3  ;;  %v11760_v5 = vperm.slane %v1418_v53, 4  ;;  %v11766_v24 = vperm.slane %v1417_v14, 4 }
0x1dc1   : > { %13516 = vst [vmem:[#allocation181_spill] sm:$0xff] %v11752_v43  ;;  %v11770_v55 = vperm.slane %v1420_v37, 5  ;;  %v11772_v34 = vperm.slane %v1417_v14, 7  ;;  %v11774_v43 = vperm.slane %v1420_v37, 4  ;;  %v11781_v28 = vperm.slane %v1418_v53, 5 }
0x1dc2   : > { %13518 = vst [vmem:[#allocation183_spill] sm:$0xff] %v11756_v29  ;;  %v11783_v4 = vperm.slane %v1417_v14, 6  ;;  %v5347_v56 = vmul.f32 %v11248_v47, %v5224_v41  ;;  %v11790_v29 = vperm.slane %v1420_v37, 7  ;;  %v5148_v6 = vmul.f32 %v11221_v33, %v5022_v61 }
0x1dc3   : > { %13519 = vst [vmem:[#allocation184_spill] sm:$0xff] %v11758_v57  ;;  %v5344_v57 = vmul.f32 %v11241_v54, %v5224_v41  ;;  %v5147_v54 = vmul.f32 %v11027_v52, %v11730_v18  ;;  %v5142_v14 = vmul.f32 %v11124_v35, %v5020_v31  ;;  %v11801_v44 = vmul.f32 %v11232_v9, %v11728_v50  ;;  %v13533_v52 = vld [vmem:[#allocation50_spill] sm:$0xff]  ;;  %v13534_v35 = vld [vmem:[#allocation44_spill] sm:$0xff] }
0x1dc4   : > { %13520 = vst [vmem:[#allocation185_spill] sm:$0xff] %v11760_v5  ;;  %v5351_v5 = vmul.f32 %v11038_v22, %v11732_v42  ;;  %v5349_v22 = vmul.f32 %v11255_v32, %v11732_v42  ;;  %v5352_v37 = vmul.f32 %v11262_v10, %v11740_v25  ;;  %v11817_v9 = vmul.f32 %v13534_v35, %v11734_v58  ;;  %v13540_v35 = vld [vmem:[#allocation53_spill] sm:$0xff] }
0x1dc5   : > { %13524 = vst [vmem:[#allocation189_spill] sm:$0xff] %v11770_v55  ;;  %v11788_v55 = vperm.slane %v1418_v53, 7  ;;  %v5143_v53 = vmul.f32 %v11137_v16, %v5020_v31  ;;  %v13536_v16 = vld [vmem:[#allocation51_spill] sm:$0xff]  ;;  %v5150_v10 = vmul.f32 %v13540_v35, %v5022_v61 }
0x1dc6   : > { %13525 = vst [vmem:[#allocation190_spill] sm:$0xff] %v11774_v43  ;;  %v5140_v43 = vmul.f32 %v11116_v12, %v5020_v31  ;;  %v13532_v12 = vld [vmem:[#allocation42_spill] sm:$0xff]  ;;  %v11811_v51 = vadd.f32 %v5351_v5, %v5147_v54  ;;  %v13539_v54 = vld [vmem:[#allocation52_spill] sm:$0xff]  ;;  %v5141_v5 = vmul.f32 %v11616_v60, %v5020_v31 }
0x1dc7   : > { %13527 = vst [vmem:[#allocation192_spill] sm:$0xff] %v11781_v28  ;;  %v11807_v33 = vmul.f32 %v13532_v12, %v5022_v61  ;;  %v11813_v32 = vadd.f32 %v5347_v56, %v5143_v53  ;;  %v13537_v12 = vld [vmem:[#allocation46_spill] sm:$0xff]  ;;  %v5149_v56 = vmul.f32 %v13539_v54, %v5022_v61  ;;  %v11833_v53 = vadd.f32 %v5352_v37, %v5148_v6  ;;  %v13541_v28 = vld [vmem:[#allocation56_spill] sm:$0xff] }
0x1dc8   : > { %13529 = vst [vmem:[#allocation194_spill] sm:$0xff] %v11788_v55  ;;  %v5360_v47 = vadd.f32 %v5344_v57, %v5140_v43  ;;  %v11821_v55 = vmul.f32 %v13536_v16, %v11730_v18  ;;  %v5354_v57 = vmul.f32 %v11269_v63, %v11740_v25  ;;  %v5345_v16 = vmul.f32 %v13541_v28, %v5224_v41  ;;  %v13543_v54 = vld [vmem:[#allocation54_spill] sm:$0xff] }
0x1dc9   : > { %13530 = vst [vmem:[#allocation195_spill] sm:$0xff] %v11790_v29  ;;  %v5145_v29 = vmul.f32 %v13533_v52, %v11730_v18  ;;  %v11829_v52 = vmul.f32 %v13537_v12, %v11738_v8  ;;  %v11844_v31 = vmul.f32 %v13543_v54, %v11728_v50  ;;  %v11848_v6 = vmul.f32 %v11277_v45, %v11742_v26  ;;  %v13545_v61 = vld [vmem:[#allocation66_spill] sm:$0xff] }
0x1dca   : > { %13531 = vst [vmem:[#allocation196_spill] sm:$0xff] %v11801_v44  ;;  %v5346_v44 = vmul.f32 %v11675_v59, %v5224_v41  ;;  %v5568_v41 = vmul.f32 %v13545_v61, %v11744_v3  ;;  %v5361_v37 = vadd.f32 %v5345_v16, %v5141_v5  ;;  %v13546_v16 = vld [vmem:[#allocation57_spill] sm:$0xff] }
0x1dcb   : > { %13535 = vst [vmem:[#allocation197_spill] sm:$0xff] %v11817_v9  ;;  %v11825_v43 = vadd.f32 %v5349_v22, %v5145_v29  ;;  %v5569_v22 = vmul.f32 %v11635_v40, %v11744_v3  ;;  %v11861_v5 = vmul.f32 %v13546_v16, %v11732_v42 }
0x1dcc   : > { %13538 = vst [vmem:[#allocation198_spill] sm:$0xff] %v11829_v52  ;;  %v11840_v52 = vadd.f32 %v5354_v57, %v5150_v10  ;;  %v5570_v10 = vmul.f32 %v11288_v19, %v11744_v3  ;;  %v5788_v57 = vmul.f32 %v11586_v7, %v11750_v62  ;;  %v5362_v54 = vadd.f32 %v5346_v44, %v5142_v14  ;;  %v13550_v19 = vld [vmem:[#allocation79_spill] sm:$0xff]  ;;  %v13627_v7 = vld [vmem:[#allocation182_spill] sm:$0xff] }
0x1dcd   : > { %13544 = vst [vmem:[#allocation200_spill] sm:$0xff] %v11848_v6  ;;  %v5585_v45 = vadd.f32 %v5569_v22, %v5361_v37  ;;  %v6228_v44 = vmul.f32 %v11449_v36, %v11738_v8  ;;  %v6229_v22 = vmul.f32 %v11375_v23, %v11738_v8 }
0x1dce   : > { %13542 = vst [vmem:[#allocation199_spill] sm:$0xff] %v11840_v52  ;;  %v5586_v14 = vadd.f32 %v5570_v10, %v5362_v54  ;;  %v6448_v54 = vmul.f32 %v11499_v2, %v11783_v4  ;;  %v13551_v10 = vld [vmem:[#allocation62_spill] sm:$0xff] }
0x1dcf   : > { %v13602_v2 = vld [vmem:[#allocation110_spill] sm:$0xff] }
0x1e33   : > { %v4957_v9 = vpop.xlane.xlu1 %4956 }
0x1e34   : > { %v4959_v29 = vperm.slane %v4957_v9, 0  ;;  %v4960_v63 = vperm.slane %v4957_v9, 1  ;;  %v4961_v12 = vperm.slane %v4957_v9, 2  ;;  %v4962_v28 = vperm.slane %v4957_v9, 3  ;;  %v13548_v9 = vld [vmem:[#allocation84_spill] sm:$0xff] }
0x1e36   : > { %v4967_v35 = vsub.f32 %v11706_v49, %v4959_v29  ;;  %v4968_v59 = vsub.f32 %v11700_v1, %v4960_v63  ;;  %v4969_v40 = vsub.f32 %v11703_v15, %v4961_v12  ;;  %v11865_v49 = vmul.f32 %v11293_v0, %v11746_v38  ;;  %v13547_v15 = vld [vmem:[#allocation60_spill] sm:$0xff] }
0x1e37   : > { %v5584_v12 = vadd.f32 %v5568_v41, %v5360_v47  ;;  %v6008_v63 = vmul.f32 %v11338_v17, %v11766_v24  ;;  %v5353_v1 = vmul.f32 %v13547_v15, %v11740_v25  ;;  %v4970_v29 = vsub.f32 %v11715_v11, %v4962_v28  ;;  %v13549_v41 = vld [vmem:[#allocation58_spill] sm:$0xff] }
0x1e38   : > { %v4971_v60 = vmul.f32 1.442695, %v4967_v35  ;;  %v4973_v6 = vmul.f32 1.442695, %v4968_v59  ;;  %v4975_v52 = vmul.f32 1.442695, %v4969_v40  ;;  %v5789_v35 = vmul.f32 %v13548_v9, %v11750_v62 }
0x1e39   : > { %v6009_v59 = vmul.f32 %v11414_v13, %v11766_v24  ;;  %v5804_v40 = vadd.f32 %v5788_v57, %v5584_v12  ;;  %v5350_v37 = vmul.f32 %v13549_v41, %v11732_v42  ;;  %v6449_v28 = vmul.f32 %v11594_v48, %v11783_v4  ;;  %v13629_v48 = vld [vmem:[#allocation153_spill] sm:$0xff] }
0x1e3a   : > { %8966 = vpow2.f32 %v4971_v60  ;;  %v5805_v47 = vadd.f32 %v5789_v35, %v5585_v45  ;;  %v5790_v60 = vmul.f32 %v13550_v19, %v11750_v62  ;;  %v13552_v45 = vld [vmem:[#allocation68_spill] sm:$0xff]  ;;  %v6668_v35 = vmul.f32 %v11633_v20, %v11772_v34 }
0x1e3b   : > { %8968 = vpow2.f32 %v4973_v6  ;;  %v6024_v15 = vadd.f32 %v6008_v63, %v5804_v40  ;;  %v5355_v6 = vmul.f32 %v13551_v10, %v11740_v25  ;;  %v5571_v57 = vmul.f32 %v13552_v45, %v11744_v3  ;;  %v13554_v25 = vld [vmem:[#allocation85_spill] sm:$0xff]  ;;  %v11900_v3 = vpop.permute.xlu0 %6349 }
0x1e3c   : > { %8970 = vpow2.f32 %v4975_v52  ;;  %v6025_v12 = vadd.f32 %v6009_v59, %v5805_v47  ;;  %v13553_v52 = vld [vmem:[#allocation80_spill] sm:$0xff]  ;;  %v5806_v42 = vadd.f32 %v5790_v60, %v5586_v14  ;;  %v5369_v41 = vadd.f32 %v5353_v1, %v5149_v56  ;;  %13555 = vst [vmem:[#allocation57_spill] sm:$0xff] %v11900_v3  ;;  %v13556_v45 = vld [vmem:[#allocation81_spill] sm:$0xff] }
0x1e3d   : > { %v5575_v11 = vmul.f32 %v13553_v52, %v11746_v38  ;;  %v6244_v63 = vadd.f32 %v6228_v44, %v6024_v15  ;;  %v5791_v10 = vmul.f32 %v13554_v25, %v11750_v62  ;;  %v4977_v59 = vmul.f32 1.442695, %v4970_v29  ;;  %v13557_v15 = vld [vmem:[#allocation91_spill] sm:$0xff] }
0x1e3e   : > { %v6245_v19 = vadd.f32 %v6229_v22, %v6025_v12  ;;  %v5577_v52 = vmul.f32 %v13556_v45, %v11734_v58  ;;  %v6010_v14 = vmul.f32 %v13557_v15, %v11766_v24  ;;  %v6230_v60 = vmul.f32 %v11457_v30, %v11738_v8  ;;  %v13558_v12 = vld [vmem:[#allocation70_spill] sm:$0xff]  ;;  %v13595_v15 = vld [vmem:[#allocation87_spill] sm:$0xff] }
0x1e3f   : > { %v6464_v44 = vadd.f32 %v6448_v54, %v6244_v63  ;;  %v5371_v62 = vadd.f32 %v5355_v6, %v11807_v33  ;;  %v5587_v1 = vadd.f32 %v5571_v57, %v11813_v32  ;;  %v6011_v22 = vmul.f32 %v11424_v27, %v11766_v24  ;;  %v13560_v57 = vld [vmem:[#allocation183_spill] sm:$0xff]  ;;  %v13563_v27 = vld [vmem:[#allocation64_spill] sm:$0xff] }
0x1e40   : > { %v11896_v40 = vpop.eup %8966  ;;  %v6465_v29 = vadd.f32 %v6449_v28, %v6245_v19  ;;  %v5573_v54 = vmul.f32 %v13558_v12, %v11746_v38  ;;  %v6026_v63 = vadd.f32 %v6010_v14, %v5806_v42  ;;  %v6450_v8 = vmul.f32 %v11900_v3, %v11783_v4  ;;  %v13561_v28 = vld [vmem:[#allocation150_spill] sm:$0xff]  ;;  %v13584_v12 = vld [vmem:[#allocation181_spill] sm:$0xff] }
0x1e41   : > { %v11902_v47 = vpop.eup %8968  ;;  %4984 = vperm.xlu2 %8534, %v11896_v40   ;;  %v11920_v25 = vadd.f32 %v6668_v35, %v6464_v44  ;;  %v5807_v33 = vadd.f32 %v5791_v10, %v5587_v1  ;;  %v6669_v32 = vmul.f32 %v11663_v39, %v11772_v34  ;;  %v5574_v19 = vmul.f32 %v11679_v21, %v11746_v38  ;;  %v13565_v21 = vld [vmem:[#allocation197_spill] sm:$0xff] }
0x1e42   : > { %v11911_v56 = vpop.eup %8970  ;;  %4987 = vperm.xlu1 %8535, %v11902_v47   ;;  %8972 = vpow2.f32 %v4977_v59  ;;  %v5366_v24 = vadd.f32 %v5350_v37, %v11821_v55  ;;  %v5144_v6 = vmul.f32 %v11577_v46, %v11730_v18  ;;  %v5793_v42 = vmul.f32 %v13561_v28, %v13560_v57  ;;  %v13564_v37 = vld [vmem:[#allocation136_spill] sm:$0xff] }
0x1e43   : > { %13559 = vst [vmem:[#allocation84_spill] sm:$0xff] %v11920_v25  ;;  %4990 = vperm.xlu0 %8536, %v11911_v56   ;;  %v6246_v35 = vadd.f32 %v6230_v60, %v6026_v63  ;;  %v5591_v14 = vadd.f32 %v5575_v11, %v11811_v51  ;;  %v11935_v44 = vadd.f32 %v5577_v52, %v5369_v41  ;;  %v13566_v51 = vld [vmem:[#allocation128_spill] sm:$0xff]  ;;  %v13567_v52 = vld [vmem:[#allocation162_spill] sm:$0xff]  ;;  %v13568_v63 = vld [vmem:[#allocation185_spill] sm:$0xff] }
0x1e44   : > { %v6027_v10 = vadd.f32 %v6011_v22, %v5807_v33  ;;  %v11937_v1 = vadd.f32 %v6669_v32, %v6465_v29  ;;  %v5358_v38 = vmul.f32 %v13563_v27, %v11742_v26  ;;  %v5589_v59 = vadd.f32 %v5573_v54, %v11825_v43  ;;  %v13569_v33 = vld [vmem:[#allocation92_spill] sm:$0xff]  ;;  %v13570_v54 = vld [vmem:[#allocation145_spill] sm:$0xff]  ;;  %v13579_v27 = vld [vmem:[#allocation115_spill] sm:$0xff] }
0x1e45   : > { %v6466_v55 = vadd.f32 %v6450_v8, %v6246_v35  ;;  %v6888_v18 = vmul.f32 %v13564_v37, %v11920_v25  ;;  %v11945_v45 = vadd.f32 %v13565_v21, %v5371_v62  ;;  %v5590_v60 = vadd.f32 %v5574_v19, %v5366_v24  ;;  %v13571_v21 = vld [vmem:[#allocation86_spill] sm:$0xff]  ;;  %v13577_v37 = vld [vmem:[#allocation196_spill] sm:$0xff] }
0x1e46   : > { %13562 = vst [vmem:[#allocation183_spill] sm:$0xff] %v11937_v1  ;;  %v6451_v41 = vmul.f32 %v13566_v51, %v11783_v4  ;;  %v6889_v11 = vmul.f32 %v13567_v52, %v11937_v1  ;;  %v5364_v22 = vadd.f32 %v11861_v5, %v5144_v6  ;;  %v5809_v29 = vadd.f32 %v5793_v42, %v5589_v59  ;;  %v13572_v4 = vld [vmem:[#allocation109_spill] sm:$0xff]  ;;  %v13573_v24 = vld [vmem:[#allocation198_spill] sm:$0xff]  ;;  %v13575_v42 = vld [vmem:[#allocation180_spill] sm:$0xff] }
0x1e47   : > { %v6013_v43 = vmul.f32 %v13569_v33, %v13568_v63  ;;  %v6670_v8 = vmul.f32 %v13570_v54, %v11772_v34  ;;  %v5794_v62 = vmul.f32 %v13571_v21, %v13560_v57  ;;  %v6014_v19 = vmul.f32 %v13572_v4, %v13568_v63  ;;  %v13574_v5 = vld [vmem:[#allocation149_spill] sm:$0xff]  ;;  %v13576_v59 = vld [vmem:[#allocation82_spill] sm:$0xff]  ;;  %v13578_v51 = vld [vmem:[#allocation192_spill] sm:$0xff] }
0x1e48   : > { %v11956_v32 = vpop.eup %8972  ;;  %v6247_v35 = vadd.f32 %v13573_v24, %v6027_v10  ;;  %v6671_v6 = vmul.f32 %v13574_v5, %v11772_v34  ;;  %v11967_v52 = vmul.f32 %v13576_v59, %v13575_v42  ;;  %v6233_v33 = vmul.f32 %v13579_v27, %v13578_v51  ;;  %v13581_v4 = vld [vmem:[#allocation83_spill] sm:$0xff]  ;;  %v13582_v34 = vld [vmem:[#allocation101_spill] sm:$0xff]  ;;  %v13583_v59 = vld [vmem:[#allocation72_spill] sm:$0xff] }
0x1e49   : > { %6921 = vperm.xlu2 %8534, %v6888_v18   ;;  %v5374_v18 = vadd.f32 %v5358_v38, %v13577_v37  ;;  %v11972_v28 = vadd.f32 %v6670_v8, %v6466_v55  ;;  %v5582_v10 = vmul.f32 %v13581_v4, %v13575_v42  ;;  %v5810_v24 = vadd.f32 %v5794_v62, %v5590_v60  ;;  %v13585_v27 = vld [vmem:[#allocation131_spill] sm:$0xff]  ;;  %v11984_v8 = vpop.permute.xlu0 %6594  ;;  %v13587_v54 = vld [vmem:[#allocation125_spill] sm:$0xff] }
0x1e4a   : > { %6924 = vperm.xlu1 %8535, %v6889_v11   ;;  %v6234_v11 = vmul.f32 %v13582_v34, %v13578_v51  ;;  %v6467_v5 = vadd.f32 %v6451_v41, %v6247_v35  ;;  %v5576_v21 = vmul.f32 %v13583_v59, %v11734_v58  ;;  %v5588_v38 = vadd.f32 %v11865_v49, %v5364_v22  ;;  %v13588_v60 = vld [vmem:[#allocation135_spill] sm:$0xff]  ;;  %v13590_v41 = vld [vmem:[#allocation100_spill] sm:$0xff]  ;;  %v13591_v49 = vld [vmem:[#allocation194_spill] sm:$0xff] }
0x1e4b   : > { %13580 = vst [vmem:[#allocation197_spill] sm:$0xff] %v11972_v28  ;;  %4993 = vperm.xlu0 %8536, %v11956_v32   ;;  %v6029_v37 = vadd.f32 %v6013_v43, %v5809_v29  ;;  %v6453_v55 = vmul.f32 %v13585_v27, %v13584_v12  ;;  %v5356_v3 = vmul.f32 %v13587_v54, %v11742_v26  ;;  %v13592_v22 = vld [vmem:[#allocation152_spill] sm:$0xff]  ;;  %v13593_v43 = vld [vmem:[#allocation166_spill] sm:$0xff] }
0x1e4c   : > { %13586 = vst [vmem:[#allocation185_spill] sm:$0xff] %v11984_v8  ;;  %v6030_v4 = vadd.f32 %v6014_v19, %v5810_v24  ;;  %v6454_v62 = vmul.f32 %v13588_v60, %v13584_v12  ;;  %v11990_v34 = vadd.f32 %v6671_v6, %v6467_v5  ;;  %v5795_v35 = vmul.f32 %v13590_v41, %v13560_v57  ;;  %v13594_v59 = vld [vmem:[#allocation184_spill] sm:$0xff]  ;;  %v13596_v19 = vld [vmem:[#allocation165_spill] sm:$0xff]  ;;  %v13597_v6 = vld [vmem:[#allocation74_spill] sm:$0xff] }
0x1e4d   : > { %v6249_v30 = vadd.f32 %v6233_v33, %v6029_v37  ;;  %v6673_v29 = vmul.f32 %v13592_v22, %v13591_v49  ;;  %v6890_v27 = vmul.f32 %v13593_v43, %v11972_v28  ;;  %v5796_v20 = vmul.f32 %v13595_v15, %v13594_v59  ;;  %v13598_v33 = vld [vmem:[#allocation98_spill] sm:$0xff]  ;;  %v13599_v60 = vld [vmem:[#allocation93_spill] sm:$0xff] }
0x1e4e   : > { %13589 = vst [vmem:[#allocation198_spill] sm:$0xff] %v11990_v34  ;;  %v6250_v54 = vadd.f32 %v6234_v11, %v6030_v4  ;;  %v6891_v24 = vmul.f32 %v13596_v19, %v11990_v34  ;;  %v6674_v5 = vmul.f32 %v11984_v8, %v13591_v49  ;;  %v5578_v41 = vmul.f32 %v13597_v6, %v11734_v58  ;;  %v13600_v4 = vld [vmem:[#allocation88_spill] sm:$0xff]  ;;  %v13603_v58 = vld [vmem:[#allocation143_spill] sm:$0xff] }
0x1e4f   : > { %v5792_v37 = vmul.f32 %v13598_v33, %v13560_v57  ;;  %v6015_v22 = vmul.f32 %v13599_v60, %v13568_v63  ;;  %v6469_v43 = vadd.f32 %v6453_v55, %v6249_v30  ;;  %v5592_v15 = vadd.f32 %v5576_v21, %v11833_v53  ;;  %v13601_v19 = vld [vmem:[#allocation188_spill] sm:$0xff]  ;;  %v13607_v53 = vld [vmem:[#allocation122_spill] sm:$0xff] }
0x1e50   : > { %v5799_v11 = vmul.f32 %v13600_v4, %v13594_v59  ;;  %v6016_v36 = vmul.f32 %v13602_v2, %v13601_v19  ;;  %v6470_v8 = vadd.f32 %v6454_v62, %v6250_v54  ;;  %v5153_v6 = vmul.f32 %v13603_v58, %v11728_v50  ;;  %v13604_v57 = vld [vmem:[#allocation116_spill] sm:$0xff]  ;;  %v13609_v62 = vld [vmem:[#allocation199_spill] sm:$0xff] }
0x1e51   : > { %6927 = vperm.xlu2 %8534, %v6890_v27   ;;  %v5811_v39 = vadd.f32 %v5795_v35, %v5591_v14  ;;  %v6235_v17 = vmul.f32 %v13604_v57, %v13578_v51  ;;  %v12019_v60 = vadd.f32 %v6673_v29, %v6469_v43  ;;  %v13606_v27 = vld [vmem:[#allocation39_spill] sm:$0xff]  ;;  %v12022_v30 = vadd.f32 %v5582_v10, %v5374_v18  ;;  %v13612_v18 = vld [vmem:[#allocation130_spill] sm:$0xff]  ;;  %v13613_v2 = vld [vmem:[#allocation200_spill] sm:$0xff] }
0x1e52   : > { %6930 = vperm.xlu1 %8535, %v6891_v24   ;;  %v6455_v21 = vmul.f32 %v13607_v53, %v13584_v12  ;;  %v5812_v55 = vadd.f32 %v5796_v20, %v5592_v15  ;;  %v12026_v4 = vadd.f32 %v6674_v5, %v6470_v8  ;;  %v5372_v54 = vadd.f32 %v5356_v3, %v11844_v31  ;;  %v13610_v57 = vld [vmem:[#allocation127_spill] sm:$0xff]  ;;  %v13614_v20 = vld [vmem:[#allocation172_spill] sm:$0xff] }
0x1e53   : > { %13605 = vst [vmem:[#allocation180_spill] sm:$0xff] %v12019_v60  ;;  %8537 = vset.pattern.permute.xlu0 %v13606_v27  ;;  %v5594_v24 = vadd.f32 %v5578_v41, %v13609_v62  ;;  %v5808_v14 = vadd.f32 %v5792_v37, %v5588_v38  ;;  %v6031_v35 = vadd.f32 %v6015_v22, %v5811_v39  ;;  %v13611_v27 = vld [vmem:[#allocation186_spill] sm:$0xff]  ;;  %v13615_v31 = vld [vmem:[#allocation164_spill] sm:$0xff] }
0x1e54   : > { %13608 = vst [vmem:[#allocation196_spill] sm:$0xff] %v12026_v4  ;;  %v6012_v29 = vmul.f32 %v13610_v57, %v13568_v63  ;;  %v5815_v43 = vadd.f32 %v5799_v11, %v11945_v45  ;;  %v6236_v10 = vmul.f32 %v13612_v18, %v13611_v27  ;;  %v6032_v58 = vadd.f32 %v6016_v36, %v5812_v55  ;;  %v13616_v39 = vld [vmem:[#allocation76_spill] sm:$0xff]  ;;  %v13617_v63 = vld [vmem:[#allocation99_spill] sm:$0xff]  ;;  %v13618_v45 = vld [vmem:[#allocation193_spill] sm:$0xff] }
0x1e55   : > { %v5373_v53 = vadd.f32 %v13613_v2, %v5153_v6  ;;  %v5798_v15 = vmul.f32 %v13614_v20, %v13594_v59  ;;  %v6251_v8 = vadd.f32 %v6235_v17, %v6031_v35  ;;  %v6893_v3 = vmul.f32 %v13615_v31, %v12019_v60  ;;  %v13619_v22 = vld [vmem:[#allocation134_spill] sm:$0xff]  ;;  %v13621_v2 = vld [vmem:[#allocation179_spill] sm:$0xff]  ;;  %v13622_v6 = vld [vmem:[#allocation89_spill] sm:$0xff] }
0x1e56   : > { %v5581_v38 = vmul.f32 %v13616_v39, %v13575_v42  ;;  %v6232_v41 = vmul.f32 %v13617_v63, %v13578_v51  ;;  %v6456_v5 = vmul.f32 %v13619_v22, %v13618_v45  ;;  %v13620_v36 = vld [vmem:[#allocation170_spill] sm:$0xff]  ;;  %v5801_v11 = vmul.f32 %v13622_v6, %v13621_v2  ;;  %v13624_v35 = vld [vmem:[#allocation151_spill] sm:$0xff]  ;;  %v13626_v22 = vld [vmem:[#allocation132_spill] sm:$0xff] }
0x1e57   : > { %v6894_v37 = vmul.f32 %v13620_v36, %v12026_v4  ;;  %v13623_v17 = vld [vmem:[#allocation102_spill] sm:$0xff]  ;;  %v6028_v62 = vadd.f32 %v6012_v29, %v5808_v14  ;;  %v6675_v31 = vmul.f32 %v13624_v35, %v13591_v49  ;;  %v13625_v39 = vld [vmem:[#allocation111_spill] sm:$0xff]  ;;  %v6252_v20 = vadd.f32 %v6236_v10, %v6032_v58  ;;  %v13631_v35 = vld [vmem:[#allocation105_spill] sm:$0xff] }
0x1e58   : > { %v5797_v55 = vmul.f32 %v13623_v17, %v13594_v59  ;;  %v6019_v51 = vmul.f32 %v13625_v39, %v13601_v19  ;;  %v6452_v18 = vmul.f32 %v13626_v22, %v13584_v12  ;;  %v13628_v36 = vld [vmem:[#allocation155_spill] sm:$0xff]  ;;  %v5597_v6 = vadd.f32 %v5581_v38, %v5373_v53  ;;  %v13630_v17 = vld [vmem:[#allocation124_spill] sm:$0xff]  ;;  %v13634_v38 = vld [vmem:[#allocation117_spill] sm:$0xff] }
0x1e59   : > { %6936 = vperm.xlu2 %8534, %v6893_v3   ;;  %v6676_v61 = vmul.f32 %v13628_v36, %v13627_v7  ;;  %v6017_v59 = vmul.f32 %v13629_v48, %v13601_v19  ;;  %v5814_v14 = vadd.f32 %v5798_v15, %v5594_v24  ;;  %v6471_v29 = vadd.f32 %v6455_v21, %v6251_v8  ;;  %v13632_v10 = vld [vmem:[#allocation148_spill] sm:$0xff]  ;;  %v13636_v8 = vld [vmem:[#allocation141_spill] sm:$0xff] }
0x1e5a   : > { %6939 = vperm.xlu1 %8535, %v6894_v37   ;;  %v6248_v3 = vadd.f32 %v6232_v41, %v6028_v62  ;;  %v6239_v39 = vmul.f32 %v13631_v35, %v13611_v27  ;;  %v6472_v58 = vadd.f32 %v6456_v5, %v6252_v20  ;;  %v6672_v12 = vmul.f32 %v13632_v10, %v13591_v49  ;;  %v13633_v37 = vld [vmem:[#allocation94_spill] sm:$0xff]  ;;  %v13638_v20 = vld [vmem:[#allocation104_spill] sm:$0xff] }
0x1e5b   : > { %6870 = vperm.xlu0 %8537, %v13630_v17   ;;  %v5813_v23 = vadd.f32 %v5797_v55, %v11935_v44  ;;  %v6018_v53 = vmul.f32 %v13633_v37, %v13601_v19  ;;  %v6238_v48 = vmul.f32 %v13634_v38, %v13611_v27  ;;  %v12072_v24 = vadd.f32 %v6675_v31, %v6471_v29  ;;  %v13639_v44 = vld [vmem:[#allocation137_spill] sm:$0xff]  ;;  %v13640_v19 = vld [vmem:[#allocation171_spill] sm:$0xff] }
0x1e5c   : > { %v6035_v21 = vadd.f32 %v6019_v51, %v5815_v43  ;;  %v6468_v15 = vadd.f32 %v6452_v18, %v6248_v3  ;;  %v6459_v41 = vmul.f32 %v13636_v8, %v13618_v45  ;;  %v12076_v17 = vadd.f32 %v6676_v61, %v6472_v58  ;;  %v13641_v31 = vld [vmem:[#allocation103_spill] sm:$0xff]  ;;  %v13643_v51 = vld [vmem:[#allocation173_spill] sm:$0xff]  ;;  %v13644_v3 = vld [vmem:[#allocation106_spill] sm:$0xff] }
0x1e5d   : > { %13635 = vst [vmem:[#allocation192_spill] sm:$0xff] %v12072_v24  ;;  %v5800_v49 = vmul.f32 %v13638_v20, %v13621_v2  ;;  %v6034_v5 = vadd.f32 %v6018_v53, %v5814_v14  ;;  %v6458_v55 = vmul.f32 %v13639_v44, %v13618_v45  ;;  %v6895_v62 = vmul.f32 %v13640_v19, %v12072_v24  ;;  %v13645_v8 = vld [vmem:[#allocation190_spill] sm:$0xff]  ;;  %v13646_v14 = vld [vmem:[#allocation112_spill] sm:$0xff] }
0x1e5e   : > { %13637 = vst [vmem:[#allocation181_spill] sm:$0xff] %v12076_v17  ;;  %v6237_v29 = vmul.f32 %v13641_v31, %v13611_v27  ;;  %v6255_v43 = vadd.f32 %v6239_v39, %v6035_v21  ;;  %v12086_v18 = vadd.f32 %v6672_v12, %v6468_v15  ;;  %v6896_v61 = vmul.f32 %v13643_v51, %v12076_v17  ;;  %v13647_v20 = vld [vmem:[#allocation158_spill] sm:$0xff]  ;;  %v13649_v21 = vld [vmem:[#allocation168_spill] sm:$0xff] }
0x1e5f   : > { %v5802_v58 = vmul.f32 %v13644_v3, %v13621_v2  ;;  %v6021_v53 = vmul.f32 %v13646_v14, %v13645_v8  ;;  %v6254_v35 = vadd.f32 %v6238_v48, %v6034_v5  ;;  %v6678_v44 = vmul.f32 %v13647_v20, %v13627_v7  ;;  %v13648_v27 = vld [vmem:[#allocation138_spill] sm:$0xff]  ;;  %v13650_v3 = vld [vmem:[#allocation95_spill] sm:$0xff] }
0x1e60   : > { %13642 = vst [vmem:[#allocation194_spill] sm:$0xff] %v12086_v18  ;;  %v6033_v19 = vadd.f32 %v6017_v59, %v5813_v23  ;;  %v6457_v39 = vmul.f32 %v13648_v27, %v13618_v45  ;;  %v6475_v12 = vadd.f32 %v6459_v41, %v6255_v43  ;;  %v6892_v15 = vmul.f32 %v13649_v21, %v12086_v18  ;;  %v13653_v59 = vld [vmem:[#allocation175_spill] sm:$0xff]  ;;  %v13654_v43 = vld [vmem:[#allocation154_spill] sm:$0xff] }
0x1e61   : > { %6942 = vperm.xlu2 %8534, %v6895_v62   ;;  %v5596_v51 = vadd.f32 %v11967_v52, %v5372_v54  ;;  %v6020_v38 = vmul.f32 %v13650_v3, %v13645_v8  ;;  %v5817_v14 = vadd.f32 %v5801_v11, %v5597_v6  ;;  %v6474_v48 = vadd.f32 %v6458_v55, %v6254_v35  ;;  %v13652_v62 = vld [vmem:[#allocation123_spill] sm:$0xff]  ;;  %v13657_v35 = vld [vmem:[#allocation189_spill] sm:$0xff] }
0x1e62   : > { %6945 = vperm.xlu1 %8535, %v6896_v61   ;;  %v13651_v5 = vmov 0   ;;  %v6679_v23 = vmul.f32 %v13652_v62, %v13627_v7  ;;  %v6022_v45 = vmul.f32 %v13653_v59, %v13645_v8  ;;  %v6253_v41 = vadd.f32 %v6237_v29, %v6033_v19  ;;  %v12110_v61 = vpop.permute.xlu0 %6839  ;;  %v13658_v55 = vld [vmem:[#allocation107_spill] sm:$0xff]  ;;  %v13659_v62 = vld [vmem:[#allocation118_spill] sm:$0xff] }
0x1e63   : > { %8538 = vset.pattern.permute.xlu0 %v13651_v5  ;;  %v6677_v21 = vmul.f32 %v13654_v43, %v13627_v7  ;;  %13655 = vst [vmem:[#allocation184_spill] sm:$0xff] %v12110_v61  ;;  %v5816_v52 = vadd.f32 %v5800_v49, %v5596_v51  ;;  %v5818_v54 = vadd.f32 %v5802_v58, %v12022_v30  ;;  %v13661_v7 = vld [vmem:[#allocation157_spill] sm:$0xff]  ;;  %v13663_v49 = vld [vmem:[#allocation140_spill] sm:$0xff] }
0x1e64   : > { %6933 = vperm.xlu0 %8538, %v6892_v15   ;;  %v6037_v6 = vadd.f32 %v6021_v53, %v5817_v14  ;;  %v12113_v11 = vadd.f32 %v6678_v44, %v6474_v48  ;;  %v6242_v5 = vmul.f32 %v13658_v55, %v13657_v35  ;;  %v6240_v3 = vmul.f32 %v13659_v62, %v13657_v35  ;;  %v13662_v15 = vld [vmem:[#allocation187_spill] sm:$0xff]  ;;  %v13665_v14 = vld [vmem:[#allocation144_spill] sm:$0xff] }
0x1e65   : > { %v6473_v59 = vadd.f32 %v6457_v39, %v6253_v41  ;;  %v12119_v19 = vadd.f32 %v6679_v23, %v6475_v12  ;;  %v6241_v29 = vmul.f32 %v13661_v7, %v13657_v35  ;;  %v6036_v20 = vadd.f32 %v6020_v38, %v5816_v52  ;;  %v13666_v39 = vld [vmem:[#allocation176_spill] sm:$0xff]  ;;  %v13667_v23 = vld [vmem:[#allocation195_spill] sm:$0xff] }
0x1e66   : > { %13656 = vst [vmem:[#allocation98_spill] sm:$0xff] %v12113_v11  ;;  %v6461_v51 = vmul.f32 %v13663_v49, %v13662_v15  ;;  %v6898_v30 = vmul.f32 %v12110_v61, %v12113_v11  ;;  %v6038_v44 = vadd.f32 %v6022_v45, %v5818_v54  ;;  %v6462_v53 = vmul.f32 %v13665_v14, %v13662_v15  ;;  %v13668_v41 = vld [vmem:[#allocation160_spill] sm:$0xff]  ;;  %v13669_v49 = vld [vmem:[#allocation159_spill] sm:$0xff]  ;;  %v13670_v45 = vld [vmem:[#allocation174_spill] sm:$0xff] }
0x1e67   : > { %13660 = vst [vmem:[#allocation188_spill] sm:$0xff] %v12119_v19  ;;  %v12127_v58 = vadd.f32 %v6677_v21, %v6473_v59  ;;  %v6899_v12 = vmul.f32 %v13666_v39, %v12119_v19  ;;  %v6257_v48 = vadd.f32 %v6241_v29, %v6037_v6  ;;  %v6681_v7 = vmul.f32 %v13668_v41, %v13667_v23  ;;  %v13671_v54 = vld [vmem:[#allocation133_spill] sm:$0xff]  ;;  %v13672_v6 = vld [vmem:[#allocation156_spill] sm:$0xff] }
0x1e68   : > { %v6258_v38 = vadd.f32 %v6242_v5, %v6038_v44  ;;  %v6256_v52 = vadd.f32 %v6240_v3, %v6036_v20  ;;  %v6682_v62 = vmul.f32 %v13669_v49, %v13667_v23  ;;  %v6460_v61 = vmul.f32 %v13671_v54, %v13662_v15  ;;  %v13675_v3 = vld [vmem:[#allocation178_spill] sm:$0xff] }
0x1e69   : > { %13664 = vst [vmem:[#allocation199_spill] sm:$0xff] %v12127_v58  ;;  %6951 = vperm.xlu2 %8534, %v6898_v30   ;;  %v6897_v21 = vmul.f32 %v13670_v45, %v12127_v58  ;;  %v6477_v59 = vadd.f32 %v6461_v51, %v6257_v48  ;;  %v6680_v29 = vmul.f32 %v13672_v6, %v13667_v23  ;;  %v13677_v51 = vld [vmem:[#allocation191_spill] sm:$0xff] }
0x1e6a   : > { %6954 = vperm.xlu1 %8535, %v6899_v12   ;;  %v6478_v14 = vadd.f32 %v6462_v53, %v6258_v38  ;;  %v6476_v5 = vadd.f32 %v6460_v61, %v6256_v52  ;;  %v13678_v53 = vld [vmem:[#allocation177_spill] sm:$0xff] }
0x1e6b   : > { %v12143_v39 = vadd.f32 %v6681_v7, %v6477_v59 }
0x1e6c   : > { %6948 = vperm.xlu0 %8538, %v6897_v21   ;;  %v12145_v20 = vadd.f32 %v6682_v62, %v6478_v14  ;;  %v12149_v44 = vadd.f32 %v6680_v29, %v6476_v5  ;;  %v13679_v21 = vld [vmem:[#allocation36_spill] sm:$0xff] }
0x1e6d   : > { %13673 = vst [vmem:[#allocation127_spill] sm:$0xff] %v12143_v39  ;;  %v6901_v30 = vmul.f32 %v13675_v3, %v12143_v39  ;;  %v12173_v5 = vadd.s32 4294967280, %v13679_v21 }
0x1e6e   : > { %13674 = vst [vmem:[#allocation186_spill] sm:$0xff] %v12145_v20  ;;  %v6902_v12 = vmul.f32 %v13677_v51, %v12145_v20  ;;  %v6900_v48 = vmul.f32 %v13678_v53, %v12149_v44 }
0x1e6f   : > { %13676 = vst [vmem:[#allocation200_spill] sm:$0xff] %v12149_v44 }
0x1e70   : > { %13680 = vst [vmem:[#allocation99_spill] sm:$0xff] %v12173_v5 }
0x1e71   : > { %6960 = vperm.xlu2 %8534, %v6901_v30  }
0x1e72   : > { %6963 = vperm.xlu1 %8535, %v6902_v12   ;;  %v12177_v12 = vadd.s32 4294967288, %v13679_v21 }
0x1e74   : > { %6957 = vperm.xlu0 %8538, %v6900_v48   ;;  %13681 = vst [vmem:[#allocation193_spill] sm:$0xff] %v12177_v12 }
0x1e79   : > { %7573 = vperm.xlu2 %8534, %v11937_v1  }
0x1e7a   : > { %7582 = vperm.xlu1 %8535, %v12086_v18  }
0x1e7c   : > { %7570 = vperm.xlu0 %8538, %v11920_v25  }
0x1e81   : > { %7594 = vperm.xlu2 %8534, %v12076_v17  }
0x1e82   : > { %7576 = vperm.xlu1 %8535, %v11972_v28  }
0x1e84   : > { %7585 = vperm.xlu0 %8538, %v12019_v60   ;;  %v13697_v60 = vld [vmem:[#allocation139_spill] sm:$0xff] }
0x1e89   : > { %7579 = vperm.xlu2 %8534, %v11990_v34  }
0x1e8a   : > { %7597 = vperm.xlu1 %8535, %v12127_v58  }
0x1e8c   : > { %7588 = vperm.xlu0 %8538, %v12026_v4  }
0x1e91   : > { %7606 = vperm.xlu2 %8534, %v12149_v44  }
0x1e92   : > { %7591 = vperm.xlu1 %8535, %v12072_v24  }
0x1e94   : > { %7600 = vperm.xlu0 %8538, %v12113_v11  }
0x1e9a   : > { %7609 = vperm.xlu1 %8535, %v12143_v39  }
0x1e9b   : > { %v4985_v62 = vpop.permute.xlu2 %4984 }
0x1e9c   : > { %7612 = vperm.xlu0 %8538, %v12145_v20   ;;  %v4995_v29 = vperm.slane %v4985_v62, %v13679_v21 }
0x1ea2   : > { %7603 = vperm.xlu1 %8535, %v12119_v19  }
0x1ea3   : > { %v6922_v61 = vpop.permute.xlu2 %6921 }
0x1ea4   : > { %v6968_v53 = vperm.slane %v6922_v61, %v13679_v21  ;;  %v12190_v61 = vadd.s32 4294967272, %v13679_v21 }
0x1ea6   : > { %13683 = vst [vmem:[#allocation179_spill] sm:$0xff] %v12190_v61 }
0x1eab   : > { %v6928_v7 = vpop.permute.xlu2 %6927 }
0x1eac   : > { %v6974_v62 = vperm.slane %v6928_v7, %v12173_v5 }
0x1eb3   : > { %v6937_v52 = vpop.permute.xlu2 %6936 }
0x1eb4   : > { %v4988_v14 = vpop.permute.xlu1 %4987 }
0x1eb5   : > { %v4991_v38 = vpop.permute.xlu0 %4990  ;;  %v4996_v59 = vperm.slane %v4988_v14, %v13679_v21 }
0x1eb6   : > { %v4997_v30 = vperm.slane %v4991_v38, %v13679_v21 }
0x1eb7   : > { %v4999_v48 = vsel %vm1348_vm2, %v4996_v59, %v4995_v29 }
0x1eb8   : > { %v5000_v38 = vsel %vm1350_vm3, %v4997_v30, %v4999_v48 }
0x1ebb   : > { %v6943_v29 = vpop.permute.xlu2 %6942 }
0x1ebc   : > { %v6925_v51 = vpop.permute.xlu1 %6924 }
0x1ebd   : > { %v4994_v3 = vpop.permute.xlu0 %4993  ;;  %v6970_v45 = vperm.slane %v6925_v51, %v12177_v12 }
0x1ebe   : > { %v4998_v14 = vperm.slane %v4994_v3, %v13679_v21 }
0x1ebf   : > { %v6972_v44 = vsel %vm6971_vm14, %v6970_v45, %v6968_v53 }
0x1ec0   : > { %v5001_v20 = vsel %vm1352_vm4, %v4998_v14, %v5000_v38  ;;  %v6976_v59 = vsel %vm6975_vm13, %v6974_v62, %v6972_v44  ;;  %v6982_v62 = vperm.slane %v6937_v52, %v12177_v12 }
0x1ec1   : > { %v5003_v19 = vsel %vm13682_vm15, %v5001_v20, 0.0 }
0x1ec2   : > { %5004 = vadd.xlane.f32.xlu2 %v5003_v19 }
0x1ec3   : > { %v6952_v45 = vpop.permute.xlu2 %6951 }
0x1ec4   : > { %v6931_v51 = vpop.permute.xlu1 %6930  ;;  %v6991_v4 = vperm.slane %v6952_v45, %v12173_v5 }
0x1ec5   : > { %v6978_v7 = vperm.slane %v6931_v51, %v12190_v61 }
0x1ec7   : > { %v6980_v3 = vsel %vm6979_vm9, %v6978_v7, %v6976_v59 }
0x1ecb   : > { %v6961_v14 = vpop.permute.xlu2 %6960 }
0x1ecc   : > { %v6940_v53 = vpop.permute.xlu1 %6939 }
0x1ecd   : > { %v12194_v30 = vpop.permute.xlu0 %6870  ;;  %v6984_v20 = vperm.slane %v6940_v53, %v12173_v5  ;;  %v6996_v53 = vperm.slane %v6961_v14, %v12177_v12 }
0x1ece   : > { %13684 = vst [vmem:[#allocation132_spill] sm:$0xff] %v12194_v30  ;;  %v13711_v30 = vld [vmem:[#allocation119_spill] sm:$0xff] }
0x1ed3   : > { %v7574_v7 = vpop.permute.xlu2 %7573 }
0x1ed4   : > { %v6946_v48 = vpop.permute.xlu1 %6945  ;;  %v7618_v18 = vperm.slane %v7574_v7, %v12177_v12 }
0x1ed5   : > { %v6988_v59 = vperm.slane %v6946_v48, %v13679_v21 }
0x1ed6   : > { %v6934_v44 = vpop.permute.xlu0 %6933 }
0x1ed7   : > { %v6981_v19 = vperm.slane %v6934_v44, %v13679_v21 }
0x1ed9   : > { %v6983_v38 = vsel %vm6971_vm14, %v6982_v62, %v6981_v19 }
0x1eda   : > { %v6985_v39 = vsel %vm6975_vm13, %v6984_v20, %v6983_v38 }
0x1edb   : > { %v7595_v19 = vpop.permute.xlu2 %7594 }
0x1edc   : > { %v6955_v51 = vpop.permute.xlu1 %6954 }
0x1ede   : > { %v6949_v58 = vpop.permute.xlu0 %6948 }
0x1edf   : > { %v6989_v11 = vperm.slane %v6949_v58, %v12177_v12 }
0x1ee1   : > { %v6990_v24 = vsel %vm6971_vm14, %v6989_v11, %v6988_v59 }
0x1ee2   : > { %v6992_v52 = vsel %vm6975_vm13, %v6991_v4, %v6990_v24 }
0x1ee3   : > { %v7580_v11 = vpop.permute.xlu2 %7579 }
0x1ee4   : > { %v6964_v44 = vpop.permute.xlu1 %6963  ;;  %v7622_v24 = vperm.slane %v7580_v11, %v12190_v61  ;;  %v6993_v11 = vperm.slane %v6955_v51, %v12190_v61 }
0x1ee6   : > { %v6958_v34 = vpop.permute.xlu0 %6957 }
0x1ee7   : > { %v6995_v62 = vperm.slane %v6958_v34, %v13679_v21  ;;  %v6986_v34 = vperm.slane %v6943_v29, %v12190_v61  ;;  %v6994_v29 = vsel %vm6979_vm9, %v6993_v11, %v6992_v52 }
0x1ee9   : > { %v6997_v20 = vsel %vm6971_vm14, %v6996_v53, %v6995_v62 }
0x1eec   : > { %v7583_v38 = vpop.permute.xlu1 %7582 }
0x1eed   : > { %v7624_v1 = vperm.slane %v7583_v38, %v13679_v21 }
0x1eee   : > { %v7571_v48 = vpop.permute.xlu0 %7570 }
0x1eef   : > { %v7617_v58 = vperm.slane %v7571_v48, %v13679_v21 }
0x1ef1   : > { %v7619_v45 = vsel %vm6971_vm14, %v7618_v18, %v7617_v58  ;;  %v6987_v18 = vsel %vm6979_vm9, %v6986_v34, %v6985_v39 }
0x1ef2   : > { %v7002_v58 = vsel %vm1348_vm2, %v6987_v18, %v6980_v3 }
0x1ef4   : > { %v7577_v59 = vpop.permute.xlu1 %7576 }
0x1ef5   : > { %v7620_v4 = vperm.slane %v7577_v59, %v12173_v5 }
0x1ef6   : > { %v7586_v14 = vpop.permute.xlu0 %7585 }
0x1ef7   : > { %v7621_v53 = vsel %vm6975_vm13, %v7620_v4, %v7619_v45  ;;  %v7625_v62 = vperm.slane %v7586_v14, %v12177_v12  ;;  %v12226_v45 = vsel %vm1350_vm3, %v6994_v29, %v7002_v58 }
0x1ef8   : > { %v7623_v7 = vsel %vm6979_vm9, %v7622_v24, %v7621_v53  ;;  %13685 = vst [vmem:[#allocation182_spill] sm:$0xff] %v12226_v45 }
0x1ef9   : > { %v7626_v48 = vsel %vm6971_vm14, %v7625_v62, %v7624_v1  ;;  %v6998_v1 = vperm.slane %v6964_v44, %v12173_v5  ;;  %v7631_v44 = vperm.slane %v7595_v19, %v13679_v21  ;;  %v13691_v19 = vld [vmem:[#allocation75_spill] sm:$0xff] }
0x1efb   : > { %v12235_v52 = vsel %vm6975_vm13, %v6998_v1, %v6997_v20 }
0x1efc   : > { %v7598_v59 = vpop.permute.xlu1 %7597  ;;  %13686 = vst [vmem:[#allocation155_spill] sm:$0xff] %v12235_v52 }
0x1efd   : > { %v7632_v53 = vperm.slane %v7598_v59, %v12177_v12  ;;  %v12252_v59 = vpop.permute.xlu2 %7606  ;;  %v13705_v12 = vld [vmem:[#allocation126_spill] sm:$0xff] }
0x1efe   : > { %v7589_v28 = vpop.permute.xlu0 %7588  ;;  %13690 = vst [vmem:[#allocation103_spill] sm:$0xff] %v12252_v59 }
0x1eff   : > { %v7627_v38 = vperm.slane %v7589_v28, %v12173_v5 }
0x1f01   : > { %v7628_v39 = vsel %vm6975_vm13, %v7627_v38, %v7626_v48  ;;  %v7633_v48 = vsel %vm6971_vm14, %v7632_v53, %v7631_v44 }
0x1f04   : > { %v7592_v4 = vpop.permute.xlu1 %7591 }
0x1f05   : > { %v7629_v24 = vperm.slane %v7592_v4, %v12190_v61  ;;  %v5359_v4 = vmul.f32 %v13691_v19, %v11742_v26 }
0x1f06   : > { %v7601_v34 = vpop.permute.xlu0 %7600 }
0x1f07   : > { %v7630_v3 = vsel %vm6979_vm9, %v7629_v24, %v7628_v39  ;;  %v7634_v62 = vperm.slane %v7601_v34, %v12173_v5  ;;  %v13692_v24 = vld [vmem:[#allocation55_spill] sm:$0xff]  ;;  %v13693_v39 = vld [vmem:[#allocation78_spill] sm:$0xff] }
0x1f08   : > { %v7645_v14 = vsel %vm1348_vm2, %v7630_v3, %v7623_v7  ;;  %v7650_v51 = vsel %vm7649_vm1, %v7630_v3, %v7623_v7  ;;  %v5155_v1 = vmul.f32 %v13692_v24, %v11728_v50  ;;  %v5583_v3 = vmul.f32 %v13693_v39, %v13575_v42  ;;  %v13704_v5 = vld [vmem:[#allocation66_spill] sm:$0xff] }
0x1f09   : > { %v7635_v11 = vsel %vm6975_vm13, %v7634_v62, %v7633_v48  ;;  %v13695_v48 = vld [vmem:[#allocation96_spill] sm:$0xff] }
0x1f0a   : > { %v5375_v34 = vadd.f32 %v5359_v4, %v5155_v1 }
0x1f0c   : > { %v12237_v28 = vpop.permute.xlu1 %7609 }
0x1f0d   : > { %13687 = vst [vmem:[#allocation124_spill] sm:$0xff] %v12237_v28 }
0x1f14   : > { %v7604_v18 = vpop.permute.xlu1 %7603 }
0x1f15   : > { %v7636_v58 = vperm.slane %v7604_v18, %v12190_v61 }
0x1f17   : > { %v7637_v7 = vsel %vm6979_vm9, %v7636_v58, %v7635_v11  ;;  %v6023_v58 = vmul.f32 %v13695_v48, %v13645_v8 }
0x1f18   : > { %v12247_v20 = vsel %vm1350_vm3, %v7637_v7, %v7645_v14  ;;  %v12250_v29 = vsel %vm7651_vm8, %v7637_v7, %v7650_v51  ;;  %v5599_v14 = vadd.f32 %v5583_v3, %v5375_v34  ;;  %v13694_v51 = vld [vmem:[#allocation45_spill] sm:$0xff] }
0x1f19   : > { %13688 = vst [vmem:[#allocation148_spill] sm:$0xff] %v12247_v20  ;;  %v5803_v18 = vmul.f32 %v13694_v51, %v13621_v2  ;;  %v13696_v2 = vld [vmem:[#allocation120_spill] sm:$0xff] }
0x1f1a   : > { %13689 = vst [vmem:[#allocation94_spill] sm:$0xff] %v12250_v29  ;;  %v12276_v3 = vmul.f32 %v13696_v2, %v13657_v35 }
0x1f35   : > { %v5005_v38 = vpop.xlane.xlu2 %5004 }
0x1f36   : > { %8974 = vrcp.f32 %v5005_v38  ;;  %v5819_v38 = vadd.f32 %v5803_v18, %v5599_v14 }
0x1f38   : > { %v12272_v1 = vadd.f32 %v6023_v58, %v5819_v38 }
0x1f3c   : > { %v8975_v53 = vpop.eup %8974 }
0x1f3d   : > { %v5008_v62 = vperm.slane %v8975_v53, 0  ;;  %v5009_v44 = vperm.slane %v8975_v53, 1  ;;  %v5010_v11 = vperm.slane %v8975_v53, 2  ;;  %v5011_v26 = vperm.slane %v8975_v53, 3 }
0x1f3f   : > { %v5017_v7 = vmul.f32 %v11902_v47, %v5009_v44  ;;  %v5016_v50 = vmul.f32 %v11896_v40, %v5008_v62  ;;  %v12279_v8 = vmul.f32 %v11911_v56, %v5010_v11  ;;  %v12284_v47 = vmul.f32 %v11956_v32, %v5011_v26 }
0x1f41   : > { %v12266_v17 = vperm.slane %v5017_v7, 0  ;;  %v12268_v42 = vperm.slane %v5017_v7, 1  ;;  %v12270_v4 = vperm.slane %v5017_v7, 2  ;;  %v12281_v34 = vperm.slane %v5017_v7, 3 }
0x1f42   : > { %v12290_v14 = vperm.slane %v5017_v7, 4  ;;  %v12294_v62 = vperm.slane %v5017_v7, 5  ;;  %v12296_v56 = vperm.slane %v5017_v7, 6  ;;  %v12298_v44 = vperm.slane %v5017_v7, 7 }
0x1f43   : > { %v5180_v40 = vmul.f32 %v12266_v17, %v11577_v46  ;;  %v5384_v53 = vmul.f32 %v12268_v42, %v13546_v16  ;;  %v5608_v35 = vmul.f32 %v12270_v4, %v11293_v0  ;;  %v12300_v32 = vperm.slane %v5016_v50, 0 }
0x1f44   : > { %v12302_v58 = vperm.slane %v5016_v50, 1  ;;  %v12304_v46 = vperm.slane %v5016_v50, 2  ;;  %v5828_v16 = vmul.f32 %v12281_v34, %v13598_v33  ;;  %v12308_v11 = vperm.slane %v5016_v50, 3 }
0x1f45   : > { %v5400_v18 = vadd.f32 %v5384_v53, %v5180_v40  ;;  %v12310_v26 = vperm.slane %v5016_v50, 4  ;;  %v12312_v0 = vperm.slane %v5016_v50, 5  ;;  %v5177_v7 = vmul.f32 %v12300_v32, %v13697_v60  ;;  %v13698_v40 = vld [vmem:[#allocation56_spill] sm:$0xff]  ;;  %v13699_v60 = vld [vmem:[#allocation147_spill] sm:$0xff] }
0x1f46   : > { %v5381_v53 = vmul.f32 %v12302_v58, %v13698_v40  ;;  %v12318_v25 = vperm.slane %v5016_v50, 6  ;;  %v6048_v29 = vmul.f32 %v12290_v14, %v13610_v57  ;;  %v6268_v33 = vmul.f32 %v12294_v62, %v13617_v63  ;;  %v13700_v40 = vld [vmem:[#allocation47_spill] sm:$0xff] }
0x1f47   : > { %v5624_v38 = vadd.f32 %v5608_v35, %v5400_v18  ;;  %v6488_v20 = vmul.f32 %v12296_v56, %v13626_v22  ;;  %v6708_v35 = vmul.f32 %v12298_v44, %v13632_v10  ;;  %v5605_v52 = vmul.f32 %v12304_v46, %v13699_v60  ;;  %v13701_v22 = vld [vmem:[#allocation63_spill] sm:$0xff] }
0x1f48   : > { %v5397_v45 = vadd.f32 %v5381_v53, %v5177_v7  ;;  %v5176_v59 = vmul.f32 %v12300_v32, %v13700_v40  ;;  %v5825_v57 = vmul.f32 %v12308_v11, %v13548_v9  ;;  %v6045_v63 = vmul.f32 %v12310_v26, %v11414_v13  ;;  %v13703_v53 = vld [vmem:[#allocation129_spill] sm:$0xff] }
0x1f49   : > { %v5844_v18 = vadd.f32 %v5828_v16, %v5624_v38  ;;  %v12336_v28 = vperm.slane %v5016_v50, 7  ;;  %v5380_v61 = vmul.f32 %v12302_v58, %v13701_v22  ;;  %v13702_v38 = vld [vmem:[#allocation97_spill] sm:$0xff]  ;;  %v6485_v60 = vmul.f32 %v12318_v25, %v13703_v53  ;;  %v13706_v50 = vld [vmem:[#allocation48_spill] sm:$0xff] }
0x1f4a   : > { %v5621_v16 = vadd.f32 %v5605_v52, %v5397_v45  ;;  %v6265_v7 = vmul.f32 %v12312_v0, %v13702_v38  ;;  %v5604_v9 = vmul.f32 %v12304_v46, %v13704_v5  ;;  %v5824_v13 = vmul.f32 %v12308_v11, %v13705_v12  ;;  %v13708_v52 = vld [vmem:[#allocation167_spill] sm:$0xff]  ;;  %v13709_v38 = vld [vmem:[#allocation161_spill] sm:$0xff] }
0x1f4b   : > { %v6064_v10 = vadd.f32 %v6048_v29, %v5844_v18  ;;  %v5396_v40 = vadd.f32 %v5380_v61, %v5176_v59  ;;  %v5178_v21 = vmul.f32 %v12300_v32, %v13706_v50  ;;  %v13707_v29 = vld [vmem:[#allocation90_spill] sm:$0xff]  ;;  %v5382_v18 = vmul.f32 %v12302_v58, %v13708_v52  ;;  %v13710_v53 = vld [vmem:[#allocation113_spill] sm:$0xff] }
0x1f4c   : > { %v5841_v22 = vadd.f32 %v5825_v57, %v5621_v16  ;;  %v6044_v45 = vmul.f32 %v12310_v26, %v13707_v29  ;;  %v6705_v61 = vmul.f32 %v12336_v28, %v13709_v38  ;;  %v6264_v5 = vmul.f32 %v12312_v0, %v13710_v53  ;;  %v13712_v57 = vld [vmem:[#allocation77_spill] sm:$0xff]  ;;  %v13713_v29 = vld [vmem:[#allocation79_spill] sm:$0xff] }
0x1f4d   : > { %v6284_v2 = vadd.f32 %v6268_v33, %v6064_v10  ;;  %v5620_v59 = vadd.f32 %v5604_v9, %v5396_v40  ;;  %v6484_v12 = vmul.f32 %v12318_v25, %v13711_v30  ;;  %v5398_v33 = vadd.f32 %v5382_v18, %v5178_v21  ;;  %v13718_v53 = vld [vmem:[#allocation91_spill] sm:$0xff] }
0x1f4e   : > { %v6061_v50 = vadd.f32 %v6045_v63, %v5841_v22  ;;  %v5606_v10 = vmul.f32 %v12304_v46, %v13712_v57  ;;  %v5826_v52 = vmul.f32 %v12308_v11, %v13713_v29  ;;  %v12365_v51 = vperm.slane %v12279_v8, 0  ;;  %v13719_v57 = vld [vmem:[#allocation72_spill] sm:$0xff] }
0x1f4f   : > { %v6504_v48 = vadd.f32 %v6488_v20, %v6284_v2  ;;  %v5840_v16 = vadd.f32 %v5824_v13, %v5620_v59  ;;  %v12368_v40 = vperm.slane %v12279_v8, 1  ;;  %v12373_v20 = vperm.slane %v12279_v8, 2  ;;  %v13715_v2 = vld [vmem:[#allocation59_spill] sm:$0xff]  ;;  %v13716_v13 = vld [vmem:[#allocation69_spill] sm:$0xff] }
0x1f50   : > { %v6281_v38 = vadd.f32 %v6265_v7, %v6061_v50  ;;  %v5622_v30 = vadd.f32 %v5606_v10, %v5398_v33  ;;  %v5184_v63 = vmul.f32 %v12365_v51, %v13715_v2  ;;  %v12380_v18 = vperm.slane %v12279_v8, 3 }
0x1f51   : > { %v12370_v9 = vadd.f32 %v6708_v35, %v6504_v48  ;;  %v6060_v21 = vadd.f32 %v6044_v45, %v5840_v16  ;;  %v5388_v22 = vmul.f32 %v12368_v40, %v13716_v13  ;;  %v13717_v48 = vld [vmem:[#allocation146_spill] sm:$0xff]  ;;  %v6046_v50 = vmul.f32 %v12310_v26, %v13718_v53  ;;  %v13725_v53 = vld [vmem:[#allocation67_spill] sm:$0xff] }
0x1f52   : > { %v6501_v59 = vadd.f32 %v6485_v60, %v6281_v38  ;;  %v6704_v35 = vmul.f32 %v12336_v28, %v13717_v48  ;;  %v5842_v7 = vadd.f32 %v5826_v52, %v5622_v30  ;;  %v5612_v10 = vmul.f32 %v12373_v20, %v13719_v57  ;;  %v13721_v13 = vld [vmem:[#allocation114_spill] sm:$0xff]  ;;  %v13722_v38 = vld [vmem:[#allocation87_spill] sm:$0xff] }
0x1f53   : > { %13714 = vst [vmem:[#allocation190_spill] sm:$0xff] %v12370_v9  ;;  %7293 = vperm.xlu0 %8538, %v12370_v9   ;;  %v6280_v45 = vadd.f32 %v6264_v5, %v6060_v21  ;;  %v5404_v33 = vadd.f32 %v5388_v22, %v5184_v63  ;;  %v12390_v16 = vperm.slane %v12279_v8, 4  ;;  %v6266_v60 = vmul.f32 %v12312_v0, %v13721_v13 }
0x1f54   : > { %v12392_v29 = vadd.f32 %v6705_v61, %v6501_v59  ;;  %v6062_v2 = vadd.f32 %v6046_v50, %v5842_v7  ;;  %v5832_v52 = vmul.f32 %v12380_v18, %v13722_v38  ;;  %v12399_v5 = vperm.slane %v12279_v8, 5  ;;  %v13723_v61 = vld [vmem:[#allocation57_spill] sm:$0xff]  ;;  %v13724_v59 = vld [vmem:[#allocation50_spill] sm:$0xff] }
0x1f55   : > { %v6500_v30 = vadd.f32 %v6484_v12, %v6280_v45  ;;  %v5628_v48 = vadd.f32 %v5612_v10, %v5404_v33  ;;  %v12402_v21 = vperm.slane %v12279_v8, 6  ;;  %v6486_v22 = vmul.f32 %v12318_v25, %v13723_v61  ;;  %v13727_v33 = vld [vmem:[#allocation110_spill] sm:$0xff] }
0x1f56   : > { %13720 = vst [vmem:[#allocation138_spill] sm:$0xff] %v12392_v29  ;;  %7284 = vperm.xlu1 %8535, %v12392_v29   ;;  %v6282_v63 = vadd.f32 %v6266_v60, %v6062_v2  ;;  %v5181_v7 = vmul.f32 %v12266_v17, %v13724_v59  ;;  %v5385_v50 = vmul.f32 %v12268_v42, %v13725_v53  ;;  %v12416_v10 = vperm.slane %v12279_v8, 7  ;;  %v13728_v2 = vld [vmem:[#allocation145_spill] sm:$0xff]  ;;  %v13729_v61 = vld [vmem:[#allocation70_spill] sm:$0xff] }
0x1f57   : > { %v12411_v12 = vadd.f32 %v6704_v35, %v6500_v30  ;;  %v5848_v45 = vadd.f32 %v5832_v52, %v5628_v48  ;;  %v6052_v57 = vmul.f32 %v12390_v16, %v13727_v33  ;;  %v6706_v60 = vmul.f32 %v12336_v28, %v13728_v2  ;;  %v13730_v35 = vld [vmem:[#allocation130_spill] sm:$0xff]  ;;  %v13734_v2 = vld [vmem:[#allocation52_spill] sm:$0xff] }
0x1f58   : > { %v6502_v13 = vadd.f32 %v6486_v22, %v6282_v63  ;;  %v5401_v38 = vadd.f32 %v5385_v50, %v5181_v7  ;;  %v5609_v59 = vmul.f32 %v12270_v4, %v13729_v61  ;;  %v6272_v52 = vmul.f32 %v12399_v5, %v13730_v35  ;;  %v13731_v30 = vld [vmem:[#allocation134_spill] sm:$0xff]  ;;  %v13735_v50 = vld [vmem:[#allocation60_spill] sm:$0xff] }
0x1f59   : > { %13726 = vst [vmem:[#allocation154_spill] sm:$0xff] %v12411_v12  ;;  %7281 = vperm.xlu2 %8534, %v12411_v12   ;;  %v6068_v53 = vadd.f32 %v6052_v57, %v5848_v45  ;;  %v6492_v48 = vmul.f32 %v12402_v21, %v13731_v30  ;;  %v13732_v33 = vld [vmem:[#allocation150_spill] sm:$0xff]  ;;  %v5185_v7 = vmul.f32 %v12365_v51, %v13734_v2  ;;  %v13736_v57 = vld [vmem:[#allocation92_spill] sm:$0xff]  ;;  %v13737_v30 = vld [vmem:[#allocation115_spill] sm:$0xff] }
0x1f5a   : > { %v5829_v8 = vmul.f32 %v12281_v34, %v13732_v33  ;;  %v12429_v63 = vadd.f32 %v6706_v60, %v6502_v13  ;;  %v5625_v22 = vadd.f32 %v5609_v59, %v5401_v38  ;;  %v5389_v61 = vmul.f32 %v12368_v40, %v13735_v50  ;;  %v13738_v60 = vld [vmem:[#allocation131_spill] sm:$0xff]  ;;  %v13739_v33 = vld [vmem:[#allocation81_spill] sm:$0xff] }
0x1f5b   : > { %v6288_v9 = vadd.f32 %v6272_v52, %v6068_v53  ;;  %v6712_v45 = vmul.f32 %v12416_v10, %v13628_v36  ;;  %v6049_v35 = vmul.f32 %v12290_v14, %v13736_v57  ;;  %v6269_v29 = vmul.f32 %v12294_v62, %v13737_v30  ;;  %v13740_v52 = vld [vmem:[#allocation152_spill] sm:$0xff]  ;;  %v13741_v50 = vld [vmem:[#allocation53_spill] sm:$0xff]  ;;  %v13742_v12 = vld [vmem:[#allocation71_spill] sm:$0xff] }
0x1f5c   : > { %13733 = vst [vmem:[#allocation189_spill] sm:$0xff] %v12429_v63  ;;  %7287 = vperm.xlu0 %8538, %v12429_v63   ;;  %v5845_v13 = vadd.f32 %v5829_v8, %v5625_v22  ;;  %v6489_v38 = vmul.f32 %v12296_v56, %v13738_v60  ;;  %v5405_v59 = vadd.f32 %v5389_v61, %v5185_v7  ;;  %v13743_v8 = vld [vmem:[#allocation102_spill] sm:$0xff]  ;;  %v13744_v60 = vld [vmem:[#allocation153_spill] sm:$0xff] }
0x1f5d   : > { %v5613_v2 = vmul.f32 %v12373_v20, %v13739_v33  ;;  %v6508_v53 = vadd.f32 %v6492_v48, %v6288_v9  ;;  %v6709_v36 = vmul.f32 %v12298_v44, %v13740_v52  ;;  %v5186_v57 = vmul.f32 %v12365_v51, %v13741_v50  ;;  %v13745_v33 = vld [vmem:[#allocation74_spill] sm:$0xff] }
0x1f5e   : > { %v5390_v30 = vmul.f32 %v12368_v40, %v13742_v12  ;;  %v6065_v41 = vadd.f32 %v6049_v35, %v5845_v13  ;;  %v5833_v22 = vmul.f32 %v12380_v18, %v13743_v8  ;;  %v6053_v7 = vmul.f32 %v12390_v16, %v13744_v60  ;;  %v13750_v8 = vld [vmem:[#allocation137_spill] sm:$0xff] }
0x1f5f   : > { %v5629_v63 = vadd.f32 %v5613_v2, %v5405_v59  ;;  %v12456_v61 = vadd.f32 %v6712_v45, %v6508_v53  ;;  %v6273_v9 = vmul.f32 %v12399_v5, %v13641_v31  ;;  %v5614_v52 = vmul.f32 %v12373_v20, %v13745_v33  ;;  %v13746_v45 = vld [vmem:[#allocation172_spill] sm:$0xff]  ;;  %v13747_v2 = vld [vmem:[#allocation51_spill] sm:$0xff]  ;;  %v13748_v53 = vld [vmem:[#allocation58_spill] sm:$0xff] }
0x1f60   : > { %v5406_v48 = vadd.f32 %v5390_v30, %v5186_v57  ;;  %v6285_v50 = vadd.f32 %v6269_v29, %v6065_v41  ;;  %v6493_v12 = vmul.f32 %v12402_v21, %v13648_v27  ;;  %v6713_v35 = vmul.f32 %v12416_v10, %v13654_v43 }
0x1f61   : > { %v5849_v39 = vadd.f32 %v5833_v22, %v5629_v63  ;;  %7305 = vperm.xlu1 %8535, %v12456_v61   ;;  %v5834_v59 = vmul.f32 %v12380_v18, %v13746_v45  ;;  %v5182_v31 = vmul.f32 %v12266_v17, %v13747_v2  ;;  %v5386_v57 = vmul.f32 %v12268_v42, %v13748_v53  ;;  %v13749_v63 = vld [vmem:[#allocation117_spill] sm:$0xff]  ;;  %v13752_v2 = vld [vmem:[#allocation158_spill] sm:$0xff] }
0x1f62   : > { %v5630_v13 = vadd.f32 %v5614_v52, %v5406_v48  ;;  %v6505_v41 = vadd.f32 %v6489_v38, %v6285_v50  ;;  %v6054_v27 = vmul.f32 %v12390_v16, %v13633_v37  ;;  %v6274_v43 = vmul.f32 %v12399_v5, %v13749_v63  ;;  %v13751_v48 = vld [vmem:[#allocation169_spill] sm:$0xff]  ;;  %v13754_v53 = vld [vmem:[#allocation86_spill] sm:$0xff]  ;;  %v13758_v63 = vld [vmem:[#allocation135_spill] sm:$0xff] }
0x1f63   : > { %v6069_v29 = vadd.f32 %v6053_v7, %v5849_v39  ;;  %v6494_v22 = vmul.f32 %v12402_v21, %v13750_v8  ;;  %v5402_v60 = vadd.f32 %v5386_v57, %v5182_v31  ;;  %v5610_v33 = vmul.f32 %v12270_v4, %v13751_v48  ;;  %v13753_v38 = vld [vmem:[#allocation49_spill] sm:$0xff] }
0x1f64   : > { %v5850_v30 = vadd.f32 %v5834_v59, %v5630_v13  ;;  %v12481_v52 = vadd.f32 %v6709_v36, %v6505_v41  ;;  %v6714_v39 = vmul.f32 %v12416_v10, %v13752_v2  ;;  %v5179_v37 = vmul.f32 %v12300_v32, %v13753_v38  ;;  %v13755_v59 = vld [vmem:[#allocation65_spill] sm:$0xff] }
0x1f65   : > { %v6289_v45 = vadd.f32 %v6273_v9, %v6069_v29  ;;  %v5626_v50 = vadd.f32 %v5610_v33, %v5402_v60  ;;  %v5830_v13 = vmul.f32 %v12281_v34, %v13754_v53  ;;  %v5383_v31 = vmul.f32 %v12302_v58, %v13755_v59  ;;  %v13756_v36 = vld [vmem:[#allocation109_spill] sm:$0xff]  ;;  %v13759_v60 = vld [vmem:[#allocation68_spill] sm:$0xff] }
0x1f66   : > { %v6070_v7 = vadd.f32 %v6054_v27, %v5850_v30  ;;  %7296 = vperm.xlu2 %8534, %v12481_v52   ;;  %v6050_v9 = vmul.f32 %v12290_v14, %v13756_v36  ;;  %v13757_v41 = vld [vmem:[#allocation101_spill] sm:$0xff]  ;;  %v6490_v32 = vmul.f32 %v12296_v56, %v13758_v63  ;;  %v5607_v48 = vmul.f32 %v12304_v46, %v13759_v60  ;;  %v13761_v46 = vld [vmem:[#allocation108_spill] sm:$0xff] }
0x1f67   : > { %v6509_v57 = vadd.f32 %v6493_v12, %v6289_v45  ;;  %v6270_v29 = vmul.f32 %v12294_v62, %v13757_v41  ;;  %v5846_v30 = vadd.f32 %v5830_v13, %v5626_v50  ;;  %v5399_v8 = vadd.f32 %v5383_v31, %v5179_v37  ;;  %v13760_v58 = vld [vmem:[#allocation85_spill] sm:$0xff] }
0x1f68   : > { %v6290_v27 = vadd.f32 %v6274_v43, %v6070_v7  ;;  %v5827_v12 = vmul.f32 %v12308_v11, %v13760_v58  ;;  %v12505_v45 = vperm.slane %v12284_v47, 0  ;;  %v12508_v2 = vperm.slane %v12284_v47, 1  ;;  %v13762_v37 = vld [vmem:[#allocation61_spill] sm:$0xff]  ;;  %v13763_v7 = vld [vmem:[#allocation64_spill] sm:$0xff] }
0x1f69   : > { %v12500_v33 = vadd.f32 %v6713_v35, %v6509_v57  ;;  %v6066_v53 = vadd.f32 %v6050_v9, %v5846_v30  ;;  %v5623_v59 = vadd.f32 %v5607_v48, %v5399_v8  ;;  %v12511_v43 = vperm.slane %v12284_v47, 2 }
0x1f6a   : > { %v6510_v38 = vadd.f32 %v6494_v22, %v6290_v27  ;;  %v6047_v35 = vmul.f32 %v12310_v26, %v13761_v46  ;;  %v5190_v11 = vmul.f32 %v12505_v45, %v13762_v37  ;;  %v5394_v50 = vmul.f32 %v12508_v2, %v13763_v7  ;;  %v13764_v26 = vld [vmem:[#allocation185_spill] sm:$0xff]  ;;  %v13765_v27 = vld [vmem:[#allocation83_spill] sm:$0xff] }
0x1f6b   : > { %7308 = vperm.xlu0 %8538, %v12500_v33   ;;  %v12521_v13 = vperm.slane %v12284_v47, 3  ;;  %v6286_v31 = vadd.f32 %v6270_v29, %v6066_v53  ;;  %v5843_v57 = vadd.f32 %v5827_v12, %v5623_v59  ;;  %v12526_v36 = vperm.slane %v12284_v47, 4  ;;  %v13766_v29 = vld [vmem:[#allocation46_spill] sm:$0xff]  ;;  %v13768_v12 = vld [vmem:[#allocation41_spill] sm:$0xff]  ;;  %v13769_v53 = vld [vmem:[#allocation43_spill] sm:$0xff] }
0x1f6c   : > { %v12523_v22 = vadd.f32 %v6714_v39, %v6510_v38  ;;  %v12530_v9 = vadd.f32 %v12276_v3, %v12272_v1  ;;  %v6710_v41 = vmul.f32 %v12298_v44, %v13764_v26  ;;  %v5410_v63 = vadd.f32 %v5394_v50, %v5190_v11  ;;  %v13767_v1 = vld [vmem:[#allocation106_spill] sm:$0xff]  ;;  %v13773_v26 = vld [vmem:[#allocation149_spill] sm:$0xff] }
0x1f6d   : > { %v5618_v30 = vmul.f32 %v12511_v43, %v13765_v27  ;;  %v6506_v39 = vadd.f32 %v6490_v32, %v6286_v31  ;;  %v6063_v8 = vadd.f32 %v6047_v35, %v5843_v57  ;;  %v6267_v60 = vmul.f32 %v12312_v0, %v13766_v29  ;;  %v13770_v35 = vld [vmem:[#allocation128_spill] sm:$0xff]  ;;  %v13771_v0 = vld [vmem:[#allocation175_spill] sm:$0xff]  ;;  %v13775_v29 = vld [vmem:[#allocation54_spill] sm:$0xff] }
0x1f6e   : > { %7311 = vperm.xlu1 %8535, %v12523_v22   ;;  %v12540_v48 = vperm.slane %v12284_v47, 5  ;;  %v5838_v3 = vmul.f32 %v12521_v13, %v13767_v1  ;;  %v5183_v38 = vmul.f32 %v12266_v17, %v13768_v12  ;;  %v5387_v59 = vmul.f32 %v12268_v42, %v13769_v53  ;;  %v13772_v57 = vld [vmem:[#allocation80_spill] sm:$0xff] }
0x1f6f   : > { %v5634_v58 = vadd.f32 %v5618_v30, %v5410_v63  ;;  %v12548_v46 = vadd.f32 %v6710_v41, %v6506_v39  ;;  %v6283_v32 = vadd.f32 %v6267_v60, %v6063_v8  ;;  %v6487_v37 = vmul.f32 %v12318_v25, %v13770_v35  ;;  %v13774_v39 = vld [vmem:[#allocation100_spill] sm:$0xff]  ;;  %v13776_v60 = vld [vmem:[#allocation142_spill] sm:$0xff] }
0x1f70   : > { %v6058_v11 = vmul.f32 %v12526_v36, %v13771_v0  ;;  %v12555_v50 = vperm.slane %v12284_v47, 6  ;;  %v5403_v31 = vadd.f32 %v5387_v59, %v5183_v38  ;;  %v5611_v17 = vmul.f32 %v12270_v4, %v13772_v57  ;;  %v13779_v38 = vld [vmem:[#allocation144_spill] sm:$0xff]  ;;  %v13780_v59 = vld [vmem:[#allocation93_spill] sm:$0xff]  ;;  %v13781_v35 = vld [vmem:[#allocation82_spill] sm:$0xff] }
0x1f71   : > { %v5854_v7 = vadd.f32 %v5838_v3, %v5634_v58  ;;  %7299 = vperm.xlu2 %8534, %v12548_v46   ;;  %v6503_v42 = vadd.f32 %v6487_v37, %v6283_v32  ;;  %v6707_v41 = vmul.f32 %v12336_v28, %v13773_v26  ;;  %v6278_v25 = vmul.f32 %v12540_v48, %v13658_v55  ;;  %v13777_v28 = vld [vmem:[#allocation163_spill] sm:$0xff]  ;;  %v13783_v57 = vld [vmem:[#allocation116_spill] sm:$0xff]  ;;  %v13785_v26 = vld [vmem:[#allocation122_spill] sm:$0xff] }
0x1f72   : > { %v12565_v63 = vperm.slane %v12284_v47, 7  ;;  %v5627_v30 = vadd.f32 %v5611_v17, %v5403_v31  ;;  %v5831_v8 = vmul.f32 %v12281_v34, %v13774_v39  ;;  %v5188_v4 = vmul.f32 %v12505_v45, %v13775_v29  ;;  %v13778_v47 = vld [vmem:[#allocation125_spill] sm:$0xff]  ;;  %v13782_v0 = vld [vmem:[#allocation143_spill] sm:$0xff] }
0x1f73   : > { %v6074_v27 = vadd.f32 %v6058_v11, %v5854_v7  ;;  %v12573_v58 = vmul.f32 %v13776_v60, %v13662_v15  ;;  %v12577_v1 = vmul.f32 %v13777_v28, %v13667_v23  ;;  %v12579_v55 = vadd.f32 %v6707_v41, %v6503_v42  ;;  %v13784_v42 = vld [vmem:[#allocation73_spill] sm:$0xff] }
0x1f74   : > { %v5392_v3 = vmul.f32 %v12508_v2, %v13778_v47  ;;  %v6498_v34 = vmul.f32 %v12555_v50, %v13779_v38  ;;  %v5847_v53 = vadd.f32 %v5831_v8, %v5627_v30  ;;  %v6051_v32 = vmul.f32 %v12290_v14, %v13780_v59  ;;  %v13787_v30 = vld [vmem:[#allocation104_spill] sm:$0xff] }
0x1f75   : > { %v6294_v12 = vadd.f32 %v6278_v25, %v6074_v27  ;;  %7290 = vperm.xlu0 %8538, %v12579_v55   ;;  %v6718_v15 = vmul.f32 %v12565_v63, %v13669_v49  ;;  %v5616_v37 = vmul.f32 %v12511_v43, %v13781_v35  ;;  %v5189_v11 = vmul.f32 %v12505_v45, %v13782_v0  ;;  %v13786_v25 = vld [vmem:[#allocation151_spill] sm:$0xff]  ;;  %v13788_v47 = vld [vmem:[#allocation76_spill] sm:$0xff]  ;;  %v13793_v35 = vld [vmem:[#allocation89_spill] sm:$0xff] }
0x1f76   : > { %v5408_v23 = vadd.f32 %v5392_v3, %v5188_v4  ;;  %v6067_v31 = vadd.f32 %v6051_v32, %v5847_v53  ;;  %v6271_v17 = vmul.f32 %v12294_v62, %v13783_v57  ;;  %v5393_v14 = vmul.f32 %v12508_v2, %v13784_v42  ;;  %v13791_v53 = vld [vmem:[#allocation62_spill] sm:$0xff] }
0x1f77   : > { %v6514_v7 = vadd.f32 %v6498_v34, %v6294_v12  ;;  %v6491_v41 = vmul.f32 %v12296_v56, %v13785_v26  ;;  %v6711_v49 = vmul.f32 %v12298_v44, %v13786_v25  ;;  %v5836_v39 = vmul.f32 %v12521_v13, %v13787_v30  ;;  %v13789_v12 = vld [vmem:[#allocation95_spill] sm:$0xff]  ;;  %v13790_v34 = vld [vmem:[#allocation42_spill] sm:$0xff]  ;;  %v13797_v30 = vld [vmem:[#allocation157_spill] sm:$0xff] }
0x1f78   : > { %v5632_v27 = vadd.f32 %v5616_v37, %v5408_v23  ;;  %v6287_v29 = vadd.f32 %v6271_v17, %v6067_v31  ;;  %v5409_v4 = vadd.f32 %v5393_v14, %v5189_v11  ;;  %v5617_v62 = vmul.f32 %v12511_v43, %v13788_v47  ;;  %v13792_v32 = vld [vmem:[#allocation118_spill] sm:$0xff]  ;;  %v13794_v31 = vld [vmem:[#allocation44_spill] sm:$0xff] }
0x1f79   : > { %v12604_v8 = vadd.f32 %v6718_v15, %v6514_v7  ;;  %v6056_v38 = vmul.f32 %v12526_v36, %v13789_v12  ;;  %v5187_v56 = vmul.f32 %v12365_v51, %v13790_v34  ;;  %v5391_v44 = vmul.f32 %v12368_v40, %v13791_v53  ;;  %v13795_v17 = vld [vmem:[#allocation112_spill] sm:$0xff] }
0x1f7a   : > { %v5852_v3 = vadd.f32 %v5836_v39, %v5632_v27  ;;  %v6507_v59 = vadd.f32 %v6491_v41, %v6287_v29  ;;  %v6276_v15 = vmul.f32 %v12540_v48, %v13792_v32  ;;  %v5633_v23 = vadd.f32 %v5617_v62, %v5409_v4  ;;  %v13796_v14 = vld [vmem:[#allocation88_spill] sm:$0xff]  ;;  %v13798_v29 = vld [vmem:[#allocation111_spill] sm:$0xff]  ;;  %v13803_v32 = vld [vmem:[#allocation121_spill] sm:$0xff] }
0x1f7b   : > { %7323 = vperm.xlu1 %8535, %v12604_v8   ;;  %v5837_v37 = vmul.f32 %v12521_v13, %v13793_v35  ;;  %v6496_v11 = vmul.f32 %v12555_v50, %v13671_v54  ;;  %v5407_v7 = vadd.f32 %v5391_v44, %v5187_v56  ;;  %v5615_v51 = vmul.f32 %v12373_v20, %v13794_v31  ;;  %v13801_v12 = vld [vmem:[#allocation160_spill] sm:$0xff]  ;;  %v13802_v44 = vld [vmem:[#allocation105_spill] sm:$0xff] }
0x1f7c   : > { %v6072_v0 = vadd.f32 %v6056_v38, %v5852_v3  ;;  %v12623_v57 = vadd.f32 %v6711_v49, %v6507_v59  ;;  %v6057_v42 = vmul.f32 %v12526_v36, %v13795_v17  ;;  %v5835_v26 = vmul.f32 %v12380_v18, %v13796_v14  ;;  %v13799_v3 = vld [vmem:[#allocation78_spill] sm:$0xff]  ;;  %v9024_v38 = vld [vmem:[%s9416_s26] sm:$0xff]  ;;  %v13805_v17 = vld [vmem:[#allocation141_spill] sm:$0xff] }
0x1f7d   : > { %v5853_v40 = vadd.f32 %v5837_v37, %v5633_v23  ;;  %v5631_v25 = vadd.f32 %v5615_v51, %v5407_v7  ;;  %v5191_v27 = vmul.f32 %v12505_v45, %v13692_v24  ;;  %v5395_v54 = vmul.f32 %v12508_v2, %v13691_v19  ;;  %v13800_v19 = vld [vmem:[#allocation140_spill] sm:$0xff] }
0x1f7e   : > { %v6292_v41 = vadd.f32 %v6276_v15, %v6072_v0  ;;  %7302 = vperm.xlu2 %8534, %v12623_v57   ;;  %v6716_v20 = vmul.f32 %v12565_v63, %v13672_v6  ;;  %v6277_v39 = vmul.f32 %v12540_v48, %v13797_v30  ;;  %v6055_v18 = vmul.f32 %v12390_v16, %v13798_v29  ;;  %v13804_v15 = vld [vmem:[#allocation45_spill] sm:$0xff]  ;;  %v13809_v30 = vld [vmem:[#allocation120_spill] sm:$0xff] }
0x1f7f   : > { %v6073_v49 = vadd.f32 %v6057_v42, %v5853_v40  ;;  %v5851_v47 = vadd.f32 %v5835_v26, %v5631_v25  ;;  %v5411_v62 = vadd.f32 %v5395_v54, %v5191_v27  ;;  %v5619_v24 = vmul.f32 %v12511_v43, %v13799_v3  ;;  %v13806_v42 = vld [vmem:[#allocation96_spill] sm:$0xff] }
0x1f80   : > { %v6512_v4 = vadd.f32 %v6496_v11, %v6292_v41  ;;  %v6497_v2 = vmul.f32 %v12555_v50, %v13800_v19  ;;  %v6717_v6 = vmul.f32 %v12565_v63, %v13801_v12  ;;  %v5208_v34 = vmul.f32 0.125, %v9024_v38  ;;  %v13807_v26 = vld [vmem:[#allocation132_spill] sm:$0xff] }
0x1f81   : > { %v6293_v45 = vadd.f32 %v6277_v39, %v6073_v49  ;;  %v6071_v53 = vadd.f32 %v6055_v18, %v5851_v47  ;;  %v6275_v16 = vmul.f32 %v12399_v5, %v13802_v44  ;;  %v5635_v59 = vadd.f32 %v5619_v24, %v5411_v62  ;;  %v13810_v24 = vld [vmem:[#allocation37_spill] sm:$0xff]  ;;  %v13811_v19 = vld [vmem:[#allocation40_spill] sm:$0xff] }
0x1f82   : > { %v12647_v56 = vadd.f32 %v6716_v20, %v6512_v4  ;;  %v5839_v23 = vmul.f32 %v12521_v13, %v13804_v15  ;;  %v5416_v35 = vrot.slane %v5208_v34, 1  ;;  %v5636_v37 = vrot.slane %v5208_v34, 2 }
0x1f83   : > { %7687 = vrot.lane.b32.xlu1 %v13803_v32, %s13359_s5  ;;  %v6513_v43 = vadd.f32 %v6497_v2, %v6293_v45  ;;  %v6479_v0 = vadd.f32 %v12573_v58, %v12530_v9  ;;  %v5856_v11 = vrot.slane %v5208_v34, 3  ;;  %v6291_v31 = vadd.f32 %v6275_v16, %v6071_v53  ;;  %v12696_v16 = vpop.permute.xlu0 %7612  ;;  %s12738_s5 = sand.u32 1, %s9142_s1  }
0x1f84   : > { %7317 = vperm.xlu0 %8538, %v12647_v56   ;;  %v5855_v5 = vadd.f32 %v5839_v23, %v5635_v59  ;;  %v5424_v51 = vadd.f32 %v5416_v35, %v5208_v34  ;;  %v6495_v13 = vmul.f32 %v12402_v21, %v13805_v17  ;;  %v6059_v14 = vmul.f32 %v12526_v36, %v13806_v42  ;;  %v13813_v59 = vld [vmem:[#allocation39_spill] sm:$0xff]  ;;  %s8177_s11 = sshll.u32 %s12738_s5, 2 }
0x1f85   : > { %v12658_v7 = vadd.f32 %v6717_v6, %v6513_v43  ;;  %v12661_v40 = vadd.f32 %v12577_v1, %v6479_v0  ;;  %v6076_v58 = vrot.slane %v5208_v34, 4  ;;  %v6296_v20 = vrot.slane %v5208_v34, 5  ;;  %v13808_v1 = vld [vmem:[#allocation123_spill] sm:$0xff]  ;;  %s12797_s3 = scalar_lea.vmem [#allocation5], %s8177_s11 }
0x1f86   : > { %v5644_v9 = vadd.f32 %v5636_v37, %v5424_v51  ;;  %v6511_v25 = vadd.f32 %v6495_v13, %v6291_v31  ;;  %v6075_v27 = vadd.f32 %v6059_v14, %v5855_v5  ;;  %v6715_v49 = vmul.f32 %v12416_v10, %v13808_v1  ;;  %v9026_v37 = vld [vmem:[%s9416_s26 + $0x10] sm:$0xff] }
0x1f87   : > { %7320 = vperm.xlu2 %8534, %v12658_v7   ;;  %v6903_v41 = vmul.f32 %v13807_v26, %v12661_v40  ;;  %v6279_v39 = vmul.f32 %v12540_v48, %v13809_v30  ;;  %v6516_v29 = vrot.slane %v5208_v34, 6  ;;  %v6499_v47 = vmul.f32 %v12555_v50, %v13776_v60  ;;  %v13812_v50 = vld [vmem:[#allocation38_spill] sm:$0xff]  ;;  %v9025_v60 = vld [vmem:[%s9416_s26 + $0x8] sm:$0xff] }
0x1f88   : > { %v5864_v54 = vadd.f32 %v5856_v11, %v5644_v9  ;;  %v12675_v36 = vadd.f32 %v6715_v49, %v6511_v25  ;;  %v6736_v3 = vrot.slane %v5208_v34, 7  ;;  %v6719_v48 = vmul.f32 %v12565_v63, %v13777_v28 }
0x1f89   : > { %v6295_v18 = vadd.f32 %v6279_v39, %v6075_v27  ;;  %v5209_v63 = vmul.f32 0.125, %v9025_v60  ;;  %v5210_v0 = vmul.f32 0.125, %v9026_v37 }
0x1f8a   : > { %v6084_v21 = vadd.f32 %v6076_v58, %v5864_v54  ;;  %v13815_v54 = vld [vmem:[#allocation193_spill] sm:$0xff] }
0x1f8b   : > { %6966 = vperm.xlu1 %8535, %v6903_v41   ;;  %v6515_v10 = vadd.f32 %v6499_v47, %v6295_v18  ;;  %v5417_v28 = vrot.slane %v5209_v63, 1  ;;  %v5637_v34 = vrot.slane %v5209_v63, 2  ;;  %v5857_v44 = vrot.slane %v5209_v63, 3  ;;  %v13814_v41 = vld [vmem:[#allocation36_spill] sm:$0xff] }
0x1f8c   : > { %7615 = vperm.xlu0 %8538, %v12661_v40   ;;  %v6304_v4 = vadd.f32 %v6296_v20, %v6084_v21  ;;  %v6077_v43 = vrot.slane %v5209_v63, 4  ;;  %v6297_v35 = vrot.slane %v5209_v63, 5  ;;  %v6517_v5 = vrot.slane %v5209_v63, 6  ;;  %v13816_v21 = vld [vmem:[#allocation99_spill] sm:$0xff] }
0x1f8d   : > { %v12686_v2 = vadd.f32 %v6719_v48, %v6515_v10  ;;  %v5425_v38 = vadd.f32 %v5417_v28, %v5209_v63  ;;  %v5418_v51 = vrot.slane %v5210_v0, 1  ;;  %v6737_v14 = vrot.slane %v5209_v63, 7  ;;  %v13817_v48 = vld [vmem:[#allocation179_spill] sm:$0xff] }
0x1f8e   : > { %v6524_v62 = vadd.f32 %v6516_v29, %v6304_v4  ;;  %v5638_v58 = vrot.slane %v5210_v0, 2  ;;  %v5858_v30 = vrot.slane %v5210_v0, 3  ;;  %v6078_v10 = vrot.slane %v5210_v0, 4 }
0x1f8f   : > { %7314 = vperm.xlu2 %8534, %v12675_v36   ;;  %v5645_v53 = vadd.f32 %v5637_v34, %v5425_v38  ;;  %v5426_v9 = vadd.f32 %v5418_v51, %v5210_v0  ;;  %v6298_v38 = vrot.slane %v5210_v0, 5 }
0x1f90   : > { %v12683_v45 = vadd.f32 %v6736_v3, %v6524_v62 }
0x1f91   : > { %v5865_v32 = vadd.f32 %v5857_v44, %v5645_v53  ;;  %v5646_v49 = vadd.f32 %v5638_v58, %v5426_v9 }
0x1f92   : > { %v7014_v12 = vperm.slane %v12683_v45, 0 }
0x1f93   : > { %8539 = vset.pattern.permute.xlu1 %v13810_v24  ;;  %v6085_v23 = vadd.f32 %v6077_v43, %v5865_v32  ;;  %v5866_v3 = vadd.f32 %v5858_v30, %v5646_v49  ;;  %v6518_v32 = vrot.slane %v5210_v0, 6 }
0x1f94   : > { %8544 = vset.pattern.permute.xlu0 %v13811_v19 }
0x1f95   : > { %v6305_v31 = vadd.f32 %v6297_v35, %v6085_v23  ;;  %v6086_v28 = vadd.f32 %v6078_v10, %v5866_v3  ;;  %v9027_v10 = vld [vmem:[%s9416_s26 + $0x18] sm:$0xff]  ;;  %s12773_s26 = scalar_lea.vmem [#allocation7], %s8177_s11 }
0x1f96   : > { %s7927_s12 = sshll.u32 %s12773_s26, 4  ;;  %s7928_s12 = int_to_ptr.vmem [resolvable:$true] %s7927_s12 }
0x1f97   : > { %7326 = vperm.xlu2 %8534, %v12686_v2   ;;  %v6525_v42 = vadd.f32 %v6517_v5, %v6305_v31  ;;  %v6306_v44 = vadd.f32 %v6298_v38, %v6086_v28 }
0x1f99   : > { %v6745_v27 = vadd.f32 %v6737_v14, %v6525_v42  ;;  %v6526_v37 = vadd.f32 %v6518_v32, %v6306_v44 }
0x1f9b   : > { %7019 = vperm.xlu1 %8539, %v7014_v12   ;;  %v12705_v18 = vperm.slane %v6745_v27, 0 }
0x1f9f   : > { %8545 = vset.pattern.permute.xlu2 %v13812_v50 }
0x1fa3   : > { %8540 = vset.pattern.permute.xlu1 %v13811_v19 }
0x1fab   : > { %7025 = vperm.xlu1 %8540, %v7014_v12  }
0x1fb3   : > { %8541 = vset.pattern.permute.xlu1 %v13812_v50  ;;  %v12694_v6 = vpop.permute.xlu2 %7281 }
0x1fbb   : > { %7031 = vperm.xlu1 %8541, %v7014_v12  }
0x1fc0   : > { %v7297_v15 = vpop.permute.xlu2 %7296 }
0x1fc1   : > { %v7336_v20 = vperm.slane %v7297_v15, %v13815_v54 }
0x1fc3   : > { %8542 = vset.pattern.permute.xlu1 %v13813_v59 }
0x1fc5   : > { %v7294_v11 = vpop.permute.xlu0 %7293 }
0x1fc6   : > { %v7335_v25 = vperm.slane %v7294_v11, %v13814_v41  ;;  %v6738_v11 = vrot.slane %v5210_v0, 7 }
0x1fc8   : > { %v7285_v17 = vpop.permute.xlu1 %7284  ;;  %v7337_v39 = vsel %vm6971_vm14, %v7336_v20, %v7335_v25  ;;  %v6746_v51 = vadd.f32 %v6738_v11, %v6526_v37  ;;  %v7328_v20 = vperm.slane %v12694_v6, %v13814_v41 }
0x1fcb   : > { %7037 = vperm.xlu1 %8542, %v7014_v12   ;;  %v7300_v13 = vpop.permute.xlu2 %7299 }
0x1fcc   : > { %v7338_v29 = vperm.slane %v7300_v13, %v13816_v21 }
0x1fce   : > { %v7288_v1 = vpop.permute.xlu0 %7287  ;;  %v7339_v47 = vsel %vm6975_vm13, %v7338_v29, %v7337_v39 }
0x1fcf   : > { %v7331_v0 = vperm.slane %v7288_v1, %v13816_v21 }
0x1fd3   : > { %8543 = vset.pattern.permute.xlu1 %v13810_v24  ;;  %v7306_v4 = vpop.permute.xlu1 %7305 }
0x1fd4   : > { %v7342_v23 = vperm.slane %v7306_v4, %v13814_v41 }
0x1fd8   : > { %v7303_v62 = vpop.permute.xlu2 %7302 }
0x1fd9   : > { %v7340_v12 = vperm.slane %v7303_v62, %v13817_v48  ;;  %v12735_v62 = vperm.slane %v6746_v51, 0 }
0x1fdb   : > { %7044 = vperm.xlu1 %8543, %v12705_v18   ;;  %v7341_v60 = vsel %vm6979_vm9, %v7340_v12, %v7339_v47  ;;  %v5211_v12 = vmul.f32 0.125, %v9027_v10  ;;  %v13821_v10 = vld [vmem:[#allocation182_spill] sm:$0xff] }
0x1fdc   : > { %v12711_v63 = vmul.f32 %v7341_v60, %v6745_v27  ;;  %v7329_v27 = vperm.slane %v7285_v17, %v13815_v54 }
0x1fdd   : > { %v7309_v34 = vpop.permute.xlu0 %7308 }
0x1fde   : > { %v7343_v43 = vperm.slane %v7309_v34, %v13815_v54  ;;  %v7330_v30 = vsel %vm6971_vm14, %v7329_v27, %v7328_v20  ;;  %v13818_v34 = vld [vmem:[#allocation124_spill] sm:$0xff]  ;;  %v5859_v20 = vrot.slane %v5211_v12, 3 }
0x1fdf   : > { %v7332_v39 = vsel %vm6975_vm13, %v7331_v0, %v7330_v30  ;;  %v7639_v44 = vperm.slane %v13818_v34, %v13815_v54  ;;  %v6299_v34 = vrot.slane %v5211_v12, 5 }
0x1fe0   : > { %v7312_v15 = vpop.permute.xlu1 %7311  ;;  %v7344_v31 = vsel %vm6971_vm14, %v7343_v43, %v7342_v23 }
0x1fe1   : > { %v7321_v53 = vpop.permute.xlu2 %7320  ;;  %v7345_v35 = vperm.slane %v7312_v15, %v13816_v21  ;;  %v5419_v15 = vrot.slane %v5211_v12, 1 }
0x1fe2   : > { %v7350_v6 = vperm.slane %v7321_v53, %v13815_v54  ;;  %v13819_v53 = vld [vmem:[#allocation103_spill] sm:$0xff] }
0x1fe3   : > { %8546 = vset.pattern.permute.xlu1 %v13813_v59  ;;  %v7346_v5 = vsel %vm6975_vm13, %v7345_v35, %v7344_v31  ;;  %v7638_v23 = vperm.slane %v13819_v53, %v13814_v41  ;;  %v5427_v31 = vadd.f32 %v5419_v15, %v5211_v12 }
0x1fe7   : > { %v7291_v9 = vpop.permute.xlu0 %7290 }
0x1fe8   : > { %v7333_v49 = vperm.slane %v7291_v9, %v13817_v48  ;;  %v7640_v9 = vsel %vm6971_vm14, %v7639_v44, %v7638_v23  ;;  %v13822_v44 = vld [vmem:[#allocation148_spill] sm:$0xff]  ;;  %v6519_v23 = vrot.slane %v5211_v12, 6 }
0x1fe9   : > { %v7315_v13 = vpop.permute.xlu2 %7314 }
0x1fea   : > { %v7347_v42 = vperm.slane %v7315_v13, %v13817_v48  ;;  %v7334_v29 = vsel %vm6979_vm9, %v7333_v49, %v7332_v39 }
0x1feb   : > { %7062 = vperm.xlu1 %8546, %v12705_v18   ;;  %v7657_v1 = vsel %vm1348_vm2, %v7341_v60, %v7334_v29  ;;  %v7661_v28 = vsel %vm7649_vm1, %v7341_v60, %v7334_v29  ;;  %vm7006_vm1 = vcmask 257024  }
0x1fec   : > { %v7348_v14 = vsel %vm6979_vm9, %v7347_v42, %v7346_v5  ;;  %v5639_v5 = vrot.slane %v5211_v12, 2 }
0x1fed   : > { %v12722_v58 = vmul.f32 %v7348_v14, %v6746_v51  ;;  %v7324_v25 = vpop.permute.xlu1 %7323  ;;  %v7658_v37 = vsel %vm1350_vm3, %v7348_v14, %v7657_v1  ;;  %v7662_v11 = vsel %vm7651_vm8, %v7348_v14, %v7661_v28  ;;  %v7641_v51 = vperm.slane %v12696_v16, %v13816_v21 }
0x1fee   : > { %v7352_v38 = vperm.slane %v7324_v25, %v13816_v21  ;;  %v5647_v0 = vadd.f32 %v5639_v5, %v5427_v31  ;;  %v7360_v14 = vmul.f32 %v7334_v29, %v12683_v45  ;;  %v7368_v45 = vrot.slane %v12711_v63, 7 }
0x1fef   : > { %v7370_v29 = vrot.slane %v12722_v58, 6  ;;  %vm7715_vm8 = vcmask 654336  }
0x1ff0   : > { %v5867_v39 = vadd.f32 %v5859_v20, %v5647_v0  ;;  %v7369_v63 = vsel %vm1348_vm2, %v7368_v45, %v7360_v14  ;;  %v7706_v0 = vld [vmem:[%s13824_s21 + $0x28] sm:$0xff] }
0x1ff1   : > { %v7327_v47 = vpop.permute.xlu2 %7326  ;;  %v13827_v45 = vld [vmem:[#allocation84_spill] sm:$0xff] }
0x1ff2   : > { %v7354_v32 = vperm.slane %v7327_v47, %v13817_v48  ;;  %v6079_v47 = vrot.slane %v5211_v12, 4 }
0x1ff3   : > { %8547 = vset.pattern.permute.xlu1 %v13810_v24 }
0x1ff5   : > { %v12733_v4 = vpop.permute.xlu1 %7687 }
0x1ff6   : > { %v7318_v17 = vpop.permute.xlu0 %7317 }
0x1ff7   : > { %v7349_v3 = vperm.slane %v7318_v17, %v13814_v41  ;;  %v7642_v17 = vsel %vm6975_vm13, %v7641_v51, %v7640_v9  ;;  %v7710_v9 = vld [vmem:[%s13824_s21 + $0x48] sm:$0xff] }
0x1ff8   : > { %7725 = vmatpush.msra.mxu0 %v7710_v9 }
0x1ff9   : > { %v7351_v43 = vsel %vm6971_vm14, %v7350_v6, %v7349_v3  ;;  %v13820_v6 = vld [vmem:[#allocation155_spill] sm:$0xff] }
0x1ffa   : > { %v7353_v35 = vsel %vm6975_vm13, %v7352_v38, %v7351_v43  ;;  %v6087_v38 = vadd.f32 %v6079_v47, %v5867_v39  ;;  %v13823_v43 = vld [vmem:[#allocation94_spill] sm:$0xff]  ;;  %v7702_v39 = vld [vmem:[%s13824_s21 + $0x8] sm:$0xff] }
0x1ffb   : > { %7069 = vperm.xlu1 %8547, %v12735_v62   ;;  %v7355_v60 = vsel %vm6979_vm9, %v7354_v32, %v7353_v35  ;;  %v7371_v35 = vsel %vm1350_vm3, %v7370_v29, %v7369_v63  ;;  %v13830_v63 = vld [vmem:[#allocation180_spill] sm:$0xff] }
0x1ffc   : > { %v7659_v13 = vsel %vm1352_vm4, %v7355_v60, %v7658_v37  ;;  %v7663_v42 = vsel %vm7653_vm11, %v7355_v60, %v7662_v11  ;;  %v6307_v53 = vadd.f32 %v6299_v34, %v6087_v38  ;;  %v6739_v11 = vrot.slane %v5211_v12, 7  ;;  %v7709_v12 = vld [vmem:[%s13824_s21 + $0x40] sm:$0xff] }
0x1ffd   : > { %v6967_v25 = vpop.permute.xlu1 %6966  ;;  %v12764_v27 = vsel %vm4712_vm5, %v7659_v13, %v7663_v42  ;;  %7882 = vst.msk [vmem:[%s12773_s26] sm:$0xf] %vm7006_vm1, %v7659_v13  ;;  %v13826_v13 = vmov 0   ;;  %7726 = vmatpush.msra.mxu0 %v7709_v12  ;;  %v8569_v12 = vld [vmem:[#allocation4] ss:$0 sm:$0xff] }
0x1ffe   : > { %v7616_v49 = vpop.permute.xlu0 %7615  ;;  %v7000_v30 = vperm.slane %v6967_v25, %v13817_v48  ;;  %7695 = vrot.lane.b32.xlu2 %v12764_v27, %s13360_s19  ;;  %v6527_v37 = vadd.f32 %v6519_v23, %v6307_v53  ;;  %v7707_v25 = vld [vmem:[%s13824_s21 + $0x30] sm:$0xff] }
0x1fff   : > { %v7643_v16 = vperm.slane %v7616_v49, %v13817_v48  ;;  %v7705_v49 = vld [vmem:[%s13824_s21 + $0x20] sm:$0xff] }
0x2000   : > { %v7001_v1 = vsel %vm6979_vm9, %v7000_v30, %v13820_v6  ;;  %v7704_v30 = vld [vmem:[%s13824_s21 + $0x18] sm:$0xff] }
0x2001   : > { %v7644_v3 = vsel %vm6979_vm9, %v7643_v16, %v7642_v17  ;;  %v7004_v28 = vsel %vm1352_vm4, %v7001_v1, %v13821_v10  ;;  %v7703_v16 = vld [vmem:[%s13824_s21 + $0x10] sm:$0xff]  ;;  %v7701_v17 = vld [vmem:[%s13824_s21] sm:$0xff] }
0x2002   : > { %v7647_v32 = vsel %vm1352_vm4, %v7644_v3, %v13822_v44  ;;  %v7654_v15 = vsel %vm7653_vm11, %v7644_v3, %v13823_v43  ;;  %v7007_v42 = vsel %vm7006_vm1, %v7004_v28, 0.0 }
0x2003   : > { %v12791_v58 = vsel %vm4712_vm5, %v7647_v32, %v7654_v15  ;;  %8548 = vset.pattern.permute.xlu1 %v13811_v19  ;;  %7881 = vst.msk [vmem:[%s12797_s3] sm:$0xf] %vm7006_vm1, %v7647_v32  ;;  %v6747_v19 = vadd.f32 %v6739_v11, %v6527_v37  ;;  %vm7699_vm5 = vcmask 392192  }
0x2004   : > { %7691 = vrot.lane.b32.xlu0 %v12791_v58, %s13354_s9  ;;  %s8184_s9 = sshll.u32 %s9411_s22, 3  ;;  %s13837_s22 = sld [smem:[#allocation30_spill]] }
0x2005   : > { %v7363_v31 = vmul.f32 %v7355_v60, %v6747_v19  ;;  %v7708_v60 = vld [vmem:[%s13824_s21 + $0x38] sm:$0xff]  ;;  %s1082_s11 = scalar_lea.vmem %s13825_s6, %s8184_s9  ;;  %v12820_v14 = vperm.slane %v6747_v19, 0  ;;  %s13829_s6 = sld [smem:[#allocation29_spill]] }
0x2006   : > { %7727 = vmatpush.msra.mxu0 %v7708_v60  ;;  %v7787_v20 = vld [vmem:[%s1082_s11] sm:$0xff]  ;;  %s13832_s11 = sld [smem:[#allocation15_spill]] }
0x2007   : > { %v7372_v5 = vrot.slane %v7363_v31, 5 }
0x2008   : > { %7728 = vmatpush.msra.mxu0 %v7707_v25 }
0x2009   : > { %v12805_v51 = vsel %vm1352_vm4, %v7372_v5, %v7371_v35  ;;  %v13831_v35 = vld [vmem:[#allocation181_spill] sm:$0xff] }
0x200a   : > { %7729 = vmatpush.msra.mxu0 %v7706_v0 }
0x200b   : > { %7075 = vperm.xlu1 %8548, %v12735_v62   ;;  %v8568_v31 = vld [vmem:[%s13829_s6] ss:$0 sm:$0xff]  ;;  %s13864_s6 = sld [smem:[#allocation33_spill]] }
0x200c   : > { %7730 = vmatpush.msra.mxu0 %v7705_v49 }
0x200d   : > { %v7020_v47 = vpop.permute.xlu1 %7019 }
0x200e   : > { %7731 = vmatpush.msra.mxu0 %v7704_v30  ;;  %v7130_v29 = vmul.f32 %v7020_v47, %v13827_v45 }
0x2010   : > { %7732 = vmatpush.msra.mxu0 %v7703_v16 }
0x2012   : > { %7733 = vmatpush.msra.mxu0 %v7702_v39 }
0x2013   : > { %8549 = vset.pattern.permute.xlu1 %v13826_v13 }
0x2014   : > { %7734 = vmatpush.msra.mxu0 %v7701_v17 }
0x201d   : > { %v7026_v28 = vpop.permute.xlu1 %7025 }
0x202d   : > { %v7032_v38 = vpop.permute.xlu1 %7031 }
0x202e   : > { %7008 = vadd.xlane.f32.xlu0 %v7007_v42 }
0x203d   : > { %v12833_v34 = vpop.permute.xlu1 %7037 }
0x2042   : > { %7050 = vperm.xlu0 %8544, %v12705_v18  }
0x204a   : > { %7793 = vrot.lane.b32.xlu0 %v7787_v20, %s13360_s19  ;;  %s13828_s19 = sld [smem:[#allocation28_spill]] }
0x204d   : > { %v7045_v44 = vpop.permute.xlu1 %7044 }
0x2050   : > { %v8567_v37 = vld [vmem:[%s13828_s19] ss:$0 sm:$0xff]  ;;  %s1078_s19 = scalar_lea.vmem %s13832_s11, %s8184_s9  ;;  %s13863_s9 = sld [smem:[#allocation31_spill]] }
0x2051   : > { %s13868_s11 = sld [smem:[#allocation35_spill]] }
0x2052   : > { %7100 = vperm.xlu0 %8544, %v12820_v14  }
0x2058   : > { %v7696_v1 = vpop.permute.xlu2 %7695 }
0x205a   : > { %8555 = vset.pattern.permute.xlu0 %v13826_v13 }
0x205b   : > { %7163 = vperm.xlu0 %8555, %v7130_v29  }
0x205d   : > { %v12837_v43 = vpop.permute.xlu1 %7062 }
0x206d   : > { %v7070_v23 = vpop.permute.xlu1 %7069 }
0x2076   : > { %v7692_v6 = vpop.permute.xlu0 %7691 }
0x2077   : > { %v7698_v3 = vsel %vm1430_vm7, %v12733_v4, %v7692_v6  ;;  %v7138_v4 = vmul.f32 %v7070_v23, %v13831_v35  ;;  %v13835_v23 = vld [vmem:[#allocation194_spill] sm:$0xff] }
0x2078   : > { %v7700_v10 = vsel %vm7699_vm5, %v7698_v3, %v7696_v1  ;;  %v13836_v35 = vld [vmem:[#allocation198_spill] sm:$0xff] }
0x2079   : > { %8277 = vmatmul.msk.f32.vlgmr.msra.gmra.mxu0 %vm7715_vm8, %v7700_v10  ;;  %v7786_v10 = vld [vmem:[%s1078_s19] sm:$0xff]  ;;  %s8179_s19 = sshll.u32 %s12738_s5, 3 }
0x20a1   : > { %v12835_v32 = vpop.xlane.xlu0 %7008 }
0x20b4   : > { %v7051_v15 = vpop.permute.xlu0 %7050 }
0x20b5   : > { %v7135_v53 = vmul.f32 %v7051_v15, %v13830_v63  ;;  %v13833_v15 = vld [vmem:[#allocation197_spill] sm:$0xff] }
0x20b6   : > { %v7132_v63 = vmul.f32 %v7032_v38, %v13833_v15 }
0x20b7   : > { %7178 = vperm.xlu0 %8555, %v7135_v53   ;;  %v13834_v53 = vld [vmem:[#allocation183_spill] sm:$0xff] }
0x20bf   : > { %7187 = vperm.xlu0 %8555, %v7138_v4   ;;  %v13839_v4 = vld [vmem:[#allocation196_spill] sm:$0xff] }
0x20f6   : > { %v7736_v11 = vpop.f32.mrf.mxu0 }
0x20f7   : > { %v7737_v19 = vadd.f32 %v8567_v37, %v7736_v11  ;;  %v7794_v37 = vpop.permute.xlu0 %7793  ;;  %v13840_v11 = vld [vmem:[#allocation98_spill] sm:$0xff] }
0x20f9   : > { %v7739_v5 = vmax.f32 %v7737_v19, 0.0  ;;  %v13841_v19 = vld [vmem:[#allocation199_spill] sm:$0xff] }
0x20fb   : > { %v7744_v42 = vmul.f32 %v8568_v31, %v7739_v5  ;;  %v13842_v5 = vld [vmem:[#allocation127_spill] sm:$0xff] }
0x20fd   : > { %v7745_v9 = vsel %vm1430_vm7, %v7744_v42, 0.0 }
0x20fe   : > { %7746 = vadd.xlane.f32.xlu2 %v7745_v9  ;;  %v7805_v9 = vld [vmem:[%s13837_s22 + $0x38] sm:$0xff] }
0x20ff   : > { %7821 = vmatpush.msra.mxu1 %v7805_v9 }
0x2116   : > { %7056 = vperm.xlu2 %8545, %v12705_v18  }
0x211e   : > { %7081 = vperm.xlu2 %8545, %v12735_v62  }
0x2126   : > { %8550 = vset.pattern.permute.xlu2 %v13826_v13 }
0x2171   : > { %v7747_v60 = vpop.xlane.xlu2 %7746 }
0x2172   : > { %v7752_v25 = vadd.f32 %v8569_v12, %v7747_v60  ;;  %v7804_v12 = vld [vmem:[%s13837_s22 + $0x30] sm:$0xff]  ;;  %v7803_v60 = vld [vmem:[%s13837_s22 + $0x28] sm:$0xff] }
0x2173   : > { %7822 = vmatpush.msra.mxu1 %v7804_v12  ;;  %v13857_v12 = vld [vmem:[#allocation170_spill] sm:$0xff] }
0x2174   : > { %v8278_v0 = vmul.f32 -1.442695, %v7752_v25  ;;  %v7802_v25 = vld [vmem:[%s13837_s22 + $0x20] sm:$0xff] }
0x2175   : > { %7823 = vmatpush.msra.mxu1 %v7803_v60  ;;  %v7404_v60 = vmul.f32 %v13857_v12, %v12548_v46 }
0x2176   : > { %8976 = vpow2.f32 %v8278_v0  ;;  %v7801_v0 = vld [vmem:[%s13837_s22 + $0x18] sm:$0xff] }
0x2177   : > { %7824 = vmatpush.msra.mxu1 %v7802_v25 }
0x2179   : > { %7825 = vmatpush.msra.mxu1 %v7801_v0 }
0x217c   : > { %v8977_v20 = vpop.eup %8976 }
0x217d   : > { %v7756_v49 = vadd.f32 1.0, %v8977_v20  ;;  %v7800_v20 = vld [vmem:[%s13837_s22 + $0x10] sm:$0xff] }
0x217e   : > { %7826 = vmatpush.msra.mxu1 %v7800_v20  ;;  %v13860_v20 = vld [vmem:[#allocation174_spill] sm:$0xff] }
0x217f   : > { %8978 = vrcp.f32 %v7756_v49  ;;  %v7768_v47 = vand.u32 2147483648, %v7756_v49  ;;  %v7766_v18 = vand.u32 2147483647, %v7756_v49  ;;  %vm7762_vm11 = vweird.f32 %v7756_v49 }
0x2181   : > { %v7769_v29 = vor.u32 1.1754944e-38, %v7768_v47  ;;  %vm7767_vm10 = vcmp.eq.f32.partialorder %v7766_v18, 8.507059e+37  ;;  %v13843_v47 = vld [vmem:[#allocation188_spill] sm:$0xff] }
0x2185   : > { %v8979_v30 = vpop.eup %8978 }
0x2186   : > { %v7758_v16 = vmul.f32 %v8979_v30, %v7756_v49  ;;  %vm7763_vm7 = vweird.f32 %v8979_v30  ;;  %v7799_v49 = vld [vmem:[%s13837_s22 + $0x8] sm:$0xff] }
0x2187   : > { %vm7764_vm12 = vmor %vm7762_vm11, %vm7763_vm7  ;;  %7827 = vmatpush.msra.mxu1 %v7799_v49  ;;  %v7407_v49 = vmul.f32 %v13860_v20, %v12500_v33  ;;  %v13865_v20 = vld [vmem:[#allocation164_spill] sm:$0xff] }
0x2188   : > { %v7759_v39 = vsub.f32 1.0, %v7758_v16 }
0x218a   : > { %v7760_v17 = vmul.f32 %v8979_v30, %v7759_v39 }
0x218c   : > { %v7761_v45 = vadd.f32 %v8979_v30, %v7760_v17 }
0x218e   : > { %v7765_v6 = vsel %vm7764_vm12, %v8979_v30, %v7761_v45  ;;  %v7798_v30 = vld [vmem:[%s13837_s22] sm:$0xff] }
0x218f   : > { %v7770_v1 = vsel %vm7767_vm10, %v7769_v29, %v7765_v6  ;;  %7828 = vmatpush.msra.mxu1 %v7798_v30 }
0x2190   : > { %7774 = vperm.xlu1 %8549, %v7770_v1   ;;  %v7778_v3 = vsub.f32 1.0, %v7770_v1 }
0x2192   : > { %7781 = vperm.xlu2 %8550, %v7778_v3  }
0x2198   : > { %8552 = vset.pattern.permute.xlu1 %v13810_v24  ;;  %v7131_v24 = vmul.f32 %v7026_v28, %v13834_v53 }
0x2199   : > { %7789 = vrot.lane.b32.xlu1 %v7786_v10, %s13352_s10  ;;  %s13858_s10 = sld [smem:[#allocation32_spill]] }
0x219a   : > { %8551 = vset.pattern.permute.xlu2 %v13813_v59 }
0x21a1   : > { %7094 = vperm.xlu1 %8552, %v12820_v14  }
0x21a2   : > { %7087 = vperm.xlu2 %8551, %v12735_v62   ;;  %v7134_v62 = vmul.f32 %v7045_v44, %v13835_v23  ;;  %v7076_v44 = vpop.permute.xlu1 %7075  ;;  %v13845_v23 = vld [vmem:[#allocation200_spill] sm:$0xff] }
0x21a3   : > { %v7139_v31 = vmul.f32 %v7076_v44, %v13841_v19 }
0x21a9   : > { %8554 = vset.pattern.permute.xlu1 %v13813_v59  ;;  %v7133_v59 = vmul.f32 %v12833_v34, %v13836_v35 }
0x21aa   : > { %8553 = vset.pattern.permute.xlu2 %v13812_v50  ;;  %v7057_v50 = vpop.permute.xlu2 %7056 }
0x21ab   : > { %v7136_v28 = vmul.f32 %v7057_v50, %v13839_v4 }
0x21b1   : > { %7112 = vperm.xlu1 %8554, %v12820_v14  }
0x21b2   : > { %7106 = vperm.xlu2 %8553, %v12820_v14   ;;  %v13838_v14 = vld [vmem:[#allocation192_spill] sm:$0xff] }
0x21b3   : > { %v7137_v38 = vmul.f32 %v12837_v43, %v13838_v14  ;;  %v7101_v43 = vpop.permute.xlu0 %7100  ;;  %v13848_v14 = vld [vmem:[#allocation138_spill] sm:$0xff] }
0x21b4   : > { %v7143_v42 = vmul.f32 %v7101_v43, %v13842_v5  ;;  %v13855_v43 = vld [vmem:[#allocation168_spill] sm:$0xff] }
0x21b9   : > { %8557 = vset.pattern.permute.xlu1 %v13826_v13 }
0x21ba   : > { %7169 = vperm.xlu1 %8557, %v7132_v63   ;;  %8556 = vset.pattern.permute.xlu2 %v13826_v13  ;;  %v7082_v13 = vpop.permute.xlu2 %7081  ;;  %v13844_v63 = vld [vmem:[#allocation186_spill] sm:$0xff] }
0x21bb   : > { %7166 = vperm.xlu2 %8556, %v7131_v24   ;;  %v7140_v34 = vmul.f32 %v7082_v13, %v13840_v11  ;;  %v13851_v13 = vld [vmem:[#allocation166_spill] sm:$0xff]  ;;  %v13852_v11 = vld [vmem:[#allocation165_spill] sm:$0xff]  ;;  %v7164_v30 = vpop.permute.xlu0 %7163 }
0x21c2   : > { %7175 = vperm.xlu1 %8557, %v7134_v62  }
0x21c3   : > { %7172 = vperm.xlu2 %8556, %v7133_v59   ;;  %v13847_v59 = vld [vmem:[#allocation136_spill] sm:$0xff]  ;;  %v7179_v46 = vpop.permute.xlu0 %7178 }
0x21ca   : > { %7184 = vperm.xlu1 %8557, %v7137_v38   ;;  %v13849_v38 = vld [vmem:[#allocation162_spill] sm:$0xff] }
0x21cb   : > { %7181 = vperm.xlu2 %8556, %v7136_v28   ;;  %v7399_v4 = vmul.f32 %v13849_v38, %v13848_v14  ;;  %v7375_v28 = vsel %vm7006_vm1, %v12805_v51, 0.0  ;;  %v13856_v51 = vld [vmem:[#allocation184_spill] sm:$0xff] }
0x21cc   : > { %v7408_v9 = vmul.f32 %v13856_v51, %v12523_v22  ;;  %v13861_v22 = vld [vmem:[#allocation171_spill] sm:$0xff] }
0x21d2   : > { %7193 = vperm.xlu1 %8557, %v7140_v34   ;;  %v13853_v34 = vld [vmem:[#allocation173_spill] sm:$0xff] }
0x21d3   : > { %7190 = vperm.xlu2 %8556, %v7139_v31   ;;  %v7406_v19 = vmul.f32 %v13853_v34, %v12456_v61  ;;  %v13854_v31 = vld [vmem:[#allocation190_spill] sm:$0xff] }
0x21d4   : > { %v7402_v5 = vmul.f32 %v13855_v43, %v13854_v31 }
0x21da   : > { %7202 = vperm.xlu1 %8557, %v7143_v42  }
0x21ec   : > { %v7782_v16 = vpop.permute.xlu2 %7781 }
0x21ed   : > { %v7784_v29 = vmul.f32 %v7782_v16, %v12764_v27  ;;  %v13846_v27 = vld [vmem:[#allocation154_spill] sm:$0xff] }
0x21ee   : > { %v7398_v50 = vmul.f32 %v13847_v59, %v13846_v27 }
0x21fc   : > { %v7088_v39 = vpop.permute.xlu2 %7087 }
0x21fd   : > { %v7141_v17 = vmul.f32 %v7088_v39, %v13843_v47  ;;  %v7405_v39 = vmul.f32 %v13861_v22, %v12623_v57  ;;  %v13867_v22 = vld [vmem:[#allocation191_spill] sm:$0xff] }
0x21ff   : > { %7196 = vperm.xlu0 %8555, %v7141_v17  }
0x2202   : > { %v7775_v18 = vpop.permute.xlu1 %7774 }
0x2203   : > { %v7777_v45 = vmul.f32 %v7775_v18, %v12791_v58  ;;  %v13862_v18 = vld [vmem:[#allocation178_spill] sm:$0xff] }
0x2205   : > { %v7785_v6 = vadd.f32 %v7784_v29, %v7777_v45  ;;  %v7411_v45 = vmul.f32 %v13862_v18, %v12658_v7  ;;  %v7833_v29 = vld [vmem:[%s13858_s10] sm:$0xff]  ;;  %s12996_s10 = scalar_lea.vmem [#allocation9], %s8179_s19  ;;  %s9048_s19 = scalar_lea.hbm %s13868_s11, 8 }
0x2206   : > { %7857 = vmatpush.msrb.mxu1 %v7833_v29 }
0x220b   : > { %v7790_v1 = vpop.permute.xlu1 %7789 }
0x220c   : > { %v7796_v3 = vsel %vm1101_vm0, %v7785_v6, %v7790_v1  ;;  %v7107_v10 = vpop.permute.xlu2 %7106  ;;  %v7188_v6 = vpop.permute.xlu0 %7187  ;;  %v7413_v1 = vmul.f32 %v13807_v26, %v12686_v2  ;;  %vm7838_vm0 = vcmask 64512  }
0x220d   : > { %v7797_v15 = vsel %vm7699_vm5, %v7796_v3, %v7794_v37  ;;  %v7144_v53 = vmul.f32 %v7107_v10, %v13844_v63  ;;  %v13850_v37 = vld [vmem:[#allocation189_spill] sm:$0xff]  ;;  %v7224_v2 = vperm.slane %v7188_v6, %v13814_v41 }
0x220e   : > { %8279 = vmatmul.msk.f32.vlgmr.msra.gmra.mxu1 %vm1263_vm6, %v7797_v15  ;;  %v7400_v44 = vmul.f32 %v13851_v13, %v13850_v37  ;;  %v7218_v15 = vperm.slane %v7179_v46, %v13815_v54 }
0x220f   : > { %7205 = vperm.xlu0 %8555, %v7144_v53  }
0x2213   : > { %v7095_v24 = vpop.permute.xlu1 %7094 }
0x2214   : > { %v7142_v62 = vmul.f32 %v7095_v24, %v13845_v23  ;;  %v7210_v24 = vperm.slane %v7164_v30, %v13814_v41  ;;  %v13866_v30 = vld [vmem:[#allocation177_spill] sm:$0xff] }
0x2215   : > { %v7167_v42 = vpop.permute.xlu2 %7166 }
0x2216   : > { %7199 = vperm.xlu2 %8556, %v7142_v62   ;;  %v7211_v63 = vperm.slane %v7167_v42, %v13815_v54 }
0x2218   : > { %v7212_v59 = vsel %vm6971_vm14, %v7211_v63, %v7210_v24 }
0x221d   : > { %v7173_v61 = vpop.permute.xlu2 %7172 }
0x221e   : > { %v7215_v37 = vperm.slane %v7173_v61, %v13817_v48 }
0x2223   : > { %v7113_v35 = vpop.permute.xlu1 %7112 }
0x2224   : > { %v7145_v58 = vmul.f32 %v7113_v35, %v12661_v40  ;;  %v7401_v40 = vmul.f32 %v13852_v11, %v12579_v55  ;;  %v13859_v55 = vld [vmem:[#allocation176_spill] sm:$0xff] }
0x2225   : > { %v7409_v0 = vmul.f32 %v13859_v55, %v12675_v36  ;;  %v7182_v47 = vpop.permute.xlu2 %7181  ;;  %v8570_v55 = vld [vmem:[%s13863_s9] ss:$0 sm:$0xff]  ;;  %s7891_s9 = sand.u32 1, %s9377_s0  }
0x2226   : > { %7208 = vperm.xlu2 %8556, %v7145_v58   ;;  %v7220_v35 = vperm.slane %v7182_v47, %v13816_v21  ;;  %s13004_s15 = scalar_lea.sflag [#allocation8], %s7891_s9 }
0x222c   : > { %v7170_v25 = vpop.permute.xlu1 %7169 }
0x222d   : > { %v7191_v36 = vpop.permute.xlu2 %7190  ;;  %v7213_v7 = vperm.slane %v7170_v25, %v13816_v21 }
0x222e   : > { %7431 = vperm.xlu2 %8556, %v7398_v50   ;;  %v7225_v53 = vperm.slane %v7191_v36, %v13815_v54 }
0x222f   : > { %v7214_v14 = vsel %vm6975_vm13, %v7213_v7, %v7212_v59 }
0x2230   : > { %v7226_v38 = vsel %vm6971_vm14, %v7225_v53, %v7224_v2  ;;  %v7216_v31 = vsel %vm6979_vm9, %v7215_v37, %v7214_v14 }
0x2234   : > { %v7176_v16 = vpop.permute.xlu1 %7175 }
0x2235   : > { %v7217_v57 = vperm.slane %v7176_v16, %v13814_v41  ;;  %v7410_v16 = vmul.f32 %v13866_v30, %v12647_v56 }
0x2236   : > { %7434 = vperm.xlu2 %8556, %v7399_v4  }
0x2237   : > { %v7219_v23 = vsel %vm6971_vm14, %v7218_v15, %v7217_v57 }
0x2238   : > { %v7221_v4 = vsel %vm6975_vm13, %v7220_v35, %v7219_v23 }
0x2239   : > { %7376 = vadd.xlane.f32.xlu0 %v7375_v28 }
0x223c   : > { %v7185_v17 = vpop.permute.xlu1 %7184 }
0x223d   : > { %v7222_v62 = vperm.slane %v7185_v17, %v13817_v48 }
0x223e   : > { %7437 = vperm.xlu2 %8556, %v7400_v44  }
0x223f   : > { %v7223_v13 = vsel %vm6979_vm9, %v7222_v62, %v7221_v4 }
0x2240   : > { %v7238_v51 = vsel %vm1348_vm2, %v7223_v13, %v7216_v31 }
0x2244   : > { %v7194_v33 = vpop.permute.xlu1 %7193 }
0x2245   : > { %v7227_v26 = vperm.slane %v7194_v33, %v13816_v21  ;;  %v8571_v33 = vld [vmem:[%s13864_s6] ss:$0 sm:$0xff]  ;;  %s8285_s6 = sshll.u32 %s9377_s0, 2 }
0x2246   : > { %7440 = vperm.xlu2 %8556, %v7401_v40   ;;  %s7925_s8 = scalar_lea.hbm %s13868_s11, %s8285_s6 }
0x2247   : > { %v7228_v44 = vsel %vm6975_vm13, %v7227_v26, %v7226_v38  ;;  %s7929_s13 = sshll.u32 %s7925_s8, 4  ;;  %s7930_s13 = int_to_ptr.hbm [resolvable:$true] %s7929_s13 }
0x2248   : > { %s9042_s21 = sshra.s32 %s7930_s13, 4  ;;  %s9043_s21 = int_to_ptr.hbm [resolvable:$true] %s9042_s21 }
0x2249   : > { %s9044_s22 = scalar_lea.hbm %s9043_s21, 4  ;;  %p9049_p0 = scmp.lt.s32.totalorder %s9043_s21, %s13868_s11 }
0x224a   : > { %p9045_p11 = scmp.ne.s32.totalorder %s9043_s21, %s9044_s22  ;;  %p9050_p1 = scmp.lt.s32.totalorder %s9048_s19, %s9044_s22 }
0x224c   : > { %v7203_v58 = vpop.permute.xlu1 %7202  ;;  %p9046_p12 = pnand %p9045_p11, %p9396_p5  ;;  %p9051_p2 = por %p9050_p1, %p9049_p0 }
0x224d   : > { %7455 = vperm.xlu0 %8555, %v7406_v19   ;;  %v7232_v11 = vperm.slane %v7203_v58, %v13815_v54 }
0x224e   : > { %7443 = vperm.xlu2 %8556, %v7402_v5   ;;  %p9047_p13 = pneg %p9046_p12 }
0x2250   : > { %p9052_p3 = pnand %p9051_p2, %p9047_p13 }
0x2255   : > { %7461 = vperm.xlu0 %8555, %v7408_v9  }
0x2256   : > { %7449 = vperm.xlu2 %8556, %v7404_v60  }
0x225d   : > { %7464 = vperm.xlu0 %8555, %v7409_v0  }
0x225e   : > { %7458 = vperm.xlu2 %8556, %v7407_v49   ;;  %v7403_v49 = vmul.f32 %v13865_v20, %v12481_v52 }
0x2266   : > { %7452 = vperm.xlu2 %8556, %v7405_v39   ;;  %v7412_v39 = vmul.f32 %v13867_v22, %v12604_v8 }
0x226e   : > { %7470 = vperm.xlu2 %8556, %v7411_v45  }
0x2270   : > { %v7200_v3 = vpop.permute.xlu2 %7199 }
0x2271   : > { %v7197_v10 = vpop.permute.xlu0 %7196  ;;  %v7231_v50 = vperm.slane %v7200_v3, %v13814_v41 }
0x2272   : > { %v7229_v27 = vperm.slane %v7197_v10, %v13817_v48 }
0x2273   : > { %v7233_v43 = vsel %vm6971_vm14, %v7232_v11, %v7231_v50 }
0x2274   : > { %v7230_v34 = vsel %vm6979_vm9, %v7229_v27, %v7228_v44 }
0x2275   : > { %v7239_v12 = vsel %vm1350_vm3, %v7230_v34, %v7238_v51 }
0x2276   : > { %7476 = vperm.xlu2 %8556, %v7413_v1  }
0x2280   : > { %v7209_v28 = vpop.permute.xlu2 %7208 }
0x2281   : > { %v7206_v40 = vpop.permute.xlu0 %7205  ;;  %v7236_v5 = vperm.slane %v7209_v28, %v13817_v48 }
0x2282   : > { %v7234_v19 = vperm.slane %v7206_v40, %v13816_v21 }
0x2284   : > { %v7235_v42 = vsel %vm6975_vm13, %v7234_v19, %v7233_v43 }
0x2285   : > { %v7237_v9 = vsel %vm6979_vm9, %v7236_v5, %v7235_v42 }
0x2286   : > { %v7240_v60 = vsel %vm1352_vm4, %v7237_v9, %v7239_v12 }
0x2287   : > { %v7242_v25 = vsel %vm7006_vm1, %v7240_v60, 0.0 }
0x2288   : > { %7243 = vadd.xlane.f32.xlu1 %v7242_v25  ;;  %v7432_v47 = vpop.permute.xlu2 %7431 }
0x2289   : > { %v7478_v59 = vperm.slane %v7432_v47, %v13814_v41 }
0x228b   : > { %v7830_v0 = vpop.f32.mrf.mxu1 }
0x228c   : > { %v7831_v61 = vadd.f32 %v8570_v55, %v7830_v0 }
0x228e   : > { %8280 = vmatmul.msk.f32.vlgmr.msrb.gmra.mxu1 %vm7838_vm0, %v7831_v61 }
0x2290   : > { %v7435_v46 = vpop.permute.xlu2 %7434 }
0x2291   : > { %v7479_v35 = vperm.slane %v7435_v46, %v13815_v54 }
0x2293   : > { %v7480_v28 = vsel %vm6971_vm14, %v7479_v35, %v7478_v59 }
0x2298   : > { %v7438_v17 = vpop.permute.xlu2 %7437 }
0x2299   : > { %v7481_v58 = vperm.slane %v7438_v17, %v13816_v21 }
0x229b   : > { %v7482_v11 = vsel %vm6975_vm13, %v7481_v58, %v7480_v28 }
0x22a0   : > { %v7441_v18 = vpop.permute.xlu2 %7440 }
0x22a1   : > { %7446 = vperm.xlu1 %8557, %v7403_v49   ;;  %v7483_v50 = vperm.slane %v7441_v18, %v13817_v48 }
0x22a3   : > { %v7484_v31 = vsel %vm6979_vm9, %v7483_v50, %v7482_v11 }
0x22a8   : > { %v7444_v45 = vpop.permute.xlu2 %7443 }
0x22a9   : > { %7467 = vperm.xlu1 %8557, %v7410_v16   ;;  %v7485_v24 = vperm.slane %v7444_v45, %v13814_v41 }
0x22ac   : > { %v12958_v36 = vpop.xlane.xlu0 %7376 }
0x22b0   : > { %v7450_v29 = vpop.permute.xlu2 %7449 }
0x22b1   : > { %7473 = vperm.xlu1 %8557, %v7412_v39   ;;  %v7488_v2 = vperm.slane %v7450_v29, %v13816_v21 }
0x22b8   : > { %v7459_v6 = vpop.permute.xlu2 %7458 }
0x22b9   : > { %v7493_v40 = vperm.slane %v7459_v6, %v13815_v54 }
0x22bf   : > { %v7456_v52 = vpop.permute.xlu0 %7455 }
0x22c0   : > { %v7453_v57 = vpop.permute.xlu2 %7452  ;;  %v7492_v4 = vperm.slane %v7456_v52, %v13814_v41 }
0x22c1   : > { %v7490_v14 = vperm.slane %v7453_v57, %v13817_v48 }
0x22c2   : > { %v7494_v42 = vsel %vm6971_vm14, %v7493_v40, %v7492_v4 }
0x22c7   : > { %v7462_v15 = vpop.permute.xlu0 %7461 }
0x22c8   : > { %v7471_v53 = vpop.permute.xlu2 %7470  ;;  %v7495_v37 = vperm.slane %v7462_v15, %v13816_v21 }
0x22c9   : > { %v7500_v43 = vperm.slane %v7471_v53, %v13815_v54 }
0x22ca   : > { %v7496_v12 = vsel %vm6975_vm13, %v7495_v37, %v7494_v42 }
0x22cf   : > { %v7465_v38 = vpop.permute.xlu0 %7464 }
0x22d0   : > { %v7497_v34 = vperm.slane %v7465_v38, %v13817_v48  ;;  %v7477_v19 = vpop.permute.xlu2 %7476 }
0x22d1   : > { %v7504_v60 = vperm.slane %v7477_v19, %v13817_v48 }
0x22d2   : > { %v7498_v55 = vsel %vm6979_vm9, %v7497_v34, %v7496_v12 }
0x22fb   : > { %v12961_v1 = vpop.xlane.xlu1 %7243 }
0x230b   : > { %v7859_v3 = vpop.f32.mrf.mxu1 }
0x230c   : > { %v7860_v56 = vadd.f32 %v8571_v33, %v7859_v3 }
0x230e   : > { %v8281_v10 = vmul.f32 -1.442695, %v7860_v56 }
0x2310   : > { %8980 = vpow2.f32 %v8281_v10 }
0x2313   : > { %v7447_v8 = vpop.permute.xlu1 %7446 }
0x2314   : > { %v7486_v63 = vperm.slane %v7447_v8, %v13815_v54 }
0x2316   : > { %v8981_v7 = vpop.eup %8980  ;;  %v7487_v62 = vsel %vm6971_vm14, %v7486_v63, %v7485_v24 }
0x2317   : > { %v7865_v23 = vadd.f32 1.0, %v8981_v7  ;;  %v7489_v27 = vsel %vm6975_vm13, %v7488_v2, %v7487_v62 }
0x2318   : > { %v7491_v44 = vsel %vm6979_vm9, %v7490_v14, %v7489_v27 }
0x2319   : > { %8982 = vrcp.f32 %v7865_v23  ;;  %v7877_v48 = vand.u32 2147483648, %v7865_v23  ;;  %v7875_v22 = vand.u32 2147483647, %v7865_v23  ;;  %vm7871_vm6 = vweird.f32 %v7865_v23 }
0x231b   : > { %v7468_v26 = vpop.permute.xlu1 %7467  ;;  %v7878_v47 = vor.u32 1.1754944e-38, %v7877_v48 }
0x231c   : > { %v7499_v13 = vperm.slane %v7468_v26, %v13814_v41  ;;  %v7506_v41 = vsel %vm1348_vm2, %v7491_v44, %v7484_v31 }
0x231d   : > { %v7507_v61 = vsel %vm1350_vm3, %v7498_v55, %v7506_v41  ;;  %vm7876_vm3 = vcmp.eq.f32.partialorder %v7875_v22, 8.507059e+37 }
0x231e   : > { %v7501_v25 = vsel %vm6971_vm14, %v7500_v43, %v7499_v13 }
0x231f   : > { %v8983_v9 = vpop.eup %8982 }
0x2320   : > { %v7867_v20 = vmul.f32 %v8983_v9, %v7865_v23  ;;  %vm7872_vm2 = vweird.f32 %v8983_v9 }
0x2321   : > { %vm7873_vm14 = vmor %vm7871_vm6, %vm7872_vm2 }
0x2322   : > { %v7868_v30 = vsub.f32 1.0, %v7867_v20 }
0x2323   : > { %v7474_v5 = vpop.permute.xlu1 %7473 }
0x2324   : > { %v7502_v51 = vperm.slane %v7474_v5, %v13816_v21  ;;  %v7869_v16 = vmul.f32 %v8983_v9, %v7868_v30 }
0x2326   : > { %v7503_v0 = vsel %vm6975_vm13, %v7502_v51, %v7501_v25  ;;  %v7870_v39 = vadd.f32 %v8983_v9, %v7869_v16 }
0x2327   : > { %v7505_v54 = vsel %vm6979_vm9, %v7504_v60, %v7503_v0 }
0x2328   : > { %v7508_v21 = vsel %vm1352_vm4, %v7505_v54, %v7507_v61  ;;  %v7874_v46 = vsel %vm7873_vm14, %v8983_v9, %v7870_v39 }
0x2329   : > { %v7510_v49 = vsel %vm7006_vm1, %v7508_v21, 0.0  ;;  %v7879_v17 = vsel %vm7876_vm3, %v7878_v47, %v7874_v46 }
0x232a   : > { %7511 = vadd.xlane.f32.xlu0 %v7510_v49  ;;  %7885 = vst.msk [vmem:[%s12996_s10] sm:$0xff] %vm7838_vm0, %v7879_v17 }
0x232b   : > { %9055 = shalt.err (!%p9052_p3)
}
0x232c   : > { %s13869_s8 = sld [smem:[#allocation34_spill]]  ;;  %s7913_s9 = sshll.u32 %s12797_s3, 4  ;;  %s7914_s9 = int_to_ptr.vmem [resolvable:$true] %s7913_s9 }
0x232d   : > { %8292 = dma.vmem_to_hbm [thread:$0]  (%p9396_p5), %s7928_s12, 64, %s7930_s13, %s13004_s15  }
0x232e   : > { %s7887_s21 = scalar_lea.sflag [#allocation6], %s12738_s5 }
0x2332   : > { %s7911_s26 = scalar_lea.hbm %s13869_s8, %s8285_s6  ;;  %s9076_s11 = scalar_lea.hbm %s13869_s8, 8 }
0x2333   : > { %s7915_s23 = sshll.u32 %s7911_s26, 4  ;;  %s7916_s23 = int_to_ptr.hbm [resolvable:$true] %s7915_s23 }
0x2334   : > { %s9070_s22 = sshra.s32 %s7916_s23, 4  ;;  %s9071_s22 = int_to_ptr.hbm [resolvable:$true] %s9070_s22 }
0x2335   : > { %s9072_s19 = scalar_lea.hbm %s9071_s22, 4  ;;  %p9077_p9 = scmp.lt.s32.totalorder %s9071_s22, %s13869_s8 }
0x2336   : > { %p9073_p4 = scmp.ne.s32.totalorder %s9071_s22, %s9072_s19  ;;  %p9078_p10 = scmp.lt.s32.totalorder %s9076_s11, %s9072_s19 }
0x2338   : > { %p9074_p7 = pnand %p9073_p4, %p9396_p5  ;;  %p9079_p11 = por %p9078_p10, %p9077_p9 }
0x233a   : > { %p9075_p8 = pneg %p9074_p7 }
0x233c   : > { %p9080_p12 = pnand %p9079_p11, %p9075_p8 }
0x233e   : > { %9083 = shalt.err (!%p9080_p12)
}
0x233f   : > { %8291 = dma.vmem_to_hbm [thread:$0]  (%p9396_p5), %s7914_s9, 64, %s7916_s23, %s7887_s21  }
0x2340   : > { %s8287_s13 = sshll.u32 %s9377_s0, 3  ;;  %s7944_s12 = sshll.u32 %s12996_s10, 4  ;;  %s7945_s12 = int_to_ptr.vmem [resolvable:$true] %s7944_s12 }
0x2341   : > { %s7942_s3 = scalar_lea.hbm %s9348_s27, %s8287_s13  ;;  %s9104_s26 = scalar_lea.hbm %s9348_s27, 16 }
0x2342   : > { %s7946_s5 = sshll.u32 %s7942_s3, 4  ;;  %s7947_s5 = int_to_ptr.hbm [resolvable:$true] %s7946_s5 }
0x2343   : > { %s9098_s6 = sshra.s32 %s7947_s5, 4  ;;  %s9099_s6 = int_to_ptr.hbm [resolvable:$true] %s9098_s6 }
0x2344   : > { %s9100_s11 = scalar_lea.hbm %s9099_s6, 8  ;;  %p9105_p2 = scmp.lt.s32.totalorder %s9099_s6, %s9348_s27 }
0x2345   : > { %p9101_p13 = scmp.ne.s32.totalorder %s9099_s6, %s9100_s11  ;;  %p9106_p3 = scmp.lt.s32.totalorder %s9104_s26, %s9100_s11 }
0x2347   : > { %p9102_p0 = pnand %p9101_p13, %p9396_p5  ;;  %p9107_p4 = por %p9106_p3, %p9105_p2 }
0x2349   : > { %p9103_p1 = pneg %p9102_p0 }
0x234b   : > { %p9108_p7 = pnand %p9107_p4, %p9103_p1 }
0x234d   : > { %9111 = shalt.err (!%p9108_p7)
}
0x234e   : > { %8293 = dma.vmem_to_hbm [thread:$0]  (%p9396_p5), %s7945_s12, 128, %s7947_s5, %s13004_s15   ;;  %v13034_v18 = vsub.f32 %v12835_v32, %v12961_v1  ;;  %v13038_v45 = vsub.f32 %v12958_v36, %v12961_v1  ;;  %vm7883_vm11 = vcmask 3072  }
0x234f   : > { %s1086_s15 = scalar_lea.vmem %s9343_s4, %s9519_s17 }
0x2350   : > { %v7249_v29 = vand.u32 2147483647, %v13034_v18  ;;  %v7382_v6 = vand.u32 2147483647, %v13038_v45  ;;  %v7246_v5 = vmax.f32 %v13034_v18, 0.0  ;;  %v7379_v42 = vmax.f32 %v13038_v45, 0.0 }
0x2351   : > { %vm7247_vm15 = vcmp.ne.f32.partialorder %v13034_v18, %v13034_v18  ;;  %vm7380_vm9 = vcmp.ne.f32.partialorder %v13038_v45, %v13038_v45 }
0x2352   : > { %v7250_v33 = vsub.f32 0.0, %v7249_v29  ;;  %v7383_v52 = vsub.f32 0.0, %v7382_v6 }
0x2354   : > { %v7251_v3 = vmul.f32 1.442695, %v7250_v33  ;;  %v7384_v56 = vmul.f32 1.442695, %v7383_v52 }
0x2356   : > { %8984 = vpow2.f32 %v7251_v3 }
0x2357   : > { %8986 = vpow2.f32 %v7384_v56 }
0x235c   : > { %v8985_v57 = vpop.eup %8984 }
0x235d   : > { %v8987_v10 = vpop.eup %8986  ;;  %v7253_v8 = vadd.f32 1.0, %v8985_v57  ;;  %v7256_v2 = vmul.f32 -0.5, %v8985_v57 }
0x235e   : > { %v7386_v63 = vadd.f32 1.0, %v8987_v10  ;;  %v7389_v35 = vmul.f32 -0.5, %v8987_v10  ;;  %v7392_v14 = vand.u32 2147483647, %v8987_v10 }
0x235f   : > { %8988 = vlog2.f32 %v7253_v8  ;;  %v7257_v59 = vadd.f32 1.0, %v7256_v2 }
0x2360   : > { %8990 = vlog2.f32 %v7386_v63  ;;  %v7390_v50 = vadd.f32 1.0, %v7389_v35  ;;  %vm7393_vm13 = vcmp.lt.f32.partialorder %v7392_v14, 0.0004427343 }
0x2361   : > { %v7258_v13 = vmul.f32 %v8985_v57, %v7257_v59 }
0x2362   : > { %v7391_v44 = vmul.f32 %v8987_v10, %v7390_v50 }
0x2365   : > { %v8989_v27 = vpop.eup %8988 }
0x2366   : > { %v7255_v38 = vmul.f32 0.6931472, %v8989_v27 }
0x239d   : > { %v7512_v15 = vpop.xlane.xlu0 %7511 }
0x239e   : > { %v13043_v7 = vsub.f32 %v12958_v36, %v7512_v15  ;;  %v13046_v1 = vsub.f32 %v12835_v32, %v7512_v15  ;;  %v8991_v36 = vpop.eup %8990  ;;  %v7259_v32 = vand.u32 2147483647, %v8985_v57 }
0x239f   : > { %v7388_v4 = vmul.f32 0.6931472, %v8991_v36 }
0x23a0   : > { %v7517_v53 = vand.u32 2147483647, %v13043_v7  ;;  %v7537_v24 = vand.u32 2147483647, %v13046_v1  ;;  %vm7260_vm4 = vcmp.lt.f32.partialorder %v7259_v32, 0.0004427343  ;;  %vm7515_vm8 = vcmp.ne.f32.partialorder %v13043_v7, %v13043_v7 }
0x23a1   : > { %v7261_v19 = vsel %vm7260_vm4, %v7258_v13, %v7255_v38  ;;  %v7394_v31 = vsel %vm7393_vm13, %v7391_v44, %v7388_v4  ;;  %v7514_v49 = vmax.f32 %v13043_v7, 0.0  ;;  %v7534_v22 = vmax.f32 %v13046_v1, 0.0 }
0x23a2   : > { %v7518_v23 = vsub.f32 0.0, %v7517_v53  ;;  %v7538_v62 = vsub.f32 0.0, %v7537_v24  ;;  %v7262_v51 = vadd.f32 %v7261_v19, %v7246_v5  ;;  %v7395_v41 = vadd.f32 %v7394_v31, %v7379_v42 }
0x23a3   : > { %vm7535_vm7 = vcmp.ne.f32.partialorder %v13046_v1, %v13046_v1 }
0x23a4   : > { %v7519_v26 = vmul.f32 1.442695, %v7518_v23  ;;  %v7539_v58 = vmul.f32 1.442695, %v7538_v62  ;;  %v7263_v54 = vsel %vm7247_vm15, %v13034_v18, %v7262_v51  ;;  %v7396_v61 = vsel %vm7380_vm9, %v13038_v45, %v7395_v41 }
0x23a5   : > { %v7397_v46 = vadd.f32 %v7396_v61, %v7263_v54 }
0x23a6   : > { %8992 = vpow2.f32 %v7519_v26 }
0x23a7   : > { %8994 = vpow2.f32 %v7539_v58 }
0x23ac   : > { %v8993_v28 = vpop.eup %8992 }
0x23ad   : > { %v8995_v37 = vpop.eup %8994  ;;  %v7521_v11 = vadd.f32 1.0, %v8993_v28  ;;  %v7524_v40 = vmul.f32 -0.5, %v8993_v28  ;;  %v7527_v12 = vand.u32 2147483647, %v8993_v28 }
0x23ae   : > { %v7541_v34 = vadd.f32 1.0, %v8995_v37  ;;  %v7544_v43 = vmul.f32 -0.5, %v8995_v37  ;;  %v7547_v25 = vand.u32 2147483647, %v8995_v37 }
0x23af   : > { %8996 = vlog2.f32 %v7521_v11  ;;  %v7525_v9 = vadd.f32 1.0, %v7524_v40  ;;  %vm7528_vm1 = vcmp.lt.f32.partialorder %v7527_v12, 0.0004427343 }
0x23b0   : > { %8998 = vlog2.f32 %v7541_v34  ;;  %v7545_v60 = vadd.f32 1.0, %v7544_v43  ;;  %vm7548_vm5 = vcmp.lt.f32.partialorder %v7547_v25, 0.0004427343 }
0x23b1   : > { %v7526_v21 = vmul.f32 %v8993_v28, %v7525_v9 }
0x23b2   : > { %v7546_v48 = vmul.f32 %v8995_v37, %v7545_v60 }
0x23b5   : > { %v8997_v55 = vpop.eup %8996 }
0x23b6   : > { %v8999_v0 = vpop.eup %8998  ;;  %v7523_v20 = vmul.f32 0.6931472, %v8997_v55 }
0x23b7   : > { %v7543_v30 = vmul.f32 0.6931472, %v8999_v0 }
0x23b8   : > { %v7529_v16 = vsel %vm7528_vm1, %v7526_v21, %v7523_v20 }
0x23b9   : > { %v7530_v39 = vadd.f32 %v7529_v16, %v7514_v49  ;;  %v7549_v47 = vsel %vm7548_vm5, %v7546_v48, %v7543_v30 }
0x23ba   : > { %v7550_v17 = vadd.f32 %v7549_v47, %v7534_v22 }
0x23bb   : > { %v7531_v18 = vsel %vm7515_vm8, %v13043_v7, %v7530_v39 }
0x23bc   : > { %v7532_v45 = vadd.f32 %v7531_v18, %v7397_v46  ;;  %v7551_v29 = vsel %vm7535_vm7, %v13046_v1, %v7550_v17 }
0x23be   : > { %v7552_v6 = vadd.f32 %v7551_v29, %v7532_v45 }
0x23c0   : > { %7884 = vst.msk [vmem:[%s1086_s15] sm:$0xf] %vm7883_vm11, %v7552_v6 }
0x23c1 PF: > { %p8307_p5 = scmp.ge.s32.totalorder %s9150_s7, 2  ;;  %s7958_s23 = sand.u32 1, %s9138_s28  }
0x23c2   : > { %s7959_s0 = scalar_lea.sflag [#allocation6], %s7958_s23 }
0x23c3   : > { %p8298_p8 = pnand %p8307_p5, %p9400_p6 }
0x23c5   : > { %p8299_p9 = pneg %p8298_p8 }
0x23c7   : > { %9129 = dma.done.wait (%p8299_p9), %s7959_s0, 64  }
0x23c8   : > { %9131 = vsyncadd (%p8299_p9), %s7959_s0, 4294967232  ;;  %s13870_s16 = sadd.s32 4294967294, %s9150_s7  }
0x23c9   : > { %s7968_s17 = sand.u32 1, %s13870_s16  }
0x23ca   : > { %s7969_s10 = scalar_lea.sflag [#allocation8], %s7968_s17 }
0x23cb   : > { %9133 = dma.done.wait (%p8299_p9), %s7969_s10, 192  }
0x23cc   : > { %9135 = vsyncadd (%p8299_p9), %s7969_s10, 4294967104  ;;  %p85_p10 = scmp.ge.s32.totalorder %s9381_s20, 4   ;;  %s13871_s28 = smov %s9142_s1 }
0x23cd   : > { %s13872_s1 = smov %s9146_s2  ;;  %s13873_s2 = smov %s9394_s14 }
0x23ce   : > { %s13874_s7 = smov %s9381_s20  ;;  %87 = sbr.rel (!%p85_p10) target bundleno = 75 (0x4b), region = 259 }
0x23d3   :  { %7992 = vsyncpa [#allocation6], 1 }
0x23d4   :  { %7994 = vsyncpa [#allocation6 + $0x1], 1 }
0x23d5   :  { %7995 = vsyncpa [#allocation8], 1 }
0x23d6   :  { %7997 = vsyncpa [#allocation8 + $0x1], 1 }

</bundles_post_ra>
